<compile_context>
chip_gen: v7x
topology: tpu7x:2x2x1
jax: 0.10.0
libtpu: 0.0.40
codegen_flags: <defaults>
</compile_context>

<pallas_src>
from math import sqrt

import jax
import jax.numpy as jnp
from jax import lax
from jax.experimental import pallas as pl
from jax.experimental.pallas import tpu as pltpu

# Fixed geometry of BaseLine1 (MNIST): 28x28 -> pool -> 14x14 -> pool -> 7x7.
K1 = 128            # conv1 contraction dim (25 real taps, zero padded)
C1 = 128            # conv1 out channels (16 real, zero padded)
C2 = 128            # conv2 out channels (32 real, zero padded)
HP, WP = 18, 24     # padded 14x14 h1 raster (2-halo; width padded, WP mult of 8)
NROW = 440          # flattened padded raster rows (18*24 = 432, padded to 440)
MW = 14 * WP        # 336: conv2 "wide" output rows (h in [0,14), w' in [0,24))
NFC = 7 * 7 * C2    # 6272: flattened FC input (flatten perm folded into weights)


# ----------------------------- Pallas kernels ------------------------------ #

def fused_conv_kernel(p1_ref, mask_ref, w1_ref, b1_ref, w2_ref, b2_ref,
                      o_ref, h1_ref, acc_ref):
    # p1_ref : (1, 4, NROW, K1) bf16  conv1 im2col patches, grouped by pooling
    #                                 quadrant, rows on the padded h1 raster
    #                                 r = (h+2)*WP + (w+2)
    # mask_ref: (NROW, 1) f32         1.0 on real h1 rows, 0.0 on the halo
    # w1_ref : (K1, C1)  bf16         conv1 weights (zero padded)
    # b1_ref : (1, C1)   f32
    # w2_ref : (25, C1, C2) bf16      conv2 weights per 5x5 tap (zero padded)
    # b2_ref : (1, C2)   f32
    # o_ref  : (1, 7, 7, C2) bf16     pooled conv2 features (lane-dense)
    # h1_ref : VMEM (NROW, C1) f32    pooled conv1 activations on padded raster
    # acc_ref: VMEM (MW, C2)  f32     conv2 accumulator (wide raster, w' < 14 valid)

    # ---- conv1 GEMM + ReLU + 2x2 max-pool (max over the 4 quadrant GEMMs) ----
    w1 = w1_ref[...]
    h1_ref[...] = jnp.dot(p1_ref[0, 0], w1, preferred_element_type=jnp.float32)
    for q in range(1, 4):
        h1_ref[...] = jnp.maximum(
            h1_ref[...],
            jnp.dot(p1_ref[0, q], w1, preferred_element_type=jnp.float32))
    # bias + ReLU commute with the quadrant max; mask zeroes the halo rows.
    h1_ref[...] = jnp.maximum(h1_ref[...] + b1_ref[...], 0.0) * mask_ref[...]

    # ---- conv2: 25 shifted contiguous row-slices of h1, accumulated GEMMs ----
    for k in range(25):
        kh, kw = k // 5, k % 5
        lhs = h1_ref[pl.ds(kh * WP + kw, MW), :].astype(jnp.bfloat16)
        contrib = jnp.dot(lhs, w2_ref[k], preferred_element_type=jnp.float32)
        if k == 0:
            acc_ref[...] = contrib
        else:
            acc_ref[...] = acc_ref[...] + contrib

    # ---- 2x2 max-pool (strided row reads) + bias + ReLU, lane-dense store ----
    b2 = b2_ref[...]
    for h2 in range(7):
        best = None
        for dh in range(2):
            for dw in range(2):
                v = acc_ref[pl.ds((2 * h2 + dh) * WP + dw, 7, 2), :]   # (7, C2)
                best = v if best is None else jnp.maximum(best, v)
        o_ref[0, h2] = jnp.maximum(best + b2, 0.0).astype(o_ref.dtype)


def fused_conv(p1, mask, w1p, b1p, w2p, b2p):
    B = p1.shape[0]
    return pl.pallas_call(
        fused_conv_kernel,
        out_shape=jax.ShapeDtypeStruct((B, 7, 7, C2), jnp.bfloat16),
        grid=(B,),
        in_specs=[
            pl.BlockSpec((1, 4, NROW, K1), lambda b: (b, 0, 0, 0)),
            pl.BlockSpec((NROW, 1), lambda b: (0, 0)),
            pl.BlockSpec((K1, C1), lambda b: (0, 0)),
            pl.BlockSpec((1, C1), lambda b: (0, 0)),
            pl.BlockSpec((25, C1, C2), lambda b: (0, 0, 0)),
            pl.BlockSpec((1, C2), lambda b: (0, 0)),
        ],
        out_specs=pl.BlockSpec((1, 7, 7, C2), lambda b: (b, 0, 0, 0)),
        scratch_shapes=[
            pltpu.VMEM((NROW, C1), jnp.float32),
            pltpu.VMEM((MW, C2), jnp.float32),
        ],
        compiler_params=pltpu.CompilerParams(dimension_semantics=("parallel",)),
    )(p1, mask, w1p, b1p, w2p, b2p)


def fc_kernel(x_ref, w_ref, b_ref, o_ref):
    o_ref[...] = (jnp.dot(x_ref[...], w_ref[...],
                          preferred_element_type=jnp.float32)
                  + b_ref[...]).astype(o_ref.dtype)


def fc(x, w_perm, bias):
    B, D = x.shape
    N = w_perm.shape[1]
    return pl.pallas_call(
        fc_kernel,
        out_shape=jax.ShapeDtypeStruct((B, N), jnp.float32),
        grid=(1,),
        in_specs=[
            pl.BlockSpec((B, D), lambda i: (0, 0)),
            pl.BlockSpec((D, N), lambda i: (0, 0)),
            pl.BlockSpec((1, N), lambda i: (0, 0)),
        ],
        out_specs=pl.BlockSpec((B, N), lambda i: (0, 0)),
        compiler_params=pltpu.CompilerParams(dimension_semantics=("arbitrary",)),
    )(x, w_perm, bias)


# ------------------------------- JAX glue ---------------------------------- #

def build_conv1_patches(x_img):
    """(B,28,28) f32 -> (B,4,NROW,K1) bf16 quadrant-grouped, raster-embedded patches."""
    B = x_img.shape[0]
    xp = jnp.pad(x_img, ((0, 0), (2, 2), (2, 2)))               # (B,32,32)
    cols = [xp[:, kh:kh + 28, kw:kw + 28]
            for kh in range(5) for kw in range(5)]               # k = kh*5+kw
    p = jnp.stack(cols, axis=-1)                                 # (B,28,28,25)
    p = jnp.pad(p, ((0, 0), (0, 0), (0, 0), (0, K1 - 25)))       # K 25 -> 128
    p = p.reshape(B, 14, 2, 14, 2, K1)                           # (b,h,dh,w,dw,k)
    p = p.transpose(0, 2, 4, 1, 3, 5)                            # (b,dh,dw,h,w,k)
    buf = jnp.zeros((B, 4, HP, WP, K1), x_img.dtype)
    buf = buf.at[:, :, 2:16, 2:16, :].set(p.reshape(B, 4, 14, 14, K1))
    buf = buf.reshape(B, 4, HP * WP, K1)
    buf = jnp.pad(buf, ((0, 0), (0, 0), (0, NROW - HP * WP), (0, 0)))
    return buf.astype(jnp.bfloat16)                              # (B,4,440,128)


def build_row_mask():
    """(NROW,1) f32: 1.0 on real 14x14 rows of the padded raster, 0.0 on the halo."""
    r = jnp.arange(NROW)
    hp, wp = r // WP, r % WP
    valid = (hp >= 2) & (hp < 16) & (wp >= 2) & (wp < 16)
    return valid.astype(jnp.float32).reshape(NROW, 1)


def prep_params(params):
    """Reshape / zero-pad / cast the PyTorch-shaped parameters for the kernels."""
    w1, b1 = params["w1"], params["b1"]
    w2, b2 = params["w2"], params["b2"]
    wf, bf = params["wf"], params["bf"]
    # conv1: (16,1,5,5) -> (25,16) -> (K1,C1) bf16
    w1p = jnp.pad(w1.reshape(16, 25).T,
                  ((0, K1 - 25), (0, C1 - 16))).astype(jnp.bfloat16)
    b1p = jnp.pad(b1, (0, C1 - 16)).reshape(1, C1).astype(jnp.float32)
    # conv2: (32,16,5,5) -> per-tap (25,16,32) -> (25,C1,C2) bf16
    w2r = jnp.transpose(w2, (2, 3, 1, 0)).reshape(25, 16, 32)
    w2p = jnp.pad(w2r, ((0, 0), (0, C1 - 16), (0, C2 - 32))).astype(jnp.bfloat16)
    b2p = jnp.pad(b2, (0, C2 - 32)).reshape(1, C2).astype(jnp.float32)
    # fc: fold the NCHW flatten permutation into the weights, pad N 10 -> 128.
    # Kernel-1 features are (h2, w2, c_padded); PyTorch flattens (c, h2, w2):
    #   wf_perm[(h2*7+w2)*C2 + c, n] = wf[n, c*49 + h2*7 + w2]
    wfr = wf.reshape(10, 32, 49).transpose(2, 1, 0)              # (j, c, n)
    wfr = jnp.pad(wfr, ((0, 0), (0, C2 - 32), (0, 128 - 10)))
    wf_perm = wfr.reshape(49 * C2, 128).astype(jnp.bfloat16)
    bfp = jnp.pad(bf, (0, 128 - 10)).reshape(1, 128).astype(jnp.float32)
    return w1p, b1p, w2p, b2p, wf_perm, bfp


def init_params(key):
    """Deterministic init matching the PyTorch module's parameter shapes."""
    def u(k, shape, fan_in):
        bound = 1.0 / sqrt(fan_in)
        return jax.random.uniform(k, shape, jnp.float32, -bound, bound)
    k = jax.random.split(key, 6)
    return dict(
        w1=u(k[0], (16, 1, 5, 5), 1 * 5 * 5),   b1=u(k[1], (16,), 1 * 5 * 5),
        w2=u(k[2], (32, 16, 5, 5), 16 * 5 * 5), b2=u(k[3], (32,), 16 * 5 * 5),
        wf=u(k[4], (10, 7 * 7 * 32), 7 * 7 * 32), bf=u(k[5], (10,), 7 * 7 * 32),
    )


@jax.jit
def baseline1_forward(x_nchw, params):
    B = x_nchw.shape[0]
    w1p, b1p, w2p, b2p, wf_perm, bfp = prep_params(params)
    p1 = build_conv1_patches(x_nchw[:, 0, :, :])                 # (B,4,440,128) bf16
    mask = build_row_mask()
    feats = fused_conv(p1, mask, w1p, b1p, w2p, b2p)             # (B,7,7,128) bf16
    logits = fc(feats.reshape(B, NFC), wf_perm, bfp)             # (B,128) f32
    return logits[:, :10]


def reference_forward(x, params):
    """Pure-JAX (XLA) f32 reference of the PyTorch forward, for validation."""
    def conv_block(x, w, b):
        y = lax.conv_general_dilated(
            x, w, window_strides=(1, 1), padding=((2, 2), (2, 2)),
            dimension_numbers=("NCHW", "OIHW", "NCHW"),
            precision=lax.Precision.HIGHEST)
        y = jnp.maximum(y + b[None, :, None, None], 0.0)
        return lax.reduce_window(y, -jnp.inf, lax.max,
                                 (1, 1, 2, 2), (1, 1, 2, 2), "VALID")
    y = conv_block(x, params["w1"], params["b1"])
    y = conv_block(y, params["w2"], params["b2"])
    y = y.reshape(y.shape[0], -1)
    return y @ params["wf"].T + params["bf"]


if __name__ == "__main__":
    key = jax.random.PRNGKey(0)
    pkey, xkey = jax.random.split(key)
    params = init_params(pkey)
    x = jax.random.normal(xkey, (2, 1, 28, 28), jnp.float32)     # NCHW like PyTorch

    out = jax.block_until_ready(baseline1_forward(x, params))
    assert out.shape == (2, 10), out.shape

    ref = reference_forward(x, params)
    assert jnp.allclose(out, ref, rtol=3e-2, atol=3e-2), (out, ref)

    print("KERNEL_OK")
</pallas_src>

<mosaic_0001>
module attributes {stable_mosaic.version = 11 : i64} {
  func.func @fused_conv_kernel(%arg0: i32, %arg1: memref<1x4x440x128xbf16, #tpu.memory_space<vmem>>, %arg2: memref<440x1xf32, #tpu.memory_space<vmem>>, %arg3: memref<128x128xbf16, #tpu.memory_space<vmem>>, %arg4: memref<1x128xf32, #tpu.memory_space<vmem>>, %arg5: memref<25x128x128xbf16, #tpu.memory_space<vmem>>, %arg6: memref<1x128xf32, #tpu.memory_space<vmem>>, %arg7: memref<1x7x7x128xbf16, #tpu.memory_space<vmem>>, %arg8: memref<440x128xf32, #tpu.memory_space<vmem>>, %arg9: memref<336x128xf32, #tpu.memory_space<vmem>>) attributes {dimension_semantics = [#tpu.dimension_semantics<parallel>], iteration_bounds = array<i64: 2>, scalar_prefetch = 0 : i64, scratch_operands = 2 : i64, tpu.core_type = #tpu.core_type<tc>, window_params = [{transform_indices = @transform_0, window_bounds = array<i64: 1, 4, 440, 128>}, {pipeline_mode = #tpu.pipeline_mode<synchronous>, transform_indices = @transform_1, window_bounds = array<i64: 440, 1>}, {pipeline_mode = #tpu.pipeline_mode<synchronous>, transform_indices = @transform_2, window_bounds = array<i64: 128, 128>}, {pipeline_mode = #tpu.pipeline_mode<synchronous>, transform_indices = @transform_3, window_bounds = array<i64: 1, 128>}, {pipeline_mode = #tpu.pipeline_mode<synchronous>, transform_indices = @transform_4, window_bounds = array<i64: 25, 128, 128>}, {pipeline_mode = #tpu.pipeline_mode<synchronous>, transform_indices = @transform_5, window_bounds = array<i64: 1, 128>}, {transform_indices = @transform_6, window_bounds = array<i64: 1, 7, 7, 128>}]} {
    %c0 = arith.constant 0 : index
    %c0_0 = arith.constant 0 : index
    %0 = vector.load %arg3[%c0, %c0_0] : memref<128x128xbf16, #tpu.memory_space<vmem>>, vector<128x128xbf16>
    %c0_1 = arith.constant 0 : index
    %c0_2 = arith.constant 0 : index
    %c0_3 = arith.constant 0 : index
    %c0_4 = arith.constant 0 : index
    %1 = vector.load %arg1[%c0_1, %c0_2, %c0_3, %c0_4] : memref<1x4x440x128xbf16, #tpu.memory_space<vmem>>, vector<1x1x440x128xbf16>
    %2 = vector.shape_cast %1 : vector<1x1x440x128xbf16> to vector<440x128xbf16>
    %cst = arith.constant dense<0.000000e+00> : vector<440x128xf32>
    %3 = tpu.matmul %2, %0, %cst {dimension_numbers = #tpu.dot_dimension_numbers<[1], [0], [0], [1], [0, 0, 1, 1], [], []>} : vector<440x128xbf16>, vector<128x128xbf16>, vector<440x128xf32> -> vector<440x128xf32>
    %c0_5 = arith.constant 0 : index
    %c0_6 = arith.constant 0 : index
    %4 = vector.load %arg8[%c0_5, %c0_6] : memref<440x128xf32, #tpu.memory_space<vmem>>, vector<440x128xf32>
    tpu.vector_store %arg8[%c0_5, %c0_6], %3 {strides = array<i32>} : memref<440x128xf32, #tpu.memory_space<vmem>>, vector<440x128xf32>,
    %c0_7 = arith.constant 0 : index
    %c0_8 = arith.constant 0 : index
    %5 = vector.load %arg8[%c0_7, %c0_8] : memref<440x128xf32, #tpu.memory_space<vmem>>, vector<440x128xf32>
    %c0_9 = arith.constant 0 : index
    %c1 = arith.constant 1 : index
    %c0_10 = arith.constant 0 : index
    %c0_11 = arith.constant 0 : index
    %6 = vector.load %arg1[%c0_9, %c1, %c0_10, %c0_11] : memref<1x4x440x128xbf16, #tpu.memory_space<vmem>>, vector<1x1x440x128xbf16>
    %7 = vector.shape_cast %6 : vector<1x1x440x128xbf16> to vector<440x128xbf16>
    %cst_12 = arith.constant dense<0.000000e+00> : vector<440x128xf32>
    %8 = tpu.matmul %7, %0, %cst_12 {dimension_numbers = #tpu.dot_dimension_numbers<[1], [0], [0], [1], [0, 0, 1, 1], [], []>} : vector<440x128xbf16>, vector<128x128xbf16>, vector<440x128xf32> -> vector<440x128xf32>
    %9 = arith.maximumf %5, %8 : vector<440x128xf32>
    %c0_13 = arith.constant 0 : index
    %c0_14 = arith.constant 0 : index
    %10 = vector.load %arg8[%c0_13, %c0_14] : memref<440x128xf32, #tpu.memory_space<vmem>>, vector<440x128xf32>
    tpu.vector_store %arg8[%c0_13, %c0_14], %9 {strides = array<i32>} : memref<440x128xf32, #tpu.memory_space<vmem>>, vector<440x128xf32>,
    %c0_15 = arith.constant 0 : index
    %c0_16 = arith.constant 0 : index
    %11 = vector.load %arg8[%c0_15, %c0_16] : memref<440x128xf32, #tpu.memory_space<vmem>>, vector<440x128xf32>
    %c0_17 = arith.constant 0 : index
    %c2 = arith.constant 2 : index
    %c0_18 = arith.constant 0 : index
    %c0_19 = arith.constant 0 : index
    %12 = vector.load %arg1[%c0_17, %c2, %c0_18, %c0_19] : memref<1x4x440x128xbf16, #tpu.memory_space<vmem>>, vector<1x1x440x128xbf16>
    %13 = vector.shape_cast %12 : vector<1x1x440x128xbf16> to vector<440x128xbf16>
    %cst_20 = arith.constant dense<0.000000e+00> : vector<440x128xf32>
    %14 = tpu.matmul %13, %0, %cst_20 {dimension_numbers = #tpu.dot_dimension_numbers<[1], [0], [0], [1], [0, 0, 1, 1], [], []>} : vector<440x128xbf16>, vector<128x128xbf16>, vector<440x128xf32> -> vector<440x128xf32>
    %15 = arith.maximumf %11, %14 : vector<440x128xf32>
    %c0_21 = arith.constant 0 : index
    %c0_22 = arith.constant 0 : index
    %16 = vector.load %arg8[%c0_21, %c0_22] : memref<440x128xf32, #tpu.memory_space<vmem>>, vector<440x128xf32>
    tpu.vector_store %arg8[%c0_21, %c0_22], %15 {strides = array<i32>} : memref<440x128xf32, #tpu.memory_space<vmem>>, vector<440x128xf32>,
    %c0_23 = arith.constant 0 : index
    %c0_24 = arith.constant 0 : index
    %17 = vector.load %arg8[%c0_23, %c0_24] : memref<440x128xf32, #tpu.memory_space<vmem>>, vector<440x128xf32>
    %c0_25 = arith.constant 0 : index
    %c3 = arith.constant 3 : index
    %c0_26 = arith.constant 0 : index
    %c0_27 = arith.constant 0 : index
    %18 = vector.load %arg1[%c0_25, %c3, %c0_26, %c0_27] : memref<1x4x440x128xbf16, #tpu.memory_space<vmem>>, vector<1x1x440x128xbf16>
    %19 = vector.shape_cast %18 : vector<1x1x440x128xbf16> to vector<440x128xbf16>
    %cst_28 = arith.constant dense<0.000000e+00> : vector<440x128xf32>
    %20 = tpu.matmul %19, %0, %cst_28 {dimension_numbers = #tpu.dot_dimension_numbers<[1], [0], [0], [1], [0, 0, 1, 1], [], []>} : vector<440x128xbf16>, vector<128x128xbf16>, vector<440x128xf32> -> vector<440x128xf32>
    %21 = arith.maximumf %17, %20 : vector<440x128xf32>
    %c0_29 = arith.constant 0 : index
    %c0_30 = arith.constant 0 : index
    %22 = vector.load %arg8[%c0_29, %c0_30] : memref<440x128xf32, #tpu.memory_space<vmem>>, vector<440x128xf32>
    tpu.vector_store %arg8[%c0_29, %c0_30], %21 {strides = array<i32>} : memref<440x128xf32, #tpu.memory_space<vmem>>, vector<440x128xf32>,
    %c0_31 = arith.constant 0 : index
    %c0_32 = arith.constant 0 : index
    %23 = vector.load %arg8[%c0_31, %c0_32] : memref<440x128xf32, #tpu.memory_space<vmem>>, vector<440x128xf32>
    %c0_33 = arith.constant 0 : index
    %c0_34 = arith.constant 0 : index
    %24 = vector.load %arg4[%c0_33, %c0_34] : memref<1x128xf32, #tpu.memory_space<vmem>>, vector<1x128xf32>
    %25 = vector.broadcast %24 : vector<1x128xf32> to vector<440x128xf32>
    %26 = arith.addf %23, %25 : vector<440x128xf32>
    %cst_35 = arith.constant 0.000000e+00 : f32
    %27 = vector.broadcast %cst_35 : f32 to vector<440x128xf32>
    %28 = arith.maximumf %26, %27 : vector<440x128xf32>
    %c0_36 = arith.constant 0 : index
    %c0_37 = arith.constant 0 : index
    %29 = vector.load %arg2[%c0_36, %c0_37] : memref<440x1xf32, #tpu.memory_space<vmem>>, vector<440x1xf32>
    %30 = vector.broadcast %29 : vector<440x1xf32> to vector<440x128xf32>
    %31 = arith.mulf %28, %30 : vector<440x128xf32>
    %c0_38 = arith.constant 0 : index
    %c0_39 = arith.constant 0 : index
    %32 = vector.load %arg8[%c0_38, %c0_39] : memref<440x128xf32, #tpu.memory_space<vmem>>, vector<440x128xf32>
    tpu.vector_store %arg8[%c0_38, %c0_39], %31 {strides = array<i32>} : memref<440x128xf32, #tpu.memory_space<vmem>>, vector<440x128xf32>,
    %c0_40 = arith.constant 0 : index
    %c0_41 = arith.constant 0 : index
    %33 = vector.load %arg8[%c0_40, %c0_41] : memref<440x128xf32, #tpu.memory_space<vmem>>, vector<336x128xf32>
    %34 = arith.truncf %33 : vector<336x128xf32> to vector<336x128xbf16>
    %c0_42 = arith.constant 0 : index
    %c0_43 = arith.constant 0 : index
    %c0_44 = arith.constant 0 : index
    %35 = vector.load %arg5[%c0_42, %c0_43, %c0_44] : memref<25x128x128xbf16, #tpu.memory_space<vmem>>, vector<1x128x128xbf16>
    %36 = vector.shape_cast %35 : vector<1x128x128xbf16> to vector<128x128xbf16>
    %cst_45 = arith.constant dense<0.000000e+00> : vector<336x128xf32>
    %37 = tpu.matmul %34, %36, %cst_45 {dimension_numbers = #tpu.dot_dimension_numbers<[1], [0], [0], [1], [0, 0, 1, 1], [], []>} : vector<336x128xbf16>, vector<128x128xbf16>, vector<336x128xf32> -> vector<336x128xf32>
    %c0_46 = arith.constant 0 : index
    %c0_47 = arith.constant 0 : index
    %38 = vector.load %arg9[%c0_46, %c0_47] : memref<336x128xf32, #tpu.memory_space<vmem>>, vector<336x128xf32>
    tpu.vector_store %arg9[%c0_46, %c0_47], %37 {strides = array<i32>} : memref<336x128xf32, #tpu.memory_space<vmem>>, vector<336x128xf32>,
    %c1_48 = arith.constant 1 : index
    %c0_49 = arith.constant 0 : index
    %39 = vector.load %arg8[%c1_48, %c0_49] : memref<440x128xf32, #tpu.memory_space<vmem>>, vector<336x128xf32>
    %40 = arith.truncf %39 : vector<336x128xf32> to vector<336x128xbf16>
    %c1_50 = arith.constant 1 : index
    %c0_51 = arith.constant 0 : index
    %c0_52 = arith.constant 0 : index
    %41 = vector.load %arg5[%c1_50, %c0_51, %c0_52] : memref<25x128x128xbf16, #tpu.memory_space<vmem>>, vector<1x128x128xbf16>
    %42 = vector.shape_cast %41 : vector<1x128x128xbf16> to vector<128x128xbf16>
    %cst_53 = arith.constant dense<0.000000e+00> : vector<336x128xf32>
    %43 = tpu.matmul %40, %42, %cst_53 {dimension_numbers = #tpu.dot_dimension_numbers<[1], [0], [0], [1], [0, 0, 1, 1], [], []>} : vector<336x128xbf16>, vector<128x128xbf16>, vector<336x128xf32> -> vector<336x128xf32>
    %c0_54 = arith.constant 0 : index
    %c0_55 = arith.constant 0 : index
    %44 = vector.load %arg9[%c0_54, %c0_55] : memref<336x128xf32, #tpu.memory_space<vmem>>, vector<336x128xf32>
    %45 = arith.addf %44, %43 : vector<336x128xf32>
    %c0_56 = arith.constant 0 : index
    %c0_57 = arith.constant 0 : index
    %46 = vector.load %arg9[%c0_56, %c0_57] : memref<336x128xf32, #tpu.memory_space<vmem>>, vector<336x128xf32>
    tpu.vector_store %arg9[%c0_56, %c0_57], %45 {strides = array<i32>} : memref<336x128xf32, #tpu.memory_space<vmem>>, vector<336x128xf32>,
    %c2_58 = arith.constant 2 : index
    %c0_59 = arith.constant 0 : index
    %47 = vector.load %arg8[%c2_58, %c0_59] : memref<440x128xf32, #tpu.memory_space<vmem>>, vector<336x128xf32>
    %48 = arith.truncf %47 : vector<336x128xf32> to vector<336x128xbf16>
    %c2_60 = arith.constant 2 : index
    %c0_61 = arith.constant 0 : index
    %c0_62 = arith.constant 0 : index
    %49 = vector.load %arg5[%c2_60, %c0_61, %c0_62] : memref<25x128x128xbf16, #tpu.memory_space<vmem>>, vector<1x128x128xbf16>
    %50 = vector.shape_cast %49 : vector<1x128x128xbf16> to vector<128x128xbf16>
    %cst_63 = arith.constant dense<0.000000e+00> : vector<336x128xf32>
    %51 = tpu.matmul %48, %50, %cst_63 {dimension_numbers = #tpu.dot_dimension_numbers<[1], [0], [0], [1], [0, 0, 1, 1], [], []>} : vector<336x128xbf16>, vector<128x128xbf16>, vector<336x128xf32> -> vector<336x128xf32>
    %c0_64 = arith.constant 0 : index
    %c0_65 = arith.constant 0 : index
    %52 = vector.load %arg9[%c0_64, %c0_65] : memref<336x128xf32, #tpu.memory_space<vmem>>, vector<336x128xf32>
    %53 = arith.addf %52, %51 : vector<336x128xf32>
    %c0_66 = arith.constant 0 : index
    %c0_67 = arith.constant 0 : index
    %54 = vector.load %arg9[%c0_66, %c0_67] : memref<336x128xf32, #tpu.memory_space<vmem>>, vector<336x128xf32>
    tpu.vector_store %arg9[%c0_66, %c0_67], %53 {strides = array<i32>} : memref<336x128xf32, #tpu.memory_space<vmem>>, vector<336x128xf32>,
    %c3_68 = arith.constant 3 : index
    %c0_69 = arith.constant 0 : index
    %55 = vector.load %arg8[%c3_68, %c0_69] : memref<440x128xf32, #tpu.memory_space<vmem>>, vector<336x128xf32>
    %56 = arith.truncf %55 : vector<336x128xf32> to vector<336x128xbf16>
    %c3_70 = arith.constant 3 : index
    %c0_71 = arith.constant 0 : index
    %c0_72 = arith.constant 0 : index
    %57 = vector.load %arg5[%c3_70, %c0_71, %c0_72] : memref<25x128x128xbf16, #tpu.memory_space<vmem>>, vector<1x128x128xbf16>
    %58 = vector.shape_cast %57 : vector<1x128x128xbf16> to vector<128x128xbf16>
    %cst_73 = arith.constant dense<0.000000e+00> : vector<336x128xf32>
    %59 = tpu.matmul %56, %58, %cst_73 {dimension_numbers = #tpu.dot_dimension_numbers<[1], [0], [0], [1], [0, 0, 1, 1], [], []>} : vector<336x128xbf16>, vector<128x128xbf16>, vector<336x128xf32> -> vector<336x128xf32>
    %c0_74 = arith.constant 0 : index
    %c0_75 = arith.constant 0 : index
    %60 = vector.load %arg9[%c0_74, %c0_75] : memref<336x128xf32, #tpu.memory_space<vmem>>, vector<336x128xf32>
    %61 = arith.addf %60, %59 : vector<336x128xf32>
    %c0_76 = arith.constant 0 : index
    %c0_77 = arith.constant 0 : index
    %62 = vector.load %arg9[%c0_76, %c0_77] : memref<336x128xf32, #tpu.memory_space<vmem>>, vector<336x128xf32>
    tpu.vector_store %arg9[%c0_76, %c0_77], %61 {strides = array<i32>} : memref<336x128xf32, #tpu.memory_space<vmem>>, vector<336x128xf32>,
    %c4 = arith.constant 4 : index
    %c0_78 = arith.constant 0 : index
    %63 = vector.load %arg8[%c4, %c0_78] : memref<440x128xf32, #tpu.memory_space<vmem>>, vector<336x128xf32>
    %64 = arith.truncf %63 : vector<336x128xf32> to vector<336x128xbf16>
    %c4_79 = arith.constant 4 : index
    %c0_80 = arith.constant 0 : index
    %c0_81 = arith.constant 0 : index
    %65 = vector.load %arg5[%c4_79, %c0_80, %c0_81] : memref<25x128x128xbf16, #tpu.memory_space<vmem>>, vector<1x128x128xbf16>
    %66 = vector.shape_cast %65 : vector<1x128x128xbf16> to vector<128x128xbf16>
    %cst_82 = arith.constant dense<0.000000e+00> : vector<336x128xf32>
    %67 = tpu.matmul %64, %66, %cst_82 {dimension_numbers = #tpu.dot_dimension_numbers<[1], [0], [0], [1], [0, 0, 1, 1], [], []>} : vector<336x128xbf16>, vector<128x128xbf16>, vector<336x128xf32> -> vector<336x128xf32>
    %c0_83 = arith.constant 0 : index
    %c0_84 = arith.constant 0 : index
    %68 = vector.load %arg9[%c0_83, %c0_84] : memref<336x128xf32, #tpu.memory_space<vmem>>, vector<336x128xf32>
    %69 = arith.addf %68, %67 : vector<336x128xf32>
    %c0_85 = arith.constant 0 : index
    %c0_86 = arith.constant 0 : index
    %70 = vector.load %arg9[%c0_85, %c0_86] : memref<336x128xf32, #tpu.memory_space<vmem>>, vector<336x128xf32>
    tpu.vector_store %arg9[%c0_85, %c0_86], %69 {strides = array<i32>} : memref<336x128xf32, #tpu.memory_space<vmem>>, vector<336x128xf32>,
    %c24 = arith.constant 24 : index
    %c0_87 = arith.constant 0 : index
    %71 = vector.load %arg8[%c24, %c0_87] : memref<440x128xf32, #tpu.memory_space<vmem>>, vector<336x128xf32>
    %72 = arith.truncf %71 : vector<336x128xf32> to vector<336x128xbf16>
    %c5 = arith.constant 5 : index
    %c0_88 = arith.constant 0 : index
    %c0_89 = arith.constant 0 : index
    %73 = vector.load %arg5[%c5, %c0_88, %c0_89] : memref<25x128x128xbf16, #tpu.memory_space<vmem>>, vector<1x128x128xbf16>
    %74 = vector.shape_cast %73 : vector<1x128x128xbf16> to vector<128x128xbf16>
    %cst_90 = arith.constant dense<0.000000e+00> : vector<336x128xf32>
    %75 = tpu.matmul %72, %74, %cst_90 {dimension_numbers = #tpu.dot_dimension_numbers<[1], [0], [0], [1], [0, 0, 1, 1], [], []>} : vector<336x128xbf16>, vector<128x128xbf16>, vector<336x128xf32> -> vector<336x128xf32>
    %c0_91 = arith.constant 0 : index
    %c0_92 = arith.constant 0 : index
    %76 = vector.load %arg9[%c0_91, %c0_92] : memref<336x128xf32, #tpu.memory_space<vmem>>, vector<336x128xf32>
    %77 = arith.addf %76, %75 : vector<336x128xf32>
    %c0_93 = arith.constant 0 : index
    %c0_94 = arith.constant 0 : index
    %78 = vector.load %arg9[%c0_93, %c0_94] : memref<336x128xf32, #tpu.memory_space<vmem>>, vector<336x128xf32>
    tpu.vector_store %arg9[%c0_93, %c0_94], %77 {strides = array<i32>} : memref<336x128xf32, #tpu.memory_space<vmem>>, vector<336x128xf32>,
    %c25 = arith.constant 25 : index
    %c0_95 = arith.constant 0 : index
    %79 = vector.load %arg8[%c25, %c0_95] : memref<440x128xf32, #tpu.memory_space<vmem>>, vector<336x128xf32>
    %80 = arith.truncf %79 : vector<336x128xf32> to vector<336x128xbf16>
    %c6 = arith.constant 6 : index
    %c0_96 = arith.constant 0 : index
    %c0_97 = arith.constant 0 : index
    %81 = vector.load %arg5[%c6, %c0_96, %c0_97] : memref<25x128x128xbf16, #tpu.memory_space<vmem>>, vector<1x128x128xbf16>
    %82 = vector.shape_cast %81 : vector<1x128x128xbf16> to vector<128x128xbf16>
    %cst_98 = arith.constant dense<0.000000e+00> : vector<336x128xf32>
    %83 = tpu.matmul %80, %82, %cst_98 {dimension_numbers = #tpu.dot_dimension_numbers<[1], [0], [0], [1], [0, 0, 1, 1], [], []>} : vector<336x128xbf16>, vector<128x128xbf16>, vector<336x128xf32> -> vector<336x128xf32>
    %c0_99 = arith.constant 0 : index
    %c0_100 = arith.constant 0 : index
    %84 = vector.load %arg9[%c0_99, %c0_100] : memref<336x128xf32, #tpu.memory_space<vmem>>, vector<336x128xf32>
    %85 = arith.addf %84, %83 : vector<336x128xf32>
    %c0_101 = arith.constant 0 : index
    %c0_102 = arith.constant 0 : index
    %86 = vector.load %arg9[%c0_101, %c0_102] : memref<336x128xf32, #tpu.memory_space<vmem>>, vector<336x128xf32>
    tpu.vector_store %arg9[%c0_101, %c0_102], %85 {strides = array<i32>} : memref<336x128xf32, #tpu.memory_space<vmem>>, vector<336x128xf32>,
    %c26 = arith.constant 26 : index
    %c0_103 = arith.constant 0 : index
    %87 = vector.load %arg8[%c26, %c0_103] : memref<440x128xf32, #tpu.memory_space<vmem>>, vector<336x128xf32>
    %88 = arith.truncf %87 : vector<336x128xf32> to vector<336x128xbf16>
    %c7 = arith.constant 7 : index
    %c0_104 = arith.constant 0 : index
    %c0_105 = arith.constant 0 : index
    %89 = vector.load %arg5[%c7, %c0_104, %c0_105] : memref<25x128x128xbf16, #tpu.memory_space<vmem>>, vector<1x128x128xbf16>
    %90 = vector.shape_cast %89 : vector<1x128x128xbf16> to vector<128x128xbf16>
    %cst_106 = arith.constant dense<0.000000e+00> : vector<336x128xf32>
    %91 = tpu.matmul %88, %90, %cst_106 {dimension_numbers = #tpu.dot_dimension_numbers<[1], [0], [0], [1], [0, 0, 1, 1], [], []>} : vector<336x128xbf16>, vector<128x128xbf16>, vector<336x128xf32> -> vector<336x128xf32>
    %c0_107 = arith.constant 0 : index
    %c0_108 = arith.constant 0 : index
    %92 = vector.load %arg9[%c0_107, %c0_108] : memref<336x128xf32, #tpu.memory_space<vmem>>, vector<336x128xf32>
    %93 = arith.addf %92, %91 : vector<336x128xf32>
    %c0_109 = arith.constant 0 : index
    %c0_110 = arith.constant 0 : index
    %94 = vector.load %arg9[%c0_109, %c0_110] : memref<336x128xf32, #tpu.memory_space<vmem>>, vector<336x128xf32>
    tpu.vector_store %arg9[%c0_109, %c0_110], %93 {strides = array<i32>} : memref<336x128xf32, #tpu.memory_space<vmem>>, vector<336x128xf32>,
    %c27 = arith.constant 27 : index
    %c0_111 = arith.constant 0 : index
    %95 = vector.load %arg8[%c27, %c0_111] : memref<440x128xf32, #tpu.memory_space<vmem>>, vector<336x128xf32>
    %96 = arith.truncf %95 : vector<336x128xf32> to vector<336x128xbf16>
    %c8 = arith.constant 8 : index
    %c0_112 = arith.constant 0 : index
    %c0_113 = arith.constant 0 : index
    %97 = vector.load %arg5[%c8, %c0_112, %c0_113] : memref<25x128x128xbf16, #tpu.memory_space<vmem>>, vector<1x128x128xbf16>
    %98 = vector.shape_cast %97 : vector<1x128x128xbf16> to vector<128x128xbf16>
    %cst_114 = arith.constant dense<0.000000e+00> : vector<336x128xf32>
    %99 = tpu.matmul %96, %98, %cst_114 {dimension_numbers = #tpu.dot_dimension_numbers<[1], [0], [0], [1], [0, 0, 1, 1], [], []>} : vector<336x128xbf16>, vector<128x128xbf16>, vector<336x128xf32> -> vector<336x128xf32>
    %c0_115 = arith.constant 0 : index
    %c0_116 = arith.constant 0 : index
    %100 = vector.load %arg9[%c0_115, %c0_116] : memref<336x128xf32, #tpu.memory_space<vmem>>, vector<336x128xf32>
    %101 = arith.addf %100, %99 : vector<336x128xf32>
    %c0_117 = arith.constant 0 : index
    %c0_118 = arith.constant 0 : index
    %102 = vector.load %arg9[%c0_117, %c0_118] : memref<336x128xf32, #tpu.memory_space<vmem>>, vector<336x128xf32>
    tpu.vector_store %arg9[%c0_117, %c0_118], %101 {strides = array<i32>} : memref<336x128xf32, #tpu.memory_space<vmem>>, vector<336x128xf32>,
    %c28 = arith.constant 28 : index
    %c0_119 = arith.constant 0 : index
    %103 = vector.load %arg8[%c28, %c0_119] : memref<440x128xf32, #tpu.memory_space<vmem>>, vector<336x128xf32>
    %104 = arith.truncf %103 : vector<336x128xf32> to vector<336x128xbf16>
    %c9 = arith.constant 9 : index
    %c0_120 = arith.constant 0 : index
    %c0_121 = arith.constant 0 : index
    %105 = vector.load %arg5[%c9, %c0_120, %c0_121] : memref<25x128x128xbf16, #tpu.memory_space<vmem>>, vector<1x128x128xbf16>
    %106 = vector.shape_cast %105 : vector<1x128x128xbf16> to vector<128x128xbf16>
    %cst_122 = arith.constant dense<0.000000e+00> : vector<336x128xf32>
    %107 = tpu.matmul %104, %106, %cst_122 {dimension_numbers = #tpu.dot_dimension_numbers<[1], [0], [0], [1], [0, 0, 1, 1], [], []>} : vector<336x128xbf16>, vector<128x128xbf16>, vector<336x128xf32> -> vector<336x128xf32>
    %c0_123 = arith.constant 0 : index
    %c0_124 = arith.constant 0 : index
    %108 = vector.load %arg9[%c0_123, %c0_124] : memref<336x128xf32, #tpu.memory_space<vmem>>, vector<336x128xf32>
    %109 = arith.addf %108, %107 : vector<336x128xf32>
    %c0_125 = arith.constant 0 : index
    %c0_126 = arith.constant 0 : index
    %110 = vector.load %arg9[%c0_125, %c0_126] : memref<336x128xf32, #tpu.memory_space<vmem>>, vector<336x128xf32>
    tpu.vector_store %arg9[%c0_125, %c0_126], %109 {strides = array<i32>} : memref<336x128xf32, #tpu.memory_space<vmem>>, vector<336x128xf32>,
    %c48 = arith.constant 48 : index
    %c0_127 = arith.constant 0 : index
    %111 = vector.load %arg8[%c48, %c0_127] : memref<440x128xf32, #tpu.memory_space<vmem>>, vector<336x128xf32>
    %112 = arith.truncf %111 : vector<336x128xf32> to vector<336x128xbf16>
    %c10 = arith.constant 10 : index
    %c0_128 = arith.constant 0 : index
    %c0_129 = arith.constant 0 : index
    %113 = vector.load %arg5[%c10, %c0_128, %c0_129] : memref<25x128x128xbf16, #tpu.memory_space<vmem>>, vector<1x128x128xbf16>
    %114 = vector.shape_cast %113 : vector<1x128x128xbf16> to vector<128x128xbf16>
    %cst_130 = arith.constant dense<0.000000e+00> : vector<336x128xf32>
    %115 = tpu.matmul %112, %114, %cst_130 {dimension_numbers = #tpu.dot_dimension_numbers<[1], [0], [0], [1], [0, 0, 1, 1], [], []>} : vector<336x128xbf16>, vector<128x128xbf16>, vector<336x128xf32> -> vector<336x128xf32>
    %c0_131 = arith.constant 0 : index
    %c0_132 = arith.constant 0 : index
    %116 = vector.load %arg9[%c0_131, %c0_132] : memref<336x128xf32, #tpu.memory_space<vmem>>, vector<336x128xf32>
    %117 = arith.addf %116, %115 : vector<336x128xf32>
    %c0_133 = arith.constant 0 : index
    %c0_134 = arith.constant 0 : index
    %118 = vector.load %arg9[%c0_133, %c0_134] : memref<336x128xf32, #tpu.memory_space<vmem>>, vector<336x128xf32>
    tpu.vector_store %arg9[%c0_133, %c0_134], %117 {strides = array<i32>} : memref<336x128xf32, #tpu.memory_space<vmem>>, vector<336x128xf32>,
    %c49 = arith.constant 49 : index
    %c0_135 = arith.constant 0 : index
    %119 = vector.load %arg8[%c49, %c0_135] : memref<440x128xf32, #tpu.memory_space<vmem>>, vector<336x128xf32>
    %120 = arith.truncf %119 : vector<336x128xf32> to vector<336x128xbf16>
    %c11 = arith.constant 11 : index
    %c0_136 = arith.constant 0 : index
    %c0_137 = arith.constant 0 : index
    %121 = vector.load %arg5[%c11, %c0_136, %c0_137] : memref<25x128x128xbf16, #tpu.memory_space<vmem>>, vector<1x128x128xbf16>
    %122 = vector.shape_cast %121 : vector<1x128x128xbf16> to vector<128x128xbf16>
    %cst_138 = arith.constant dense<0.000000e+00> : vector<336x128xf32>
    %123 = tpu.matmul %120, %122, %cst_138 {dimension_numbers = #tpu.dot_dimension_numbers<[1], [0], [0], [1], [0, 0, 1, 1], [], []>} : vector<336x128xbf16>, vector<128x128xbf16>, vector<336x128xf32> -> vector<336x128xf32>
    %c0_139 = arith.constant 0 : index
    %c0_140 = arith.constant 0 : index
    %124 = vector.load %arg9[%c0_139, %c0_140] : memref<336x128xf32, #tpu.memory_space<vmem>>, vector<336x128xf32>
    %125 = arith.addf %124, %123 : vector<336x128xf32>
    %c0_141 = arith.constant 0 : index
    %c0_142 = arith.constant 0 : index
    %126 = vector.load %arg9[%c0_141, %c0_142] : memref<336x128xf32, #tpu.memory_space<vmem>>, vector<336x128xf32>
    tpu.vector_store %arg9[%c0_141, %c0_142], %125 {strides = array<i32>} : memref<336x128xf32, #tpu.memory_space<vmem>>, vector<336x128xf32>,
    %c50 = arith.constant 50 : index
    %c0_143 = arith.constant 0 : index
    %127 = vector.load %arg8[%c50, %c0_143] : memref<440x128xf32, #tpu.memory_space<vmem>>, vector<336x128xf32>
    %128 = arith.truncf %127 : vector<336x128xf32> to vector<336x128xbf16>
    %c12 = arith.constant 12 : index
    %c0_144 = arith.constant 0 : index
    %c0_145 = arith.constant 0 : index
    %129 = vector.load %arg5[%c12, %c0_144, %c0_145] : memref<25x128x128xbf16, #tpu.memory_space<vmem>>, vector<1x128x128xbf16>
    %130 = vector.shape_cast %129 : vector<1x128x128xbf16> to vector<128x128xbf16>
    %cst_146 = arith.constant dense<0.000000e+00> : vector<336x128xf32>
    %131 = tpu.matmul %128, %130, %cst_146 {dimension_numbers = #tpu.dot_dimension_numbers<[1], [0], [0], [1], [0, 0, 1, 1], [], []>} : vector<336x128xbf16>, vector<128x128xbf16>, vector<336x128xf32> -> vector<336x128xf32>
    %c0_147 = arith.constant 0 : index
    %c0_148 = arith.constant 0 : index
    %132 = vector.load %arg9[%c0_147, %c0_148] : memref<336x128xf32, #tpu.memory_space<vmem>>, vector<336x128xf32>
    %133 = arith.addf %132, %131 : vector<336x128xf32>
    %c0_149 = arith.constant 0 : index
    %c0_150 = arith.constant 0 : index
    %134 = vector.load %arg9[%c0_149, %c0_150] : memref<336x128xf32, #tpu.memory_space<vmem>>, vector<336x128xf32>
    tpu.vector_store %arg9[%c0_149, %c0_150], %133 {strides = array<i32>} : memref<336x128xf32, #tpu.memory_space<vmem>>, vector<336x128xf32>,
    %c51 = arith.constant 51 : index
    %c0_151 = arith.constant 0 : index
    %135 = vector.load %arg8[%c51, %c0_151] : memref<440x128xf32, #tpu.memory_space<vmem>>, vector<336x128xf32>
    %136 = arith.truncf %135 : vector<336x128xf32> to vector<336x128xbf16>
    %c13 = arith.constant 13 : index
    %c0_152 = arith.constant 0 : index
    %c0_153 = arith.constant 0 : index
    %137 = vector.load %arg5[%c13, %c0_152, %c0_153] : memref<25x128x128xbf16, #tpu.memory_space<vmem>>, vector<1x128x128xbf16>
    %138 = vector.shape_cast %137 : vector<1x128x128xbf16> to vector<128x128xbf16>
    %cst_154 = arith.constant dense<0.000000e+00> : vector<336x128xf32>
    %139 = tpu.matmul %136, %138, %cst_154 {dimension_numbers = #tpu.dot_dimension_numbers<[1], [0], [0], [1], [0, 0, 1, 1], [], []>} : vector<336x128xbf16>, vector<128x128xbf16>, vector<336x128xf32> -> vector<336x128xf32>
    %c0_155 = arith.constant 0 : index
    %c0_156 = arith.constant 0 : index
    %140 = vector.load %arg9[%c0_155, %c0_156] : memref<336x128xf32, #tpu.memory_space<vmem>>, vector<336x128xf32>
    %141 = arith.addf %140, %139 : vector<336x128xf32>
    %c0_157 = arith.constant 0 : index
    %c0_158 = arith.constant 0 : index
    %142 = vector.load %arg9[%c0_157, %c0_158] : memref<336x128xf32, #tpu.memory_space<vmem>>, vector<336x128xf32>
    tpu.vector_store %arg9[%c0_157, %c0_158], %141 {strides = array<i32>} : memref<336x128xf32, #tpu.memory_space<vmem>>, vector<336x128xf32>,
    %c52 = arith.constant 52 : index
    %c0_159 = arith.constant 0 : index
    %143 = vector.load %arg8[%c52, %c0_159] : memref<440x128xf32, #tpu.memory_space<vmem>>, vector<336x128xf32>
    %144 = arith.truncf %143 : vector<336x128xf32> to vector<336x128xbf16>
    %c14 = arith.constant 14 : index
    %c0_160 = arith.constant 0 : index
    %c0_161 = arith.constant 0 : index
    %145 = vector.load %arg5[%c14, %c0_160, %c0_161] : memref<25x128x128xbf16, #tpu.memory_space<vmem>>, vector<1x128x128xbf16>
    %146 = vector.shape_cast %145 : vector<1x128x128xbf16> to vector<128x128xbf16>
    %cst_162 = arith.constant dense<0.000000e+00> : vector<336x128xf32>
    %147 = tpu.matmul %144, %146, %cst_162 {dimension_numbers = #tpu.dot_dimension_numbers<[1], [0], [0], [1], [0, 0, 1, 1], [], []>} : vector<336x128xbf16>, vector<128x128xbf16>, vector<336x128xf32> -> vector<336x128xf32>
    %c0_163 = arith.constant 0 : index
    %c0_164 = arith.constant 0 : index
    %148 = vector.load %arg9[%c0_163, %c0_164] : memref<336x128xf32, #tpu.memory_space<vmem>>, vector<336x128xf32>
    %149 = arith.addf %148, %147 : vector<336x128xf32>
    %c0_165 = arith.constant 0 : index
    %c0_166 = arith.constant 0 : index
    %150 = vector.load %arg9[%c0_165, %c0_166] : memref<336x128xf32, #tpu.memory_space<vmem>>, vector<336x128xf32>
    tpu.vector_store %arg9[%c0_165, %c0_166], %149 {strides = array<i32>} : memref<336x128xf32, #tpu.memory_space<vmem>>, vector<336x128xf32>,
    %c72 = arith.constant 72 : index
    %c0_167 = arith.constant 0 : index
    %151 = vector.load %arg8[%c72, %c0_167] : memref<440x128xf32, #tpu.memory_space<vmem>>, vector<336x128xf32>
    %152 = arith.truncf %151 : vector<336x128xf32> to vector<336x128xbf16>
    %c15 = arith.constant 15 : index
    %c0_168 = arith.constant 0 : index
    %c0_169 = arith.constant 0 : index
    %153 = vector.load %arg5[%c15, %c0_168, %c0_169] : memref<25x128x128xbf16, #tpu.memory_space<vmem>>, vector<1x128x128xbf16>
    %154 = vector.shape_cast %153 : vector<1x128x128xbf16> to vector<128x128xbf16>
    %cst_170 = arith.constant dense<0.000000e+00> : vector<336x128xf32>
    %155 = tpu.matmul %152, %154, %cst_170 {dimension_numbers = #tpu.dot_dimension_numbers<[1], [0], [0], [1], [0, 0, 1, 1], [], []>} : vector<336x128xbf16>, vector<128x128xbf16>, vector<336x128xf32> -> vector<336x128xf32>
    %c0_171 = arith.constant 0 : index
    %c0_172 = arith.constant 0 : index
    %156 = vector.load %arg9[%c0_171, %c0_172] : memref<336x128xf32, #tpu.memory_space<vmem>>, vector<336x128xf32>
    %157 = arith.addf %156, %155 : vector<336x128xf32>
    %c0_173 = arith.constant 0 : index
    %c0_174 = arith.constant 0 : index
    %158 = vector.load %arg9[%c0_173, %c0_174] : memref<336x128xf32, #tpu.memory_space<vmem>>, vector<336x128xf32>
    tpu.vector_store %arg9[%c0_173, %c0_174], %157 {strides = array<i32>} : memref<336x128xf32, #tpu.memory_space<vmem>>, vector<336x128xf32>,
    %c73 = arith.constant 73 : index
    %c0_175 = arith.constant 0 : index
    %159 = vector.load %arg8[%c73, %c0_175] : memref<440x128xf32, #tpu.memory_space<vmem>>, vector<336x128xf32>
    %160 = arith.truncf %159 : vector<336x128xf32> to vector<336x128xbf16>
    %c16 = arith.constant 16 : index
    %c0_176 = arith.constant 0 : index
    %c0_177 = arith.constant 0 : index
    %161 = vector.load %arg5[%c16, %c0_176, %c0_177] : memref<25x128x128xbf16, #tpu.memory_space<vmem>>, vector<1x128x128xbf16>
    %162 = vector.shape_cast %161 : vector<1x128x128xbf16> to vector<128x128xbf16>
    %cst_178 = arith.constant dense<0.000000e+00> : vector<336x128xf32>
    %163 = tpu.matmul %160, %162, %cst_178 {dimension_numbers = #tpu.dot_dimension_numbers<[1], [0], [0], [1], [0, 0, 1, 1], [], []>} : vector<336x128xbf16>, vector<128x128xbf16>, vector<336x128xf32> -> vector<336x128xf32>
    %c0_179 = arith.constant 0 : index
    %c0_180 = arith.constant 0 : index
    %164 = vector.load %arg9[%c0_179, %c0_180] : memref<336x128xf32, #tpu.memory_space<vmem>>, vector<336x128xf32>
    %165 = arith.addf %164, %163 : vector<336x128xf32>
    %c0_181 = arith.constant 0 : index
    %c0_182 = arith.constant 0 : index
    %166 = vector.load %arg9[%c0_181, %c0_182] : memref<336x128xf32, #tpu.memory_space<vmem>>, vector<336x128xf32>
    tpu.vector_store %arg9[%c0_181, %c0_182], %165 {strides = array<i32>} : memref<336x128xf32, #tpu.memory_space<vmem>>, vector<336x128xf32>,
    %c74 = arith.constant 74 : index
    %c0_183 = arith.constant 0 : index
    %167 = vector.load %arg8[%c74, %c0_183] : memref<440x128xf32, #tpu.memory_space<vmem>>, vector<336x128xf32>
    %168 = arith.truncf %167 : vector<336x128xf32> to vector<336x128xbf16>
    %c17 = arith.constant 17 : index
    %c0_184 = arith.constant 0 : index
    %c0_185 = arith.constant 0 : index
    %169 = vector.load %arg5[%c17, %c0_184, %c0_185] : memref<25x128x128xbf16, #tpu.memory_space<vmem>>, vector<1x128x128xbf16>
    %170 = vector.shape_cast %169 : vector<1x128x128xbf16> to vector<128x128xbf16>
    %cst_186 = arith.constant dense<0.000000e+00> : vector<336x128xf32>
    %171 = tpu.matmul %168, %170, %cst_186 {dimension_numbers = #tpu.dot_dimension_numbers<[1], [0], [0], [1], [0, 0, 1, 1], [], []>} : vector<336x128xbf16>, vector<128x128xbf16>, vector<336x128xf32> -> vector<336x128xf32>
    %c0_187 = arith.constant 0 : index
    %c0_188 = arith.constant 0 : index
    %172 = vector.load %arg9[%c0_187, %c0_188] : memref<336x128xf32, #tpu.memory_space<vmem>>, vector<336x128xf32>
    %173 = arith.addf %172, %171 : vector<336x128xf32>
    %c0_189 = arith.constant 0 : index
    %c0_190 = arith.constant 0 : index
    %174 = vector.load %arg9[%c0_189, %c0_190] : memref<336x128xf32, #tpu.memory_space<vmem>>, vector<336x128xf32>
    tpu.vector_store %arg9[%c0_189, %c0_190], %173 {strides = array<i32>} : memref<336x128xf32, #tpu.memory_space<vmem>>, vector<336x128xf32>,
    %c75 = arith.constant 75 : index
    %c0_191 = arith.constant 0 : index
    %175 = vector.load %arg8[%c75, %c0_191] : memref<440x128xf32, #tpu.memory_space<vmem>>, vector<336x128xf32>
    %176 = arith.truncf %175 : vector<336x128xf32> to vector<336x128xbf16>
    %c18 = arith.constant 18 : index
    %c0_192 = arith.constant 0 : index
    %c0_193 = arith.constant 0 : index
    %177 = vector.load %arg5[%c18, %c0_192, %c0_193] : memref<25x128x128xbf16, #tpu.memory_space<vmem>>, vector<1x128x128xbf16>
    %178 = vector.shape_cast %177 : vector<1x128x128xbf16> to vector<128x128xbf16>
    %cst_194 = arith.constant dense<0.000000e+00> : vector<336x128xf32>
    %179 = tpu.matmul %176, %178, %cst_194 {dimension_numbers = #tpu.dot_dimension_numbers<[1], [0], [0], [1], [0, 0, 1, 1], [], []>} : vector<336x128xbf16>, vector<128x128xbf16>, vector<336x128xf32> -> vector<336x128xf32>
    %c0_195 = arith.constant 0 : index
    %c0_196 = arith.constant 0 : index
    %180 = vector.load %arg9[%c0_195, %c0_196] : memref<336x128xf32, #tpu.memory_space<vmem>>, vector<336x128xf32>
    %181 = arith.addf %180, %179 : vector<336x128xf32>
    %c0_197 = arith.constant 0 : index
    %c0_198 = arith.constant 0 : index
    %182 = vector.load %arg9[%c0_197, %c0_198] : memref<336x128xf32, #tpu.memory_space<vmem>>, vector<336x128xf32>
    tpu.vector_store %arg9[%c0_197, %c0_198], %181 {strides = array<i32>} : memref<336x128xf32, #tpu.memory_space<vmem>>, vector<336x128xf32>,
    %c76 = arith.constant 76 : index
    %c0_199 = arith.constant 0 : index
    %183 = vector.load %arg8[%c76, %c0_199] : memref<440x128xf32, #tpu.memory_space<vmem>>, vector<336x128xf32>
    %184 = arith.truncf %183 : vector<336x128xf32> to vector<336x128xbf16>
    %c19 = arith.constant 19 : index
    %c0_200 = arith.constant 0 : index
    %c0_201 = arith.constant 0 : index
    %185 = vector.load %arg5[%c19, %c0_200, %c0_201] : memref<25x128x128xbf16, #tpu.memory_space<vmem>>, vector<1x128x128xbf16>
    %186 = vector.shape_cast %185 : vector<1x128x128xbf16> to vector<128x128xbf16>
    %cst_202 = arith.constant dense<0.000000e+00> : vector<336x128xf32>
    %187 = tpu.matmul %184, %186, %cst_202 {dimension_numbers = #tpu.dot_dimension_numbers<[1], [0], [0], [1], [0, 0, 1, 1], [], []>} : vector<336x128xbf16>, vector<128x128xbf16>, vector<336x128xf32> -> vector<336x128xf32>
    %c0_203 = arith.constant 0 : index
    %c0_204 = arith.constant 0 : index
    %188 = vector.load %arg9[%c0_203, %c0_204] : memref<336x128xf32, #tpu.memory_space<vmem>>, vector<336x128xf32>
    %189 = arith.addf %188, %187 : vector<336x128xf32>
    %c0_205 = arith.constant 0 : index
    %c0_206 = arith.constant 0 : index
    %190 = vector.load %arg9[%c0_205, %c0_206] : memref<336x128xf32, #tpu.memory_space<vmem>>, vector<336x128xf32>
    tpu.vector_store %arg9[%c0_205, %c0_206], %189 {strides = array<i32>} : memref<336x128xf32, #tpu.memory_space<vmem>>, vector<336x128xf32>,
    %c96 = arith.constant 96 : index
    %c0_207 = arith.constant 0 : index
    %191 = vector.load %arg8[%c96, %c0_207] : memref<440x128xf32, #tpu.memory_space<vmem>>, vector<336x128xf32>
    %192 = arith.truncf %191 : vector<336x128xf32> to vector<336x128xbf16>
    %c20 = arith.constant 20 : index
    %c0_208 = arith.constant 0 : index
    %c0_209 = arith.constant 0 : index
    %193 = vector.load %arg5[%c20, %c0_208, %c0_209] : memref<25x128x128xbf16, #tpu.memory_space<vmem>>, vector<1x128x128xbf16>
    %194 = vector.shape_cast %193 : vector<1x128x128xbf16> to vector<128x128xbf16>
    %cst_210 = arith.constant dense<0.000000e+00> : vector<336x128xf32>
    %195 = tpu.matmul %192, %194, %cst_210 {dimension_numbers = #tpu.dot_dimension_numbers<[1], [0], [0], [1], [0, 0, 1, 1], [], []>} : vector<336x128xbf16>, vector<128x128xbf16>, vector<336x128xf32> -> vector<336x128xf32>
    %c0_211 = arith.constant 0 : index
    %c0_212 = arith.constant 0 : index
    %196 = vector.load %arg9[%c0_211, %c0_212] : memref<336x128xf32, #tpu.memory_space<vmem>>, vector<336x128xf32>
    %197 = arith.addf %196, %195 : vector<336x128xf32>
    %c0_213 = arith.constant 0 : index
    %c0_214 = arith.constant 0 : index
    %198 = vector.load %arg9[%c0_213, %c0_214] : memref<336x128xf32, #tpu.memory_space<vmem>>, vector<336x128xf32>
    tpu.vector_store %arg9[%c0_213, %c0_214], %197 {strides = array<i32>} : memref<336x128xf32, #tpu.memory_space<vmem>>, vector<336x128xf32>,
    %c97 = arith.constant 97 : index
    %c0_215 = arith.constant 0 : index
    %199 = vector.load %arg8[%c97, %c0_215] : memref<440x128xf32, #tpu.memory_space<vmem>>, vector<336x128xf32>
    %200 = arith.truncf %199 : vector<336x128xf32> to vector<336x128xbf16>
    %c21 = arith.constant 21 : index
    %c0_216 = arith.constant 0 : index
    %c0_217 = arith.constant 0 : index
    %201 = vector.load %arg5[%c21, %c0_216, %c0_217] : memref<25x128x128xbf16, #tpu.memory_space<vmem>>, vector<1x128x128xbf16>
    %202 = vector.shape_cast %201 : vector<1x128x128xbf16> to vector<128x128xbf16>
    %cst_218 = arith.constant dense<0.000000e+00> : vector<336x128xf32>
    %203 = tpu.matmul %200, %202, %cst_218 {dimension_numbers = #tpu.dot_dimension_numbers<[1], [0], [0], [1], [0, 0, 1, 1], [], []>} : vector<336x128xbf16>, vector<128x128xbf16>, vector<336x128xf32> -> vector<336x128xf32>
    %c0_219 = arith.constant 0 : index
    %c0_220 = arith.constant 0 : index
    %204 = vector.load %arg9[%c0_219, %c0_220] : memref<336x128xf32, #tpu.memory_space<vmem>>, vector<336x128xf32>
    %205 = arith.addf %204, %203 : vector<336x128xf32>
    %c0_221 = arith.constant 0 : index
    %c0_222 = arith.constant 0 : index
    %206 = vector.load %arg9[%c0_221, %c0_222] : memref<336x128xf32, #tpu.memory_space<vmem>>, vector<336x128xf32>
    tpu.vector_store %arg9[%c0_221, %c0_222], %205 {strides = array<i32>} : memref<336x128xf32, #tpu.memory_space<vmem>>, vector<336x128xf32>,
    %c98 = arith.constant 98 : index
    %c0_223 = arith.constant 0 : index
    %207 = vector.load %arg8[%c98, %c0_223] : memref<440x128xf32, #tpu.memory_space<vmem>>, vector<336x128xf32>
    %208 = arith.truncf %207 : vector<336x128xf32> to vector<336x128xbf16>
    %c22 = arith.constant 22 : index
    %c0_224 = arith.constant 0 : index
    %c0_225 = arith.constant 0 : index
    %209 = vector.load %arg5[%c22, %c0_224, %c0_225] : memref<25x128x128xbf16, #tpu.memory_space<vmem>>, vector<1x128x128xbf16>
    %210 = vector.shape_cast %209 : vector<1x128x128xbf16> to vector<128x128xbf16>
    %cst_226 = arith.constant dense<0.000000e+00> : vector<336x128xf32>
    %211 = tpu.matmul %208, %210, %cst_226 {dimension_numbers = #tpu.dot_dimension_numbers<[1], [0], [0], [1], [0, 0, 1, 1], [], []>} : vector<336x128xbf16>, vector<128x128xbf16>, vector<336x128xf32> -> vector<336x128xf32>
    %c0_227 = arith.constant 0 : index
    %c0_228 = arith.constant 0 : index
    %212 = vector.load %arg9[%c0_227, %c0_228] : memref<336x128xf32, #tpu.memory_space<vmem>>, vector<336x128xf32>
    %213 = arith.addf %212, %211 : vector<336x128xf32>
    %c0_229 = arith.constant 0 : index
    %c0_230 = arith.constant 0 : index
    %214 = vector.load %arg9[%c0_229, %c0_230] : memref<336x128xf32, #tpu.memory_space<vmem>>, vector<336x128xf32>
    tpu.vector_store %arg9[%c0_229, %c0_230], %213 {strides = array<i32>} : memref<336x128xf32, #tpu.memory_space<vmem>>, vector<336x128xf32>,
    %c99 = arith.constant 99 : index
    %c0_231 = arith.constant 0 : index
    %215 = vector.load %arg8[%c99, %c0_231] : memref<440x128xf32, #tpu.memory_space<vmem>>, vector<336x128xf32>
    %216 = arith.truncf %215 : vector<336x128xf32> to vector<336x128xbf16>
    %c23 = arith.constant 23 : index
    %c0_232 = arith.constant 0 : index
    %c0_233 = arith.constant 0 : index
    %217 = vector.load %arg5[%c23, %c0_232, %c0_233] : memref<25x128x128xbf16, #tpu.memory_space<vmem>>, vector<1x128x128xbf16>
    %218 = vector.shape_cast %217 : vector<1x128x128xbf16> to vector<128x128xbf16>
    %cst_234 = arith.constant dense<0.000000e+00> : vector<336x128xf32>
    %219 = tpu.matmul %216, %218, %cst_234 {dimension_numbers = #tpu.dot_dimension_numbers<[1], [0], [0], [1], [0, 0, 1, 1], [], []>} : vector<336x128xbf16>, vector<128x128xbf16>, vector<336x128xf32> -> vector<336x128xf32>
    %c0_235 = arith.constant 0 : index
    %c0_236 = arith.constant 0 : index
    %220 = vector.load %arg9[%c0_235, %c0_236] : memref<336x128xf32, #tpu.memory_space<vmem>>, vector<336x128xf32>
    %221 = arith.addf %220, %219 : vector<336x128xf32>
    %c0_237 = arith.constant 0 : index
    %c0_238 = arith.constant 0 : index
    %222 = vector.load %arg9[%c0_237, %c0_238] : memref<336x128xf32, #tpu.memory_space<vmem>>, vector<336x128xf32>
    tpu.vector_store %arg9[%c0_237, %c0_238], %221 {strides = array<i32>} : memref<336x128xf32, #tpu.memory_space<vmem>>, vector<336x128xf32>,
    %c100 = arith.constant 100 : index
    %c0_239 = arith.constant 0 : index
    %223 = vector.load %arg8[%c100, %c0_239] : memref<440x128xf32, #tpu.memory_space<vmem>>, vector<336x128xf32>
    %224 = arith.truncf %223 : vector<336x128xf32> to vector<336x128xbf16>
    %c24_240 = arith.constant 24 : index
    %c0_241 = arith.constant 0 : index
    %c0_242 = arith.constant 0 : index
    %225 = vector.load %arg5[%c24_240, %c0_241, %c0_242] : memref<25x128x128xbf16, #tpu.memory_space<vmem>>, vector<1x128x128xbf16>
    %226 = vector.shape_cast %225 : vector<1x128x128xbf16> to vector<128x128xbf16>
    %cst_243 = arith.constant dense<0.000000e+00> : vector<336x128xf32>
    %227 = tpu.matmul %224, %226, %cst_243 {dimension_numbers = #tpu.dot_dimension_numbers<[1], [0], [0], [1], [0, 0, 1, 1], [], []>} : vector<336x128xbf16>, vector<128x128xbf16>, vector<336x128xf32> -> vector<336x128xf32>
    %c0_244 = arith.constant 0 : index
    %c0_245 = arith.constant 0 : index
    %228 = vector.load %arg9[%c0_244, %c0_245] : memref<336x128xf32, #tpu.memory_space<vmem>>, vector<336x128xf32>
    %229 = arith.addf %228, %227 : vector<336x128xf32>
    %c0_246 = arith.constant 0 : index
    %c0_247 = arith.constant 0 : index
    %230 = vector.load %arg9[%c0_246, %c0_247] : memref<336x128xf32, #tpu.memory_space<vmem>>, vector<336x128xf32>
    tpu.vector_store %arg9[%c0_246, %c0_247], %229 {strides = array<i32>} : memref<336x128xf32, #tpu.memory_space<vmem>>, vector<336x128xf32>,
    %c0_248 = arith.constant 0 : index
    %c0_249 = arith.constant 0 : index
    %231 = vector.load %arg6[%c0_248, %c0_249] : memref<1x128xf32, #tpu.memory_space<vmem>>, vector<1x128xf32>
    %c0_250 = arith.constant 0 : index
    %c0_251 = arith.constant 0 : index
    %232 = tpu.strided_load %arg9[%c0_250, %c0_251] {strides = array<i32: 2, 1>} : memref<336x128xf32, #tpu.memory_space<vmem>>, vector<7x128xf32>
    %c1_252 = arith.constant 1 : index
    %c0_253 = arith.constant 0 : index
    %233 = tpu.strided_load %arg9[%c1_252, %c0_253] {strides = array<i32: 2, 1>} : memref<336x128xf32, #tpu.memory_space<vmem>>, vector<7x128xf32>
    %234 = arith.maximumf %232, %233 : vector<7x128xf32>
    %c24_254 = arith.constant 24 : index
    %c0_255 = arith.constant 0 : index
    %235 = tpu.strided_load %arg9[%c24_254, %c0_255] {strides = array<i32: 2, 1>} : memref<336x128xf32, #tpu.memory_space<vmem>>, vector<7x128xf32>
    %236 = arith.maximumf %234, %235 : vector<7x128xf32>
    %c25_256 = arith.constant 25 : index
    %c0_257 = arith.constant 0 : index
    %237 = tpu.strided_load %arg9[%c25_256, %c0_257] {strides = array<i32: 2, 1>} : memref<336x128xf32, #tpu.memory_space<vmem>>, vector<7x128xf32>
    %238 = arith.maximumf %236, %237 : vector<7x128xf32>
    %239 = vector.broadcast %231 : vector<1x128xf32> to vector<7x128xf32>
    %240 = arith.addf %238, %239 : vector<7x128xf32>
    %cst_258 = arith.constant 0.000000e+00 : f32
    %241 = vector.broadcast %cst_258 : f32 to vector<7x128xf32>
    %242 = arith.maximumf %240, %241 : vector<7x128xf32>
    %243 = arith.truncf %242 : vector<7x128xf32> to vector<7x128xbf16>
    %c0_259 = arith.constant 0 : index
    %c0_260 = arith.constant 0 : index
    %c0_261 = arith.constant 0 : index
    %c0_262 = arith.constant 0 : index
    %244 = vector.load %arg7[%c0_259, %c0_260, %c0_261, %c0_262] : memref<1x7x7x128xbf16, #tpu.memory_space<vmem>>, vector<1x1x7x128xbf16>
    %245 = vector.shape_cast %244 : vector<1x1x7x128xbf16> to vector<7x128xbf16>
    %246 = vector.shape_cast %243 : vector<7x128xbf16> to vector<1x1x7x128xbf16>
    tpu.vector_store %arg7[%c0_259, %c0_260, %c0_261, %c0_262], %246 {strides = array<i32>} : memref<1x7x7x128xbf16, #tpu.memory_space<vmem>>, vector<1x1x7x128xbf16>,
    %c48_263 = arith.constant 48 : index
    %c0_264 = arith.constant 0 : index
    %247 = tpu.strided_load %arg9[%c48_263, %c0_264] {strides = array<i32: 2, 1>} : memref<336x128xf32, #tpu.memory_space<vmem>>, vector<7x128xf32>
    %c49_265 = arith.constant 49 : index
    %c0_266 = arith.constant 0 : index
    %248 = tpu.strided_load %arg9[%c49_265, %c0_266] {strides = array<i32: 2, 1>} : memref<336x128xf32, #tpu.memory_space<vmem>>, vector<7x128xf32>
    %249 = arith.maximumf %247, %248 : vector<7x128xf32>
    %c72_267 = arith.constant 72 : index
    %c0_268 = arith.constant 0 : index
    %250 = tpu.strided_load %arg9[%c72_267, %c0_268] {strides = array<i32: 2, 1>} : memref<336x128xf32, #tpu.memory_space<vmem>>, vector<7x128xf32>
    %251 = arith.maximumf %249, %250 : vector<7x128xf32>
    %c73_269 = arith.constant 73 : index
    %c0_270 = arith.constant 0 : index
    %252 = tpu.strided_load %arg9[%c73_269, %c0_270] {strides = array<i32: 2, 1>} : memref<336x128xf32, #tpu.memory_space<vmem>>, vector<7x128xf32>
    %253 = arith.maximumf %251, %252 : vector<7x128xf32>
    %254 = vector.broadcast %231 : vector<1x128xf32> to vector<7x128xf32>
    %255 = arith.addf %253, %254 : vector<7x128xf32>
    %cst_271 = arith.constant 0.000000e+00 : f32
    %256 = vector.broadcast %cst_271 : f32 to vector<7x128xf32>
    %257 = arith.maximumf %255, %256 : vector<7x128xf32>
    %258 = arith.truncf %257 : vector<7x128xf32> to vector<7x128xbf16>
    %c0_272 = arith.constant 0 : index
    %c1_273 = arith.constant 1 : index
    %c0_274 = arith.constant 0 : index
    %c0_275 = arith.constant 0 : index
    %259 = vector.load %arg7[%c0_272, %c1_273, %c0_274, %c0_275] : memref<1x7x7x128xbf16, #tpu.memory_space<vmem>>, vector<1x1x7x128xbf16>
    %260 = vector.shape_cast %259 : vector<1x1x7x128xbf16> to vector<7x128xbf16>
    %261 = vector.shape_cast %258 : vector<7x128xbf16> to vector<1x1x7x128xbf16>
    tpu.vector_store %arg7[%c0_272, %c1_273, %c0_274, %c0_275], %261 {strides = array<i32>} : memref<1x7x7x128xbf16, #tpu.memory_space<vmem>>, vector<1x1x7x128xbf16>,
    %c96_276 = arith.constant 96 : index
    %c0_277 = arith.constant 0 : index
    %262 = tpu.strided_load %arg9[%c96_276, %c0_277] {strides = array<i32: 2, 1>} : memref<336x128xf32, #tpu.memory_space<vmem>>, vector<7x128xf32>
    %c97_278 = arith.constant 97 : index
    %c0_279 = arith.constant 0 : index
    %263 = tpu.strided_load %arg9[%c97_278, %c0_279] {strides = array<i32: 2, 1>} : memref<336x128xf32, #tpu.memory_space<vmem>>, vector<7x128xf32>
    %264 = arith.maximumf %262, %263 : vector<7x128xf32>
    %c120 = arith.constant 120 : index
    %c0_280 = arith.constant 0 : index
    %265 = tpu.strided_load %arg9[%c120, %c0_280] {strides = array<i32: 2, 1>} : memref<336x128xf32, #tpu.memory_space<vmem>>, vector<7x128xf32>
    %266 = arith.maximumf %264, %265 : vector<7x128xf32>
    %c121 = arith.constant 121 : index
    %c0_281 = arith.constant 0 : index
    %267 = tpu.strided_load %arg9[%c121, %c0_281] {strides = array<i32: 2, 1>} : memref<336x128xf32, #tpu.memory_space<vmem>>, vector<7x128xf32>
    %268 = arith.maximumf %266, %267 : vector<7x128xf32>
    %269 = vector.broadcast %231 : vector<1x128xf32> to vector<7x128xf32>
    %270 = arith.addf %268, %269 : vector<7x128xf32>
    %cst_282 = arith.constant 0.000000e+00 : f32
    %271 = vector.broadcast %cst_282 : f32 to vector<7x128xf32>
    %272 = arith.maximumf %270, %271 : vector<7x128xf32>
    %273 = arith.truncf %272 : vector<7x128xf32> to vector<7x128xbf16>
    %c0_283 = arith.constant 0 : index
    %c2_284 = arith.constant 2 : index
    %c0_285 = arith.constant 0 : index
    %c0_286 = arith.constant 0 : index
    %274 = vector.load %arg7[%c0_283, %c2_284, %c0_285, %c0_286] : memref<1x7x7x128xbf16, #tpu.memory_space<vmem>>, vector<1x1x7x128xbf16>
    %275 = vector.shape_cast %274 : vector<1x1x7x128xbf16> to vector<7x128xbf16>
    %276 = vector.shape_cast %273 : vector<7x128xbf16> to vector<1x1x7x128xbf16>
    tpu.vector_store %arg7[%c0_283, %c2_284, %c0_285, %c0_286], %276 {strides = array<i32>} : memref<1x7x7x128xbf16, #tpu.memory_space<vmem>>, vector<1x1x7x128xbf16>,
    %c144 = arith.constant 144 : index
    %c0_287 = arith.constant 0 : index
    %277 = tpu.strided_load %arg9[%c144, %c0_287] {strides = array<i32: 2, 1>} : memref<336x128xf32, #tpu.memory_space<vmem>>, vector<7x128xf32>
    %c145 = arith.constant 145 : index
    %c0_288 = arith.constant 0 : index
    %278 = tpu.strided_load %arg9[%c145, %c0_288] {strides = array<i32: 2, 1>} : memref<336x128xf32, #tpu.memory_space<vmem>>, vector<7x128xf32>
    %279 = arith.maximumf %277, %278 : vector<7x128xf32>
    %c168 = arith.constant 168 : index
    %c0_289 = arith.constant 0 : index
    %280 = tpu.strided_load %arg9[%c168, %c0_289] {strides = array<i32: 2, 1>} : memref<336x128xf32, #tpu.memory_space<vmem>>, vector<7x128xf32>
    %281 = arith.maximumf %279, %280 : vector<7x128xf32>
    %c169 = arith.constant 169 : index
    %c0_290 = arith.constant 0 : index
    %282 = tpu.strided_load %arg9[%c169, %c0_290] {strides = array<i32: 2, 1>} : memref<336x128xf32, #tpu.memory_space<vmem>>, vector<7x128xf32>
    %283 = arith.maximumf %281, %282 : vector<7x128xf32>
    %284 = vector.broadcast %231 : vector<1x128xf32> to vector<7x128xf32>
    %285 = arith.addf %283, %284 : vector<7x128xf32>
    %cst_291 = arith.constant 0.000000e+00 : f32
    %286 = vector.broadcast %cst_291 : f32 to vector<7x128xf32>
    %287 = arith.maximumf %285, %286 : vector<7x128xf32>
    %288 = arith.truncf %287 : vector<7x128xf32> to vector<7x128xbf16>
    %c0_292 = arith.constant 0 : index
    %c3_293 = arith.constant 3 : index
    %c0_294 = arith.constant 0 : index
    %c0_295 = arith.constant 0 : index
    %289 = vector.load %arg7[%c0_292, %c3_293, %c0_294, %c0_295] : memref<1x7x7x128xbf16, #tpu.memory_space<vmem>>, vector<1x1x7x128xbf16>
    %290 = vector.shape_cast %289 : vector<1x1x7x128xbf16> to vector<7x128xbf16>
    %291 = vector.shape_cast %288 : vector<7x128xbf16> to vector<1x1x7x128xbf16>
    tpu.vector_store %arg7[%c0_292, %c3_293, %c0_294, %c0_295], %291 {strides = array<i32>} : memref<1x7x7x128xbf16, #tpu.memory_space<vmem>>, vector<1x1x7x128xbf16>,
    %c192 = arith.constant 192 : index
    %c0_296 = arith.constant 0 : index
    %292 = tpu.strided_load %arg9[%c192, %c0_296] {strides = array<i32: 2, 1>} : memref<336x128xf32, #tpu.memory_space<vmem>>, vector<7x128xf32>
    %c193 = arith.constant 193 : index
    %c0_297 = arith.constant 0 : index
    %293 = tpu.strided_load %arg9[%c193, %c0_297] {strides = array<i32: 2, 1>} : memref<336x128xf32, #tpu.memory_space<vmem>>, vector<7x128xf32>
    %294 = arith.maximumf %292, %293 : vector<7x128xf32>
    %c216 = arith.constant 216 : index
    %c0_298 = arith.constant 0 : index
    %295 = tpu.strided_load %arg9[%c216, %c0_298] {strides = array<i32: 2, 1>} : memref<336x128xf32, #tpu.memory_space<vmem>>, vector<7x128xf32>
    %296 = arith.maximumf %294, %295 : vector<7x128xf32>
    %c217 = arith.constant 217 : index
    %c0_299 = arith.constant 0 : index
    %297 = tpu.strided_load %arg9[%c217, %c0_299] {strides = array<i32: 2, 1>} : memref<336x128xf32, #tpu.memory_space<vmem>>, vector<7x128xf32>
    %298 = arith.maximumf %296, %297 : vector<7x128xf32>
    %299 = vector.broadcast %231 : vector<1x128xf32> to vector<7x128xf32>
    %300 = arith.addf %298, %299 : vector<7x128xf32>
    %cst_300 = arith.constant 0.000000e+00 : f32
    %301 = vector.broadcast %cst_300 : f32 to vector<7x128xf32>
    %302 = arith.maximumf %300, %301 : vector<7x128xf32>
    %303 = arith.truncf %302 : vector<7x128xf32> to vector<7x128xbf16>
    %c0_301 = arith.constant 0 : index
    %c4_302 = arith.constant 4 : index
    %c0_303 = arith.constant 0 : index
    %c0_304 = arith.constant 0 : index
    %304 = vector.load %arg7[%c0_301, %c4_302, %c0_303, %c0_304] : memref<1x7x7x128xbf16, #tpu.memory_space<vmem>>, vector<1x1x7x128xbf16>
    %305 = vector.shape_cast %304 : vector<1x1x7x128xbf16> to vector<7x128xbf16>
    %306 = vector.shape_cast %303 : vector<7x128xbf16> to vector<1x1x7x128xbf16>
    tpu.vector_store %arg7[%c0_301, %c4_302, %c0_303, %c0_304], %306 {strides = array<i32>} : memref<1x7x7x128xbf16, #tpu.memory_space<vmem>>, vector<1x1x7x128xbf16>,
    %c240 = arith.constant 240 : index
    %c0_305 = arith.constant 0 : index
    %307 = tpu.strided_load %arg9[%c240, %c0_305] {strides = array<i32: 2, 1>} : memref<336x128xf32, #tpu.memory_space<vmem>>, vector<7x128xf32>
    %c241 = arith.constant 241 : index
    %c0_306 = arith.constant 0 : index
    %308 = tpu.strided_load %arg9[%c241, %c0_306] {strides = array<i32: 2, 1>} : memref<336x128xf32, #tpu.memory_space<vmem>>, vector<7x128xf32>
    %309 = arith.maximumf %307, %308 : vector<7x128xf32>
    %c264 = arith.constant 264 : index
    %c0_307 = arith.constant 0 : index
    %310 = tpu.strided_load %arg9[%c264, %c0_307] {strides = array<i32: 2, 1>} : memref<336x128xf32, #tpu.memory_space<vmem>>, vector<7x128xf32>
    %311 = arith.maximumf %309, %310 : vector<7x128xf32>
    %c265 = arith.constant 265 : index
    %c0_308 = arith.constant 0 : index
    %312 = tpu.strided_load %arg9[%c265, %c0_308] {strides = array<i32: 2, 1>} : memref<336x128xf32, #tpu.memory_space<vmem>>, vector<7x128xf32>
    %313 = arith.maximumf %311, %312 : vector<7x128xf32>
    %314 = vector.broadcast %231 : vector<1x128xf32> to vector<7x128xf32>
    %315 = arith.addf %313, %314 : vector<7x128xf32>
    %cst_309 = arith.constant 0.000000e+00 : f32
    %316 = vector.broadcast %cst_309 : f32 to vector<7x128xf32>
    %317 = arith.maximumf %315, %316 : vector<7x128xf32>
    %318 = arith.truncf %317 : vector<7x128xf32> to vector<7x128xbf16>
    %c0_310 = arith.constant 0 : index
    %c5_311 = arith.constant 5 : index
    %c0_312 = arith.constant 0 : index
    %c0_313 = arith.constant 0 : index
    %319 = vector.load %arg7[%c0_310, %c5_311, %c0_312, %c0_313] : memref<1x7x7x128xbf16, #tpu.memory_space<vmem>>, vector<1x1x7x128xbf16>
    %320 = vector.shape_cast %319 : vector<1x1x7x128xbf16> to vector<7x128xbf16>
    %321 = vector.shape_cast %318 : vector<7x128xbf16> to vector<1x1x7x128xbf16>
    tpu.vector_store %arg7[%c0_310, %c5_311, %c0_312, %c0_313], %321 {strides = array<i32>} : memref<1x7x7x128xbf16, #tpu.memory_space<vmem>>, vector<1x1x7x128xbf16>,
    %c288 = arith.constant 288 : index
    %c0_314 = arith.constant 0 : index
    %322 = tpu.strided_load %arg9[%c288, %c0_314] {strides = array<i32: 2, 1>} : memref<336x128xf32, #tpu.memory_space<vmem>>, vector<7x128xf32>
    %c289 = arith.constant 289 : index
    %c0_315 = arith.constant 0 : index
    %323 = tpu.strided_load %arg9[%c289, %c0_315] {strides = array<i32: 2, 1>} : memref<336x128xf32, #tpu.memory_space<vmem>>, vector<7x128xf32>
    %324 = arith.maximumf %322, %323 : vector<7x128xf32>
    %c312 = arith.constant 312 : index
    %c0_316 = arith.constant 0 : index
    %325 = tpu.strided_load %arg9[%c312, %c0_316] {strides = array<i32: 2, 1>} : memref<336x128xf32, #tpu.memory_space<vmem>>, vector<7x128xf32>
    %326 = arith.maximumf %324, %325 : vector<7x128xf32>
    %c313 = arith.constant 313 : index
    %c0_317 = arith.constant 0 : index
    %327 = tpu.strided_load %arg9[%c313, %c0_317] {strides = array<i32: 2, 1>} : memref<336x128xf32, #tpu.memory_space<vmem>>, vector<7x128xf32>
    %328 = arith.maximumf %326, %327 : vector<7x128xf32>
    %329 = vector.broadcast %231 : vector<1x128xf32> to vector<7x128xf32>
    %330 = arith.addf %328, %329 : vector<7x128xf32>
    %cst_318 = arith.constant 0.000000e+00 : f32
    %331 = vector.broadcast %cst_318 : f32 to vector<7x128xf32>
    %332 = arith.maximumf %330, %331 : vector<7x128xf32>
    %333 = arith.truncf %332 : vector<7x128xf32> to vector<7x128xbf16>
    %c0_319 = arith.constant 0 : index
    %c6_320 = arith.constant 6 : index
    %c0_321 = arith.constant 0 : index
    %c0_322 = arith.constant 0 : index
    %334 = vector.load %arg7[%c0_319, %c6_320, %c0_321, %c0_322] : memref<1x7x7x128xbf16, #tpu.memory_space<vmem>>, vector<1x1x7x128xbf16>
    %335 = vector.shape_cast %334 : vector<1x1x7x128xbf16> to vector<7x128xbf16>
    %336 = vector.shape_cast %333 : vector<7x128xbf16> to vector<1x1x7x128xbf16>
    tpu.vector_store %arg7[%c0_319, %c6_320, %c0_321, %c0_322], %336 {strides = array<i32>} : memref<1x7x7x128xbf16, #tpu.memory_space<vmem>>, vector<1x1x7x128xbf16>,
    return
  }
  func.func @transform_0(%arg0: i32) -> (i32, i32, i32, i32) {
    %c0_i32 = arith.constant 0 : i32
    %c0_i32_0 = arith.constant 0 : i32
    %c0_i32_1 = arith.constant 0 : i32
    %c0_i32_2 = arith.constant 0 : i32
    return %arg0, %c0_i32, %c0_i32_0, %c0_i32_1 : i32, i32, i32, i32
  }
  func.func @transform_1(%arg0: i32) -> (i32, i32) {
    %c0_i32 = arith.constant 0 : i32
    %c0_i32_0 = arith.constant 0 : i32
    %c0_i32_1 = arith.constant 0 : i32
    return %c0_i32, %c0_i32_0 : i32, i32
  }
  func.func @transform_2(%arg0: i32) -> (i32, i32) {
    %c0_i32 = arith.constant 0 : i32
    %c0_i32_0 = arith.constant 0 : i32
    %c0_i32_1 = arith.constant 0 : i32
    return %c0_i32, %c0_i32_0 : i32, i32
  }
  func.func @transform_3(%arg0: i32) -> (i32, i32) {
    %c0_i32 = arith.constant 0 : i32
    %c0_i32_0 = arith.constant 0 : i32
    %c0_i32_1 = arith.constant 0 : i32
    return %c0_i32, %c0_i32_0 : i32, i32
  }
  func.func @transform_4(%arg0: i32) -> (i32, i32, i32) {
    %c0_i32 = arith.constant 0 : i32
    %c0_i32_0 = arith.constant 0 : i32
    %c0_i32_1 = arith.constant 0 : i32
    %c0_i32_2 = arith.constant 0 : i32
    return %c0_i32, %c0_i32_0, %c0_i32_1 : i32, i32, i32
  }
  func.func @transform_5(%arg0: i32) -> (i32, i32) {
    %c0_i32 = arith.constant 0 : i32
    %c0_i32_0 = arith.constant 0 : i32
    %c0_i32_1 = arith.constant 0 : i32
    return %c0_i32, %c0_i32_0 : i32, i32
  }
  func.func @transform_6(%arg0: i32) -> (i32, i32, i32, i32) {
    %c0_i32 = arith.constant 0 : i32
    %c0_i32_0 = arith.constant 0 : i32
    %c0_i32_1 = arith.constant 0 : i32
    %c0_i32_2 = arith.constant 0 : i32
    return %arg0, %c0_i32, %c0_i32_0, %c0_i32_1 : i32, i32, i32, i32
  }
}

module attributes {stable_mosaic.version = 11 : i64} {
  func.func @fc_kernel(%arg0: i32, %arg1: memref<2x6272xbf16, #tpu.memory_space<vmem>>, %arg2: memref<6272x128xbf16, #tpu.memory_space<vmem>>, %arg3: memref<1x128xf32, #tpu.memory_space<vmem>>, %arg4: memref<2x128xf32, #tpu.memory_space<vmem>>) attributes {dimension_semantics = [#tpu.dimension_semantics<arbitrary>], iteration_bounds = array<i64: 1>, scalar_prefetch = 0 : i64, scratch_operands = 0 : i64, tpu.core_type = #tpu.core_type<tc>, window_params = [{pipeline_mode = #tpu.pipeline_mode<synchronous>, transform_indices = @transform_0, window_bounds = array<i64: 2, 6272>}, {pipeline_mode = #tpu.pipeline_mode<synchronous>, transform_indices = @transform_1, window_bounds = array<i64: 6272, 128>}, {pipeline_mode = #tpu.pipeline_mode<synchronous>, transform_indices = @transform_2, window_bounds = array<i64: 1, 128>}, {pipeline_mode = #tpu.pipeline_mode<synchronous>, transform_indices = @transform_3, window_bounds = array<i64: 2, 128>}]} {
    %c0 = arith.constant 0 : index
    %c0_0 = arith.constant 0 : index
    %0 = vector.load %arg1[%c0, %c0_0] : memref<2x6272xbf16, #tpu.memory_space<vmem>>, vector<2x6272xbf16>
    %c0_1 = arith.constant 0 : index
    %c0_2 = arith.constant 0 : index
    %1 = vector.load %arg2[%c0_1, %c0_2] : memref<6272x128xbf16, #tpu.memory_space<vmem>>, vector<6272x128xbf16>
    %cst = arith.constant dense<0.000000e+00> : vector<2x128xf32>
    %2 = tpu.matmul %0, %1, %cst {dimension_numbers = #tpu.dot_dimension_numbers<[1], [0], [0], [1], [0, 0, 1, 1], [], []>} : vector<2x6272xbf16>, vector<6272x128xbf16>, vector<2x128xf32> -> vector<2x128xf32>
    %c0_3 = arith.constant 0 : index
    %c0_4 = arith.constant 0 : index
    %3 = vector.load %arg3[%c0_3, %c0_4] : memref<1x128xf32, #tpu.memory_space<vmem>>, vector<1x128xf32>
    %4 = vector.broadcast %3 : vector<1x128xf32> to vector<2x128xf32>
    %5 = arith.addf %2, %4 : vector<2x128xf32>
    %c0_5 = arith.constant 0 : index
    %c0_6 = arith.constant 0 : index
    %6 = vector.load %arg4[%c0_5, %c0_6] : memref<2x128xf32, #tpu.memory_space<vmem>>, vector<2x128xf32>
    tpu.vector_store %arg4[%c0_5, %c0_6], %5 {strides = array<i32>} : memref<2x128xf32, #tpu.memory_space<vmem>>, vector<2x128xf32>,
    return
  }
  func.func @transform_0(%arg0: i32) -> (i32, i32) {
    %c0_i32 = arith.constant 0 : i32
    %c0_i32_0 = arith.constant 0 : i32
    %c0_i32_1 = arith.constant 0 : i32
    return %c0_i32, %c0_i32_0 : i32, i32
  }
  func.func @transform_1(%arg0: i32) -> (i32, i32) {
    %c0_i32 = arith.constant 0 : i32
    %c0_i32_0 = arith.constant 0 : i32
    %c0_i32_1 = arith.constant 0 : i32
    return %c0_i32, %c0_i32_0 : i32, i32
  }
  func.func @transform_2(%arg0: i32) -> (i32, i32) {
    %c0_i32 = arith.constant 0 : i32
    %c0_i32_0 = arith.constant 0 : i32
    %c0_i32_1 = arith.constant 0 : i32
    return %c0_i32, %c0_i32_0 : i32, i32
  }
  func.func @transform_3(%arg0: i32) -> (i32, i32) {
    %c0_i32 = arith.constant 0 : i32
    %c0_i32_0 = arith.constant 0 : i32
    %c0_i32_1 = arith.constant 0 : i32
    return %c0_i32, %c0_i32_0 : i32, i32
  }
}

</mosaic_0001>

<bundles_post_ra>
// kernel: baseline1_forward.3
= control target key start
LH: loop header
LB: loop body
LE: loop exit
PB: predicated region body
PF: predicated region fallthrough
CT: control target
= control target key end

     0   :  { %v825_v27 = vlaneseq  ;;  %v5922_v35 = vmov 1966171168   ;;  %s7239_s0 = inlined_call_operand.vmem [shape: bf16[2,6272], index: 0, kind: input, shape index: {}]   ;;  %s7240_s1 = inlined_call_operand.vmem [shape: bf16[6272,128], index: 1, kind: input, shape index: {}]   ;;  %s7241_s2 = inlined_call_operand.vmem [shape: f32[1,128], index: 2, kind: input, shape index: {}]   ;;  %s7242_s3 = inlined_call_operand.hbm [shape: f32[2,128], index: 3, kind: output, shape index: {}]  }
   0x1   :  { %v5500_v0 = vld [vmem:[%s7240_s1 + $0x40] sm:$0xff]   ;;  %v5504_v4 = vld [vmem:[%s7240_s1 + $0x48] sm:$0xff]   ;;  %v5508_v8 = vld [vmem:[%s7240_s1 + $0x50] sm:$0xff]   ;;  %v823_v36 = vunpack.c.l.s4 %v5922_v35 }
   0x2   :  { %v5501_v1 = vld [vmem:[%s7240_s1] sm:$0xff]   ;;  %4939 = vmatprep.subr.bf16.mxu0 %v5500_v0  ;;  %v5505_v5 = vld [vmem:[%s7240_s1 + $0x8] sm:$0xff]   ;;  %v5509_v9 = vld [vmem:[%s7240_s1 + $0x10] sm:$0xff]   ;;  %v826_v32 = vshrl.u32 %v825_v27, 7 }
   0x3   :  { %v5502_v2 = vld [vmem:[%s7240_s1 + $0xc0] sm:$0xff]   ;;  %4940 = vmatpush3.bf16.msra.mxu0 %v5501_v1  ;;  %v5506_v6 = vld [vmem:[%s7240_s1 + $0xc8] sm:$0xff]   ;;  %v5510_v10 = vld [vmem:[%s7240_s1 + $0xd0] sm:$0xff]   ;;  %v824_v39 = vunpack.c.0.s8 %v823_v36 }
   0x4   :  { %v5503_v3 = vld [vmem:[%s7240_s1 + $0x80] sm:$0xff]   ;;  %4961 = vmatprep.subr.bf16.mxu1 %v5502_v2  ;;  %4941 = vmatprep.subr.bf16.mxu0 %v5504_v4  ;;  %v5507_v7 = vld [vmem:[%s7240_s1 + $0x88] sm:$0xff]   ;;  %v5511_v11 = vld [vmem:[%s7240_s1 + $0x90] sm:$0xff]  }
   0x5   :  { %4962 = vmatpush3.bf16.msra.mxu1 %v5503_v3  ;;  %v5512_v12 = vld [vmem:[%s7240_s1 + $0x58] sm:$0xff]   ;;  %v5516_v16 = vld [vmem:[%s7240_s1 + $0x60] sm:$0xff]   ;;  %v5520_v20 = vld [vmem:[%s7240_s1 + $0x68] sm:$0xff]   ;;  %v6051_v41 = vsub.s32 %v824_v39, %v826_v32 }
   0x6   :  { %4963 = vmatprep.subr.bf16.mxu1 %v5506_v6  ;;  %v5513_v13 = vld [vmem:[%s7240_s1 + $0x18] sm:$0xff]   ;;  %v5517_v17 = vld [vmem:[%s7240_s1 + $0x20] sm:$0xff]   ;;  %v5521_v21 = vld [vmem:[%s7240_s1 + $0x28] sm:$0xff]  }
   0x7   :  { %4942 = vmatpush3.bf16.msra.mxu0 %v5505_v5  ;;  %v5514_v14 = vld [vmem:[%s7240_s1 + $0xd8] sm:$0xff]   ;;  %v5518_v18 = vld [vmem:[%s7240_s1 + $0xe0] sm:$0xff]   ;;  %v5522_v22 = vld [vmem:[%s7240_s1 + $0xe8] sm:$0xff]  }
   0x8   :  { %4943 = vmatprep.subr.bf16.mxu0 %v5508_v8  ;;  %v5515_v15 = vld [vmem:[%s7240_s1 + $0x98] sm:$0xff]   ;;  %v5519_v19 = vld [vmem:[%s7240_s1 + $0xa0] sm:$0xff]   ;;  %v5523_v23 = vld [vmem:[%s7240_s1 + $0xa8] sm:$0xff]  }
   0x9   :  { %4964 = vmatpush3.bf16.msra.mxu1 %v5507_v7  ;;  %v5524_v24 = vld [vmem:[%s7240_s1 + $0x70] sm:$0xff]   ;;  %v5528_v29 = vld [vmem:[%s7240_s1 + $0x78] sm:$0xff]   ;;  %v16_v33 = vld [vmem:[%s7239_s0] sm:$0xff] }
   0xa   :  { %4965 = vmatprep.subr.bf16.mxu1 %v5510_v10  ;;  %v5525_v25 = vld [vmem:[%s7240_s1 + $0x30] sm:$0xff]   ;;  %v5529_v30 = vld [vmem:[%s7240_s1 + $0x38] sm:$0xff]   ;;  %v5533_v37 = vld [vmem:[%s7240_s1 + $0x140] sm:$0xff]   ;;  %v821_v38 = vcombine.high %v16_v33, %v16_v33  ;;  %v828_v42 = vrot.slane %v16_v33, %v6051_v41 }
   0xb   :  { %4944 = vmatpush3.bf16.msra.mxu0 %v5509_v9  ;;  %v5526_v26 = vld [vmem:[%s7240_s1 + $0xf0] sm:$0xff]   ;;  %v5530_v31 = vld [vmem:[%s7240_s1 + $0xf8] sm:$0xff]   ;;  %v5535_v40 = vld [vmem:[%s7240_s1 + $0x1c0] sm:$0xff]  }
   0xc   :  { %4945 = vmatprep.subr.bf16.mxu0 %v5512_v12  ;;  %v5527_v28 = vld [vmem:[%s7240_s1 + $0xb0] sm:$0xff]   ;;  %v5532_v34 = vld [vmem:[%s7240_s1 + $0xb8] sm:$0xff]   ;;  %v6055_v43 = vrot.slane %v821_v38, %v6051_v41  ;;  %v836_v44 = vcombine.high %v828_v42, %v828_v42  ;;  %v844_v45 = vrot.slane %v828_v42, %v6051_v41  ;;  %v5534_v47 = vld [vmem:[%s7240_s1 + $0x100] sm:$0xff]  }
   0xd   :  { %4966 = vmatpush3.bf16.msra.mxu1 %v5511_v11  ;;  %v5536_v49 = vld [vmem:[%s7240_s1 + $0x180] sm:$0xff]   ;;  %v5537_v52 = vld [vmem:[%s7240_s1 + $0x148] sm:$0xff]   ;;  %v5541_v58 = vld [vmem:[%s7240_s1 + $0x150] sm:$0xff]  }
   0xe   :  { %4967 = vmatprep.subr.bf16.mxu1 %v5514_v14  ;;  %v837_v46 = vcombine.high %v6055_v43, %v6055_v43  ;;  %v858_v48 = vrot.slane %v836_v44, %v6051_v41  ;;  %v866_v51 = vcombine.high %v844_v45, %v844_v45  ;;  %v5538_v54 = vld [vmem:[%s7240_s1 + $0x108] sm:$0xff]   ;;  %v5542_v59 = vld [vmem:[%s7240_s1 + $0x110] sm:$0xff]   ;;  %v5545_v62 = vld [vmem:[%s7240_s1 + $0x158] sm:$0xff]  }
   0xf   :  { %4946 = vmatpush3.bf16.msra.mxu0 %v5513_v13  ;;  %v5539_v55 = vld [vmem:[%s7240_s1 + $0x1c8] sm:$0xff]   ;;  %v5543_v60 = vld [vmem:[%s7240_s1 + $0x1d0] sm:$0xff]   ;;  %v5546_v63 = vld [vmem:[%s7240_s1 + $0x118] sm:$0xff]  }
  0x10   :  { %4947 = vmatprep.subr.bf16.mxu0 %v5516_v16  ;;  %v865_v50 = vrot.slane %v837_v46, %v6051_v41  ;;  %3562 = vmatprep.mubr.bf16.mxu0 %v858_v48  ;;  %v868_v53 = vcombine.high %v858_v48, %v858_v48  ;;  %v5540_v57 = vld [vmem:[%s7240_s1 + $0x188] sm:$0xff]   ;;  %v5544_v61 = vld [vmem:[%s7240_s1 + $0x190] sm:$0xff]   ;;  %v5547_v0 = vld [vmem:[%s7240_s1 + $0x1d8] sm:$0xff]  }
  0x11   :  { %4968 = vmatpush3.bf16.msra.mxu1 %v5515_v15  ;;  %v5548_v1 = vld [vmem:[%s7240_s1 + $0x198] sm:$0xff]   ;;  %v5549_v2 = vld [vmem:[%s7240_s1 + $0x160] sm:$0xff]   ;;  %v5553_v6 = vld [vmem:[%s7240_s1 + $0x168] sm:$0xff]  }
  0x12   :  { %4969 = vmatprep.subr.bf16.mxu1 %v5518_v18  ;;  %v869_v56 = vcombine.high %v865_v50, %v865_v50  ;;  %3602 = vmatprep.mubr.bf16.mxu1 %v868_v53  ;;  %v5550_v3 = vld [vmem:[%s7240_s1 + $0x120] sm:$0xff]   ;;  %v5554_v7 = vld [vmem:[%s7240_s1 + $0x128] sm:$0xff]   ;;  %v5557_v10 = vld [vmem:[%s7240_s1 + $0x170] sm:$0xff]   ;;  %v851_v18 = vrot.slane %v6055_v43, %v6051_v41 }
  0x13   :  { %4948 = vmatpush3.bf16.msra.mxu0 %v5517_v17  ;;  %v5551_v4 = vld [vmem:[%s7240_s1 + $0x1e0] sm:$0xff]   ;;  %v5555_v8 = vld [vmem:[%s7240_s1 + $0x1e8] sm:$0xff]   ;;  %v5558_v11 = vld [vmem:[%s7240_s1 + $0x130] sm:$0xff]  }
  0x14   :  { %4949 = vmatprep.subr.bf16.mxu0 %v5520_v20  ;;  %v5552_v5 = vld [vmem:[%s7240_s1 + $0x1a0] sm:$0xff]   ;;  %v5556_v9 = vld [vmem:[%s7240_s1 + $0x1a8] sm:$0xff]   ;;  %v5559_v12 = vld [vmem:[%s7240_s1 + $0x1f0] sm:$0xff]  }
  0x15   :  { %4970 = vmatpush3.bf16.msra.mxu1 %v5519_v19  ;;  %v5560_v13 = vld [vmem:[%s7240_s1 + $0x1b0] sm:$0xff]   ;;  %v5561_v14 = vld [vmem:[%s7240_s1 + $0x178] sm:$0xff]   ;;  %v5565_v19 = vld [vmem:[%s7240_s1 + $0x240] sm:$0xff]  }
  0x16   :  { %4971 = vmatprep.subr.bf16.mxu1 %v5522_v22  ;;  %v5562_v15 = vld [vmem:[%s7240_s1 + $0x138] sm:$0xff]   ;;  %v5566_v20 = vld [vmem:[%s7240_s1 + $0x200] sm:$0xff]   ;;  %v5572_v27 = vld [vmem:[%s7240_s1 + $0x288] sm:$0xff]  }
  0x17   :  { %4950 = vmatpush3.bf16.msra.mxu0 %v5521_v21  ;;  %v5563_v16 = vld [vmem:[%s7240_s1 + $0x1f8] sm:$0xff]   ;;  %v5567_v21 = vld [vmem:[%s7240_s1 + $0x2c0] sm:$0xff]   ;;  %v5586_v42 = vld [vmem:[%s7240_s1 + $0x228] sm:$0xff]  }
  0x18   :  { %4951 = vmatprep.subr.bf16.mxu0 %v5524_v24  ;;  %v5564_v17 = vld [vmem:[%s7240_s1 + $0x1b8] sm:$0xff]   ;;  %v5568_v22 = vld [vmem:[%s7240_s1 + $0x280] sm:$0xff]   ;;  %v5569_v24 = vld [vmem:[%s7240_s1 + $0x248] sm:$0xff]  }
  0x19   :  { %4972 = vmatpush3.bf16.msra.mxu1 %v5523_v23  ;;  %v867_v23 = vcombine.high %v851_v18, %v851_v18  ;;  %v5577_v32 = vld [vmem:[%s7240_s1 + $0x258] sm:$0xff]   ;;  %v5581_v36 = vld [vmem:[%s7240_s1 + $0x260] sm:$0xff]   ;;  %v5587_v43 = vld [vmem:[%s7240_s1 + $0x2e8] sm:$0xff]  }
  0x1a   :  { %4973 = vmatprep.subr.bf16.mxu1 %v5526_v26  ;;  %v5571_v26 = vld [vmem:[%s7240_s1 + $0x2c8] sm:$0xff]   ;;  %v5578_v33 = vld [vmem:[%s7240_s1 + $0x218] sm:$0xff]   ;;  %v5583_v38 = vld [vmem:[%s7240_s1 + $0x2e0] sm:$0xff]  }
  0x1b   :  { %4952 = vmatpush3.bf16.msra.mxu0 %v5525_v25  ;;  %v5570_v25 = vld [vmem:[%s7240_s1 + $0x208] sm:$0xff]   ;;  %v5580_v35 = vld [vmem:[%s7240_s1 + $0x298] sm:$0xff]   ;;  %v5584_v39 = vld [vmem:[%s7240_s1 + $0x2a0] sm:$0xff]  }
  0x1c   :  { %4953 = vmatprep.subr.bf16.mxu0 %v5528_v29  ;;  %v5574_v29 = vld [vmem:[%s7240_s1 + $0x210] sm:$0xff]   ;;  %v5588_v44 = vld [vmem:[%s7240_s1 + $0x2a8] sm:$0xff]  }
  0x1d   :  { %4974 = vmatpush3.bf16.msra.mxu1 %v5527_v28  ;;  %v5573_v28 = vld [vmem:[%s7240_s1 + $0x250] sm:$0xff]   ;;  %v17_v46 = vld [vmem:[%s7239_s0 + $0x8] sm:$0xff] }
  0x1e   :  { %4975 = vmatprep.subr.bf16.mxu1 %v5530_v31  ;;  %v5576_v31 = vld [vmem:[%s7240_s1 + $0x290] sm:$0xff]   ;;  %v877_v48 = vrot.slane %v17_v46, %v6051_v41 }
  0x1f   :  { %4954 = vmatpush3.bf16.msra.mxu0 %v5529_v30  ;;  %v5575_v30 = vld [vmem:[%s7240_s1 + $0x2d0] sm:$0xff]  }
  0x20   :  { %4983 = vmatprep.subr.bf16.mxu0 %v5533_v37  ;;  %v5582_v37 = vld [vmem:[%s7240_s1 + $0x220] sm:$0xff]  }
  0x21   :  { %4976 = vmatpush3.bf16.msra.mxu1 %v5532_v34  ;;  %v5579_v34 = vld [vmem:[%s7240_s1 + $0x2d8] sm:$0xff]  }
  0x22   :  { %5005 = vmatprep.subr.bf16.mxu1 %v5535_v40  ;;  %3563 = vmatmul.mubr.bf16.vlgmr.msra.gmra.mrb[0].mxu0 %v844_v45  ;;  %v5585_v40 = vld [vmem:[%s7240_s1 + $0x268] sm:$0xff]   ;;  %v5589_v45 = vld [vmem:[%s7240_s1 + $0x270] sm:$0xff]  }
  0x23   :  { %4984 = vmatpush3.bf16.msra.mxu0 %v5534_v47  ;;  %3642 = vmatprep.mubr.bf16.mxu0 %v865_v50  ;;  %v5590_v47 = vld [vmem:[%s7240_s1 + $0x230] sm:$0xff]  }
  0x24   :  { %3603 = vmatmul.mubr.bf16.vlgmr.msra.gmra.mrb[0].mxu1 %v866_v51  ;;  %4985 = vmatprep.subr.bf16.mxu0 %v5537_v52  ;;  %v5591_v50 = vld [vmem:[%s7240_s1 + $0x2f0] sm:$0xff]   ;;  %v885_v52 = vcombine.high %v877_v48, %v877_v48 }
  0x25   :  { %5006 = vmatpush3.bf16.msra.mxu1 %v5536_v49  ;;  %3682 = vmatprep.mubr.bf16.mxu1 %v869_v56  ;;  %v870_v49 = vcombine.high %v17_v46, %v17_v46  ;;  %v5592_v51 = vld [vmem:[%s7240_s1 + $0x2b0] sm:$0xff]  }
  0x26   :  { %5007 = vmatprep.subr.bf16.mxu1 %v5539_v55  ;;  %v5594_v55 = vld [vmem:[%s7240_s1 + $0x238] sm:$0xff]   ;;  %v907_v56 = vrot.slane %v885_v52, %v6051_v41  ;;  %v5640_v46 = vld [vmem:[%s7240_s1 + $0x4d0] sm:$0xff]   ;;  %v5646_v52 = vld [vmem:[%s7240_s1 + $0x460] sm:$0xff]  }
  0x27   :  { %4986 = vmatpush3.bf16.msra.mxu0 %v5538_v54  ;;  %v6243_v53 = vrot.slane %v870_v49, %v6051_v41  ;;  %v5593_v54 = vld [vmem:[%s7240_s1 + $0x278] sm:$0xff]  }
  0x28   :  { %4987 = vmatprep.subr.bf16.mxu0 %v5541_v58  ;;  %v5595_v58 = vld [vmem:[%s7240_s1 + $0x2f8] sm:$0xff]  }
  0x29   :  { %5008 = vmatpush3.bf16.msra.mxu1 %v5540_v57  ;;  %v886_v57 = vcombine.high %v6243_v53, %v6243_v53  ;;  %v5643_v49 = vld [vmem:[%s7240_s1 + $0x418] sm:$0xff]  }
  0x2a   :  { %5009 = vmatprep.subr.bf16.mxu1 %v5543_v60  ;;  %v917_v60 = vcombine.high %v907_v56, %v907_v56 }
  0x2b   :  { %4988 = vmatpush3.bf16.msra.mxu0 %v5542_v59  ;;  %v5596_v59 = vld [vmem:[%s7240_s1 + $0x2b8] sm:$0xff]  }
  0x2c   :  { %4989 = vmatprep.subr.bf16.mxu0 %v5545_v62  ;;  %v5597_v62 = vld [vmem:[%s7240_s1 + $0x340] sm:$0xff]  }
  0x2d   :  { %5010 = vmatpush3.bf16.msra.mxu1 %v5544_v61  ;;  %v893_v61 = vrot.slane %v877_v48, %v6051_v41  ;;  %v5642_v48 = vld [vmem:[%s7240_s1 + $0x458] sm:$0xff]  }
  0x2e   :  { %5011 = vmatprep.subr.bf16.mxu1 %v5547_v0  ;;  %v914_v0 = vrot.slane %v886_v57, %v6051_v41  ;;  %v5651_v57 = vld [vmem:[%s7240_s1 + $0x428] sm:$0xff]  }
  0x2f   :  { %4990 = vmatpush3.bf16.msra.mxu0 %v5546_v63  ;;  %v5598_v63 = vld [vmem:[%s7240_s1 + $0x300] sm:$0xff]  }
  0x30   :  { %4991 = vmatprep.subr.bf16.mxu0 %v5549_v2  ;;  %v5600_v2 = vld [vmem:[%s7240_s1 + $0x380] sm:$0xff]  }
  0x31   :  { %5012 = vmatpush3.bf16.msra.mxu1 %v5548_v1  ;;  %v5599_v1 = vld [vmem:[%s7240_s1 + $0x3c0] sm:$0xff]  }
  0x32   :  { %5013 = vmatprep.subr.bf16.mxu1 %v5551_v4  ;;  %v5601_v4 = vld [vmem:[%s7240_s1 + $0x348] sm:$0xff]  }
  0x33   :  { %4992 = vmatpush3.bf16.msra.mxu0 %v5550_v3  ;;  %v915_v3 = vcombine.high %v893_v61, %v893_v61 }
  0x34   :  { %4993 = vmatprep.subr.bf16.mxu0 %v5553_v6  ;;  %v918_v6 = vcombine.high %v914_v0, %v914_v0 }
  0x35   :  { %5014 = vmatpush3.bf16.msra.mxu1 %v5552_v5  ;;  %v5602_v5 = vld [vmem:[%s7240_s1 + $0x308] sm:$0xff]  }
  0x36   :  { %5015 = vmatprep.subr.bf16.mxu1 %v5555_v8  ;;  %v5604_v8 = vld [vmem:[%s7240_s1 + $0x388] sm:$0xff]  }
  0x37   :  { %4994 = vmatpush3.bf16.msra.mxu0 %v5554_v7  ;;  %v5603_v7 = vld [vmem:[%s7240_s1 + $0x3c8] sm:$0xff]  }
  0x38   :  { %4995 = vmatprep.subr.bf16.mxu0 %v5557_v10  ;;  %v5606_v10 = vld [vmem:[%s7240_s1 + $0x310] sm:$0xff]  }
  0x39   :  { %5016 = vmatpush3.bf16.msra.mxu1 %v5556_v9  ;;  %v5605_v9 = vld [vmem:[%s7240_s1 + $0x350] sm:$0xff]  }
  0x3a   :  { %5017 = vmatprep.subr.bf16.mxu1 %v5559_v12  ;;  %v5608_v12 = vld [vmem:[%s7240_s1 + $0x390] sm:$0xff]  }
  0x3b   :  { %4996 = vmatpush3.bf16.msra.mxu0 %v5558_v11  ;;  %v5607_v11 = vld [vmem:[%s7240_s1 + $0x3d0] sm:$0xff]  }
  0x3c   :  { %4997 = vmatprep.subr.bf16.mxu0 %v5561_v14  ;;  %v5610_v14 = vld [vmem:[%s7240_s1 + $0x318] sm:$0xff]  }
  0x3d   :  { %5018 = vmatpush3.bf16.msra.mxu1 %v5560_v13  ;;  %v5609_v13 = vld [vmem:[%s7240_s1 + $0x358] sm:$0xff]  }
  0x3e   :  { %5019 = vmatprep.subr.bf16.mxu1 %v5563_v16  ;;  %v5612_v16 = vld [vmem:[%s7240_s1 + $0x398] sm:$0xff]  }
  0x3f   :  { %4998 = vmatpush3.bf16.msra.mxu0 %v5562_v15  ;;  %v5611_v15 = vld [vmem:[%s7240_s1 + $0x3d8] sm:$0xff]  }
  0x40   :  { %5027 = vmatprep.subr.bf16.mxu0 %v5565_v19  ;;  %v5615_v19 = vld [vmem:[%s7240_s1 + $0x3e0] sm:$0xff]  }
  0x41   :  { %5020 = vmatpush3.bf16.msra.mxu1 %v5564_v17  ;;  %v5613_v17 = vld [vmem:[%s7240_s1 + $0x360] sm:$0xff]  }
  0x42   :  { %3643 = vmatmul.mubr.bf16.vlgmr.msra.gmra.mrb[4].mxu0 %v851_v18  ;;  %5049 = vmatprep.subr.bf16.mxu1 %v5567_v21  ;;  %v5614_v18 = vld [vmem:[%s7240_s1 + $0x320] sm:$0xff]   ;;  %v5617_v21 = vld [vmem:[%s7240_s1 + $0x368] sm:$0xff]  }
  0x43   :  { %5028 = vmatpush3.bf16.msra.mxu0 %v5566_v20  ;;  %3722 = vmatprep.mubr.bf16.mxu0 %v907_v56  ;;  %v5616_v20 = vld [vmem:[%s7240_s1 + $0x3a0] sm:$0xff]   ;;  %v5650_v56 = vld [vmem:[%s7240_s1 + $0x468] sm:$0xff]  }
  0x44   :  { %3683 = vmatmul.mubr.bf16.vlgmr.msra.gmra.mrb[4].mxu1 %v867_v23  ;;  %5029 = vmatprep.subr.bf16.mxu0 %v5569_v24  ;;  %v5619_v23 = vld [vmem:[%s7240_s1 + $0x3e8] sm:$0xff]  }
  0x45   :  { %5050 = vmatpush3.bf16.msra.mxu1 %v5568_v22  ;;  %3762 = vmatprep.mubr.bf16.mxu1 %v917_v60  ;;  %v5618_v22 = vld [vmem:[%s7240_s1 + $0x328] sm:$0xff]   ;;  %v5654_v60 = vld [vmem:[%s7240_s1 + $0x470] sm:$0xff]  }
  0x46   :  { %5051 = vmatprep.subr.bf16.mxu1 %v5571_v26  ;;  %v5620_v24 = vld [vmem:[%s7240_s1 + $0x3a8] sm:$0xff]   ;;  %v5622_v26 = vld [vmem:[%s7240_s1 + $0x330] sm:$0xff]  }
  0x47   :  { %5030 = vmatpush3.bf16.msra.mxu0 %v5570_v25  ;;  %v5621_v25 = vld [vmem:[%s7240_s1 + $0x370] sm:$0xff]  }
  0x48   :  { %5031 = vmatprep.subr.bf16.mxu0 %v5573_v28  ;;  %v5624_v28 = vld [vmem:[%s7240_s1 + $0x3b0] sm:$0xff]  }
  0x49   :  { %5052 = vmatpush3.bf16.msra.mxu1 %v5572_v27  ;;  %v5623_v27 = vld [vmem:[%s7240_s1 + $0x3f0] sm:$0xff]  }
  0x4a   :  { %5053 = vmatprep.subr.bf16.mxu1 %v5575_v30  ;;  %v5626_v30 = vld [vmem:[%s7240_s1 + $0x338] sm:$0xff]  }
  0x4b   :  { %5032 = vmatpush3.bf16.msra.mxu0 %v5574_v29  ;;  %v5625_v29 = vld [vmem:[%s7240_s1 + $0x378] sm:$0xff]  }
  0x4c   :  { %5033 = vmatprep.subr.bf16.mxu0 %v5577_v32  ;;  %v5629_v32 = vld [vmem:[%s7240_s1 + $0x3b8] sm:$0xff]  }
  0x4d   :  { %5054 = vmatpush3.bf16.msra.mxu1 %v5576_v31  ;;  %v5627_v31 = vld [vmem:[%s7240_s1 + $0x3f8] sm:$0xff]  }
  0x4e   :  { %5055 = vmatprep.subr.bf16.mxu1 %v5579_v34  ;;  %v5630_v34 = vld [vmem:[%s7240_s1 + $0x440] sm:$0xff]  }
  0x4f   :  { %5034 = vmatpush3.bf16.msra.mxu0 %v5578_v33  ;;  %v900_v33 = vrot.slane %v6243_v53, %v6051_v41  ;;  %v5647_v53 = vld [vmem:[%s7240_s1 + $0x420] sm:$0xff]  }
  0x50   :  { %5035 = vmatprep.subr.bf16.mxu0 %v5581_v36  ;;  %v5632_v36 = vld [vmem:[%s7240_s1 + $0x4c0] sm:$0xff]  }
  0x51   :  { %5056 = vmatpush3.bf16.msra.mxu1 %v5580_v35  ;;  %v5631_v35 = vld [vmem:[%s7240_s1 + $0x400] sm:$0xff]  }
  0x52   :  { %5057 = vmatprep.subr.bf16.mxu1 %v5583_v38  ;;  %v916_v38 = vcombine.high %v900_v33, %v900_v33 }
  0x53   :  { %5036 = vmatpush3.bf16.msra.mxu0 %v5582_v37  ;;  %v5633_v37 = vld [vmem:[%s7240_s1 + $0x480] sm:$0xff]  }
  0x54   :  { %5037 = vmatprep.subr.bf16.mxu0 %v5585_v40  ;;  %v5635_v40 = vld [vmem:[%s7240_s1 + $0x408] sm:$0xff]  }
  0x55   :  { %5058 = vmatpush3.bf16.msra.mxu1 %v5584_v39  ;;  %v5634_v39 = vld [vmem:[%s7240_s1 + $0x448] sm:$0xff]  }
  0x56   :  { %5059 = vmatprep.subr.bf16.mxu1 %v5587_v43  ;;  %v5637_v43 = vld [vmem:[%s7240_s1 + $0x488] sm:$0xff]  }
  0x57   :  { %5038 = vmatpush3.bf16.msra.mxu0 %v5586_v42  ;;  %v5636_v42 = vld [vmem:[%s7240_s1 + $0x4c8] sm:$0xff]  }
  0x58   :  { %5039 = vmatprep.subr.bf16.mxu0 %v5589_v45  ;;  %v5639_v45 = vld [vmem:[%s7240_s1 + $0x410] sm:$0xff]  }
  0x59   :  { %5060 = vmatpush3.bf16.msra.mxu1 %v5588_v44  ;;  %v5638_v44 = vld [vmem:[%s7240_s1 + $0x450] sm:$0xff]  }
  0x5a   :  { %5061 = vmatprep.subr.bf16.mxu1 %v5591_v50  ;;  %v5644_v50 = vld [vmem:[%s7240_s1 + $0x4d8] sm:$0xff]  }
  0x5b   :  { %5040 = vmatpush3.bf16.msra.mxu0 %v5590_v47  ;;  %v5641_v47 = vld [vmem:[%s7240_s1 + $0x490] sm:$0xff]  }
  0x5c   :  { %5041 = vmatprep.subr.bf16.mxu0 %v5593_v54  ;;  %v5648_v54 = vld [vmem:[%s7240_s1 + $0x4e0] sm:$0xff]  }
  0x5d   :  { %5062 = vmatpush3.bf16.msra.mxu1 %v5592_v51  ;;  %v5645_v51 = vld [vmem:[%s7240_s1 + $0x498] sm:$0xff]  }
  0x5e   :  { %5063 = vmatprep.subr.bf16.mxu1 %v5595_v58  ;;  %v5652_v58 = vld [vmem:[%s7240_s1 + $0x4e8] sm:$0xff]  }
  0x5f   :  { %5042 = vmatpush3.bf16.msra.mxu0 %v5594_v55  ;;  %v5649_v55 = vld [vmem:[%s7240_s1 + $0x4a0] sm:$0xff]  }
  0x60   :  { %5071 = vmatprep.subr.bf16.mxu0 %v5597_v62  ;;  %v5655_v62 = vld [vmem:[%s7240_s1 + $0x430] sm:$0xff]  }
  0x61   :  { %5064 = vmatpush3.bf16.msra.mxu1 %v5596_v59  ;;  %v5653_v59 = vld [vmem:[%s7240_s1 + $0x4a8] sm:$0xff]  }
  0x62   :  { %3723 = vmatmul.mubr.bf16.vlgmr.msra.gmra.mrb[8].mxu0 %v893_v61  ;;  %5093 = vmatprep.subr.bf16.mxu1 %v5599_v1  ;;  %v18_v61 = vld [vmem:[%s7239_s0 + $0x10] sm:$0xff] }
  0x63   :  { %5072 = vmatpush3.bf16.msra.mxu0 %v5598_v63  ;;  %3802 = vmatprep.mubr.bf16.mxu0 %v914_v0  ;;  %v926_v63 = vrot.slane %v18_v61, %v6051_v41  ;;  %v919_v0 = vcombine.high %v18_v61, %v18_v61  ;;  %v5656_v1 = vld [vmem:[%s7240_s1 + $0x4f0] sm:$0xff]  }
  0x64   :  { %3763 = vmatmul.mubr.bf16.vlgmr.msra.gmra.mrb[8].mxu1 %v915_v3  ;;  %5073 = vmatprep.subr.bf16.mxu0 %v5601_v4  ;;  %v5705_v61 = vld [vmem:[%s7240_s1 + $0x6d0] sm:$0xff]  }
  0x65   :  { %5094 = vmatpush3.bf16.msra.mxu1 %v5600_v2  ;;  %3842 = vmatprep.mubr.bf16.mxu1 %v918_v6  ;;  %v5657_v2 = vld [vmem:[%s7240_s1 + $0x4b0] sm:$0xff]   ;;  %v934_v3 = vcombine.high %v926_v63, %v926_v63  ;;  %v6449_v4 = vrot.slane %v919_v0, %v6051_v41  ;;  %v5659_v6 = vld [vmem:[%s7240_s1 + $0x438] sm:$0xff]  }
  0x66   :  { %5095 = vmatprep.subr.bf16.mxu1 %v5603_v7  ;;  %v5708_v0 = vld [vmem:[%s7240_s1 + $0x618] sm:$0xff]  }
  0x67   :  { %5074 = vmatpush3.bf16.msra.mxu0 %v5602_v5  ;;  %v5658_v5 = vld [vmem:[%s7240_s1 + $0x478] sm:$0xff]   ;;  %v956_v7 = vrot.slane %v934_v3, %v6051_v41  ;;  %v5711_v3 = vld [vmem:[%s7240_s1 + $0x660] sm:$0xff]  }
  0x68   :  { %5075 = vmatprep.subr.bf16.mxu0 %v5605_v9  ;;  %v5660_v9 = vld [vmem:[%s7240_s1 + $0x4f8] sm:$0xff]  }
  0x69   :  { %5096 = vmatpush3.bf16.msra.mxu1 %v5604_v8  ;;  %v935_v8 = vcombine.high %v6449_v4, %v6449_v4 }
  0x6a   :  { %5097 = vmatprep.subr.bf16.mxu1 %v5607_v11  ;;  %v966_v11 = vcombine.high %v956_v7, %v956_v7 }
  0x6b   :  { %5076 = vmatpush3.bf16.msra.mxu0 %v5606_v10  ;;  %v5661_v10 = vld [vmem:[%s7240_s1 + $0x4b8] sm:$0xff]  }
  0x6c   :  { %5077 = vmatprep.subr.bf16.mxu0 %v5609_v13  ;;  %v5662_v13 = vld [vmem:[%s7240_s1 + $0x540] sm:$0xff]  }
  0x6d   :  { %5098 = vmatpush3.bf16.msra.mxu1 %v5608_v12  ;;  %v942_v12 = vrot.slane %v926_v63, %v6051_v41  ;;  %v5707_v63 = vld [vmem:[%s7240_s1 + $0x658] sm:$0xff]  }
  0x6e   :  { %5099 = vmatprep.subr.bf16.mxu1 %v5611_v15  ;;  %v963_v15 = vrot.slane %v935_v8, %v6051_v41  ;;  %v5716_v8 = vld [vmem:[%s7240_s1 + $0x628] sm:$0xff]  }
  0x6f   :  { %5078 = vmatpush3.bf16.msra.mxu0 %v5610_v14  ;;  %v5663_v14 = vld [vmem:[%s7240_s1 + $0x500] sm:$0xff]  }
  0x70   :  { %5079 = vmatprep.subr.bf16.mxu0 %v5613_v17  ;;  %v5665_v17 = vld [vmem:[%s7240_s1 + $0x580] sm:$0xff]  }
  0x71   :  { %5100 = vmatpush3.bf16.msra.mxu1 %v5612_v16  ;;  %v5664_v16 = vld [vmem:[%s7240_s1 + $0x5c0] sm:$0xff]  }
  0x72   :  { %5101 = vmatprep.subr.bf16.mxu1 %v5615_v19  ;;  %v5666_v19 = vld [vmem:[%s7240_s1 + $0x548] sm:$0xff]  }
  0x73   :  { %5080 = vmatpush3.bf16.msra.mxu0 %v5614_v18  ;;  %v964_v18 = vcombine.high %v942_v12, %v942_v12 }
  0x74   :  { %5081 = vmatprep.subr.bf16.mxu0 %v5617_v21  ;;  %v967_v21 = vcombine.high %v963_v15, %v963_v15 }
  0x75   :  { %5102 = vmatpush3.bf16.msra.mxu1 %v5616_v20  ;;  %v5667_v20 = vld [vmem:[%s7240_s1 + $0x508] sm:$0xff]  }
  0x76   :  { %5103 = vmatprep.subr.bf16.mxu1 %v5619_v23  ;;  %v5669_v23 = vld [vmem:[%s7240_s1 + $0x588] sm:$0xff]  }
  0x77   :  { %5082 = vmatpush3.bf16.msra.mxu0 %v5618_v22  ;;  %v5668_v22 = vld [vmem:[%s7240_s1 + $0x5c8] sm:$0xff]  }
  0x78   :  { %5083 = vmatprep.subr.bf16.mxu0 %v5621_v25  ;;  %v5671_v25 = vld [vmem:[%s7240_s1 + $0x510] sm:$0xff]  }
  0x79   :  { %5104 = vmatpush3.bf16.msra.mxu1 %v5620_v24  ;;  %v5670_v24 = vld [vmem:[%s7240_s1 + $0x550] sm:$0xff]  }
  0x7a   :  { %5105 = vmatprep.subr.bf16.mxu1 %v5623_v27  ;;  %v5673_v27 = vld [vmem:[%s7240_s1 + $0x590] sm:$0xff]  }
  0x7b   :  { %5084 = vmatpush3.bf16.msra.mxu0 %v5622_v26  ;;  %v5672_v26 = vld [vmem:[%s7240_s1 + $0x5d0] sm:$0xff]  }
  0x7c   :  { %5085 = vmatprep.subr.bf16.mxu0 %v5625_v29  ;;  %v5675_v29 = vld [vmem:[%s7240_s1 + $0x518] sm:$0xff]  }
  0x7d   :  { %5106 = vmatpush3.bf16.msra.mxu1 %v5624_v28  ;;  %v5674_v28 = vld [vmem:[%s7240_s1 + $0x558] sm:$0xff]  }
  0x7e   :  { %5107 = vmatprep.subr.bf16.mxu1 %v5627_v31  ;;  %v5677_v31 = vld [vmem:[%s7240_s1 + $0x598] sm:$0xff]  }
  0x7f   :  { %5086 = vmatpush3.bf16.msra.mxu0 %v5626_v30  ;;  %v5676_v30 = vld [vmem:[%s7240_s1 + $0x5d8] sm:$0xff]  }
  0x80   :  { %5115 = vmatprep.subr.bf16.mxu0 %v5630_v34  ;;  %v5680_v34 = vld [vmem:[%s7240_s1 + $0x5e0] sm:$0xff]  }
  0x81   :  { %5108 = vmatpush3.bf16.msra.mxu1 %v5629_v32  ;;  %v5678_v32 = vld [vmem:[%s7240_s1 + $0x560] sm:$0xff]  }
  0x82   :  { %3803 = vmatmul.mubr.bf16.vlgmr.msra.gmra.mrb[12].mxu0 %v900_v33  ;;  %5137 = vmatprep.subr.bf16.mxu1 %v5632_v36  ;;  %v5679_v33 = vld [vmem:[%s7240_s1 + $0x520] sm:$0xff]   ;;  %v5682_v36 = vld [vmem:[%s7240_s1 + $0x568] sm:$0xff]  }
  0x83   :  { %5116 = vmatpush3.bf16.msra.mxu0 %v5631_v35  ;;  %3882 = vmatprep.mubr.bf16.mxu0 %v956_v7  ;;  %v5681_v35 = vld [vmem:[%s7240_s1 + $0x5a0] sm:$0xff]   ;;  %v5715_v7 = vld [vmem:[%s7240_s1 + $0x668] sm:$0xff]  }
  0x84   :  { %3843 = vmatmul.mubr.bf16.vlgmr.msra.gmra.mrb[12].mxu1 %v916_v38  ;;  %5117 = vmatprep.subr.bf16.mxu0 %v5634_v39  ;;  %v5684_v38 = vld [vmem:[%s7240_s1 + $0x5e8] sm:$0xff]  }
  0x85   :  { %5138 = vmatpush3.bf16.msra.mxu1 %v5633_v37  ;;  %3922 = vmatprep.mubr.bf16.mxu1 %v966_v11  ;;  %v5683_v37 = vld [vmem:[%s7240_s1 + $0x528] sm:$0xff]   ;;  %v5719_v11 = vld [vmem:[%s7240_s1 + $0x670] sm:$0xff]  }
  0x86   :  { %5139 = vmatprep.subr.bf16.mxu1 %v5636_v42  ;;  %v5685_v39 = vld [vmem:[%s7240_s1 + $0x5a8] sm:$0xff]   ;;  %v5687_v42 = vld [vmem:[%s7240_s1 + $0x530] sm:$0xff]  }
  0x87   :  { %5118 = vmatpush3.bf16.msra.mxu0 %v5635_v40  ;;  %v5686_v40 = vld [vmem:[%s7240_s1 + $0x570] sm:$0xff]  }
  0x88   :  { %5119 = vmatprep.subr.bf16.mxu0 %v5638_v44  ;;  %v5689_v44 = vld [vmem:[%s7240_s1 + $0x5b0] sm:$0xff]  }
  0x89   :  { %5140 = vmatpush3.bf16.msra.mxu1 %v5637_v43  ;;  %v5688_v43 = vld [vmem:[%s7240_s1 + $0x5f0] sm:$0xff]  }
  0x8a   :  { %5141 = vmatprep.subr.bf16.mxu1 %v5640_v46  ;;  %v5691_v46 = vld [vmem:[%s7240_s1 + $0x538] sm:$0xff]  }
  0x8b   :  { %5120 = vmatpush3.bf16.msra.mxu0 %v5639_v45  ;;  %v5690_v45 = vld [vmem:[%s7240_s1 + $0x578] sm:$0xff]  }
  0x8c   :  { %5121 = vmatprep.subr.bf16.mxu0 %v5642_v48  ;;  %v5694_v48 = vld [vmem:[%s7240_s1 + $0x5b8] sm:$0xff]  }
  0x8d   :  { %5142 = vmatpush3.bf16.msra.mxu1 %v5641_v47  ;;  %v5692_v47 = vld [vmem:[%s7240_s1 + $0x5f8] sm:$0xff]  }
  0x8e   :  { %5143 = vmatprep.subr.bf16.mxu1 %v5644_v50  ;;  %v5695_v50 = vld [vmem:[%s7240_s1 + $0x640] sm:$0xff]  }
  0x8f   :  { %5122 = vmatpush3.bf16.msra.mxu0 %v5643_v49  ;;  %v949_v49 = vrot.slane %v6449_v4, %v6051_v41  ;;  %v5712_v4 = vld [vmem:[%s7240_s1 + $0x620] sm:$0xff]  }
  0x90   :  { %5123 = vmatprep.subr.bf16.mxu0 %v5646_v52  ;;  %v5697_v52 = vld [vmem:[%s7240_s1 + $0x6c0] sm:$0xff]  }
  0x91   :  { %5144 = vmatpush3.bf16.msra.mxu1 %v5645_v51  ;;  %v5696_v51 = vld [vmem:[%s7240_s1 + $0x600] sm:$0xff]  }
  0x92   :  { %5145 = vmatprep.subr.bf16.mxu1 %v5648_v54  ;;  %v965_v54 = vcombine.high %v949_v49, %v949_v49 }
  0x93   :  { %5124 = vmatpush3.bf16.msra.mxu0 %v5647_v53  ;;  %v5698_v53 = vld [vmem:[%s7240_s1 + $0x680] sm:$0xff]  }
  0x94   :  { %5125 = vmatprep.subr.bf16.mxu0 %v5650_v56  ;;  %v5700_v56 = vld [vmem:[%s7240_s1 + $0x608] sm:$0xff]  }
  0x95   :  { %5146 = vmatpush3.bf16.msra.mxu1 %v5649_v55  ;;  %v5699_v55 = vld [vmem:[%s7240_s1 + $0x648] sm:$0xff]  }
  0x96   :  { %5147 = vmatprep.subr.bf16.mxu1 %v5652_v58  ;;  %v5702_v58 = vld [vmem:[%s7240_s1 + $0x688] sm:$0xff]  }
  0x97   :  { %5126 = vmatpush3.bf16.msra.mxu0 %v5651_v57  ;;  %v5701_v57 = vld [vmem:[%s7240_s1 + $0x6c8] sm:$0xff]  }
  0x98   :  { %5127 = vmatprep.subr.bf16.mxu0 %v5654_v60  ;;  %v5704_v60 = vld [vmem:[%s7240_s1 + $0x610] sm:$0xff]  }
  0x99   :  { %5148 = vmatpush3.bf16.msra.mxu1 %v5653_v59  ;;  %v5703_v59 = vld [vmem:[%s7240_s1 + $0x650] sm:$0xff]  }
  0x9a   :  { %5149 = vmatprep.subr.bf16.mxu1 %v5656_v1  ;;  %v5709_v1 = vld [vmem:[%s7240_s1 + $0x6d8] sm:$0xff]  }
  0x9b   :  { %5128 = vmatpush3.bf16.msra.mxu0 %v5655_v62  ;;  %v5706_v62 = vld [vmem:[%s7240_s1 + $0x690] sm:$0xff]  }
  0x9c   :  { %5129 = vmatprep.subr.bf16.mxu0 %v5658_v5  ;;  %v5713_v5 = vld [vmem:[%s7240_s1 + $0x6e0] sm:$0xff]  }
  0x9d   :  { %5150 = vmatpush3.bf16.msra.mxu1 %v5657_v2  ;;  %v5710_v2 = vld [vmem:[%s7240_s1 + $0x698] sm:$0xff]  }
  0x9e   :  { %5151 = vmatprep.subr.bf16.mxu1 %v5660_v9  ;;  %v5717_v9 = vld [vmem:[%s7240_s1 + $0x6e8] sm:$0xff]  }
  0x9f   :  { %5130 = vmatpush3.bf16.msra.mxu0 %v5659_v6  ;;  %v5714_v6 = vld [vmem:[%s7240_s1 + $0x6a0] sm:$0xff]  }
  0xa0   :  { %5159 = vmatprep.subr.bf16.mxu0 %v5662_v13  ;;  %v5721_v13 = vld [vmem:[%s7240_s1 + $0x6f0] sm:$0xff]  }
  0xa1   :  { %5152 = vmatpush3.bf16.msra.mxu1 %v5661_v10  ;;  %v5718_v10 = vld [vmem:[%s7240_s1 + $0x6a8] sm:$0xff]  }
  0xa2   :  { %3883 = vmatmul.mubr.bf16.vlgmr.msra.gmra.mrb[16].mxu0 %v942_v12  ;;  %5181 = vmatprep.subr.bf16.mxu1 %v5664_v16  ;;  %v19_v12 = vld [vmem:[%s7239_s0 + $0x18] sm:$0xff]  ;;  %v5720_v16 = vld [vmem:[%s7240_s1 + $0x630] sm:$0xff]  }
  0xa3   :  { %5160 = vmatpush3.bf16.msra.mxu0 %v5663_v14  ;;  %3962 = vmatprep.mubr.bf16.mxu0 %v963_v15  ;;  %v975_v14 = vrot.slane %v19_v12, %v6051_v41  ;;  %v968_v15 = vcombine.high %v19_v12, %v19_v12  ;;  %v5759_v12 = vld [vmem:[%s7240_s1 + $0x7b8] sm:$0xff]  }
  0xa4   :  { %3923 = vmatmul.mubr.bf16.vlgmr.msra.gmra.mrb[16].mxu1 %v964_v18  ;;  %5161 = vmatprep.subr.bf16.mxu0 %v5666_v19 }
  0xa5   :  { %5182 = vmatpush3.bf16.msra.mxu1 %v5665_v17  ;;  %4002 = vmatprep.mubr.bf16.mxu1 %v967_v21  ;;  %v5723_v17 = vld [vmem:[%s7240_s1 + $0x678] sm:$0xff]   ;;  %v983_v18 = vcombine.high %v975_v14, %v975_v14  ;;  %v6655_v19 = vrot.slane %v968_v15, %v6051_v41  ;;  %v5761_v15 = vld [vmem:[%s7240_s1 + $0x800] sm:$0xff]  }
  0xa6   :  { %5183 = vmatprep.subr.bf16.mxu1 %v5668_v22  ;;  %v5725_v21 = vld [vmem:[%s7240_s1 + $0x6f8] sm:$0xff]  }
  0xa7   :  { %5162 = vmatpush3.bf16.msra.mxu0 %v5667_v20  ;;  %v5722_v20 = vld [vmem:[%s7240_s1 + $0x6b0] sm:$0xff]   ;;  %v1005_v22 = vrot.slane %v983_v18, %v6051_v41 }
  0xa8   :  { %5163 = vmatprep.subr.bf16.mxu0 %v5670_v24  ;;  %v5724_v24 = vld [vmem:[%s7240_s1 + $0x638] sm:$0xff]  }
  0xa9   :  { %5184 = vmatpush3.bf16.msra.mxu1 %v5669_v23  ;;  %v984_v23 = vcombine.high %v6655_v19, %v6655_v19 }
  0xaa   :  { %5185 = vmatprep.subr.bf16.mxu1 %v5672_v26  ;;  %v5727_v26 = vld [vmem:[%s7240_s1 + $0x740] sm:$0xff]  }
  0xab   :  { %5164 = vmatpush3.bf16.msra.mxu0 %v5671_v25  ;;  %v991_v25 = vrot.slane %v975_v14, %v6051_v41  ;;  %v5760_v14 = vld [vmem:[%s7240_s1 + $0x840] sm:$0xff]  }
  0xac   :  { %5165 = vmatprep.subr.bf16.mxu0 %v5674_v28  ;;  %v5726_v28 = vld [vmem:[%s7240_s1 + $0x6b8] sm:$0xff]  }
  0xad   :  { %5186 = vmatpush3.bf16.msra.mxu1 %v5673_v27  ;;  %v1015_v27 = vcombine.high %v1005_v22, %v1005_v22 }
  0xae   :  { %5187 = vmatprep.subr.bf16.mxu1 %v5676_v30  ;;  %v5729_v30 = vld [vmem:[%s7240_s1 + $0x7c0] sm:$0xff]  }
  0xaf   :  { %5166 = vmatpush3.bf16.msra.mxu0 %v5675_v29  ;;  %v1012_v29 = vrot.slane %v984_v23, %v6051_v41  ;;  %v5768_v23 = vld [vmem:[%s7240_s1 + $0x850] sm:$0xff]  }
  0xb0   :  { %5167 = vmatprep.subr.bf16.mxu0 %v5678_v32  ;;  %v1013_v32 = vcombine.high %v991_v25, %v991_v25 }
  0xb1   :  { %5188 = vmatpush3.bf16.msra.mxu1 %v5677_v31  ;;  %v5728_v31 = vld [vmem:[%s7240_s1 + $0x700] sm:$0xff]  }
  0xb2   :  { %5189 = vmatprep.subr.bf16.mxu1 %v5680_v34  ;;  %v5730_v34 = vld [vmem:[%s7240_s1 + $0x780] sm:$0xff]  }
  0xb3   :  { %5168 = vmatpush3.bf16.msra.mxu0 %v5679_v33  ;;  %v5731_v33 = vld [vmem:[%s7240_s1 + $0x748] sm:$0xff]  }
  0xb4   :  { %5169 = vmatprep.subr.bf16.mxu0 %v5682_v36  ;;  %v5733_v36 = vld [vmem:[%s7240_s1 + $0x7c8] sm:$0xff]  }
  0xb5   :  { %5190 = vmatpush3.bf16.msra.mxu1 %v5681_v35  ;;  %v1016_v35 = vcombine.high %v1012_v29, %v1012_v29 }
  0xb6   :  { %5191 = vmatprep.subr.bf16.mxu1 %v5684_v38  ;;  %v5735_v38 = vld [vmem:[%s7240_s1 + $0x750] sm:$0xff]  }
  0xb7   :  { %5170 = vmatpush3.bf16.msra.mxu0 %v5683_v37  ;;  %v5732_v37 = vld [vmem:[%s7240_s1 + $0x708] sm:$0xff]  }
  0xb8   :  { %5171 = vmatprep.subr.bf16.mxu0 %v5686_v40  ;;  %v5737_v40 = vld [vmem:[%s7240_s1 + $0x7d0] sm:$0xff]  }
  0xb9   :  { %5192 = vmatpush3.bf16.msra.mxu1 %v5685_v39  ;;  %v5734_v39 = vld [vmem:[%s7240_s1 + $0x788] sm:$0xff]  }
  0xba   :  { %5193 = vmatprep.subr.bf16.mxu1 %v5688_v43  ;;  %v5739_v43 = vld [vmem:[%s7240_s1 + $0x758] sm:$0xff]  }
  0xbb   :  { %5172 = vmatpush3.bf16.msra.mxu0 %v5687_v42  ;;  %v5736_v42 = vld [vmem:[%s7240_s1 + $0x710] sm:$0xff]  }
  0xbc   :  { %5173 = vmatprep.subr.bf16.mxu0 %v5690_v45  ;;  %v5740_v45 = vld [vmem:[%s7240_s1 + $0x718] sm:$0xff]  }
  0xbd   :  { %5194 = vmatpush3.bf16.msra.mxu1 %v5689_v44  ;;  %v5738_v44 = vld [vmem:[%s7240_s1 + $0x790] sm:$0xff]  }
  0xbe   :  { %5195 = vmatprep.subr.bf16.mxu1 %v5692_v47  ;;  %v5742_v47 = vld [vmem:[%s7240_s1 + $0x798] sm:$0xff]  }
  0xbf   :  { %5174 = vmatpush3.bf16.msra.mxu0 %v5691_v46  ;;  %v5741_v46 = vld [vmem:[%s7240_s1 + $0x7d8] sm:$0xff]  }
  0xc0   :  { %5203 = vmatprep.subr.bf16.mxu0 %v5695_v50  ;;  %v5745_v50 = vld [vmem:[%s7240_s1 + $0x7e0] sm:$0xff]  }
  0xc1   :  { %5196 = vmatpush3.bf16.msra.mxu1 %v5694_v48  ;;  %v5743_v48 = vld [vmem:[%s7240_s1 + $0x760] sm:$0xff]  }
  0xc2   :  { %3963 = vmatmul.mubr.bf16.vlgmr.msra.gmra.mrb[20].mxu0 %v949_v49  ;;  %5225 = vmatprep.subr.bf16.mxu1 %v5697_v52  ;;  %v5744_v49 = vld [vmem:[%s7240_s1 + $0x720] sm:$0xff]   ;;  %v5747_v52 = vld [vmem:[%s7240_s1 + $0x768] sm:$0xff]  }
  0xc3   :  { %5204 = vmatpush3.bf16.msra.mxu0 %v5696_v51  ;;  %4042 = vmatprep.mubr.bf16.mxu0 %v1005_v22  ;;  %v5746_v51 = vld [vmem:[%s7240_s1 + $0x7a0] sm:$0xff]   ;;  %v5767_v22 = vld [vmem:[%s7240_s1 + $0x888] sm:$0xff]  }
  0xc4   :  { %4003 = vmatmul.mubr.bf16.vlgmr.msra.gmra.mrb[20].mxu1 %v965_v54  ;;  %5205 = vmatprep.subr.bf16.mxu0 %v5699_v55  ;;  %v5749_v54 = vld [vmem:[%s7240_s1 + $0x7e8] sm:$0xff]  }
  0xc5   :  { %5226 = vmatpush3.bf16.msra.mxu1 %v5698_v53  ;;  %4082 = vmatprep.mubr.bf16.mxu1 %v1015_v27  ;;  %v5748_v53 = vld [vmem:[%s7240_s1 + $0x728] sm:$0xff]   ;;  %v5772_v27 = vld [vmem:[%s7240_s1 + $0x858] sm:$0xff]  }
  0xc6   :  { %5227 = vmatprep.subr.bf16.mxu1 %v5701_v57  ;;  %v5750_v55 = vld [vmem:[%s7240_s1 + $0x7a8] sm:$0xff]   ;;  %v5751_v57 = vld [vmem:[%s7240_s1 + $0x770] sm:$0xff]  }
  0xc7   :  { %5206 = vmatpush3.bf16.msra.mxu0 %v5700_v56  ;;  %v4545_v56 = vld [vmem:[%s7241_s2] ss:$0 sm:$0xff] }
  0xc8   :  { %5207 = vmatprep.subr.bf16.mxu0 %v5703_v59  ;;  %v5752_v59 = vld [vmem:[%s7240_s1 + $0x730] sm:$0xff]  }
  0xc9   :  { %5228 = vmatpush3.bf16.msra.mxu1 %v5702_v58 }
  0xca   :  { %5229 = vmatprep.subr.bf16.mxu1 %v5705_v61  ;;  %v5753_v61 = vld [vmem:[%s7240_s1 + $0x7f0] sm:$0xff]  }
  0xcb   :  { %5208 = vmatpush3.bf16.msra.mxu0 %v5704_v60 }
  0xcc   :  { %5209 = vmatprep.subr.bf16.mxu0 %v5707_v63 }
  0xcd   :  { %5230 = vmatpush3.bf16.msra.mxu1 %v5706_v62 }
  0xce   :  { %5231 = vmatprep.subr.bf16.mxu1 %v5709_v1  ;;  %v5754_v1 = vld [vmem:[%s7240_s1 + $0x7b0] sm:$0xff]  }
  0xcf   :  { %5210 = vmatpush3.bf16.msra.mxu0 %v5708_v0 }
  0xd0   :  { %5211 = vmatprep.subr.bf16.mxu0 %v5711_v3 }
  0xd1   :  { %5232 = vmatpush3.bf16.msra.mxu1 %v5710_v2  ;;  %v5755_v2 = vld [vmem:[%s7240_s1 + $0x778] sm:$0xff]  }
  0xd2   :  { %5233 = vmatprep.subr.bf16.mxu1 %v5713_v5 }
  0xd3   :  { %5212 = vmatpush3.bf16.msra.mxu0 %v5712_v4 }
  0xd4   :  { %5213 = vmatprep.subr.bf16.mxu0 %v5715_v7  ;;  %v5756_v7 = vld [vmem:[%s7240_s1 + $0x738] sm:$0xff]  }
  0xd5   :  { %5234 = vmatpush3.bf16.msra.mxu1 %v5714_v6 }
  0xd6   :  { %5235 = vmatprep.subr.bf16.mxu1 %v5717_v9  ;;  %v5757_v9 = vld [vmem:[%s7240_s1 + $0x7f8] sm:$0xff]  }
  0xd7   :  { %5214 = vmatpush3.bf16.msra.mxu0 %v5716_v8 }
  0xd8   :  { %5215 = vmatprep.subr.bf16.mxu0 %v5719_v11 }
  0xd9   :  { %5236 = vmatpush3.bf16.msra.mxu1 %v5718_v10 }
  0xda   :  { %5237 = vmatprep.subr.bf16.mxu1 %v5721_v13  ;;  %v998_v13 = vrot.slane %v6655_v19, %v6051_v41  ;;  %v5764_v19 = vld [vmem:[%s7240_s1 + $0x848] sm:$0xff]  }
  0xdb   :  { %5216 = vmatpush3.bf16.msra.mxu0 %v5720_v16  ;;  %v5762_v16 = vld [vmem:[%s7240_s1 + $0x8c0] sm:$0xff]  }
  0xdc   :  { %5217 = vmatprep.subr.bf16.mxu0 %v5723_v17  ;;  %v5763_v17 = vld [vmem:[%s7240_s1 + $0x880] sm:$0xff]   ;;  %v1014_v18 = vcombine.high %v998_v13, %v998_v13 }
  0xdd   :  { %5238 = vmatpush3.bf16.msra.mxu1 %v5722_v20  ;;  %v5765_v20 = vld [vmem:[%s7240_s1 + $0x808] sm:$0xff]  }
  0xde   :  { %5239 = vmatprep.subr.bf16.mxu1 %v5725_v21  ;;  %v5766_v21 = vld [vmem:[%s7240_s1 + $0x8c8] sm:$0xff]  }
  0xdf   :  { %5218 = vmatpush3.bf16.msra.mxu0 %v5724_v24  ;;  %v5769_v24 = vld [vmem:[%s7240_s1 + $0x810] sm:$0xff]  }
  0xe0   :  { %5247 = vmatprep.subr.bf16.mxu0 %v5727_v26  ;;  %v5771_v26 = vld [vmem:[%s7240_s1 + $0x890] sm:$0xff]  }
  0xe1   :  { %5240 = vmatpush3.bf16.msra.mxu1 %v5726_v28  ;;  %v5773_v28 = vld [vmem:[%s7240_s1 + $0x818] sm:$0xff]  }
  0xe2   :  { %4043 = vmatmul.mubr.bf16.vlgmr.msra.gmra.mrb[24].mxu0 %v991_v25  ;;  %5269 = vmatprep.subr.bf16.mxu1 %v5729_v30  ;;  %v5770_v25 = vld [vmem:[%s7240_s1 + $0x8d0] sm:$0xff]   ;;  %v5775_v30 = vld [vmem:[%s7240_s1 + $0x898] sm:$0xff]  }
  0xe3   :  { %5248 = vmatpush3.bf16.msra.mxu0 %v5728_v31  ;;  %4122 = vmatprep.mubr.bf16.mxu0 %v1012_v29  ;;  %v5774_v29 = vld [vmem:[%s7240_s1 + $0x8d8] sm:$0xff]   ;;  %v5776_v31 = vld [vmem:[%s7240_s1 + $0x860] sm:$0xff]  }
  0xe4   :  { %4083 = vmatmul.mubr.bf16.vlgmr.msra.gmra.mrb[24].mxu1 %v1013_v32  ;;  %5249 = vmatprep.subr.bf16.mxu0 %v5731_v33  ;;  %v5777_v32 = vld [vmem:[%s7240_s1 + $0x820] sm:$0xff]  }
  0xe5   :  { %5270 = vmatpush3.bf16.msra.mxu1 %v5730_v34  ;;  %4162 = vmatprep.mubr.bf16.mxu1 %v1016_v35  ;;  %v5778_v33 = vld [vmem:[%s7240_s1 + $0x8e0] sm:$0xff]   ;;  %v5780_v35 = vld [vmem:[%s7240_s1 + $0x868] sm:$0xff]  }
  0xe6   :  { %5271 = vmatprep.subr.bf16.mxu1 %v5733_v36  ;;  %v5779_v34 = vld [vmem:[%s7240_s1 + $0x8a0] sm:$0xff]   ;;  %v5781_v36 = vld [vmem:[%s7240_s1 + $0x828] sm:$0xff]  }
  0xe7   :  { %5250 = vmatpush3.bf16.msra.mxu0 %v5732_v37  ;;  %v5782_v37 = vld [vmem:[%s7240_s1 + $0x8e8] sm:$0xff]  }
  0xe8   :  { %5251 = vmatprep.subr.bf16.mxu0 %v5735_v38  ;;  %v5783_v38 = vld [vmem:[%s7240_s1 + $0x8a8] sm:$0xff]  }
  0xe9   :  { %5272 = vmatpush3.bf16.msra.mxu1 %v5734_v39  ;;  %v5784_v39 = vld [vmem:[%s7240_s1 + $0x870] sm:$0xff]  }
  0xea   :  { %5273 = vmatprep.subr.bf16.mxu1 %v5737_v40 }
  0xeb   :  { %5252 = vmatpush3.bf16.msra.mxu0 %v5736_v42  ;;  %v5785_v42 = vld [vmem:[%s7240_s1 + $0x830] sm:$0xff]  }
  0xec   :  { %5253 = vmatprep.subr.bf16.mxu0 %v5739_v43  ;;  %v5786_v43 = vld [vmem:[%s7240_s1 + $0x8f0] sm:$0xff]  }
  0xed   :  { %5274 = vmatpush3.bf16.msra.mxu1 %v5738_v44 }
  0xee   :  { %5275 = vmatprep.subr.bf16.mxu1 %v5741_v46 }
  0xef   :  { %5254 = vmatpush3.bf16.msra.mxu0 %v5740_v45  ;;  %v20_v45 = vld [vmem:[%s7239_s0 + $0x20] sm:$0xff] }
  0xf0   :  { %5255 = vmatprep.subr.bf16.mxu0 %v5743_v48 }
  0xf1   :  { %5276 = vmatpush3.bf16.msra.mxu1 %v5742_v47 }
  0xf2   :  { %5277 = vmatprep.subr.bf16.mxu1 %v5745_v50  ;;  %v5788_v50 = vld [vmem:[%s7240_s1 + $0x878] sm:$0xff]  }
  0xf3   :  { %5256 = vmatpush3.bf16.msra.mxu0 %v5744_v49  ;;  %v5787_v49 = vld [vmem:[%s7240_s1 + $0x8b0] sm:$0xff]  }
  0xf4   :  { %5257 = vmatprep.subr.bf16.mxu0 %v5747_v52  ;;  %v1017_v52 = vcombine.high %v20_v45, %v20_v45 }
  0xf5   :  { %v4955_v58 = vpop.f32.mrb[0].mxu0  ;;  %5278 = vmatpush3.bf16.msra.mxu1 %v5746_v51  ;;  %v1024_v51 = vrot.slane %v20_v45, %v6051_v41 }
  0xf6   :  { %v4956_v60 = vpop.f32.mrb[1].mxu0  ;;  %5279 = vmatprep.subr.bf16.mxu1 %v5749_v54 }
  0xf7   :  { %v4957_v62 = vadd.f32 %v4956_v60, %v4955_v58  ;;  %v4958_v63 = vpop.f32.mrb[2].mxu0  ;;  %v4977_v0 = vpop.f32.mrb[0].mxu1  ;;  %5258 = vmatpush3.bf16.msra.mxu0 %v5748_v53  ;;  %v1032_v58 = vcombine.high %v1024_v51, %v1024_v51  ;;  %v5790_v60 = vld [vmem:[%s7240_s1 + $0x8f8] sm:$0xff]  }
  0xf8   :  { %v4959_v3 = vpop.f32.mrb[3].mxu0  ;;  %v4978_v4 = vpop.f32.mrb[1].mxu1  ;;  %5259 = vmatprep.subr.bf16.mxu0 %v5751_v57  ;;  %v5789_v57 = vld [vmem:[%s7240_s1 + $0x838] sm:$0xff]  }
  0xf9   :  { %v3565_v5 = vadd.f32 %v4957_v62, %v4545_v56  ;;  %v4979_v6 = vadd.f32 %v4978_v4, %v4977_v0  ;;  %5280 = vmatpush3.bf16.msra.mxu1 %v5750_v55  ;;  %v4980_v8 = vpop.f32.mrb[2].mxu1  ;;  %v6876_v62 = vrot.slane %v1017_v52, %v6051_v41  ;;  %v1054_v0 = vrot.slane %v1032_v58, %v6051_v41  ;;  %v5792_v3 = vld [vmem:[%s7240_s1 + $0x940] sm:$0xff]   ;;  %v5824_v52 = vld [vmem:[%s7240_s1 + $0x9b8] sm:$0xff]  }
  0xfa   :  { %5281 = vmatprep.subr.bf16.mxu1 %v5753_v61  ;;  %v4981_v10 = vpop.f32.mrb[3].mxu1 }
  0xfb   :  { %v6770_v11 = vadd.f32 %v4979_v6, %v3565_v5  ;;  %5260 = vmatpush3.bf16.msra.mxu0 %v5752_v59  ;;  %v1033_v4 = vcombine.high %v6876_v62, %v6876_v62  ;;  %v1064_v5 = vcombine.high %v1054_v0, %v1054_v0  ;;  %v5793_v6 = vld [vmem:[%s7240_s1 + $0x900] sm:$0xff]  }
  0xfc   :  { %5261 = vmatprep.subr.bf16.mxu0 %v5755_v2  ;;  %v1040_v2 = vrot.slane %v1024_v51, %v6051_v41 }
  0xfd   :  { %5282 = vmatpush3.bf16.msra.mxu1 %v5754_v1  ;;  %v5791_v1 = vld [vmem:[%s7240_s1 + $0x8b8] sm:$0xff]   ;;  %v1061_v8 = vrot.slane %v1033_v4, %v6051_v41 }
  0xfe   :  { %5283 = vmatprep.subr.bf16.mxu1 %v5757_v9  ;;  %v5795_v9 = vld [vmem:[%s7240_s1 + $0x980] sm:$0xff]   ;;  %v1062_v10 = vcombine.high %v1040_v2, %v1040_v2  ;;  %v5838_v4 = vld [vmem:[%s7240_s1 + $0xa18] sm:$0xff]  }
  0xff   :  { %5262 = vmatpush3.bf16.msra.mxu0 %v5756_v7  ;;  %v5794_v7 = vld [vmem:[%s7240_s1 + $0x9c0] sm:$0xff]  }
 0x100   :  { %5291 = vmatprep.subr.bf16.mxu0 %v5760_v14  ;;  %v5798_v14 = vld [vmem:[%s7240_s1 + $0x9c8] sm:$0xff]  }
 0x101   :  { %5284 = vmatpush3.bf16.msra.mxu1 %v5759_v12  ;;  %v5797_v12 = vld [vmem:[%s7240_s1 + $0x908] sm:$0xff]  }
 0x102   :  { %4123 = vmatmul.mubr.bf16.vlgmr.msra.gmra.mrb[28].mxu0 %v998_v13  ;;  %5313 = vmatprep.subr.bf16.mxu1 %v5762_v16  ;;  %v1065_v13 = vcombine.high %v1061_v8, %v1061_v8  ;;  %v5800_v16 = vld [vmem:[%s7240_s1 + $0x950] sm:$0xff]  }
 0x103   :  { %5292 = vmatpush3.bf16.msra.mxu0 %v5761_v15  ;;  %4202 = vmatprep.mubr.bf16.mxu0 %v1054_v0  ;;  %v5799_v15 = vld [vmem:[%s7240_s1 + $0x988] sm:$0xff]   ;;  %v5834_v0 = vld [vmem:[%s7240_s1 + $0xa10] sm:$0xff]  }
 0x104   :  { %4163 = vmatmul.mubr.bf16.vlgmr.msra.gmra.mrb[28].mxu1 %v1014_v18  ;;  %5293 = vmatprep.subr.bf16.mxu0 %v5764_v19  ;;  %v5802_v18 = vld [vmem:[%s7240_s1 + $0x9d0] sm:$0xff]  }
 0x105   :  { %5314 = vmatpush3.bf16.msra.mxu1 %v5763_v17  ;;  %4242 = vmatprep.mubr.bf16.mxu1 %v1064_v5  ;;  %v5801_v17 = vld [vmem:[%s7240_s1 + $0x910] sm:$0xff]   ;;  %v5839_v5 = vld [vmem:[%s7240_s1 + $0xad8] sm:$0xff]  }
 0x106   :  { %5315 = vmatprep.subr.bf16.mxu1 %v5766_v21  ;;  %v5803_v19 = vld [vmem:[%s7240_s1 + $0x990] sm:$0xff]   ;;  %v5805_v21 = vld [vmem:[%s7240_s1 + $0x918] sm:$0xff]  }
 0x107   :  { %5294 = vmatpush3.bf16.msra.mxu0 %v5765_v20  ;;  %v5804_v20 = vld [vmem:[%s7240_s1 + $0x958] sm:$0xff]  }
 0x108   :  { %5295 = vmatprep.subr.bf16.mxu0 %v5768_v23  ;;  %v5807_v23 = vld [vmem:[%s7240_s1 + $0x998] sm:$0xff]  }
 0x109   :  { %5316 = vmatpush3.bf16.msra.mxu1 %v5767_v22  ;;  %v5806_v22 = vld [vmem:[%s7240_s1 + $0x9d8] sm:$0xff]  }
 0x10a   :  { %5317 = vmatprep.subr.bf16.mxu1 %v5770_v25  ;;  %v5809_v25 = vld [vmem:[%s7240_s1 + $0x920] sm:$0xff]  }
 0x10b   :  { %5296 = vmatpush3.bf16.msra.mxu0 %v5769_v24  ;;  %v5808_v24 = vld [vmem:[%s7240_s1 + $0x960] sm:$0xff]  }
 0x10c   :  { %5297 = vmatprep.subr.bf16.mxu0 %v5772_v27  ;;  %v5811_v27 = vld [vmem:[%s7240_s1 + $0x9a0] sm:$0xff]  }
 0x10d   :  { %5318 = vmatpush3.bf16.msra.mxu1 %v5771_v26  ;;  %v5810_v26 = vld [vmem:[%s7240_s1 + $0x9e0] sm:$0xff]  }
 0x10e   :  { %5319 = vmatprep.subr.bf16.mxu1 %v5774_v29  ;;  %v5813_v29 = vld [vmem:[%s7240_s1 + $0x928] sm:$0xff]  }
 0x10f   :  { %5298 = vmatpush3.bf16.msra.mxu0 %v5773_v28  ;;  %v5812_v28 = vld [vmem:[%s7240_s1 + $0x968] sm:$0xff]  }
 0x110   :  { %5299 = vmatprep.subr.bf16.mxu0 %v5776_v31  ;;  %v5815_v31 = vld [vmem:[%s7240_s1 + $0x9a8] sm:$0xff]  }
 0x111   :  { %5320 = vmatpush3.bf16.msra.mxu1 %v5775_v30  ;;  %v5814_v30 = vld [vmem:[%s7240_s1 + $0x9e8] sm:$0xff]  }
 0x112   :  { %5321 = vmatprep.subr.bf16.mxu1 %v5778_v33 }
 0x113   :  { %5300 = vmatpush3.bf16.msra.mxu0 %v5777_v32  ;;  %v5816_v32 = vld [vmem:[%s7240_s1 + $0x970] sm:$0xff]  }
 0x114   :  { %5301 = vmatprep.subr.bf16.mxu0 %v5780_v35 }
 0x115   :  { %v4999_v40 = vpop.f32.mrb[4].mxu0  ;;  %5322 = vmatpush3.bf16.msra.mxu1 %v5779_v34  ;;  %v5817_v34 = vld [vmem:[%s7240_s1 + $0x930] sm:$0xff]  }
 0x116   :  { %v5000_v44 = vpop.f32.mrb[5].mxu0  ;;  %5323 = vmatprep.subr.bf16.mxu1 %v5782_v37 }
 0x117   :  { %v5001_v46 = vadd.f32 %v5000_v44, %v4999_v40  ;;  %v5002_v47 = vpop.f32.mrb[6].mxu0  ;;  %v5021_v48 = vpop.f32.mrb[4].mxu1  ;;  %5302 = vmatpush3.bf16.msra.mxu0 %v5781_v36  ;;  %v5818_v36 = vld [vmem:[%s7240_s1 + $0x9f0] sm:$0xff]  }
 0x118   :  { %v5003_v53 = vpop.f32.mrb[7].mxu0  ;;  %v5022_v54 = vpop.f32.mrb[5].mxu1  ;;  %5303 = vmatprep.subr.bf16.mxu0 %v5784_v39  ;;  %v5819_v40 = vld [vmem:[%s7240_s1 + $0x9b0] sm:$0xff]   ;;  %v5821_v47 = vld [vmem:[%s7240_s1 + $0x938] sm:$0xff]  }
 0x119   :  { %v3645_v55 = vadd.f32 %v5001_v46, %v6770_v11  ;;  %v5023_v56 = vadd.f32 %v5022_v54, %v5021_v48  ;;  %5324 = vmatpush3.bf16.msra.mxu1 %v5783_v38  ;;  %v5024_v59 = vpop.f32.mrb[6].mxu1  ;;  %v5796_v11 = vld [vmem:[%s7240_s1 + $0x948] sm:$0xff]   ;;  %v1047_v53 = vrot.slane %v6876_v62, %v6051_v41  ;;  %v5825_v54 = vld [vmem:[%s7240_s1 + $0xa40] sm:$0xff]  }
 0x11a   :  { %5325 = vmatprep.subr.bf16.mxu1 %v5786_v43  ;;  %v5025_v61 = vpop.f32.mrb[7].mxu1  ;;  %v5829_v59 = vld [vmem:[%s7240_s1 + $0xa48] sm:$0xff]  }
 0x11b   :  { %v6878_v63 = vadd.f32 %v5023_v56, %v3645_v55  ;;  %5304 = vmatpush3.bf16.msra.mxu0 %v5785_v42  ;;  %v5820_v42 = vld [vmem:[%s7240_s1 + $0x978] sm:$0xff]   ;;  %v5826_v55 = vld [vmem:[%s7240_s1 + $0xa00] sm:$0xff]   ;;  %v1063_v58 = vcombine.high %v1047_v53, %v1047_v53  ;;  %v5831_v61 = vld [vmem:[%s7240_s1 + $0xac8] sm:$0xff]  }
 0x11c   :  { %5305 = vmatprep.subr.bf16.mxu0 %v5788_v50  ;;  %v5827_v56 = vld [vmem:[%s7240_s1 + $0xac0] sm:$0xff]   ;;  %v5832_v62 = vld [vmem:[%s7240_s1 + $0xa88] sm:$0xff]  }
 0x11d   :  { %5326 = vmatpush3.bf16.msra.mxu1 %v5787_v49  ;;  %v5822_v49 = vld [vmem:[%s7240_s1 + $0x9f8] sm:$0xff]  }
 0x11e   :  { %5327 = vmatprep.subr.bf16.mxu1 %v5790_v60  ;;  %v5830_v60 = vld [vmem:[%s7240_s1 + $0xa08] sm:$0xff]  }
 0x11f   :  { %5306 = vmatpush3.bf16.msra.mxu0 %v5789_v57  ;;  %v5828_v57 = vld [vmem:[%s7240_s1 + $0xa80] sm:$0xff]  }
 0x120   :  { %5335 = vmatprep.subr.bf16.mxu0 %v5792_v3  ;;  %v5837_v3 = vld [vmem:[%s7240_s1 + $0xa58] sm:$0xff]  }
 0x121   :  { %5328 = vmatpush3.bf16.msra.mxu1 %v5791_v1  ;;  %v5835_v1 = vld [vmem:[%s7240_s1 + $0xad0] sm:$0xff]  }
 0x122   :  { %4203 = vmatmul.mubr.bf16.vlgmr.msra.gmra.mrb[32].mxu0 %v1040_v2  ;;  %5357 = vmatprep.subr.bf16.mxu1 %v5794_v7  ;;  %v5836_v2 = vld [vmem:[%s7240_s1 + $0xa90] sm:$0xff]   ;;  %v5841_v7 = vld [vmem:[%s7240_s1 + $0xa60] sm:$0xff]  }
 0x123   :  { %5336 = vmatpush3.bf16.msra.mxu0 %v5793_v6  ;;  %4282 = vmatprep.mubr.bf16.mxu0 %v1061_v8  ;;  %v5840_v6 = vld [vmem:[%s7240_s1 + $0xa98] sm:$0xff]   ;;  %v5842_v8 = vld [vmem:[%s7240_s1 + $0xa20] sm:$0xff]  }
 0x124   :  { %4243 = vmatmul.mubr.bf16.vlgmr.msra.gmra.mrb[32].mxu1 %v1062_v10  ;;  %5337 = vmatprep.subr.bf16.mxu0 %v5796_v11  ;;  %v5844_v10 = vld [vmem:[%s7240_s1 + $0xaa0] sm:$0xff]   ;;  %v5845_v11 = vld [vmem:[%s7240_s1 + $0xa68] sm:$0xff]  }
 0x125   :  { %5358 = vmatpush3.bf16.msra.mxu1 %v5795_v9  ;;  %4322 = vmatprep.mubr.bf16.mxu1 %v1065_v13  ;;  %v5843_v9 = vld [vmem:[%s7240_s1 + $0xae0] sm:$0xff]   ;;  %v5847_v13 = vld [vmem:[%s7240_s1 + $0xae8] sm:$0xff]  }
 0x126   :  { %5359 = vmatprep.subr.bf16.mxu1 %v5798_v14  ;;  %v5848_v14 = vld [vmem:[%s7240_s1 + $0xaa8] sm:$0xff]  }
 0x127   :  { %5338 = vmatpush3.bf16.msra.mxu0 %v5797_v12  ;;  %v5846_v12 = vld [vmem:[%s7240_s1 + $0xa28] sm:$0xff]  }
 0x128   :  { %5339 = vmatprep.subr.bf16.mxu0 %v5800_v16 }
 0x129   :  { %5360 = vmatpush3.bf16.msra.mxu1 %v5799_v15  ;;  %v5849_v15 = vld [vmem:[%s7240_s1 + $0xa70] sm:$0xff]  }
 0x12a   :  { %5361 = vmatprep.subr.bf16.mxu1 %v5802_v18 }
 0x12b   :  { %5340 = vmatpush3.bf16.msra.mxu0 %v5801_v17  ;;  %v5850_v17 = vld [vmem:[%s7240_s1 + $0xa30] sm:$0xff]  }
 0x12c   :  { %5341 = vmatprep.subr.bf16.mxu0 %v5804_v20 }
 0x12d   :  { %5362 = vmatpush3.bf16.msra.mxu1 %v5803_v19  ;;  %v5851_v19 = vld [vmem:[%s7240_s1 + $0xaf0] sm:$0xff]  }
 0x12e   :  { %5363 = vmatprep.subr.bf16.mxu1 %v5806_v22 }
 0x12f   :  { %5342 = vmatpush3.bf16.msra.mxu0 %v5805_v21 }
 0x130   :  { %5343 = vmatprep.subr.bf16.mxu0 %v5808_v24  ;;  %v21_v24 = vld [vmem:[%s7239_s0 + $0x28] sm:$0xff] }
 0x131   :  { %5364 = vmatpush3.bf16.msra.mxu1 %v5807_v23  ;;  %v5853_v23 = vld [vmem:[%s7240_s1 + $0xa78] sm:$0xff]  }
 0x132   :  { %5365 = vmatprep.subr.bf16.mxu1 %v5810_v26 }
 0x133   :  { %5344 = vmatpush3.bf16.msra.mxu0 %v5809_v25 }
 0x134   :  { %5345 = vmatprep.subr.bf16.mxu0 %v5812_v28  ;;  %v1066_v28 = vcombine.high %v21_v24, %v21_v24 }
 0x135   :  { %v5043_v33 = vpop.f32.mrb[8].mxu0  ;;  %5366 = vmatpush3.bf16.msra.mxu1 %v5811_v27  ;;  %v1073_v27 = vrot.slane %v21_v24, %v6051_v41 }
 0x136   :  { %v5044_v35 = vpop.f32.mrb[9].mxu0  ;;  %5367 = vmatprep.subr.bf16.mxu1 %v5814_v30 }
 0x137   :  { %v5045_v37 = vadd.f32 %v5044_v35, %v5043_v33  ;;  %v5046_v38 = vpop.f32.mrb[10].mxu0  ;;  %v5065_v39 = vpop.f32.mrb[8].mxu1  ;;  %5346 = vmatpush3.bf16.msra.mxu0 %v5813_v29  ;;  %v5855_v33 = vld [vmem:[%s7240_s1 + $0xaf8] sm:$0xff]  }
 0x138   :  { %v5047_v43 = vpop.f32.mrb[11].mxu0  ;;  %v5066_v44 = vpop.f32.mrb[9].mxu1  ;;  %5347 = vmatprep.subr.bf16.mxu0 %v5816_v32  ;;  %v5854_v38 = vld [vmem:[%s7240_s1 + $0xa38] sm:$0xff]  }
 0x139   :  { %v3725_v45 = vadd.f32 %v5045_v37, %v6878_v63  ;;  %v5067_v46 = vadd.f32 %v5066_v44, %v5065_v39  ;;  %5368 = vmatpush3.bf16.msra.mxu1 %v5815_v31  ;;  %v5068_v48 = vpop.f32.mrb[10].mxu1  ;;  %v5833_v63 = vld [vmem:[%s7240_s1 + $0xa50] sm:$0xff]   ;;  %v5856_v44 = vld [vmem:[%s7240_s1 + $0xab8] sm:$0xff]  }
 0x13a   :  { %5369 = vmatprep.subr.bf16.mxu1 %v5818_v36  ;;  %v5069_v50 = vpop.f32.mrb[11].mxu1  ;;  %v5852_v31 = vld [vmem:[%s7240_s1 + $0xab0] sm:$0xff]   ;;  %v7085_v36 = vrot.slane %v1066_v28, %v6051_v41  ;;  %v5858_v48 = vld [vmem:[%s7240_s1 + $0xb00] sm:$0xff]   ;;  %v5889_v28 = vld [vmem:[%s7240_s1 + $0xbb8] sm:$0xff]  }
 0x13b   :  { %v6982_v51 = vadd.f32 %v5067_v46, %v3725_v45  ;;  %5348 = vmatpush3.bf16.msra.mxu0 %v5817_v34  ;;  %v1081_v34 = vcombine.high %v1073_v27, %v1073_v27  ;;  %v5859_v46 = vld [vmem:[%s7240_s1 + $0xbc0] sm:$0xff]   ;;  %v5861_v50 = vld [vmem:[%s7240_s1 + $0xb48] sm:$0xff]  }
 0x13c   :  { %5349 = vmatprep.subr.bf16.mxu0 %v5820_v42  ;;  %v5857_v42 = vld [vmem:[%s7240_s1 + $0xb40] sm:$0xff]   ;;  %v1082_v43 = vcombine.high %v7085_v36, %v7085_v36 }
 0x13d   :  { %5370 = vmatpush3.bf16.msra.mxu1 %v5819_v40  ;;  %v1103_v39 = vrot.slane %v1081_v34, %v6051_v41  ;;  %v1089_v40 = vrot.slane %v1073_v27, %v6051_v41  ;;  %v1096_v27 = vrot.slane %v7085_v36, %v6051_v41 }
 0x13e   :  { %5371 = vmatprep.subr.bf16.mxu1 %v5822_v49 }
 0x13f   :  { %5350 = vmatpush3.bf16.msra.mxu0 %v5821_v47  ;;  %v1113_v45 = vcombine.high %v1103_v39, %v1103_v39  ;;  %v1110_v47 = vrot.slane %v1082_v43, %v6051_v41  ;;  %v1111_v49 = vcombine.high %v1089_v40, %v1089_v40 }
 0x140   :  { %5379 = vmatprep.subr.bf16.mxu0 %v5825_v54  ;;  %v5862_v54 = vld [vmem:[%s7240_s1 + $0xb08] sm:$0xff]  }
 0x141   :  { %5372 = vmatpush3.bf16.msra.mxu1 %v5824_v52  ;;  %v1114_v52 = vcombine.high %v1110_v47, %v1110_v47 }
 0x142   :  { %4283 = vmatmul.mubr.bf16.vlgmr.msra.gmra.mrb[36].mxu0 %v1047_v53  ;;  %5401 = vmatprep.subr.bf16.mxu1 %v5827_v56  ;;  %v5863_v53 = vld [vmem:[%s7240_s1 + $0xbc8] sm:$0xff]  }
 0x143   :  { %5380 = vmatpush3.bf16.msra.mxu0 %v5826_v55  ;;  %4362 = vmatprep.mubr.bf16.mxu0 %v1103_v39  ;;  %v5865_v55 = vld [vmem:[%s7240_s1 + $0xb50] sm:$0xff]   ;;  %v5864_v56 = vld [vmem:[%s7240_s1 + $0xb88] sm:$0xff]  }
 0x144   :  { %4323 = vmatmul.mubr.bf16.vlgmr.msra.gmra.mrb[36].mxu1 %v1063_v58  ;;  %5381 = vmatprep.subr.bf16.mxu0 %v5829_v59  ;;  %v5866_v58 = vld [vmem:[%s7240_s1 + $0xb10] sm:$0xff]   ;;  %v5869_v59 = vld [vmem:[%s7240_s1 + $0xb58] sm:$0xff]  }
 0x145   :  { %5402 = vmatpush3.bf16.msra.mxu1 %v5828_v57  ;;  %4402 = vmatprep.mubr.bf16.mxu1 %v1113_v45  ;;  %v5867_v57 = vld [vmem:[%s7240_s1 + $0xbd0] sm:$0xff]  }
 0x146   :  { %5403 = vmatprep.subr.bf16.mxu1 %v5831_v61  ;;  %v5871_v61 = vld [vmem:[%s7240_s1 + $0xbd8] sm:$0xff]  }
 0x147   :  { %5382 = vmatpush3.bf16.msra.mxu0 %v5830_v60  ;;  %v5868_v60 = vld [vmem:[%s7240_s1 + $0xb90] sm:$0xff]  }
 0x148   :  { %5383 = vmatprep.subr.bf16.mxu0 %v5833_v63  ;;  %v5873_v63 = vld [vmem:[%s7240_s1 + $0xb60] sm:$0xff]  }
 0x149   :  { %5404 = vmatpush3.bf16.msra.mxu1 %v5832_v62  ;;  %v5870_v62 = vld [vmem:[%s7240_s1 + $0xb18] sm:$0xff]  }
 0x14a   :  { %5405 = vmatprep.subr.bf16.mxu1 %v5835_v1  ;;  %v5875_v1 = vld [vmem:[%s7240_s1 + $0xbe0] sm:$0xff]  }
 0x14b   :  { %5384 = vmatpush3.bf16.msra.mxu0 %v5834_v0  ;;  %v5872_v0 = vld [vmem:[%s7240_s1 + $0xb98] sm:$0xff]  }
 0x14c   :  { %5385 = vmatprep.subr.bf16.mxu0 %v5837_v3  ;;  %v5877_v3 = vld [vmem:[%s7240_s1 + $0xb68] sm:$0xff]  }
 0x14d   :  { %5406 = vmatpush3.bf16.msra.mxu1 %v5836_v2  ;;  %v5874_v2 = vld [vmem:[%s7240_s1 + $0xb20] sm:$0xff]  }
 0x14e   :  { %5407 = vmatprep.subr.bf16.mxu1 %v5839_v5  ;;  %v5879_v5 = vld [vmem:[%s7240_s1 + $0xbe8] sm:$0xff]  }
 0x14f   :  { %5386 = vmatpush3.bf16.msra.mxu0 %v5838_v4  ;;  %v5876_v4 = vld [vmem:[%s7240_s1 + $0xba0] sm:$0xff]  }
 0x150   :  { %5387 = vmatprep.subr.bf16.mxu0 %v5841_v7  ;;  %v5881_v7 = vld [vmem:[%s7240_s1 + $0xb70] sm:$0xff]  }
 0x151   :  { %5408 = vmatpush3.bf16.msra.mxu1 %v5840_v6  ;;  %v5878_v6 = vld [vmem:[%s7240_s1 + $0xb28] sm:$0xff]  }
 0x152   :  { %5409 = vmatprep.subr.bf16.mxu1 %v5843_v9  ;;  %v5880_v9 = vld [vmem:[%s7240_s1 + $0xba8] sm:$0xff]  }
 0x153   :  { %5388 = vmatpush3.bf16.msra.mxu0 %v5842_v8 }
 0x154   :  { %5389 = vmatprep.subr.bf16.mxu0 %v5845_v11  ;;  %v5883_v11 = vld [vmem:[%s7240_s1 + $0xbf0] sm:$0xff]  }
 0x155   :  { %v5087_v16 = vpop.f32.mrb[12].mxu0  ;;  %5410 = vmatpush3.bf16.msra.mxu1 %v5844_v10 }
 0x156   :  { %v5088_v18 = vpop.f32.mrb[13].mxu0  ;;  %5411 = vmatprep.subr.bf16.mxu1 %v5847_v13 }
 0x157   :  { %v5089_v20 = vadd.f32 %v5088_v18, %v5087_v16  ;;  %v5090_v21 = vpop.f32.mrb[14].mxu0  ;;  %v5109_v22 = vpop.f32.mrb[12].mxu1  ;;  %5390 = vmatpush3.bf16.msra.mxu0 %v5846_v12  ;;  %v5885_v16 = vld [vmem:[%s7240_s1 + $0xb78] sm:$0xff]  }
 0x158   :  { %v5091_v25 = vpop.f32.mrb[15].mxu0  ;;  %v5110_v26 = vpop.f32.mrb[13].mxu1  ;;  %5391 = vmatprep.subr.bf16.mxu0 %v5849_v15  ;;  %v5882_v15 = vld [vmem:[%s7240_s1 + $0xb30] sm:$0xff]  }
 0x159   :  { %v3805_v29 = vadd.f32 %v5089_v20, %v6982_v51  ;;  %v5111_v30 = vadd.f32 %v5110_v26, %v5109_v22  ;;  %5412 = vmatpush3.bf16.msra.mxu1 %v5848_v14  ;;  %v5112_v32 = vpop.f32.mrb[14].mxu1  ;;  %v5860_v51 = vld [vmem:[%s7240_s1 + $0xb80] sm:$0xff]   ;;  %v5884_v21 = vld [vmem:[%s7240_s1 + $0xbb0] sm:$0xff]   ;;  %v5886_v26 = vld [vmem:[%s7240_s1 + $0xb38] sm:$0xff]  }
 0x15a   :  { %5413 = vmatprep.subr.bf16.mxu1 %v5851_v19  ;;  %v5113_v35 = vpop.f32.mrb[15].mxu1 }
 0x15b   :  { %v7087_v37 = vadd.f32 %v5111_v30, %v3805_v29  ;;  %5392 = vmatpush3.bf16.msra.mxu0 %v5850_v17  ;;  %v5890_v29 = vld [vmem:[%s7240_s1 + $0xc00] sm:$0xff]   ;;  %v5923_v30 = vmov 0.0  }
 0x15c   :  { %5393 = vmatprep.subr.bf16.mxu0 %v5853_v23  ;;  %v5887_v23 = vld [vmem:[%s7240_s1 + $0xbf8] sm:$0xff]  }
 0x15d   :  { %5414 = vmatpush3.bf16.msra.mxu1 %v5852_v31  ;;  %v1112_v31 = vcombine.high %v1096_v27, %v1096_v27 }
 0x15e   :  { %5415 = vmatprep.subr.bf16.mxu1 %v5855_v33 }
 0x15f   :  { %5394 = vmatpush3.bf16.msra.mxu0 %v5854_v38 }
 0x160   :  { %5423 = vmatprep.subr.bf16.mxu0 %v5857_v42 }
 0x161   :  { %5416 = vmatpush3.bf16.msra.mxu1 %v5856_v44 }
 0x162   :  { %4363 = vmatmul.mubr.bf16.vlgmr.msra.gmra.mrb[40].mxu0 %v1089_v40  ;;  %5445 = vmatprep.subr.bf16.mxu1 %v5859_v46 }
 0x163   :  { %5424 = vmatpush3.bf16.msra.mxu0 %v5858_v48  ;;  %4442 = vmatprep.mubr.bf16.mxu0 %v1110_v47 }
 0x164   :  { %4403 = vmatmul.mubr.bf16.vlgmr.msra.gmra.mrb[40].mxu1 %v1111_v49  ;;  %5425 = vmatprep.subr.bf16.mxu0 %v5861_v50 }
 0x165   :  { %5446 = vmatpush3.bf16.msra.mxu1 %v5860_v51  ;;  %4482 = vmatprep.mubr.bf16.mxu1 %v1114_v52 }
 0x166   :  { %5447 = vmatprep.subr.bf16.mxu1 %v5863_v53 }
 0x167   :  { %5426 = vmatpush3.bf16.msra.mxu0 %v5862_v54 }
 0x168   :  { %5427 = vmatprep.subr.bf16.mxu0 %v5865_v55 }
 0x169   :  { %5448 = vmatpush3.bf16.msra.mxu1 %v5864_v56 }
 0x16a   :  { %5449 = vmatprep.subr.bf16.mxu1 %v5867_v57 }
 0x16b   :  { %5428 = vmatpush3.bf16.msra.mxu0 %v5866_v58 }
 0x16c   :  { %5429 = vmatprep.subr.bf16.mxu0 %v5869_v59 }
 0x16d   :  { %5450 = vmatpush3.bf16.msra.mxu1 %v5868_v60 }
 0x16e   :  { %5451 = vmatprep.subr.bf16.mxu1 %v5871_v61 }
 0x16f   :  { %5430 = vmatpush3.bf16.msra.mxu0 %v5870_v62 }
 0x170   :  { %5431 = vmatprep.subr.bf16.mxu0 %v5873_v63 }
 0x171   :  { %5452 = vmatpush3.bf16.msra.mxu1 %v5872_v0 }
 0x172   :  { %5453 = vmatprep.subr.bf16.mxu1 %v5875_v1 }
 0x173   :  { %5432 = vmatpush3.bf16.msra.mxu0 %v5874_v2 }
 0x174   :  { %5433 = vmatprep.subr.bf16.mxu0 %v5877_v3 }
 0x175   :  { %v5131_v8 = vpop.f32.mrb[16].mxu0  ;;  %5454 = vmatpush3.bf16.msra.mxu1 %v5876_v4 }
 0x176   :  { %v5132_v10 = vpop.f32.mrb[17].mxu0  ;;  %5455 = vmatprep.subr.bf16.mxu1 %v5879_v5 }
 0x177   :  { %v5133_v12 = vadd.f32 %v5132_v10, %v5131_v8  ;;  %v5134_v13 = vpop.f32.mrb[18].mxu0  ;;  %v5153_v14 = vpop.f32.mrb[16].mxu1  ;;  %5434 = vmatpush3.bf16.msra.mxu0 %v5878_v6 }
 0x178   :  { %v5135_v17 = vpop.f32.mrb[19].mxu0  ;;  %v5154_v18 = vpop.f32.mrb[17].mxu1  ;;  %5435 = vmatprep.subr.bf16.mxu0 %v5881_v7 }
 0x179   :  { %v3885_v19 = vadd.f32 %v5133_v12, %v7087_v37  ;;  %v5155_v20 = vadd.f32 %v5154_v18, %v5153_v14  ;;  %5456 = vmatpush3.bf16.msra.mxu1 %v5880_v9  ;;  %v5156_v22 = vpop.f32.mrb[18].mxu1 }
 0x17a   :  { %5457 = vmatprep.subr.bf16.mxu1 %v5883_v11  ;;  %v5157_v24 = vpop.f32.mrb[19].mxu1 }
 0x17b   :  { %v3925_v25 = vadd.f32 %v5155_v20, %v3885_v19  ;;  %5436 = vmatpush3.bf16.msra.mxu0 %v5882_v15 }
 0x17c   :  { %5437 = vmatprep.subr.bf16.mxu0 %v5885_v16 }
 0x17d   :  { %5458 = vmatpush3.bf16.msra.mxu1 %v5884_v21 }
 0x17e   :  { %5459 = vmatprep.subr.bf16.mxu1 %v5887_v23 }
 0x17f   :  { %5438 = vmatpush3.bf16.msra.mxu0 %v5886_v26 }
 0x180   :  { %5476 = vmatprep.subr.bf16.mxu0 %v5923_v30 }
 0x181   :  { %5460 = vmatpush3.bf16.msra.mxu1 %v5889_v28 }
 0x182   :  { %8 = vsyncpa [#allocation3], 0  ;;  %4443 = vmatmul.mubr.bf16.vlgmr.msra.gmra.mrb[44].mxu0 %v1096_v27  ;;  %v5891_v32 = vld [vmem:[%s7240_s1 + $0xc08] sm:$0xff]   ;;  %vm5924_vm0 = vmmov 0   ;;  %v5892_v33 = vld [vmem:[%s7240_s1 + $0xc10] sm:$0xff]  }
 0x183   :  { %5477 = vmatpush3.bf16.msra.mxu0 %v5890_v29  ;;  %5492 = vmatprep.mubr.msk.bf16.mxu0 %vm5924_vm0, %v5923_v30  ;;  %v5893_v34 = vld [vmem:[%s7240_s1 + $0xc18] sm:$0xff]   ;;  %v5894_v35 = vld [vmem:[%s7240_s1 + $0xc20] sm:$0xff]   ;;  %v5895_v36 = vld [vmem:[%s7240_s1 + $0xc28] sm:$0xff]  }
 0x184   :  { %4483 = vmatmul.mubr.bf16.vlgmr.msra.gmra.mrb[44].mxu1 %v1112_v31  ;;  %5478 = vmatprep.subr.bf16.mxu0 %v5923_v30  ;;  %v5896_v43 = vld [vmem:[%s7240_s1 + $0xc30] sm:$0xff]   ;;  %v5897_v51 = vld [vmem:[%s7240_s1 + $0xc38] sm:$0xff]  }
 0x185   :  { %v4546_v52 = vld.sshfl [vmem:[%s7239_s0 + $0x30] sm:$0x1 pattern:$0x75316420]  ;;  %s5925_s0 = smov [#allocation2]  }
 0x186   :  { %v1128_v53 = vrot.slane %v4546_v52, %v6051_v41  ;;  %s4537_s1 = sshll.u32 %s5925_s0, 4  ;;  %s4538_s1 = int_to_ptr.vmem [resolvable:$true] %s4537_s1 }
 0x187   :  { %5479 = vmatpush3.bf16.msra.mxu0 %v5891_v32  ;;  %s5898_s18 = scalar_lea.vmem %s4538_s1, 32  ;;  %p5903_p1 = scmp.lt.s32.totalorder %s4538_s1, %s4538_s1 }
 0x188   :  { %5480 = vmatprep.subr.bf16.mxu0 %v5923_v30  ;;  %p5899_p0 = scmp.ne.s32.totalorder %s4538_s1, %s5898_s18  ;;  %p5904_p2 = scmp.lt.s32.totalorder %s5898_s18, %s5898_s18 }
 0x18a   :  { %p5905_p3 = por %p5904_p2, %p5903_p1 }
 0x18b   :  { %5481 = vmatpush3.bf16.msra.mxu0 %v5892_v33 }
 0x18c   :  { %5482 = vmatprep.subr.bf16.mxu0 %v5923_v30  ;;  %p5906_p4 = pnand %p5905_p3, %p5899_p0 }
 0x18f   :  { %5483 = vmatpush3.bf16.msra.mxu0 %v5893_v34 }
 0x190   :  { %5484 = vmatprep.subr.bf16.mxu0 %v5923_v30 }
 0x193   :  { %5485 = vmatpush3.bf16.msra.mxu0 %v5894_v35 }
 0x194   :  { %5486 = vmatprep.subr.bf16.mxu0 %v5923_v30 }
 0x195   :  { %v5175_v37 = vpop.f32.mrb[20].mxu0 }
 0x196   :  { %v5176_v38 = vpop.f32.mrb[21].mxu0 }
 0x197   :  { %v5177_v39 = vadd.f32 %v5176_v38, %v5175_v37  ;;  %v5178_v40 = vpop.f32.mrb[22].mxu0  ;;  %v5197_v42 = vpop.f32.mrb[20].mxu1  ;;  %5487 = vmatpush3.bf16.msra.mxu0 %v5895_v36 }
 0x198   :  { %v5179_v44 = vpop.f32.mrb[23].mxu0  ;;  %v5198_v45 = vpop.f32.mrb[21].mxu1  ;;  %5488 = vmatprep.subr.bf16.mxu0 %v5923_v30 }
 0x199   :  { %v3965_v46 = vadd.f32 %v5177_v39, %v3925_v25  ;;  %v5199_v47 = vadd.f32 %v5198_v45, %v5197_v42  ;;  %v5200_v48 = vpop.f32.mrb[22].mxu1 }
 0x19a   :  { %v5201_v49 = vpop.f32.mrb[23].mxu1 }
 0x19b   :  { %v4005_v50 = vadd.f32 %v5199_v47, %v3965_v46  ;;  %5489 = vmatpush3.bf16.msra.mxu0 %v5896_v43 }
 0x19c   :  { %5490 = vmatprep.subr.bf16.mxu0 %v5923_v30 }
 0x19f   :  { %5491 = vmatpush3.bf16.msra.mxu0 %v5897_v51 }
 0x1a2   :  { %5493 = vmatmul.mubr.bf16.vlgmr.msra.gmra.mrb[48].mxu0 %v1128_v53 }
 0x1b5   :  { %v5219_v54 = vpop.f32.mrb[24].mxu0 }
 0x1b6   :  { %v5220_v55 = vpop.f32.mrb[25].mxu0 }
 0x1b7   :  { %v5221_v56 = vadd.f32 %v5220_v55, %v5219_v54  ;;  %v5222_v57 = vpop.f32.mrb[26].mxu0  ;;  %v5241_v58 = vpop.f32.mrb[24].mxu1 }
 0x1b8   :  { %v5223_v59 = vpop.f32.mrb[27].mxu0  ;;  %v5242_v60 = vpop.f32.mrb[25].mxu1 }
 0x1b9   :  { %v4045_v61 = vadd.f32 %v5221_v56, %v4005_v50  ;;  %v5243_v62 = vadd.f32 %v5242_v60, %v5241_v58  ;;  %v5244_v63 = vpop.f32.mrb[26].mxu1 }
 0x1ba   :  { %v5245_v0 = vpop.f32.mrb[27].mxu1 }
 0x1bb   :  { %v4085_v1 = vadd.f32 %v5243_v62, %v4045_v61 }
 0x1d5   :  { %v5263_v2 = vpop.f32.mrb[28].mxu0 }
 0x1d6   :  { %v5264_v3 = vpop.f32.mrb[29].mxu0 }
 0x1d7   :  { %v5265_v4 = vadd.f32 %v5264_v3, %v5263_v2  ;;  %v5266_v5 = vpop.f32.mrb[30].mxu0  ;;  %v5285_v6 = vpop.f32.mrb[28].mxu1 }
 0x1d8   :  { %v5267_v41 = vpop.f32.mrb[31].mxu0  ;;  %v5286_v7 = vpop.f32.mrb[29].mxu1 }
 0x1d9   :  { %v4125_v8 = vadd.f32 %v5265_v4, %v4085_v1  ;;  %v5287_v9 = vadd.f32 %v5286_v7, %v5285_v6  ;;  %v5288_v10 = vpop.f32.mrb[30].mxu1 }
 0x1da   :  { %v5289_v11 = vpop.f32.mrb[31].mxu1 }
 0x1db   :  { %v4165_v12 = vadd.f32 %v5287_v9, %v4125_v8 }
 0x1f5   :  { %v5307_v13 = vpop.f32.mrb[32].mxu0 }
 0x1f6   :  { %v5308_v14 = vpop.f32.mrb[33].mxu0 }
 0x1f7   :  { %v5309_v15 = vadd.f32 %v5308_v14, %v5307_v13  ;;  %v5310_v16 = vpop.f32.mrb[34].mxu0  ;;  %v5329_v17 = vpop.f32.mrb[32].mxu1 }
 0x1f8   :  { %v5311_v18 = vpop.f32.mrb[35].mxu0  ;;  %v5330_v19 = vpop.f32.mrb[33].mxu1 }
 0x1f9   :  { %v4205_v20 = vadd.f32 %v5309_v15, %v4165_v12  ;;  %v5331_v21 = vadd.f32 %v5330_v19, %v5329_v17  ;;  %v5332_v22 = vpop.f32.mrb[34].mxu1 }
 0x1fa   :  { %v5333_v23 = vpop.f32.mrb[35].mxu1 }
 0x1fb   :  { %v4245_v24 = vadd.f32 %v5331_v21, %v4205_v20 }
 0x215   :  { %v5351_v25 = vpop.f32.mrb[36].mxu0 }
 0x216   :  { %v5352_v26 = vpop.f32.mrb[37].mxu0 }
 0x217   :  { %v5353_v27 = vadd.f32 %v5352_v26, %v5351_v25  ;;  %v5354_v28 = vpop.f32.mrb[38].mxu0  ;;  %v5373_v29 = vpop.f32.mrb[36].mxu1 }
 0x218   :  { %v5355_v30 = vpop.f32.mrb[39].mxu0  ;;  %v5374_v31 = vpop.f32.mrb[37].mxu1 }
 0x219   :  { %v4285_v32 = vadd.f32 %v5353_v27, %v4245_v24  ;;  %v5375_v33 = vadd.f32 %v5374_v31, %v5373_v29  ;;  %v5376_v34 = vpop.f32.mrb[38].mxu1 }
 0x21a   :  { %v5377_v35 = vpop.f32.mrb[39].mxu1 }
 0x21b   :  { %v4325_v36 = vadd.f32 %v5375_v33, %v4285_v32 }
 0x235   :  { %v5395_v37 = vpop.f32.mrb[40].mxu0 }
 0x236   :  { %v5396_v38 = vpop.f32.mrb[41].mxu0 }
 0x237   :  { %v5397_v39 = vadd.f32 %v5396_v38, %v5395_v37  ;;  %v5398_v40 = vpop.f32.mrb[42].mxu0  ;;  %v5417_v42 = vpop.f32.mrb[40].mxu1 }
 0x238   :  { %v5399_v43 = vpop.f32.mrb[43].mxu0  ;;  %v5418_v44 = vpop.f32.mrb[41].mxu1 }
 0x239   :  { %v4365_v45 = vadd.f32 %v5397_v39, %v4325_v36  ;;  %v5419_v46 = vadd.f32 %v5418_v44, %v5417_v42  ;;  %v5420_v47 = vpop.f32.mrb[42].mxu1 }
 0x23a   :  { %v5421_v48 = vpop.f32.mrb[43].mxu1 }
 0x23b   :  { %v4405_v49 = vadd.f32 %v5419_v46, %v4365_v45 }
 0x255   :  { %v5439_v50 = vpop.f32.mrb[44].mxu0 }
 0x256   :  { %v5440_v51 = vpop.f32.mrb[45].mxu0 }
 0x257   :  { %v5441_v52 = vadd.f32 %v5440_v51, %v5439_v50  ;;  %v5442_v53 = vpop.f32.mrb[46].mxu0  ;;  %v5461_v54 = vpop.f32.mrb[44].mxu1 }
 0x258   :  { %v5443_v55 = vpop.f32.mrb[47].mxu0  ;;  %v5462_v56 = vpop.f32.mrb[45].mxu1 }
 0x259   :  { %v4445_v57 = vadd.f32 %v5441_v52, %v4405_v49  ;;  %v5463_v58 = vadd.f32 %v5462_v56, %v5461_v54  ;;  %v5464_v59 = vpop.f32.mrb[46].mxu1 }
 0x25a   :  { %v5465_v60 = vpop.f32.mrb[47].mxu1 }
 0x25b   :  { %v4485_v61 = vadd.f32 %v5463_v58, %v4445_v57 }
 0x275   :  { %v4524_v62 = vpop.f32.mrb[48].mxu0 }
 0x276   :  { %v4525_v63 = vadd.f32 %v4524_v62, %v4485_v61  ;;  %v5494_v0 = vpop.f32.mrb[49].mxu0 }
 0x277   :  { %v4527_v1 = vpop.f32.mrb[50].mxu0 }
 0x278   :  { %4530 = vst [vmem:[#allocation2] sm:$0x3] %v4525_v63  ;;  %v5495_v2 = vpop.f32.mrb[51].mxu0 }
 0x279   :  { %5909 = shalt.err (!%p5906_p4)
}
 0x27a   :  { %s5910_s21 = scalar_lea.hbm %s7242_s3, 32 }
 0x27b   :  { %p5911_p5 = scmp.ne.s32.totalorder %s7242_s3, %s5910_s21  ;;  %p5914_p6 = scmp.lt.u32.totalorder %s5910_s21, %s7242_s3 }
 0x27d   :  { %p5916_p7 = pnand %p5914_p6, %p5911_p5 }
 0x27f   :  { %5919 = shalt.err (!%p5916_p7)
}
 0x280   :  { %4540 = dma.vmem_to_hbm [thread:$0]  %s4538_s1, 32, %s7242_s3, [#allocation3]  }
 0x281   :  { %5920 = dma.done.wait [#allocation3], 32  }
 0x282   :  { %5921 = vsyncadd [#allocation3], 4294967264 }
 0x283   :  { %4544 = vsyncpa [#allocation3], 1 }

// kernel: baseline1_forward.2
= control target key start
LH: loop header
LB: loop body
LE: loop exit
PB: predicated region body
PF: predicated region fallthrough
CT: control target
= control target key end

     0   :  { %s21874_s21 = smov 0   ;;  %s24992_s0 = inlined_call_operand.vmem [shape: bf16[2,4,440,128], index: 0, kind: input, shape index: {}]   ;;  %s24993_s1 = inlined_call_operand.vmem [shape: f32[440,1], index: 1, kind: input, shape index: {}]   ;;  %s24994_s2 = inlined_call_operand.vmem [shape: bf16[128,128], index: 2, kind: input, shape index: {}]   ;;  %s24995_s3 = inlined_call_operand.vmem [shape: f32[1,128], index: 3, kind: input, shape index: {}]   ;;  %s24996_s4 = inlined_call_operand.vmem [shape: bf16[25,128,128], index: 4, kind: input, shape index: {}]   ;;  %s24997_s5 = inlined_call_operand.vmem [shape: f32[1,128], index: 5, kind: input, shape index: {}]   ;;  %s24998_s6 = inlined_call_operand.vmem [shape: bf16[2,7,7,128], index: 6, kind: output, shape index: {}]  }
   0x1 LB: > { %s14869_s22 = sadd.s32 4294967295, %s21834_s21   ;;  %p14873_p0 = scmp.ge.s32.totalorder %s21834_s21, 1  ;;  %s21834_s21 = sphi %s21874_s21, %s16_s21  }
   0x2   : > { %p212_p1 = scmp.lt.s32.totalorder %s21834_s21, 3 }
   0x4   : > { %p213_p2 = pnand %p14873_p0, %p212_p1 }
   0x6   : > { %216 = sbr.rel (%p213_p2) target bundleno = 2895 (0xb4f), region = 44 }
   0xd   : > { %v21885_v0 = vld [vmem:[%s24994_s2] sm:$0xff]   ;;  %p242_p3 = scmp.lt.s32.totalorder %s14869_s22, 1  ;;  %v21890_v1 = vld [vmem:[%s24994_s2 + $0x8] sm:$0xff]   ;;  %v21902_v2 = vld [vmem:[%s24994_s2 + $0x10] sm:$0xff]   ;;  %v21836_v43 = vmov 0   ;;  %vm21838_vm0 = vmmov 0  }
   0xe   : > { %19418 = vmatprep.subr.bf16.mxu1 %v21885_v0  ;;  %16630 = vmatprep.subr.bf16.mxu0 %v21885_v0  ;;  %v21915_v3 = vld [vmem:[%s24994_s2 + $0x18] sm:$0xff]   ;;  %v21927_v5 = vld [vmem:[%s24994_s2 + $0x20] sm:$0xff]   ;;  %v21936_v6 = vld [vmem:[%s24994_s2 + $0x28] sm:$0xff]   ;;  %vm14700_vm1 = vcmask 1043456   ;;  %vm14701_vm2 = vsmask.f32 3328 }
   0xf   : > { %s25075_s22 = smov (!%p242_p3, %s14869_s22), 1  ;;  %19426 = vmatpush3.bf16.msra.mxu1 %v21885_v0  ;;  %16631 = vmatpush3.bf16.msra.mxu0 %v21885_v0  ;;  %v21945_v7 = vld [vmem:[%s24994_s2 + $0x30] sm:$0xff]   ;;  %v21952_v8 = vld [vmem:[%s24994_s2 + $0x38] sm:$0xff]   ;;  %v2958_v49 = vld [vmem:[%s24993_s1 + $0x40] sm:$0xff] }
  0x10   : > { %19419 = vmatprep.subr.bf16.mxu1 %v21890_v1  ;;  %s21492_s29 = smul.u32 880, %s25075_s22  ;;  %16632 = vmatprep.subr.bf16.mxu0 %v21890_v1  ;;  %v2956_v46 = vld [vmem:[%s24993_s1 + $0x30] sm:$0xff]  ;;  %v2957_v48 = vld [vmem:[%s24993_s1 + $0x38] sm:$0xff]  ;;  %v2959_v55 = vld [vmem:[%s24993_s1 + $0x48] sm:$0xff] }
  0x11   : > { %21505 = vset.pattern.permute.xlu0 %v21836_v43  ;;  %21506 = vset.pattern.permute.xlu1 %v21836_v43  ;;  %v2960_v51 = vld [vmem:[%s24993_s1 + $0x50] sm:$0xff]  ;;  %v2962_v56 = vld [vmem:[%s24993_s1 + $0x60] sm:$0xff]  ;;  %v2961_v57 = vld [vmem:[%s24993_s1 + $0x58] sm:$0xff]  ;;  %s21493_s11 = smul.u32 28, %s25075_s22 }
  0x12   : > { %s21909_s8 = scalar_lea.vmem %s24992_s0, %s21492_s29  ;;  %3037 = vperm.xlu0 %21505, %v2956_v46   ;;  %3047 = vperm.xlu1 %21506, %v2958_v49   ;;  %v2964_v59 = vld [vmem:[%s24993_s1 + $0x70] sm:$0xff]  ;;  %v2963_v63 = vld [vmem:[%s24993_s1 + $0x68] sm:$0xff]  ;;  %v2989_v49 = vld [vmem:[%s24993_s1 + $0x138] sm:$0xff] }
  0x13   : > { %19427 = vmatpush3.bf16.msra.mxu1 %v21890_v1  ;;  %16633 = vmatpush3.bf16.msra.mxu0 %v21890_v1  ;;  %v21515_v4 = vld [vmem:[%s21909_s8 + $0x40] sm:$0xff]   ;;  %v21516_v10 = vld [vmem:[%s21909_s8 + $0x48] sm:$0xff]   ;;  %v21517_v12 = vld [vmem:[%s21909_s8 + $0x50] sm:$0xff]   ;;  %s24926_s16 = scalar_lea.vmem %s24998_s6, %s21493_s11 }
  0x14   : > { %19420 = vmatprep.subr.bf16.mxu1 %v21902_v2  ;;  %16634 = vmatprep.subr.bf16.mxu0 %v21902_v2  ;;  %v21531_v9 = vld [vmem:[%s21909_s8] sm:$0xff]   ;;  %v21532_v11 = vld [vmem:[%s21909_s8 + $0x8] sm:$0xff]   ;;  %v21535_v13 = vld [vmem:[%s21909_s8 + $0x10] sm:$0xff]  }
  0x15   : > { %16662 = vmatprep.mubr.bf16.mxu1 %v21515_v4  ;;  %16646 = vmatprep.mubr.bf16.mxu0 %v21531_v9  ;;  %v21518_v14 = vld [vmem:[%s21909_s8 + $0x58] sm:$0xff]   ;;  %v21519_v16 = vld [vmem:[%s21909_s8 + $0x60] sm:$0xff]   ;;  %v21520_v18 = vld [vmem:[%s21909_s8 + $0x68] sm:$0xff]  }
  0x16   : > { %v21536_v15 = vld [vmem:[%s21909_s8 + $0x18] sm:$0xff]   ;;  %v21539_v17 = vld [vmem:[%s21909_s8 + $0x20] sm:$0xff]   ;;  %v21540_v19 = vld [vmem:[%s21909_s8 + $0x28] sm:$0xff]   ;;  %3042 = vperm.xlu0 %21505, %v2957_v48   ;;  %3052 = vperm.xlu1 %21506, %v2959_v55  }
  0x17   : > { %19428 = vmatpush3.bf16.msra.mxu1 %v21902_v2  ;;  %16635 = vmatpush3.bf16.msra.mxu0 %v21902_v2  ;;  %v21521_v20 = vld [vmem:[%s21909_s8 + $0x70] sm:$0xff]   ;;  %v21522_v22 = vld [vmem:[%s21909_s8 + $0x78] sm:$0xff]   ;;  %v21523_v24 = vld [vmem:[%s21909_s8 + $0x80] sm:$0xff]  }
  0x18   : > { %19421 = vmatprep.subr.bf16.mxu1 %v21915_v3  ;;  %16636 = vmatprep.subr.bf16.mxu0 %v21915_v3  ;;  %v21543_v21 = vld [vmem:[%s21909_s8 + $0x30] sm:$0xff]   ;;  %v21544_v23 = vld [vmem:[%s21909_s8 + $0x38] sm:$0xff]   ;;  %v21524_v26 = vld [vmem:[%s21909_s8 + $0x88] sm:$0xff]  }
  0x19   : > { %v21547_v25 = vld [vmem:[%s21909_s8 + $0x1b8] sm:$0xff]   ;;  %v21525_v27 = vld [vmem:[%s21909_s8 + $0x90] sm:$0xff]   ;;  %v21548_v28 = vld [vmem:[%s21909_s8 + $0x1c0] sm:$0xff]  }
  0x1a   : > { %v21551_v29 = vld [vmem:[%s21909_s8 + $0x1c8] sm:$0xff]   ;;  %v21526_v30 = vld [vmem:[%s21909_s8 + $0x98] sm:$0xff]   ;;  %v21527_v31 = vld [vmem:[%s21909_s8 + $0xa0] sm:$0xff]   ;;  %3057 = vperm.xlu0 %21505, %v2960_v51   ;;  %3062 = vperm.xlu1 %21506, %v2961_v57  }
  0x1b   : > { %19429 = vmatpush3.bf16.msra.mxu1 %v21915_v3  ;;  %16637 = vmatpush3.bf16.msra.mxu0 %v21915_v3  ;;  %v21552_v32 = vld [vmem:[%s21909_s8 + $0x1d0] sm:$0xff]   ;;  %v21555_v33 = vld [vmem:[%s21909_s8 + $0x1d8] sm:$0xff]   ;;  %v21528_v34 = vld [vmem:[%s21909_s8 + $0xa8] sm:$0xff]  }
  0x1c   : > { %19422 = vmatprep.subr.bf16.mxu1 %v21927_v5  ;;  %16638 = vmatprep.subr.bf16.mxu0 %v21927_v5  ;;  %v21529_v35 = vld [vmem:[%s21909_s8 + $0xb0] sm:$0xff]   ;;  %v21556_v36 = vld [vmem:[%s21909_s8 + $0x1e0] sm:$0xff]   ;;  %v21559_v37 = vld [vmem:[%s21909_s8 + $0x1e8] sm:$0xff]  }
  0x1d   : > { %v21530_v38 = vld [vmem:[%s21909_s8 + $0xb8] sm:$0xff]   ;;  %v21533_v39 = vld [vmem:[%s21909_s8 + $0xc0] sm:$0xff]   ;;  %v21560_v40 = vld [vmem:[%s21909_s8 + $0x1f0] sm:$0xff]  }
  0x1e   : > { %v21563_v41 = vld [vmem:[%s21909_s8 + $0x1f8] sm:$0xff]   ;;  %v21534_v42 = vld [vmem:[%s21909_s8 + $0xc8] sm:$0xff]   ;;  %v21537_v44 = vld [vmem:[%s21909_s8 + $0xd0] sm:$0xff]   ;;  %3067 = vperm.xlu0 %21505, %v2962_v56   ;;  %3072 = vperm.xlu1 %21506, %v2963_v63  }
  0x1f   : > { %19430 = vmatpush3.bf16.msra.mxu1 %v21927_v5  ;;  %16639 = vmatpush3.bf16.msra.mxu0 %v21927_v5  ;;  %v21564_v45 = vld [vmem:[%s21909_s8 + $0x200] sm:$0xff]   ;;  %v21567_v47 = vld [vmem:[%s21909_s8 + $0x208] sm:$0xff]   ;;  %v21538_v50 = vld [vmem:[%s21909_s8 + $0xd8] ss:$0 sps:$4 sm:$0xff]  }
  0x20   : > { %19423 = vmatprep.subr.bf16.mxu1 %v21936_v6  ;;  %16640 = vmatprep.subr.bf16.mxu0 %v21936_v6  ;;  %v21541_v52 = vld [vmem:[%s21909_s8 + $0xdc] sm:$0xff]   ;;  %v21568_v53 = vld [vmem:[%s21909_s8 + $0x210] sm:$0xff]   ;;  %v21542_v58 = vld [vmem:[%s21909_s8 + $0xe4] sm:$0xff]  }
  0x21   : > { %v21571_v54 = vld [vmem:[%s21909_s8 + $0x218] sm:$0xff]   ;;  %v21545_v60 = vld [vmem:[%s21909_s8 + $0xec] sm:$0xff]   ;;  %v21572_v61 = vld [vmem:[%s21909_s8 + $0x220] sm:$0xff]  }
  0x22   : > { %3077 = vperm.xlu0 %21505, %v2964_v59   ;;  %v21575_v62 = vld [vmem:[%s21909_s8 + $0x228] sm:$0xff]   ;;  %v2966_v4 = vld [vmem:[%s24993_s1 + $0x80] sm:$0xff]  ;;  %v2965_v9 = vld [vmem:[%s24993_s1 + $0x78] sm:$0xff] }
  0x23   : > { %19431 = vmatpush3.bf16.msra.mxu1 %v21936_v6  ;;  %16641 = vmatpush3.bf16.msra.mxu0 %v21936_v6  ;;  %v2988_v43 = vld [vmem:[%s24993_s1 + $0x130] sm:$0xff]  ;;  %v2987_v46 = vld [vmem:[%s24993_s1 + $0x128] sm:$0xff]  ;;  %v2990_v48 = vld [vmem:[%s24993_s1 + $0x140] sm:$0xff] }
  0x24   : > { %19424 = vmatprep.subr.bf16.mxu1 %v21945_v7  ;;  %16642 = vmatprep.subr.bf16.mxu0 %v21945_v7  ;;  %v2992_v51 = vld [vmem:[%s24993_s1 + $0x150] sm:$0xff]  ;;  %v2994_v55 = vld [vmem:[%s24993_s1 + $0x160] sm:$0xff]  ;;  %v2993_v56 = vld [vmem:[%s24993_s1 + $0x158] sm:$0xff] }
  0x25   : > { %3082 = vperm.xlu1 %21506, %v2965_v9   ;;  %v21574_v57 = vld [vmem:[%s21909_s8 + $0x164] sm:$0xff]   ;;  %v21577_v59 = vld [vmem:[%s21909_s8 + $0x16c] sm:$0xff]   ;;  %v21578_v63 = vld [vmem:[%s21909_s8 + $0x174] sm:$0xff]  }
  0x26   : > { %3087 = vperm.xlu0 %21505, %v2966_v4   ;;  %v2998_v4 = vld [vmem:[%s24993_s1 + $0x180] sm:$0xff]  ;;  %vm24929_vm3 = vmand %vm14700_vm1, %vm14701_vm2 }
  0x27   : > { %19432 = vmatpush3.bf16.msra.mxu1 %v21945_v7  ;;  %16643 = vmatpush3.bf16.msra.mxu0 %v21945_v7  ;;  %v21581_v9 = vld [vmem:[%s21909_s8 + $0x17c] sm:$0xff]  }
  0x28   : > { %19425 = vmatprep.subr.bf16.mxu1 %v21952_v8  ;;  %16644 = vmatprep.subr.bf16.mxu0 %v21952_v8 }
  0x2b   : > { %19433 = vmatpush3.bf16.msra.mxu1 %v21952_v8  ;;  %16645 = vmatpush3.bf16.msra.mxu0 %v21952_v8 }
  0x2c   : > { %16702 = vmatprep.subr.bf16.mxu1 %v21885_v0  ;;  %16774 = vmatprep.subr.bf16.mxu0 %v21885_v0 }
  0x2e   : > { %16663 = vmatmul.mubr.bf16.vlgmr.msra.gmra.mrb[0].mxu1 %v21516_v10  ;;  %16647 = vmatmul.mubr.bf16.vlgmr.msra.gmra.mrb[0].mxu0 %v21532_v11  ;;  %v21546_v10 = vld [vmem:[%s21909_s8 + $0xf4] sm:$0xff]  }
  0x2f   : > { %16703 = vmatpush3.bf16.msra.mxu1 %v21885_v0  ;;  %16666 = vmatprep.mubr.bf16.mxu1 %v21517_v12  ;;  %v2968_v11 = vld [vmem:[%s24993_s1 + $0x90] sm:$0xff]  ;;  %v21549_v12 = vld [vmem:[%s21909_s8 + $0xfc] sm:$0xff]  }
  0x30   : > { %16704 = vmatprep.subr.bf16.mxu1 %v21890_v1  ;;  %16775 = vmatpush3.bf16.msra.mxu0 %v21885_v0 }
  0x31   : > { %16776 = vmatprep.subr.bf16.mxu0 %v21890_v1  ;;  %16650 = vmatprep.mubr.bf16.mxu0 %v21535_v13  ;;  %v2967_v13 = vld [vmem:[%s24993_s1 + $0x88] sm:$0xff] }
  0x32   : > { %3097 = vperm.xlu0 %21505, %v2968_v11   ;;  %3092 = vperm.xlu1 %21506, %v2967_v13   ;;  %v2953_v11 = vld [vmem:[%s24993_s1 + $0x18] sm:$0xff]  ;;  %v2955_v13 = vld [vmem:[%s24993_s1 + $0x28] sm:$0xff] }
  0x33   : > { %16705 = vmatpush3.bf16.msra.mxu1 %v21890_v1 }
  0x34   : > { %16706 = vmatprep.subr.bf16.mxu1 %v21902_v2  ;;  %16777 = vmatpush3.bf16.msra.mxu0 %v21890_v1 }
  0x35   : > { %16778 = vmatprep.subr.bf16.mxu0 %v21902_v2 }
  0x36   : > { %16667 = vmatmul.mubr.bf16.gmra.mrb[4].mxu1 %v21518_v14  ;;  %16651 = vmatmul.mubr.bf16.gmra.mrb[4].mxu0 %v21536_v15  ;;  %v21579_v14 = vld [vmem:[%s21909_s8 + $0x238] sm:$0xff]   ;;  %v2970_v15 = vld [vmem:[%s24993_s1 + $0xa0] sm:$0xff] }
  0x37   : > { %16670 = vmatprep.mubr.bf16.mxu1 %v21519_v16  ;;  %16707 = vmatpush3.bf16.msra.mxu1 %v21902_v2  ;;  %v21550_v16 = vld [vmem:[%s21909_s8 + $0x104] sm:$0xff]  }
  0x38   : > { %16708 = vmatprep.subr.bf16.mxu1 %v21915_v3  ;;  %16779 = vmatpush3.bf16.msra.mxu0 %v21902_v2 }
  0x39   : > { %16780 = vmatprep.subr.bf16.mxu0 %v21915_v3  ;;  %16654 = vmatprep.mubr.bf16.mxu0 %v21539_v17  ;;  %v2972_v17 = vld [vmem:[%s24993_s1 + $0xb0] sm:$0xff] }
  0x3a   : > { %3107 = vperm.xlu0 %21505, %v2970_v15   ;;  %v3000_v15 = vld [vmem:[%s24993_s1 + $0x190] sm:$0xff] }
  0x3b   : > { %16709 = vmatpush3.bf16.msra.mxu1 %v21915_v3 }
  0x3c   : > { %16710 = vmatprep.subr.bf16.mxu1 %v21927_v5  ;;  %16781 = vmatpush3.bf16.msra.mxu0 %v21915_v3 }
  0x3d   : > { %16782 = vmatprep.subr.bf16.mxu0 %v21927_v5 }
  0x3e   : > { %16671 = vmatmul.mubr.bf16.gmra.mrb[8].mxu1 %v21520_v18  ;;  %16655 = vmatmul.mubr.bf16.gmra.mrb[8].mxu0 %v21540_v19  ;;  %v21553_v18 = vld [vmem:[%s21909_s8 + $0x10c] sm:$0xff]  }
  0x3f   : > { %16674 = vmatprep.mubr.bf16.mxu1 %v21521_v20  ;;  %16711 = vmatpush3.bf16.msra.mxu1 %v21927_v5  ;;  %v2971_v19 = vld [vmem:[%s24993_s1 + $0xa8] sm:$0xff] }
  0x40   : > { %16712 = vmatprep.subr.bf16.mxu1 %v21936_v6  ;;  %16783 = vmatpush3.bf16.msra.mxu0 %v21927_v5  ;;  %v21583_v20 = vld [vmem:[%s21909_s8 + $0x248] sm:$0xff]  }
  0x41   : > { %16784 = vmatprep.subr.bf16.mxu0 %v21936_v6  ;;  %16658 = vmatprep.mubr.bf16.mxu0 %v21543_v21  ;;  %v2974_v21 = vld [vmem:[%s24993_s1 + $0xc0] sm:$0xff] }
  0x42   : > { %3117 = vperm.xlu0 %21505, %v2972_v17   ;;  %v3002_v17 = vld [vmem:[%s24993_s1 + $0x1a0] sm:$0xff] }
  0x43   : > { %16713 = vmatpush3.bf16.msra.mxu1 %v21936_v6 }
  0x44   : > { %16714 = vmatprep.subr.bf16.mxu1 %v21945_v7  ;;  %16785 = vmatpush3.bf16.msra.mxu0 %v21936_v6 }
  0x45   : > { %16786 = vmatprep.subr.bf16.mxu0 %v21945_v7 }
  0x46   : > { %16675 = vmatmul.mubr.bf16.gmra.mrb[12].mxu1 %v21522_v22  ;;  %16659 = vmatmul.mubr.bf16.gmra.mrb[12].mxu0 %v21544_v23  ;;  %v21554_v22 = vld [vmem:[%s21909_s8 + $0x114] sm:$0xff]  }
  0x47   : > { %16678 = vmatprep.mubr.bf16.mxu1 %v21523_v24  ;;  %16715 = vmatpush3.bf16.msra.mxu1 %v21945_v7  ;;  %v2976_v23 = vld [vmem:[%s24993_s1 + $0xd0] sm:$0xff]  ;;  %v21557_v24 = vld [vmem:[%s21909_s8 + $0x11c] sm:$0xff]  }
  0x48   : > { %16716 = vmatprep.subr.bf16.mxu1 %v21952_v8  ;;  %16787 = vmatpush3.bf16.msra.mxu0 %v21945_v7 }
  0x49   : > { %16788 = vmatprep.subr.bf16.mxu0 %v21952_v8  ;;  %16790 = vmatprep.mubr.bf16.mxu0 %v21547_v25  ;;  %v2975_v25 = vld [vmem:[%s24993_s1 + $0xc8] sm:$0xff] }
  0x4a   : > { %3127 = vperm.xlu0 %21505, %v2974_v21   ;;  %v21590_v21 = vld [vmem:[%s21909_s8 + $0x1a4] sm:$0xff]  }
  0x4b   : > { %16717 = vmatpush3.bf16.msra.mxu1 %v21952_v8 }
  0x4c   : > { %16846 = vmatprep.subr.bf16.mxu1 %v21885_v0  ;;  %16789 = vmatpush3.bf16.msra.mxu0 %v21952_v8 }
  0x4e   : > { %16679 = vmatmul.mubr.bf16.gmra.mrb[16].mxu1 %v21524_v26  ;;  %3137 = vperm.xlu0 %21505, %v2976_v23   ;;  %v21587_v26 = vld [vmem:[%s21909_s8 + $0x258] sm:$0xff]   ;;  %v21594_v23 = vld [vmem:[%s21909_s8 + $0x1b4] ss:$0 sps:$4 sm:$0xff]  }
  0x4f   : > { %16682 = vmatprep.mubr.bf16.mxu1 %v21525_v27  ;;  %16791 = vmatmul.mubr.bf16.vlgmr.msra.gmra.mrb[16].mxu0 %v21548_v28  ;;  %v2978_v27 = vld [vmem:[%s24993_s1 + $0xe0] sm:$0xff] }
  0x50   : > { %16794 = vmatprep.mubr.bf16.mxu0 %v21551_v29  ;;  %v21558_v28 = vld [vmem:[%s21909_s8 + $0x124] sm:$0xff]   ;;  %v2980_v29 = vld [vmem:[%s24993_s1 + $0xf0] sm:$0xff] }
  0x52   : > { %3147 = vperm.xlu0 %21505, %v2978_v27   ;;  %v21603_v27 = vld [vmem:[%s21909_s8 + $0x2b4] sm:$0xff]  }
  0x56   : > { %16683 = vmatmul.mubr.bf16.gmra.mrb[20].mxu1 %v21526_v30  ;;  %v21561_v30 = vld [vmem:[%s21909_s8 + $0x12c] sm:$0xff]   ;;  %3157 = vperm.xlu0 %21505, %v2980_v29   ;;  %v21627_v29 = vld [vmem:[%s24996_s4 + $0x300] sm:$0xff]  }
  0x57   : > { %16686 = vmatprep.mubr.bf16.mxu1 %v21527_v31  ;;  %16795 = vmatmul.mubr.bf16.gmra.mrb[20].mxu0 %v21552_v32  ;;  %v21588_v31 = vld [vmem:[%s21909_s8 + $0x260] sm:$0xff]   ;;  %v21591_v32 = vld [vmem:[%s21909_s8 + $0x268] sm:$0xff]  }
  0x58   : > { %16798 = vmatprep.mubr.bf16.mxu0 %v21555_v33  ;;  %v2982_v33 = vld [vmem:[%s24993_s1 + $0x100] sm:$0xff] }
  0x5a   : > { %3167 = vperm.xlu0 %21505, %v2982_v33  }
  0x5e   : > { %16687 = vmatmul.mubr.bf16.gmra.mrb[24].mxu1 %v21528_v34  ;;  %v2981_v34 = vld [vmem:[%s24993_s1 + $0xf8] sm:$0xff] }
  0x5f   : > { %16690 = vmatprep.mubr.bf16.mxu1 %v21529_v35  ;;  %16799 = vmatmul.mubr.bf16.gmra.mrb[24].mxu0 %v21556_v36  ;;  %v2984_v35 = vld [vmem:[%s24993_s1 + $0x110] sm:$0xff]  ;;  %v21565_v36 = vld [vmem:[%s21909_s8 + $0x13c] sm:$0xff]  }
  0x60   : > { %16802 = vmatprep.mubr.bf16.mxu0 %v21559_v37  ;;  %3177 = vperm.xlu0 %21505, %v2984_v35   ;;  %v21592_v37 = vld [vmem:[%s21909_s8 + $0x270] sm:$0xff]  }
  0x66   : > { %16691 = vmatmul.mubr.bf16.gmra.mrb[28].mxu1 %v21530_v38  ;;  %v2983_v38 = vld [vmem:[%s24993_s1 + $0x108] sm:$0xff] }
  0x67   : > { %16694 = vmatprep.mubr.bf16.mxu1 %v21533_v39  ;;  %16803 = vmatmul.mubr.bf16.gmra.mrb[28].mxu0 %v21560_v40  ;;  %v21595_v39 = vld [vmem:[%s21909_s8 + $0x278] sm:$0xff]   ;;  %v2986_v40 = vld [vmem:[%s24993_s1 + $0x120] sm:$0xff] }
  0x68   : > { %16806 = vmatprep.mubr.bf16.mxu0 %v21563_v41  ;;  %3187 = vperm.xlu0 %21505, %v2986_v40   ;;  %v2985_v41 = vld [vmem:[%s24993_s1 + $0x118] sm:$0xff] }
  0x6c   : > { %3197 = vperm.xlu0 %21505, %v2988_v43  }
  0x6e   : > { %16695 = vmatmul.mubr.bf16.gmra.mrb[32].mxu1 %v21534_v42  ;;  %v21566_v42 = vld [vmem:[%s21909_s8 + $0x144] sm:$0xff]  }
  0x6f   : > { %16698 = vmatprep.mubr.bf16.mxu1 %v21537_v44  ;;  %16807 = vmatmul.mubr.bf16.gmra.mrb[32].mxu0 %v21564_v45  ;;  %v21569_v44 = vld [vmem:[%s21909_s8 + $0x14c] sm:$0xff]   ;;  %v21596_v45 = vld [vmem:[%s21909_s8 + $0x280] sm:$0xff]  }
  0x70   : > { %16810 = vmatprep.mubr.bf16.mxu0 %v21567_v47  ;;  %v21599_v47 = vld [vmem:[%s21909_s8 + $0x288] sm:$0xff]   ;;  %3207 = vperm.xlu0 %21505, %v2990_v48  }
  0x74   : > { %3217 = vperm.xlu0 %21505, %v2992_v51  }
  0x76   : > { %16699 = vmatmul.mubr.bf16.gmra.mrb[36].mxu1 %v21538_v50  ;;  %v21570_v50 = vld [vmem:[%s21909_s8 + $0x154] sm:$0xff]  }
  0x77   : > { %16718 = vmatprep.mubr.bf16.mxu1 %v21541_v52  ;;  %16811 = vmatmul.mubr.bf16.gmra.mrb[36].mxu0 %v21568_v53  ;;  %v21573_v52 = vld [vmem:[%s21909_s8 + $0x15c] sm:$0xff]   ;;  %v2991_v53 = vld [vmem:[%s24993_s1 + $0x148] sm:$0xff] }
  0x78   : > { %16814 = vmatprep.mubr.bf16.mxu0 %v21571_v54  ;;  %v21600_v54 = vld [vmem:[%s21909_s8 + $0x290] ss:$0 sps:$4 sm:$0xff]   ;;  %3227 = vperm.xlu0 %21505, %v2994_v55  }
  0x7e   : > { %16719 = vmatmul.mubr.bf16.vlgmr.msra.gmra.mrb[40].mxu1 %v21542_v58  ;;  %v2996_v58 = vld [vmem:[%s24993_s1 + $0x170] sm:$0xff] }
  0x7f   : > { %16847 = vmatpush3.bf16.msra.mxu1 %v21885_v0  ;;  %16722 = vmatprep.mubr.bf16.mxu1 %v21545_v60  ;;  %v21576_v0 = vld [vmem:[%s21909_s8 + $0x230] sm:$0xff]   ;;  %v2995_v60 = vld [vmem:[%s24993_s1 + $0x168] sm:$0xff] }
  0x80   : > { %16848 = vmatprep.subr.bf16.mxu1 %v21890_v1  ;;  %16815 = vmatmul.mubr.bf16.gmra.mrb[40].mxu0 %v21572_v61  ;;  %v2951_v61 = vld [vmem:[%s24993_s1 + $0x8] sm:$0xff] }
  0x81   : > { %16818 = vmatprep.mubr.bf16.mxu0 %v21575_v62  ;;  %3237 = vperm.xlu0 %21505, %v2996_v58   ;;  %v2950_v62 = vld [vmem:[%s24993_s1] sm:$0xff] }
  0x83   : > { %16849 = vmatpush3.bf16.msra.mxu1 %v21890_v1  ;;  %v2969_v1 = vld [vmem:[%s24993_s1 + $0x98] sm:$0xff] }
  0x84   : > { %16850 = vmatprep.subr.bf16.mxu1 %v21902_v2  ;;  %3102 = vperm.xlu1 %21506, %v2969_v1   ;;  %v2954_v1 = vld [vmem:[%s24993_s1 + $0x20] sm:$0xff] }
  0x85   : > { %3012 = vperm.xlu0 %21505, %v2951_v61  }
  0x86   : > { %16723 = vmatmul.mubr.bf16.gmra.mrb[44].mxu1 %v21546_v10  ;;  %v2997_v10 = vld [vmem:[%s24993_s1 + $0x178] sm:$0xff] }
  0x87   : > { %16726 = vmatprep.mubr.bf16.mxu1 %v21549_v12  ;;  %16851 = vmatpush3.bf16.msra.mxu1 %v21902_v2  ;;  %v21580_v2 = vld [vmem:[%s21909_s8 + $0x240] sm:$0xff]   ;;  %v2952_v12 = vld [vmem:[%s24993_s1 + $0x10] sm:$0xff] }
  0x88   : > { %16852 = vmatprep.subr.bf16.mxu1 %v21915_v3  ;;  %16819 = vmatmul.mubr.bf16.gmra.mrb[44].mxu0 %v21576_v0  ;;  %v21582_v0 = vld [vmem:[%s21909_s8 + $0x184] sm:$0xff]  }
  0x89   : > { %16822 = vmatprep.mubr.bf16.mxu0 %v21579_v14  ;;  %3112 = vperm.xlu1 %21506, %v2971_v19   ;;  %v21585_v14 = vld [vmem:[%s21909_s8 + $0x18c] sm:$0xff]  }
  0x8a   : > { %3247 = vperm.xlu0 %21505, %v2998_v4   ;;  %v3004_v19 = vld [vmem:[%s24993_s1 + $0x1b0] sm:$0xff] }
  0x8b   : > { %16853 = vmatpush3.bf16.msra.mxu1 %v21915_v3  ;;  %v2973_v3 = vld [vmem:[%s24993_s1 + $0xb8] sm:$0xff] }
  0x8c   : > { %16854 = vmatprep.subr.bf16.mxu1 %v21927_v5 }
  0x8d   : > { %3122 = vperm.xlu1 %21506, %v2973_v3   ;;  %v3003_v3 = vld [vmem:[%s24993_s1 + $0x1a8] sm:$0xff] }
  0x8e   : > { %16727 = vmatmul.mubr.bf16.gmra.mrb[48].mxu1 %v21550_v16  ;;  %3022 = vperm.xlu0 %21505, %v2953_v11   ;;  %v21586_v16 = vld [vmem:[%s21909_s8 + $0x194] sm:$0xff]  }
  0x8f   : > { %16730 = vmatprep.mubr.bf16.mxu1 %v21553_v18  ;;  %16855 = vmatpush3.bf16.msra.mxu1 %v21927_v5  ;;  %v21584_v5 = vld [vmem:[%s21909_s8 + $0x250] sm:$0xff]   ;;  %v2999_v18 = vld [vmem:[%s24993_s1 + $0x188] sm:$0xff] }
  0x90   : > { %16856 = vmatprep.subr.bf16.mxu1 %v21936_v6  ;;  %16823 = vmatmul.mubr.bf16.gmra.mrb[48].mxu0 %v21580_v2  ;;  %v21589_v2 = vld [vmem:[%s21909_s8 + $0x19c] sm:$0xff]  }
  0x91   : > { %16826 = vmatprep.mubr.bf16.mxu0 %v21583_v20  ;;  %3132 = vperm.xlu1 %21506, %v2975_v25   ;;  %v3001_v20 = vld [vmem:[%s24993_s1 + $0x198] sm:$0xff]  ;;  %v21601_v25 = vld [vmem:[%s21909_s8 + $0x2a4] sm:$0xff]  }
  0x92   : > { %3032 = vperm.xlu0 %21505, %v2955_v13  }
  0x93   : > { %16857 = vmatpush3.bf16.msra.mxu1 %v21936_v6  ;;  %v2977_v6 = vld [vmem:[%s24993_s1 + $0xd8] sm:$0xff] }
  0x94   : > { %16858 = vmatprep.subr.bf16.mxu1 %v21945_v7 }
  0x95   : > { %3142 = vperm.xlu1 %21506, %v2977_v6   ;;  %v21604_v6 = vld [vmem:[%s21909_s8 + $0x2bc] sm:$0xff]  }
  0x96   : > { %16731 = vmatmul.mubr.bf16.gmra.mrb[52].mxu1 %v21554_v22  ;;  %3257 = vperm.xlu0 %21505, %v3000_v15   ;;  %v21593_v22 = vld [vmem:[%s21909_s8 + $0x1ac] sm:$0xff]  }
  0x97   : > { %16734 = vmatprep.mubr.bf16.mxu1 %v21557_v24  ;;  %16859 = vmatpush3.bf16.msra.mxu1 %v21945_v7  ;;  %v2979_v7 = vld [vmem:[%s24993_s1 + $0xe8] sm:$0xff]  ;;  %v21597_v24 = vld [vmem:[%s21909_s8 + $0x294] sm:$0xff]  }
  0x98   : > { %16827 = vmatmul.mubr.bf16.gmra.mrb[52].mxu0 %v21584_v5  ;;  %16860 = vmatprep.subr.bf16.mxu1 %v21952_v8  ;;  %v21598_v5 = vld [vmem:[%s21909_s8 + $0x29c] sm:$0xff]  }
  0x99   : > { %16830 = vmatprep.mubr.bf16.mxu0 %v21587_v26  ;;  %3152 = vperm.xlu1 %21506, %v2979_v7   ;;  %v21602_v26 = vld [vmem:[%s21909_s8 + $0x2ac] sm:$0xff]  }
  0x9a   : > { %3267 = vperm.xlu0 %21505, %v3002_v17  }
  0x9b   : > { %16861 = vmatpush3.bf16.msra.mxu1 %v21952_v8  ;;  %v21562_v8 = vld [vmem:[%s21909_s8 + $0x134] sm:$0xff]  }
  0x9d   : > { %3162 = vperm.xlu1 %21506, %v2981_v34  }
  0x9e   : > { %16735 = vmatmul.mubr.bf16.gmra.mrb[56].mxu1 %v21558_v28  ;;  %3277 = vperm.xlu0 %21505, %v3004_v19   ;;  %v21605_v28 = vld [vmem:[%s21909_s8 + $0x2c4] sm:$0xff]  }
  0x9f   : > { %16738 = vmatprep.mubr.bf16.mxu1 %v21561_v30  ;;  %v24999_v30 = vmov 0.0  }
  0xa0   : > { %16831 = vmatmul.mubr.bf16.gmra.mrb[56].mxu0 %v21588_v31  ;;  %18118 = vmatprep.subr.bf16.mxu0 %v24999_v30  ;;  %v21606_v31 = vld [vmem:[%s21909_s8 + $0x2cc] sm:$0xff]  }
  0xa1   : > { %16834 = vmatprep.mubr.bf16.mxu0 %v21591_v32  ;;  %3172 = vperm.xlu1 %21506, %v2983_v38   ;;  %v21607_v32 = vld [vmem:[%s21909_s8 + $0x2d4] sm:$0xff]  }
  0xa2   : > { %18119 = vmatpush3.bf16.msra.mxu0 %v21627_v29  ;;  %16918 = vmatprep.subr.bf16.mxu1 %v24999_v30 }
  0xa3   : > { %18120 = vmatprep.subr.bf16.mxu0 %v24999_v30 }
  0xa5   : > { %3182 = vperm.xlu1 %21506, %v2985_v41   ;;  %v21609_v41 = vld [vmem:[%s21909_s8 + $0x2e4] sm:$0xff]  }
  0xa6   : > { %16739 = vmatmul.mubr.bf16.gmra.mrb[60].mxu1 %v21562_v8 }
  0xa7   : > { %16742 = vmatprep.mubr.bf16.mxu1 %v21565_v36 }
  0xa8   : > { %16835 = vmatmul.mubr.bf16.gmra.mrb[60].mxu0 %v21592_v37 }
  0xa9   : > { %16838 = vmatprep.mubr.bf16.mxu0 %v21595_v39  ;;  %3192 = vperm.xlu1 %21506, %v2987_v46   ;;  %v21608_v39 = vld [vmem:[%s21909_s8 + $0x2dc] sm:$0xff]  }
  0xad   : > { %3202 = vperm.xlu1 %21506, %v2989_v49   ;;  %v21628_v49 = vld [vmem:[%s24996_s4 + $0x308] sm:$0xff]  }
  0xae   : > { %16743 = vmatmul.mubr.bf16.gmra.mrb[64].mxu1 %v21566_v42  ;;  %18121 = vmatpush3.bf16.msra.mxu0 %v21628_v49 }
  0xaf   : > { %16746 = vmatprep.mubr.bf16.mxu1 %v21569_v44  ;;  %18122 = vmatprep.subr.bf16.mxu0 %v24999_v30 }
  0xb0   : > { %16839 = vmatmul.mubr.bf16.gmra.mrb[64].mxu0 %v21596_v45 }
  0xb1   : > { %16842 = vmatprep.mubr.bf16.mxu0 %v21599_v47  ;;  %3212 = vperm.xlu1 %21506, %v2991_v53  }
  0xb5   : > { %3222 = vperm.xlu1 %21506, %v2993_v56  }
  0xb6   : > { %16747 = vmatmul.mubr.bf16.gmra.mrb[68].mxu1 %v21570_v50  ;;  %v21610_v50 = vld [vmem:[%s21909_s8 + $0x2ec] sm:$0xff]  }
  0xb7   : > { %16750 = vmatprep.mubr.bf16.mxu1 %v21573_v52  ;;  %v21611_v52 = vld [vmem:[%s21909_s8 + $0x2f4] sm:$0xff]  }
  0xb8   : > { %16843 = vmatmul.mubr.bf16.gmra.mrb[68].mxu0 %v21600_v54 }
  0xb9   : > { %3232 = vperm.xlu1 %21506, %v2995_v60   ;;  %v21612_v60 = vld [vmem:[%s21909_s8 + $0x2fc] sm:$0xff]  }
  0xbd   : > { %3007 = vperm.xlu1 %21506, %v2950_v62  }
  0xbe   : > { %16751 = vmatmul.mubr.bf16.gmra.mrb[72].mxu1 %v21574_v57 }
  0xbf   : > { %16754 = vmatprep.mubr.bf16.mxu1 %v21577_v59 }
  0xc1   : > { %3242 = vperm.xlu1 %21506, %v2997_v10   ;;  %v21613_v10 = vld [vmem:[%s21909_s8 + $0x304] sm:$0xff]  }
  0xc5   : > { %3017 = vperm.xlu1 %21506, %v2952_v12   ;;  %v21629_v12 = vld [vmem:[%s24996_s4 + $0x310] sm:$0xff]  }
  0xc6   : > { %16755 = vmatmul.mubr.bf16.gmra.mrb[76].mxu1 %v21578_v63  ;;  %18123 = vmatpush3.bf16.msra.mxu0 %v21629_v12  ;;  %v21633_v12 = vld [vmem:[%s24996_s4 + $0x8] sm:$0xff]  }
  0xc7   : > { %16758 = vmatprep.mubr.bf16.mxu1 %v21581_v9  ;;  %18124 = vmatprep.subr.bf16.mxu0 %v24999_v30 }
  0xc9   : > { %3027 = vperm.xlu1 %21506, %v2954_v1   ;;  %v21614_v1 = vld [vmem:[%s21909_s8 + $0x30c] sm:$0xff]  }
  0xcd   : > { %3252 = vperm.xlu1 %21506, %v2999_v18   ;;  %v21615_v18 = vld [vmem:[%s21909_s8 + $0x314] sm:$0xff]  }
  0xce   : > { %16759 = vmatmul.mubr.bf16.gmra.mrb[80].mxu1 %v21582_v0 }
  0xcf   : > { %16762 = vmatprep.mubr.bf16.mxu1 %v21585_v14 }
  0xd1   : > { %3262 = vperm.xlu1 %21506, %v3001_v20  }
  0xd5   : > { %3272 = vperm.xlu1 %21506, %v3003_v3   ;;  %v21630_v3 = vld [vmem:[%s24996_s4 + $0x318] sm:$0xff]  }
  0xd6   : > { %16763 = vmatmul.mubr.bf16.gmra.mrb[84].mxu1 %v21586_v16  ;;  %18125 = vmatpush3.bf16.msra.mxu0 %v21630_v3 }
  0xd7   : > { %16766 = vmatprep.mubr.bf16.mxu1 %v21589_v2  ;;  %18126 = vmatprep.subr.bf16.mxu0 %v24999_v30 }
  0xde   : > { %16767 = vmatmul.mubr.bf16.gmra.mrb[88].mxu1 %v21590_v21 }
  0xdf   : > { %16770 = vmatprep.mubr.bf16.mxu1 %v21593_v22  ;;  %v22373_v22 = vpop.permute.xlu0 %3037 }
  0xe0   : > { %25011 = vst [vmem:[#allocation14_spill] sm:$0xff] %v22373_v22 }
  0xe6   : > { %16771 = vmatmul.mubr.bf16.gmra.mrb[92].mxu1 %v21594_v23 }
  0xe7   : > { %16862 = vmatprep.mubr.bf16.mxu1 %v21597_v24  ;;  %v22378_v24 = vpop.permute.xlu1 %3047 }
  0xe8   : > { %25013 = vst [vmem:[#allocation16_spill] sm:$0xff] %v22378_v24  ;;  %v21635_v24 = vld [vmem:[%s24996_s4 + $0x10] sm:$0xff]  }
  0xee   : > { %16863 = vmatmul.mubr.bf16.vlgmr.msra.gmra.mrb[96].mxu1 %v21598_v5 }
  0xef   : > { %16866 = vmatprep.mubr.bf16.mxu1 %v21601_v25  ;;  %v21616_v25 = vld [vmem:[%s21909_s8 + $0x31c] sm:$0xff]  }
  0xf6   : > { %16867 = vmatmul.mubr.bf16.gmra.mrb[100].mxu1 %v21602_v26 }
  0xf7   : > { %16870 = vmatprep.mubr.bf16.mxu1 %v21603_v27 }
  0xfe   : > { %16871 = vmatmul.mubr.bf16.gmra.mrb[104].mxu1 %v21604_v6  ;;  %v21617_v6 = vld [vmem:[%s21909_s8 + $0x324] sm:$0xff]  }
  0xff   : > { %16874 = vmatprep.mubr.bf16.mxu1 %v21605_v28 }
 0x101   : > { %v22273_v7 = vpop.f32.mrb[0].mxu1  ;;  %v22276_v33 = vpop.f32.mrb[0].mxu0 }
 0x102   : > { %v22278_v34 = vpop.f32.mrb[1].mxu1  ;;  %v22280_v8 = vpop.f32.mrb[1].mxu0 }
 0x103   : > { %v22282_v35 = vpop.f32.mrb[2].mxu1  ;;  %v22284_v36 = vpop.f32.mrb[2].mxu0 }
 0x104   : > { %v22286_v37 = vpop.f32.mrb[3].mxu1  ;;  %v22288_v38 = vpop.f32.mrb[3].mxu0 }
 0x106   : > { %16875 = vmatmul.mubr.bf16.gmra.mrb[108].mxu1 %v21606_v31 }
 0x107   : > { %16878 = vmatprep.mubr.bf16.mxu1 %v21607_v32 }
 0x109   : > { %v22291_v40 = vpop.f32.mrb[4].mxu1  ;;  %v22294_v42 = vpop.f32.mrb[4].mxu0 }
 0x10a   : > { %v22296_v43 = vpop.f32.mrb[5].mxu1  ;;  %v22298_v44 = vpop.f32.mrb[5].mxu0 }
 0x10b   : > { %v22300_v45 = vpop.f32.mrb[6].mxu1  ;;  %v22302_v46 = vpop.f32.mrb[6].mxu0 }
 0x10c   : > { %v22304_v47 = vpop.f32.mrb[7].mxu1  ;;  %v22306_v48 = vpop.f32.mrb[7].mxu0 }
 0x10e   : > { %16879 = vmatmul.mubr.bf16.gmra.mrb[112].mxu1 %v21608_v39  ;;  %v21632_v39 = vld [vmem:[%s24996_s4] sm:$0xff]  }
 0x10f   : > { %16882 = vmatprep.mubr.bf16.mxu1 %v21609_v41  ;;  %v22399_v41 = vpop.permute.xlu0 %3042  ;;  %16919 = vmatpush3.bf16.msra.mxu1 %v21632_v39 }
 0x110   : > { %25017 = vst [vmem:[#allocation20_spill] sm:$0xff] %v22399_v41  ;;  %16920 = vmatprep.subr.bf16.mxu1 %v24999_v30  ;;  %v21631_v30 = vld [vmem:[%s24996_s4 + $0x320] sm:$0xff]  }
 0x111   : > { %v22313_v51 = vpop.f32.mrb[8].mxu1  ;;  %v22316_v53 = vpop.f32.mrb[8].mxu0  ;;  %18127 = vmatpush3.bf16.msra.mxu0 %v21631_v30  ;;  %v21636_v30 = vld [vmem:[%s24996_s4 + $0x18] sm:$0xff]  }
 0x112   : > { %v22318_v54 = vpop.f32.mrb[9].mxu1  ;;  %v22320_v55 = vpop.f32.mrb[9].mxu0 }
 0x113   : > { %v22322_v56 = vpop.f32.mrb[10].mxu1  ;;  %v22324_v57 = vpop.f32.mrb[10].mxu0  ;;  %16921 = vmatpush3.bf16.msra.mxu1 %v21633_v12 }
 0x114   : > { %25001 = vst [vmem:[#allocation4_spill] sm:$0xff] %v22322_v56  ;;  %v22326_v58 = vpop.f32.mrb[11].mxu1  ;;  %v22328_v59 = vpop.f32.mrb[11].mxu0 }
 0x115   : > { %25002 = vst [vmem:[#allocation5_spill] sm:$0xff] %v22326_v58  ;;  %v22432_v41 = vpop.permute.xlu0 %3057 }
 0x116   : > { %16883 = vmatmul.mubr.bf16.gmra.mrb[116].mxu1 %v21610_v50  ;;  %v22403_v50 = vpop.permute.xlu1 %3052  ;;  %25024 = vst [vmem:[#allocation26_spill] sm:$0xff] %v22432_v41  ;;  %v21621_v41 = vld [vmem:[%s21909_s8 + $0x344] sm:$0xff]  }
 0x117   : > { %16886 = vmatprep.mubr.bf16.mxu1 %v21611_v52  ;;  %25019 = vst [vmem:[#allocation22_spill] sm:$0xff] %v22403_v50  ;;  %v25023_v50 = vmov 0.0  }
 0x118   : > { %16922 = vmatprep.subr.bf16.mxu1 %v25023_v50  ;;  %18128 = vmatprep.subr.bf16.mxu0 %v25023_v50 }
 0x119   : > { %v22331_v61 = vpop.f32.mrb[12].mxu1  ;;  %v22333_v62 = vpop.f32.mrb[12].mxu0  ;;  %16923 = vmatpush3.bf16.msra.mxu1 %v21635_v24  ;;  %18134 = vmatprep.mubr.msk.bf16.mxu0 %vm21838_vm0, %v25023_v50 }
 0x11a   : > { %25003 = vst [vmem:[#allocation6_spill] sm:$0xff] %v22331_v61  ;;  %v22335_v63 = vpop.f32.mrb[13].mxu1  ;;  %v22337_v4 = vpop.f32.mrb[13].mxu0  ;;  %16924 = vmatprep.subr.bf16.mxu1 %v25023_v50 }
 0x11b   : > { %25004 = vst [vmem:[#allocation7_spill] sm:$0xff] %v22335_v63  ;;  %v22339_v9 = vpop.f32.mrb[14].mxu1  ;;  %v22342_v11 = vpop.f32.mrb[14].mxu0 }
 0x11c   : > { %25005 = vst [vmem:[#allocation8_spill] sm:$0xff] %v22339_v9  ;;  %v22347_v0 = vpop.f32.mrb[15].mxu1  ;;  %v22349_v13 = vpop.f32.mrb[15].mxu0  ;;  %v21626_v9 = vld [vmem:[%s21909_s8 + $0x36c] ss:$0 sps:$4 sm:$0xff]  }
 0x11d   : > { %25006 = vst [vmem:[#allocation9_spill] sm:$0xff] %v22347_v0  ;;  %v22437_v22 = vpop.permute.xlu1 %3062  ;;  %16925 = vmatpush3.bf16.msra.mxu1 %v21636_v30 }
 0x11e   : > { %16887 = vmatmul.mubr.bf16.gmra.mrb[120].mxu1 %v21612_v60  ;;  %v21618_v60 = vld [vmem:[%s21909_s8 + $0x32c] sm:$0xff]   ;;  %25026 = vst [vmem:[#allocation28_spill] sm:$0xff] %v22437_v22  ;;  %16926 = vmatprep.subr.bf16.mxu1 %v25023_v50 }
 0x11f   : > { %16890 = vmatprep.mubr.bf16.mxu1 %v21613_v10 }
 0x121   : > { %v22352_v14 = vpop.f32.mrb[16].mxu1 }
 0x122   : > { %25007 = vst [vmem:[#allocation10_spill] sm:$0xff] %v22352_v14  ;;  %v22354_v15 = vpop.f32.mrb[17].mxu1  ;;  %v22357_v16 = vpop.f32.mrb[16].mxu0 }
 0x123   : > { %25008 = vst [vmem:[#allocation11_spill] sm:$0xff] %v22354_v15  ;;  %v22359_v17 = vpop.f32.mrb[18].mxu1  ;;  %v22362_v2 = vpop.f32.mrb[17].mxu0 }
 0x124   : > { %25009 = vst [vmem:[#allocation12_spill] sm:$0xff] %v22359_v17  ;;  %v22364_v19 = vpop.f32.mrb[19].mxu1  ;;  %v22366_v20 = vpop.f32.mrb[18].mxu0 }
 0x125   : > { %25010 = vst [vmem:[#allocation13_spill] sm:$0xff] %v22364_v19  ;;  %v22368_v21 = vpop.f32.mrb[19].mxu0 }
 0x126   : > { %16891 = vmatmul.mubr.bf16.gmra.mrb[124].mxu1 %v21614_v1 }
 0x127   : > { %16894 = vmatprep.mubr.bf16.mxu1 %v21615_v18  ;;  %v21619_v18 = vld [vmem:[%s21909_s8 + $0x334] sm:$0xff]  }
 0x129   : > { %v22376_v23 = vpop.f32.mrb[20].mxu1 }
 0x12a   : > { %25012 = vst [vmem:[#allocation15_spill] sm:$0xff] %v22376_v23  ;;  %v22380_v5 = vpop.f32.mrb[21].mxu1  ;;  %v22383_v26 = vpop.f32.mrb[20].mxu0 }
 0x12b   : > { %25014 = vst [vmem:[#allocation17_spill] sm:$0xff] %v22380_v5  ;;  %v22385_v27 = vpop.f32.mrb[22].mxu1  ;;  %v22388_v28 = vpop.f32.mrb[21].mxu0 }
 0x12c   : > { %25015 = vst [vmem:[#allocation18_spill] sm:$0xff] %v22385_v27  ;;  %v22390_v29 = vpop.f32.mrb[23].mxu1  ;;  %v22392_v31 = vpop.f32.mrb[22].mxu0 }
 0x12d   : > { %25016 = vst [vmem:[#allocation19_spill] sm:$0xff] %v22390_v29  ;;  %v22394_v32 = vpop.f32.mrb[23].mxu0  ;;  %v22461_v29 = vpop.permute.xlu1 %3072 }
 0x12e   : > { %16895 = vmatmul.mubr.bf16.gmra.mrb[128].mxu1 %v21616_v25  ;;  %25029 = vst [vmem:[#allocation31_spill] sm:$0xff] %v22461_v29  ;;  %v21634_v29 = vld [vmem:[%s24996_s4 + $0x328] sm:$0xff]  }
 0x12f   : > { %16898 = vmatprep.mubr.bf16.mxu1 %v21617_v6  ;;  %18129 = vmatpush3.bf16.msra.mxu0 %v21634_v29 }
 0x130   : > { %18130 = vmatprep.subr.bf16.mxu0 %v25023_v50 }
 0x131   : > { %v22401_v49 = vpop.f32.mrb[24].mxu1 }
 0x132   : > { %25018 = vst [vmem:[#allocation21_spill] sm:$0xff] %v22401_v49  ;;  %v22406_v52 = vpop.f32.mrb[25].mxu1  ;;  %v22409_v10 = vpop.f32.mrb[24].mxu0 }
 0x133   : > { %25020 = vst [vmem:[#allocation23_spill] sm:$0xff] %v22406_v52  ;;  %v22414_v1 = vpop.f32.mrb[26].mxu1  ;;  %v22417_v3 = vpop.f32.mrb[25].mxu0 }
 0x134   : > { %25021 = vst [vmem:[#allocation24_spill] sm:$0xff] %v22414_v1  ;;  %v22419_v25 = vpop.f32.mrb[27].mxu1  ;;  %v22421_v6 = vpop.f32.mrb[26].mxu0 }
 0x135   : > { %25022 = vst [vmem:[#allocation25_spill] sm:$0xff] %v22419_v25  ;;  %v22423_v39 = vpop.f32.mrb[27].mxu0  ;;  %v22459_v49 = vpop.permute.xlu0 %3067 }
 0x136   : > { %16899 = vmatmul.mubr.bf16.gmra.mrb[132].mxu1 %v21618_v60  ;;  %v21620_v60 = vld [vmem:[%s21909_s8 + $0x33c] sm:$0xff]   ;;  %25028 = vst [vmem:[#allocation30_spill] sm:$0xff] %v22459_v49 }
 0x137   : > { %16902 = vmatprep.mubr.bf16.mxu1 %v21619_v18 }
 0x139   : > { %v22435_v12 = vpop.f32.mrb[28].mxu1 }
 0x13a   : > { %25025 = vst [vmem:[#allocation27_spill] sm:$0xff] %v22435_v12  ;;  %v22440_v25 = vpop.f32.mrb[29].mxu1  ;;  %v22443_v1 = vpop.f32.mrb[28].mxu0 }
 0x13b   : > { %25027 = vst [vmem:[#allocation29_spill] sm:$0xff] %v22440_v25  ;;  %v16693_v18 = vpop.f32.mrb[30].mxu1  ;;  %v22449_v52 = vpop.f32.mrb[29].mxu0  ;;  %v21637_v25 = vld [vmem:[%s24996_s4 + $0x20] sm:$0xff]  }
 0x13c   : > { %841 = vst [vmem:[#allocation2 + $0x178] sm:$0xff] %v16693_v18  ;;  %v751_v24 = vpop.f32.mrb[31].mxu1  ;;  %v22451_v12 = vpop.f32.mrb[30].mxu0  ;;  %16927 = vmatpush3.bf16.msra.mxu1 %v21637_v25 }
 0x13d   : > { %839 = vst [vmem:[#allocation2 + $0x168] sm:$0xff] %v751_v24  ;;  %v22453_v22 = vpop.f32.mrb[31].mxu0  ;;  %16928 = vmatprep.subr.bf16.mxu1 %v25023_v50  ;;  %v21622_v24 = vld [vmem:[%s21909_s8 + $0x34c] sm:$0xff]  }
 0x13e   : > { %16903 = vmatmul.mubr.bf16.gmra.mrb[136].mxu1 %v21620_v60  ;;  %v21639_v60 = vld [vmem:[%s24996_s4 + $0x28] sm:$0xff]  }
 0x13f   : > { %16906 = vmatprep.mubr.bf16.mxu1 %v21621_v41  ;;  %v21623_v41 = vld [vmem:[%s21909_s8 + $0x354] sm:$0xff]  }
 0x140   : > { %16929 = vmatpush3.bf16.msra.mxu1 %v21639_v60 }
 0x141   : > { %v16696_v18 = vpop.f32.mrb[32].mxu1  ;;  %16930 = vmatprep.subr.bf16.mxu1 %v25023_v50 }
 0x142   : > { %844 = vst [vmem:[#allocation2 + $0x190] sm:$0xff] %v16696_v18  ;;  %v764_v30 = vpop.f32.mrb[33].mxu1  ;;  %v22465_v27 = vpop.f32.mrb[32].mxu0 }
 0x143   : > { %842 = vst [vmem:[#allocation2 + $0x180] sm:$0xff] %v764_v30  ;;  %v16697_v5 = vpop.f32.mrb[34].mxu1  ;;  %v22471_v23 = vpop.f32.mrb[33].mxu0  ;;  %v21640_v30 = vld [vmem:[%s24996_s4 + $0x30] sm:$0xff]  }
 0x144   : > { %845 = vst [vmem:[#allocation2 + $0x198] sm:$0xff] %v16697_v5  ;;  %v767_v25 = vpop.f32.mrb[35].mxu1  ;;  %v22473_v49 = vpop.f32.mrb[34].mxu0  ;;  %16931 = vmatpush3.bf16.msra.mxu1 %v21640_v30 }
 0x145   : > { %843 = vst [vmem:[#allocation2 + $0x188] sm:$0xff] %v767_v25  ;;  %v22475_v18 = vpop.f32.mrb[35].mxu0  ;;  %v22484_v5 = vpop.permute.xlu0 %3077  ;;  %16932 = vmatprep.subr.bf16.mxu1 %v25023_v50 }
 0x146   : > { %16907 = vmatmul.mubr.bf16.gmra.mrb[140].mxu1 %v21622_v24  ;;  %25030 = vst [vmem:[#allocation32_spill] sm:$0xff] %v22484_v5  ;;  %v22487_v25 = vpop.permute.xlu1 %3082  ;;  %v21624_v24 = vld [vmem:[%s21909_s8 + $0x35c] sm:$0xff]   ;;  %v21625_v5 = vld [vmem:[%s21909_s8 + $0x364] sm:$0xff]  }
 0x147   : > { %16910 = vmatprep.mubr.bf16.mxu1 %v21623_v41  ;;  %25031 = vst [vmem:[#allocation33_spill] sm:$0xff] %v22487_v25  ;;  %v21641_v41 = vld [vmem:[%s24996_s4 + $0x38] sm:$0xff]  }
 0x148   : > { %16933 = vmatpush3.bf16.msra.mxu1 %v21641_v41 }
 0x149   : > { %v16700_v60 = vpop.f32.mrb[36].mxu1  ;;  %17018 = vmatprep.subr.bf16.mxu1 %v25023_v50 }
 0x14a   : > { %848 = vst [vmem:[#allocation2 + $0x1b0] sm:$0xff] %v16700_v60  ;;  %v780_v19 = vpop.f32.mrb[37].mxu1  ;;  %v22491_v17 = vpop.f32.mrb[36].mxu0 }
 0x14b   : > { %846 = vst [vmem:[#allocation2 + $0x1a0] sm:$0xff] %v780_v19  ;;  %v16701_v29 = vpop.f32.mrb[38].mxu1  ;;  %v22497_v15 = vpop.f32.mrb[37].mxu0 }
 0x14c   : > { %v783_v30 = vpop.f32.mrb[39].mxu1  ;;  %v22499_v14 = vpop.f32.mrb[38].mxu0 }
 0x14d   : > { %847 = vst [vmem:[#allocation2 + $0x1a8] sm:$0xff] %v783_v30  ;;  %v22501_v60 = vpop.f32.mrb[39].mxu0  ;;  %v22506_v29 = vpop.permute.xlu0 %3087 }
 0x14e   : > { %16911 = vmatmul.mubr.bf16.gmra.mrb[144].mxu1 %v21624_v24  ;;  %25032 = vst [vmem:[#allocation34_spill] sm:$0xff] %v22506_v29  ;;  %v22510_v63 = vpop.permute.xlu1 %3092 }
 0x14f   : > { %16914 = vmatprep.mubr.bf16.mxu1 %v21625_v5  ;;  %25033 = vst [vmem:[#allocation35_spill] sm:$0xff] %v22510_v63 }
 0x151   : > { %v16720_v19 = vpop.f32.mrb[40].mxu1 }
 0x152   : > { %v1384_v25 = vmax.f32 %v22276_v33, %v16720_v19  ;;  %v1160_v0 = vpop.f32.mrb[41].mxu1 }
 0x153   : > { %v1382_v41 = vmax.f32 %v22280_v8, %v1160_v0  ;;  %v16721_v30 = vpop.f32.mrb[42].mxu1  ;;  %v22513_v61 = vpop.f32.mrb[40].mxu0 }
 0x154   : > { %v1385_v24 = vmax.f32 %v22284_v36, %v16721_v30  ;;  %v1163_v58 = vpop.f32.mrb[43].mxu1  ;;  %v22517_v56 = vmax.f32 %v1384_v25, %v22357_v16  ;;  %v22519_v5 = vpop.f32.mrb[41].mxu0 }
 0x155   : > { %v1383_v29 = vmax.f32 %v22288_v38, %v1163_v58  ;;  %v22523_v33 = vmax.f32 %v1382_v41, %v22362_v2  ;;  %v22525_v19 = vpop.f32.mrb[42].mxu0  ;;  %v22537_v25 = vpop.permute.xlu0 %3097 }
 0x156   : > { %16915 = vmatmul.mubr.bf16.gmra.mrb[148].mxu1 %v21626_v9  ;;  %v22528_v8 = vmax.f32 %v1385_v24, %v22366_v20  ;;  %v22530_v0 = vpop.f32.mrb[43].mxu0  ;;  %25034 = vst [vmem:[#allocation36_spill] sm:$0xff] %v22537_v25  ;;  %v22540_v2 = vpop.permute.xlu1 %3102 }
 0x157   : > { %v22533_v36 = vmax.f32 %v1383_v29, %v22368_v21  ;;  %16934 = vmatprep.mubr.msk.bf16.mxu1 %vm21838_vm0, %v25023_v50  ;;  %25035 = vst [vmem:[#allocation37_spill] sm:$0xff] %v22540_v2  ;;  %v21638_v21 = vld [vmem:[%s24996_s4 + $0x330] sm:$0xff]  }
 0x158   : > { %18131 = vmatpush3.bf16.msra.mxu0 %v21638_v21 }
 0x159   : > { %v16724_v16 = vpop.f32.mrb[44].mxu1  ;;  %18132 = vmatprep.subr.bf16.mxu0 %v25023_v50 }
 0x15a   : > { %v1388_v38 = vmax.f32 %v22294_v42, %v16724_v16  ;;  %v1176_v58 = vpop.f32.mrb[45].mxu1 }
 0x15b   : > { %v1386_v9 = vmax.f32 %v22298_v44, %v1176_v58  ;;  %v16725_v20 = vpop.f32.mrb[46].mxu1  ;;  %v22543_v41 = vpop.f32.mrb[44].mxu0 }
 0x15c   : > { %v1389_v29 = vmax.f32 %v22302_v46, %v16725_v20  ;;  %v1179_v30 = vpop.f32.mrb[47].mxu1  ;;  %v22550_v24 = vmax.f32 %v1388_v38, %v22383_v26  ;;  %v22552_v63 = vpop.f32.mrb[45].mxu0 }
 0x15d   : > { %v1387_v42 = vmax.f32 %v22306_v48, %v1179_v30  ;;  %v22556_v16 = vmax.f32 %v1386_v9, %v22388_v28  ;;  %v22558_v44 = vpop.f32.mrb[46].mxu0  ;;  %v21642_v48 = vld [vmem:[%s24996_s4 + $0x338] sm:$0xff]   ;;  %v22572_v28 = vpop.permute.xlu0 %3107 }
 0x15e   : > { %v22561_v58 = vmax.f32 %v1389_v29, %v22392_v31  ;;  %v22563_v2 = vpop.f32.mrb[47].mxu0  ;;  %v22575_v20 = vpop.permute.xlu1 %3112  ;;  %18133 = vmatpush3.bf16.msra.mxu0 %v21642_v48 }
 0x15f   : > { %v22567_v46 = vmax.f32 %v1387_v42, %v22394_v32  ;;  %25036 = vst [vmem:[#allocation38_spill] sm:$0xff] %v22575_v20  ;;  %18218 = vmatprep.subr.bf16.mxu0 %v25023_v50 }
 0x161   : > { %v16728_v26 = vpop.f32.mrb[48].mxu1 }
 0x162   : > { %v1392_v38 = vmax.f32 %v22316_v53, %v16728_v26  ;;  %v1192_v9 = vpop.f32.mrb[49].mxu1 }
 0x163   : > { %v1390_v31 = vmax.f32 %v22320_v55, %v1192_v9  ;;  %v16729_v21 = vpop.f32.mrb[50].mxu1  ;;  %v22578_v29 = vpop.f32.mrb[48].mxu0 }
 0x164   : > { %v1393_v32 = vmax.f32 %v22324_v57, %v16729_v21  ;;  %v1195_v30 = vpop.f32.mrb[51].mxu1  ;;  %v2035_v42 = vmax.f32 %v1392_v38, %v22409_v10  ;;  %v22583_v25 = vpop.f32.mrb[49].mxu0 }
 0x165   : > { %v1391_v53 = vmax.f32 %v22328_v59, %v1195_v30  ;;  %v2033_v26 = vmax.f32 %v1390_v31, %v22417_v3  ;;  %v22587_v20 = vpop.f32.mrb[50].mxu0  ;;  %v22593_v10 = vpop.permute.xlu0 %3117 }
 0x166   : > { %2090 = vst [vmem:[#allocation2 + $0x50] sm:$0xff] %v2035_v42  ;;  %v2036_v55 = vmax.f32 %v1393_v32, %v22421_v6  ;;  %v22590_v48 = vpop.f32.mrb[51].mxu0  ;;  %v22596_v21 = vpop.permute.xlu1 %3122 }
 0x167   : > { %2088 = vst [vmem:[#allocation2 + $0x40] sm:$0xff] %v2033_v26  ;;  %v2034_v9 = vmax.f32 %v1391_v53, %v22423_v39 }
 0x168   : > { %2091 = vst [vmem:[#allocation2 + $0x58] sm:$0xff] %v2036_v55 }
 0x169   : > { %v16732_v57 = vpop.f32.mrb[52].mxu1  ;;  %2089 = vst [vmem:[#allocation2 + $0x48] sm:$0xff] %v2034_v9 }
 0x16a   : > { %v1396_v38 = vmax.f32 %v22333_v62, %v16732_v57  ;;  %v1208_v59 = vpop.f32.mrb[53].mxu1 }
 0x16b   : > { %v1394_v3 = vmax.f32 %v22337_v4, %v1208_v59  ;;  %v16733_v31 = vpop.f32.mrb[54].mxu1  ;;  %v22599_v30 = vpop.f32.mrb[52].mxu0 }
 0x16c   : > { %v1397_v6 = vmax.f32 %v22342_v11, %v16733_v31  ;;  %v1211_v32 = vpop.f32.mrb[55].mxu1  ;;  %v2039_v39 = vmax.f32 %v1396_v38, %v22443_v1  ;;  %v22603_v42 = vpop.f32.mrb[53].mxu0 }
 0x16d   : > { %v1395_v53 = vmax.f32 %v22349_v13, %v1211_v32  ;;  %v2037_v26 = vmax.f32 %v1394_v3, %v22449_v52  ;;  %v22607_v62 = vpop.f32.mrb[54].mxu0  ;;  %v22613_v1 = vpop.permute.xlu0 %3127 }
 0x16e   : > { %2094 = vst [vmem:[#allocation2 + $0x70] sm:$0xff] %v2039_v39  ;;  %v2040_v55 = vmax.f32 %v1397_v6, %v22451_v12  ;;  %v22610_v4 = vpop.f32.mrb[55].mxu0  ;;  %v22616_v38 = vpop.permute.xlu1 %3132 }
 0x16f   : > { %2092 = vst [vmem:[#allocation2 + $0x60] sm:$0xff] %v2037_v26  ;;  %v2038_v9 = vmax.f32 %v1395_v53, %v22453_v22 }
 0x170   : > { %2095 = vst [vmem:[#allocation2 + $0x78] sm:$0xff] %v2040_v55 }
 0x171   : > { %v16736_v11 = vpop.f32.mrb[56].mxu1  ;;  %2093 = vst [vmem:[#allocation2 + $0x68] sm:$0xff] %v2038_v9 }
 0x172   : > { %v1400_v57 = vmax.f32 %v22273_v7, %v16736_v11  ;;  %v1224_v13 = vpop.f32.mrb[57].mxu1  ;;  %v22636_v9 = vpop.permute.xlu1 %3142 }
 0x173   : > { %v1398_v52 = vmax.f32 %v22278_v34, %v1224_v13  ;;  %v16737_v59 = vpop.f32.mrb[58].mxu1  ;;  %v22619_v3 = vpop.f32.mrb[56].mxu0 }
 0x174   : > { %v1401_v12 = vmax.f32 %v22282_v35, %v16737_v59  ;;  %v1227_v31 = vpop.f32.mrb[59].mxu1  ;;  %v2043_v22 = vmax.f32 %v1400_v57, %v22465_v27  ;;  %v22623_v6 = vpop.f32.mrb[57].mxu0 }
 0x175   : > { %v1399_v32 = vmax.f32 %v22286_v37, %v1227_v31  ;;  %v2041_v39 = vmax.f32 %v1398_v52, %v22471_v23  ;;  %v22627_v7 = vpop.f32.mrb[58].mxu0  ;;  %v22633_v27 = vpop.permute.xlu0 %3137 }
 0x176   : > { %2098 = vst [vmem:[#allocation2 + $0x90] sm:$0xff] %v2043_v22  ;;  %v2044_v53 = vmax.f32 %v1401_v12, %v22473_v49  ;;  %v22630_v34 = vpop.f32.mrb[59].mxu0 }
 0x177   : > { %2096 = vst [vmem:[#allocation2 + $0x80] sm:$0xff] %v2041_v39  ;;  %v2042_v26 = vmax.f32 %v1399_v32, %v22475_v18  ;;  %v22656_v39 = vpop.permute.xlu1 %3152 }
 0x178   : > { %2099 = vst [vmem:[#allocation2 + $0x98] sm:$0xff] %v2044_v53 }
 0x179   : > { %v16740_v35 = vpop.f32.mrb[60].mxu1  ;;  %2097 = vst [vmem:[#allocation2 + $0x88] sm:$0xff] %v2042_v26 }
 0x17a   : > { %v1404_v55 = vmax.f32 %v22291_v40, %v16740_v35  ;;  %v1240_v37 = vpop.f32.mrb[61].mxu1 }
 0x17b   : > { %v1402_v23 = vmax.f32 %v22296_v43, %v1240_v37  ;;  %v16741_v11 = vpop.f32.mrb[62].mxu1  ;;  %v22639_v57 = vpop.f32.mrb[60].mxu0 }
 0x17c   : > { %v1405_v49 = vmax.f32 %v22300_v45, %v16741_v11  ;;  %v1243_v13 = vpop.f32.mrb[63].mxu1  ;;  %v2047_v18 = vmax.f32 %v1404_v55, %v22491_v17  ;;  %v22643_v52 = vpop.f32.mrb[61].mxu0 }
 0x17d   : > { %v1403_v59 = vmax.f32 %v22304_v47, %v1243_v13  ;;  %v2045_v12 = vmax.f32 %v1402_v23, %v22497_v15  ;;  %v22647_v40 = vpop.f32.mrb[62].mxu0  ;;  %v22653_v17 = vpop.permute.xlu0 %3147  ;;  %v25038_v23 = vld [vmem:[#allocation5_spill] sm:$0xff] }
 0x17e   : > { %2102 = vst [vmem:[#allocation2 + $0xb0] sm:$0xff] %v2047_v18  ;;  %v2048_v31 = vmax.f32 %v1405_v49, %v22499_v14  ;;  %v22650_v43 = vpop.f32.mrb[63].mxu0  ;;  %v25037_v14 = vld [vmem:[#allocation4_spill] sm:$0xff] }
 0x17f   : > { %2100 = vst [vmem:[#allocation2 + $0xa0] sm:$0xff] %v2045_v12  ;;  %v2046_v22 = vmax.f32 %v1403_v59, %v22501_v60  ;;  %v22675_v12 = vpop.permute.xlu1 %3162 }
 0x180   : > { %2103 = vst [vmem:[#allocation2 + $0xb8] sm:$0xff] %v2048_v31  ;;  %v25039_v31 = vld [vmem:[#allocation6_spill] sm:$0xff] }
 0x181   : > { %v16744_v45 = vpop.f32.mrb[64].mxu1  ;;  %2101 = vst [vmem:[#allocation2 + $0xa8] sm:$0xff] %v2046_v22  ;;  %v22673_v59 = vpop.permute.xlu0 %3157 }
 0x182   : > { %v1408_v32 = vmax.f32 %v22313_v51, %v16744_v45  ;;  %v1256_v47 = vpop.f32.mrb[65].mxu1  ;;  %v25040_v45 = vld [vmem:[#allocation7_spill] sm:$0xff] }
 0x183   : > { %v1406_v15 = vmax.f32 %v22318_v54, %v1256_v47  ;;  %v16745_v53 = vpop.f32.mrb[66].mxu1  ;;  %v22659_v26 = vpop.f32.mrb[64].mxu0 }
 0x184   : > { %v1409_v35 = vmax.f32 %v25037_v14, %v16745_v53  ;;  %v1259_v55 = vpop.f32.mrb[67].mxu1  ;;  %v2051_v60 = vmax.f32 %v1408_v32, %v22513_v61  ;;  %v22663_v37 = vpop.f32.mrb[65].mxu0 }
 0x185   : > { %v1407_v11 = vmax.f32 %v25038_v23, %v1259_v55  ;;  %v2049_v49 = vmax.f32 %v1406_v15, %v22519_v5  ;;  %v22667_v51 = vpop.f32.mrb[66].mxu0  ;;  %v25042_v55 = vld [vmem:[#allocation9_spill] sm:$0xff] }
 0x186   : > { %2106 = vst [vmem:[#allocation2 + $0xd0] sm:$0xff] %v2051_v60  ;;  %v2052_v13 = vmax.f32 %v1409_v35, %v22525_v19  ;;  %v22670_v54 = vpop.f32.mrb[67].mxu0  ;;  %v25041_v19 = vld [vmem:[#allocation8_spill] sm:$0xff] }
 0x187   : > { %2104 = vst [vmem:[#allocation2 + $0xc0] sm:$0xff] %v2049_v49  ;;  %v2050_v18 = vmax.f32 %v1407_v11, %v22530_v0  ;;  %v22687_v11 = vpop.permute.xlu0 %3167 }
 0x188   : > { %2107 = vst [vmem:[#allocation2 + $0xd8] sm:$0xff] %v2052_v13 }
 0x189   : > { %v16748_v61 = vpop.f32.mrb[68].mxu1  ;;  %2105 = vst [vmem:[#allocation2 + $0xc8] sm:$0xff] %v2050_v18 }
 0x18a   : > { %v1412_v22 = vmax.f32 %v25039_v31, %v16748_v61  ;;  %v1272_v5 = vpop.f32.mrb[69].mxu1  ;;  %v22693_v31 = vpop.permute.xlu1 %3172 }
 0x18b   : > { %v1410_v32 = vmax.f32 %v25040_v45, %v1272_v5  ;;  %v16749_v47 = vpop.f32.mrb[70].mxu1  ;;  %v22679_v15 = vpop.f32.mrb[68].mxu0 }
 0x18c   : > { %v1413_v53 = vmax.f32 %v25041_v19, %v16749_v47  ;;  %v1275_v14 = vpop.f32.mrb[71].mxu1  ;;  %v2055_v0 = vmax.f32 %v1412_v22, %v22543_v41  ;;  %v22683_v35 = vpop.f32.mrb[69].mxu0  ;;  %v25043_v22 = vld [vmem:[#allocation10_spill] sm:$0xff] }
 0x18d   : > { %v1411_v60 = vmax.f32 %v25042_v55, %v1275_v14  ;;  %v2053_v23 = vmax.f32 %v1410_v32, %v22552_v63  ;;  %v16845_v49 = vpop.f32.mrb[70].mxu0  ;;  %v25044_v63 = vld [vmem:[#allocation11_spill] sm:$0xff]  ;;  %v22697_v19 = vpop.permute.xlu0 %3177  ;;  %v25045_v14 = vld [vmem:[#allocation12_spill] sm:$0xff]  ;;  %v25046_v55 = vld [vmem:[#allocation13_spill] sm:$0xff] }
 0x18e   : > { %2110 = vst [vmem:[#allocation2 + $0xf0] sm:$0xff] %v2055_v0  ;;  %v2056_v13 = vmax.f32 %v1413_v53, %v22558_v44  ;;  %v22690_v18 = vpop.f32.mrb[71].mxu0 }
 0x18f   : > { %2108 = vst [vmem:[#allocation2 + $0xe0] sm:$0xff] %v2053_v23  ;;  %v2054_v61 = vmax.f32 %v1411_v60, %v22563_v2  ;;  %v22703_v23 = vpop.permute.xlu1 %3182 }
 0x190   : > { %2111 = vst [vmem:[#allocation2 + $0xf8] sm:$0xff] %v2056_v13 }
 0x191   : > { %v16752_v41 = vpop.f32.mrb[72].mxu1  ;;  %2109 = vst [vmem:[#allocation2 + $0xe8] sm:$0xff] %v2054_v61 }
 0x192   : > { %v1416_v5 = vmax.f32 %v25043_v22, %v16752_v41  ;;  %v1288_v45 = vpop.f32.mrb[73].mxu1  ;;  %v22707_v41 = vpop.permute.xlu0 %3187  ;;  %v25047_v22 = vld [vmem:[#allocation15_spill] sm:$0xff] }
 0x193   : > { %v1414_v32 = vmax.f32 %v25044_v63, %v1288_v45  ;;  %v16753_v47 = vpop.f32.mrb[74].mxu1 }
 0x194   : > { %v1417_v44 = vmax.f32 %v25045_v14, %v16753_v47  ;;  %v1291_v53 = vpop.f32.mrb[75].mxu1  ;;  %v2059_v0 = vmax.f32 %v1416_v5, %v22578_v29  ;;  %v25048_v5 = vld [vmem:[#allocation17_spill] sm:$0xff] }
 0x195   : > { %v1415_v2 = vmax.f32 %v25046_v55, %v1291_v53  ;;  %v2057_v60 = vmax.f32 %v1414_v32, %v22583_v25  ;;  %v22711_v25 = vpop.permute.xlu1 %3192  ;;  %v25049_v32 = vld [vmem:[#allocation18_spill] sm:$0xff] }
 0x196   : > { %2114 = vst [vmem:[#allocation2 + $0x110] sm:$0xff] %v2059_v0  ;;  %v2060_v49 = vmax.f32 %v1417_v44, %v22587_v20  ;;  %v25050_v44 = vld [vmem:[#allocation19_spill] sm:$0xff] }
 0x197   : > { %2112 = vst [vmem:[#allocation2 + $0x100] sm:$0xff] %v2057_v60  ;;  %v2058_v13 = vmax.f32 %v1415_v2, %v22590_v48  ;;  %v22719_v60 = vpop.permute.xlu0 %3197 }
 0x198   : > { %2115 = vst [vmem:[#allocation2 + $0x118] sm:$0xff] %v2060_v49 }
 0x199   : > { %v16756_v61 = vpop.f32.mrb[76].mxu1  ;;  %2113 = vst [vmem:[#allocation2 + $0x108] sm:$0xff] %v2058_v13  ;;  %v22721_v13 = vpop.permute.xlu1 %3202 }
 0x19a   : > { %v1420_v45 = vmax.f32 %v25047_v22, %v16756_v61  ;;  %v1304_v29 = vpop.f32.mrb[77].mxu1  ;;  %v25051_v61 = vld [vmem:[#allocation21_spill] sm:$0xff] }
 0x19b   : > { %v1418_v63 = vmax.f32 %v25048_v5, %v1304_v29  ;;  %v16757_v47 = vpop.f32.mrb[78].mxu1 }
 0x19c   : > { %v1421_v14 = vmax.f32 %v25049_v32, %v16757_v47  ;;  %v1307_v53 = vpop.f32.mrb[79].mxu1  ;;  %v2063_v20 = vmax.f32 %v1420_v45, %v22599_v30  ;;  %v25052_v45 = vld [vmem:[#allocation23_spill] sm:$0xff]  ;;  %v25054_v32 = vld [vmem:[#allocation25_spill] sm:$0xff] }
 0x19d   : > { %v1419_v48 = vmax.f32 %v25050_v44, %v1307_v53  ;;  %v2061_v0 = vmax.f32 %v1418_v63, %v22603_v42  ;;  %v25053_v42 = vld [vmem:[#allocation24_spill] sm:$0xff]  ;;  %v22729_v53 = vpop.permute.xlu0 %3207 }
 0x19e   : > { %2118 = vst [vmem:[#allocation2 + $0x130] sm:$0xff] %v2063_v20  ;;  %v2064_v55 = vmax.f32 %v1421_v14, %v22607_v62 }
 0x19f   : > { %2116 = vst [vmem:[#allocation2 + $0x120] sm:$0xff] %v2061_v0  ;;  %v2062_v2 = vmax.f32 %v1419_v48, %v22610_v4  ;;  %v22733_v48 = vpop.permute.xlu1 %3212 }
 0x1a0   : > { %2119 = vst [vmem:[#allocation2 + $0x138] sm:$0xff] %v2064_v55  ;;  %v25055_v55 = vld [vmem:[#allocation27_spill] sm:$0xff] }
 0x1a1   : > { %v16760_v49 = vpop.f32.mrb[80].mxu1  ;;  %2117 = vst [vmem:[#allocation2 + $0x128] sm:$0xff] %v2062_v2 }
 0x1a2   : > { %v1424_v22 = vmax.f32 %v25051_v61, %v16760_v49  ;;  %v1320_v30 = vpop.f32.mrb[81].mxu1  ;;  %v25056_v49 = vld [vmem:[#allocation29_spill] sm:$0xff] }
 0x1a3   : > { %v1422_v29 = vmax.f32 %v25052_v45, %v1320_v30  ;;  %v16761_v5 = vpop.f32.mrb[82].mxu1  ;;  %v22737_v30 = vpop.permute.xlu0 %3217 }
 0x1a4   : > { %v1425_v63 = vmax.f32 %v25053_v42, %v16761_v5  ;;  %v1323_v47 = vpop.f32.mrb[83].mxu1  ;;  %v2067_v62 = vmax.f32 %v1424_v22, %v22619_v3  ;;  %v896_v22 = vld [vmem:[#allocation2 + $0x178] sm:$0xff] }
 0x1a5   : > { %v1423_v4 = vmax.f32 %v25054_v32, %v1323_v47  ;;  %v2065_v14 = vmax.f32 %v1422_v29, %v22623_v6  ;;  %v894_v29 = vld [vmem:[#allocation2 + $0x168] sm:$0xff]  ;;  %v899_v32 = vld [vmem:[#allocation2 + $0x190] sm:$0xff] }
 0x1a6   : > { %2122 = vst [vmem:[#allocation2 + $0x150] sm:$0xff] %v2067_v62  ;;  %v2068_v20 = vmax.f32 %v1425_v63, %v22627_v7  ;;  %v22741_v63 = vpop.permute.xlu1 %3222 }
 0x1a7   : > { %2120 = vst [vmem:[#allocation2 + $0x140] sm:$0xff] %v2065_v14  ;;  %v2066_v44 = vmax.f32 %v1423_v4, %v22630_v34  ;;  %v22745_v14 = vpop.permute.xlu0 %3227 }
 0x1a8   : > { %2123 = vst [vmem:[#allocation2 + $0x158] sm:$0xff] %v2068_v20 }
 0x1a9   : > { %v16764_v0 = vpop.f32.mrb[84].mxu1  ;;  %2121 = vst [vmem:[#allocation2 + $0x148] sm:$0xff] %v2066_v44  ;;  %v897_v44 = vld [vmem:[#allocation2 + $0x180] sm:$0xff] }
 0x1aa   : > { %v1428_v2 = vmax.f32 %v25055_v55, %v16764_v0  ;;  %v1336_v3 = vpop.f32.mrb[85].mxu1  ;;  %v900_v55 = vld [vmem:[#allocation2 + $0x198] sm:$0xff] }
 0x1ab   : > { %v1426_v61 = vmax.f32 %v25056_v49, %v1336_v3  ;;  %v16765_v6 = vpop.f32.mrb[86].mxu1  ;;  %v898_v49 = vld [vmem:[#allocation2 + $0x188] sm:$0xff] }
 0x1ac   : > { %v1429_v45 = vmax.f32 %v896_v22, %v16765_v6  ;;  %v1339_v7 = vpop.f32.mrb[87].mxu1  ;;  %v2071_v5 = vmax.f32 %v1428_v2, %v22639_v57  ;;  %v22747_v2 = vpop.permute.xlu1 %3232 }
 0x1ad   : > { %v1427_v34 = vmax.f32 %v894_v29, %v1339_v7  ;;  %v2069_v42 = vmax.f32 %v1426_v61, %v22643_v52  ;;  %v22753_v29 = vpop.permute.xlu0 %3237  ;;  %v903_v7 = vld [vmem:[#allocation2 + $0x1b0] sm:$0xff] }
 0x1ae   : > { %2126 = vst [vmem:[#allocation2 + $0x170] sm:$0xff] %v2071_v5  ;;  %v2072_v47 = vmax.f32 %v1429_v45, %v22647_v40 }
 0x1af   : > { %2124 = vst [vmem:[#allocation2 + $0x160] sm:$0xff] %v2069_v42  ;;  %v2070_v62 = vmax.f32 %v1427_v34, %v22650_v43 }
 0x1b0   : > { %2127 = vst [vmem:[#allocation2 + $0x178] sm:$0xff] %v2072_v47  ;;  %v3008_v34 = vpop.permute.xlu1 %3007  ;;  %v901_v47 = vld [vmem:[#allocation2 + $0x1a0] sm:$0xff] }
 0x1b1   : > { %v16768_v4 = vpop.f32.mrb[88].mxu1  ;;  %2125 = vst [vmem:[#allocation2 + $0x168] sm:$0xff] %v2070_v62 }
 0x1b2   : > { %v1432_v20 = vmax.f32 %v899_v32, %v16768_v4  ;;  %v1352_v57 = vpop.f32.mrb[89].mxu1  ;;  %v902_v4 = vld [vmem:[#allocation2 + $0x1a8] sm:$0xff] }
 0x1b3   : > { %v1430_v0 = vmax.f32 %v897_v44, %v1352_v57  ;;  %v16769_v52 = vpop.f32.mrb[90].mxu1 }
 0x1b4   : > { %v1433_v3 = vmax.f32 %v900_v55, %v16769_v52  ;;  %v1355_v40 = vpop.f32.mrb[91].mxu1  ;;  %v2075_v61 = vmax.f32 %v1432_v20, %v22659_v26  ;;  %v22763_v52 = vld [vmem:[%s24995_s3] ss:$0 sm:$0xff] }
 0x1b5   : > { %v1431_v43 = vmax.f32 %v898_v49, %v1355_v40  ;;  %v2073_v22 = vmax.f32 %v1430_v0, %v22663_v37  ;;  %v22758_v0 = vpop.permute.xlu1 %3242 }
 0x1b6   : > { %2130 = vst [vmem:[#allocation2 + $0x190] sm:$0xff] %v2075_v61  ;;  %v2076_v6 = vmax.f32 %v1433_v3, %v22667_v51 }
 0x1b7   : > { %2128 = vst [vmem:[#allocation2 + $0x180] sm:$0xff] %v2073_v22  ;;  %v2074_v45 = vmax.f32 %v1431_v43, %v22670_v54  ;;  %v3013_v54 = vpop.permute.xlu0 %3012 }
 0x1b8   : > { %2131 = vst [vmem:[#allocation2 + $0x198] sm:$0xff] %v2076_v6 }
 0x1b9   : > { %v16772_v5 = vpop.f32.mrb[92].mxu1  ;;  %2129 = vst [vmem:[#allocation2 + $0x188] sm:$0xff] %v2074_v45  ;;  %v3018_v45 = vpop.permute.xlu1 %3017 }
 0x1ba   : > { %v1436_v42 = vmax.f32 %v903_v7, %v16772_v5  ;;  %v1368_v62 = vpop.f32.mrb[93].mxu1 }
 0x1bb   : > { %v1434_v26 = vmax.f32 %v901_v47, %v1368_v62  ;;  %v16773_v32 = vpop.f32.mrb[94].mxu1  ;;  %v22767_v40 = vpop.permute.xlu0 %3247 }
 0x1bc   : > { %v1371_v37 = vpop.f32.mrb[95].mxu1  ;;  %v2079_v20 = vmax.f32 %v1436_v42, %v22679_v15 }
 0x1bd   : > { %v1435_v51 = vmax.f32 %v902_v4, %v1371_v37  ;;  %v2077_v44 = vmax.f32 %v1434_v26, %v22683_v35 }
 0x1be   : > { %2134 = vst [vmem:[#allocation2 + $0x1b0] sm:$0xff] %v2079_v20 }
 0x1bf   : > { %2132 = vst [vmem:[#allocation2 + $0x1a0] sm:$0xff] %v2077_v44  ;;  %v2078_v57 = vmax.f32 %v1435_v51, %v22690_v18 }
 0x1c1   : > { %v16864_v55 = vpop.f32.mrb[96].mxu1  ;;  %2133 = vst [vmem:[#allocation2 + $0x1a8] sm:$0xff] %v2078_v57 }
 0x1c2   : > { %v2670_v3 = vmax.f32 %v22517_v56, %v16864_v55  ;;  %v2446_v15 = vpop.f32.mrb[97].mxu1 }
 0x1c3   : > { %v2668_v49 = vmax.f32 %v22523_v33, %v2446_v15  ;;  %v16865_v35 = vpop.f32.mrb[98].mxu1 }
 0x1c4   : > { %v2671_v61 = vmax.f32 %v22528_v8, %v16865_v35  ;;  %v2449_v18 = vpop.f32.mrb[99].mxu1  ;;  %v2842_v43 = vadd.f32 %v22763_v52, %v2670_v3  ;;  %v3023_v8 = vpop.permute.xlu0 %3022 }
 0x1c5   : > { %v2669_v22 = vmax.f32 %v22533_v36, %v2449_v18  ;;  %v2840_v6 = vadd.f32 %v22763_v52, %v2668_v49  ;;  %v25057_v18 = vld [vmem:[#allocation14_spill] sm:$0xff] }
 0x1c6   : > { %v2843_v7 = vadd.f32 %v22763_v52, %v2671_v61  ;;  %v2897_v5 = vmax.f32 %v2842_v43, 0.0 }
 0x1c7   : > { %v2841_v56 = vadd.f32 %v22763_v52, %v2669_v22  ;;  %v2895_v42 = vmax.f32 %v2840_v6, 0.0  ;;  %v3028_v22 = vpop.permute.xlu1 %3027 }
 0x1c8   : > { %v2898_v33 = vmax.f32 %v2843_v7, 0.0  ;;  %v3282_v47 = vmul.f32 %v3018_v45, %v2897_v5  ;;  %v25058_v5 = vld [vmem:[#allocation20_spill] sm:$0xff] }
 0x1c9   : > { %v2896_v62 = vmax.f32 %v2841_v56, 0.0  ;;  %v3280_v26 = vmul.f32 %v3008_v34, %v2895_v42  ;;  %v16868_v32 = vpop.f32.mrb[100].mxu1  ;;  %v3033_v42 = vpop.permute.xlu0 %3032 }
 0x1ca   : > { %v2674_v4 = vmax.f32 %v22550_v24, %v16868_v32  ;;  %v2462_v37 = vpop.f32.mrb[101].mxu1  ;;  %v3283_v20 = vmul.f32 %v3023_v8, %v2898_v33  ;;  %3337 = vst [vmem:[#allocation2 + $0x10] sm:$0xff] %v3282_v47  ;;  %v2146_v8 = vld [vmem:[#allocation2 + $0x58] sm:$0xff] }
 0x1cb   : > { %v3281_v36 = vmul.f32 %v3013_v54, %v2896_v62  ;;  %3335 = vst [vmem:[#allocation2] sm:$0xff] %v3280_v26  ;;  %v2672_v51 = vmax.f32 %v22556_v16, %v2462_v37  ;;  %v16869_v44 = vpop.f32.mrb[102].mxu1 }
 0x1cc   : > { %v2846_v57 = vadd.f32 %v22763_v52, %v2674_v4  ;;  %v2675_v55 = vmax.f32 %v22561_v58, %v16869_v44  ;;  %v2465_v3 = vpop.f32.mrb[103].mxu1  ;;  %3338 = vst [vmem:[#allocation2 + $0x18] sm:$0xff] %v3283_v20  ;;  %v3433_v15 = vpack.c.bf16 %v3283_v20, %v3282_v47  ;;  %v2143_v47 = vld [vmem:[#allocation2 + $0x40] sm:$0xff] }
 0x1cd   : > { %3336 = vst [vmem:[#allocation2 + $0x8] sm:$0xff] %v3281_v36  ;;  %v2673_v34 = vmax.f32 %v22567_v46, %v2465_v3  ;;  %v2844_v24 = vadd.f32 %v22763_v52, %v2672_v51  ;;  %v3432_v49 = vpack.c.bf16 %v3281_v36, %v3280_v26  ;;  %v2145_v46 = vld [vmem:[#allocation2 + $0x50] sm:$0xff]  ;;  %v2144_v36 = vld [vmem:[#allocation2 + $0x48] sm:$0xff] }
 0x1ce   : > { %v2901_v35 = vmax.f32 %v2846_v57, 0.0  ;;  %v2847_v54 = vadd.f32 %v22763_v52, %v2675_v55 }
 0x1cf   : > { %v2845_v61 = vadd.f32 %v22763_v52, %v2673_v34  ;;  %v2899_v16 = vmax.f32 %v2844_v24, 0.0  ;;  %16935 = vmatmul.mubr.bf16.vlgmr.msra.gmra.mrb[152].mxu1 %v3432_v49  ;;  %v21649_v49 = vld [vmem:[%s24996_s4 + $0x40] sm:$0xff]  }
 0x1d0   : > { %v22784_v43 = vmul.f32 %v25057_v18, %v2901_v35  ;;  %v2902_v58 = vmax.f32 %v2847_v54, 0.0  ;;  %16938 = vmatprep.mubr.msk.bf16.mxu1 %vm21838_vm0, %v25023_v50  ;;  %17019 = vmatpush3.bf16.msra.mxu1 %v21649_v49 }
 0x1d1   : > { %v2900_v6 = vmax.f32 %v2845_v61, 0.0  ;;  %v16872_v45 = vpop.f32.mrb[104].mxu1  ;;  %v22788_v7 = vmul.f32 %v3028_v22, %v2899_v16  ;;  %v25059_v61 = vld [vmem:[#allocation26_spill] sm:$0xff]  ;;  %17020 = vmatprep.subr.bf16.mxu1 %v25023_v50 }
 0x1d2   : > { %3341 = vst [vmem:[#allocation2 + $0x30] sm:$0xff] %v22784_v43  ;;  %v22792_v56 = vmul.f32 %v25058_v5, %v2902_v58  ;;  %v2678_v33 = vmax.f32 %v2145_v46, %v16872_v45  ;;  %v2478_v62 = vpop.f32.mrb[105].mxu1  ;;  %v25060_v58 = vld [vmem:[#allocation16_spill] sm:$0xff]  ;;  %v2149_v46 = vld [vmem:[#allocation2 + $0x70] sm:$0xff] }
 0x1d3   : > { %v3285_v26 = vmul.f32 %v3033_v42, %v2900_v6  ;;  %v2676_v32 = vmax.f32 %v2143_v47, %v2478_v62  ;;  %v16873_v4 = vpop.f32.mrb[106].mxu1  ;;  %3339 = vst [vmem:[#allocation2 + $0x20] sm:$0xff] %v22788_v7  ;;  %v2147_v42 = vld [vmem:[#allocation2 + $0x60] sm:$0xff]  ;;  %v21650_v47 = vld [vmem:[%s24996_s4 + $0x48] sm:$0xff]   ;;  %v25062_v62 = vld [vmem:[#allocation22_spill] sm:$0xff] }
 0x1d4   : > { %3342 = vst [vmem:[#allocation2 + $0x38] sm:$0xff] %v22792_v56  ;;  %v2850_v37 = vadd.f32 %v22763_v52, %v2678_v33  ;;  %v2679_v20 = vmax.f32 %v2146_v8, %v16873_v4  ;;  %v2481_v51 = vpop.f32.mrb[107].mxu1  ;;  %v3435_v44 = vpack.c.bf16 %v22792_v56, %v22784_v43  ;;  %v2150_v8 = vld [vmem:[#allocation2 + $0x78] sm:$0xff]  ;;  %17021 = vmatpush3.bf16.msra.mxu1 %v21650_v47  ;;  %v2151_v47 = vld [vmem:[#allocation2 + $0x80] sm:$0xff]  ;;  %v25069_v56 = vld [vmem:[#allocation37_spill] sm:$0xff] }
 0x1d5   : > { %3340 = vst [vmem:[#allocation2 + $0x28] sm:$0xff] %v3285_v26  ;;  %v2848_v57 = vadd.f32 %v22763_v52, %v2676_v32  ;;  %v2677_v55 = vmax.f32 %v2144_v36, %v2481_v51  ;;  %v3434_v3 = vpack.c.bf16 %v3285_v26, %v22788_v7  ;;  %v25061_v7 = vld [vmem:[#allocation28_spill] sm:$0xff]  ;;  %17022 = vmatprep.subr.bf16.mxu1 %v25023_v50 }
 0x1d6   : > { %v2905_v34 = vmax.f32 %v2850_v37, 0.0  ;;  %v2851_v24 = vadd.f32 %v22763_v52, %v2679_v20  ;;  %v2148_v36 = vld [vmem:[#allocation2 + $0x68] sm:$0xff] }
 0x1d7   : > { %v2903_v35 = vmax.f32 %v2848_v57, 0.0  ;;  %v2849_v54 = vadd.f32 %v22763_v52, %v2677_v55  ;;  %16939 = vmatmul.mubr.bf16.gmra.mrb[156].mxu1 %v3433_v15 }
 0x1d8   : > { %v22807_v16 = vmul.f32 %v25059_v61, %v2905_v34  ;;  %v2906_v18 = vmax.f32 %v2851_v24, 0.0  ;;  %16942 = vmatprep.mubr.msk.bf16.mxu1 %vm21838_vm0, %v25023_v50 }
 0x1d9   : > { %v22812_v22 = vmul.f32 %v25060_v58, %v2903_v35  ;;  %v2904_v6 = vmax.f32 %v2849_v54, 0.0  ;;  %v16876_v45 = vpop.f32.mrb[108].mxu1  ;;  %v21652_v54 = vld [vmem:[%s24996_s4 + $0x50] sm:$0xff]   ;;  %v25063_v58 = vld [vmem:[#allocation32_spill] sm:$0xff] }
 0x1da   : > { %3345 = vst [vmem:[#allocation2 + $0x50] sm:$0xff] %v22807_v16  ;;  %v22817_v15 = vmul.f32 %v25061_v7, %v2906_v18  ;;  %v2682_v5 = vmax.f32 %v2149_v46, %v16876_v45  ;;  %v2494_v33 = vpop.f32.mrb[109].mxu1  ;;  %17023 = vmatpush3.bf16.msra.mxu1 %v21652_v54  ;;  %v25064_v45 = vld [vmem:[#allocation30_spill] sm:$0xff] }
 0x1db   : > { %3343 = vst [vmem:[#allocation2 + $0x40] sm:$0xff] %v22812_v22  ;;  %v22824_v26 = vmul.f32 %v25062_v62, %v2904_v6  ;;  %v2680_v32 = vmax.f32 %v2147_v42, %v2494_v33  ;;  %v16877_v4 = vpop.f32.mrb[110].mxu1  ;;  %v2153_v42 = vld [vmem:[#allocation2 + $0x90] sm:$0xff]  ;;  %v21643_v62 = vld [vmem:[%s24996_s4 + $0x340] sm:$0xff]   ;;  %17024 = vmatprep.subr.bf16.mxu1 %v25023_v50 }
 0x1dc   : > { %3346 = vst [vmem:[#allocation2 + $0x58] sm:$0xff] %v22817_v15  ;;  %v2854_v37 = vadd.f32 %v22763_v52, %v2682_v5  ;;  %v2683_v20 = vmax.f32 %v2150_v8, %v16877_v4  ;;  %v2497_v51 = vpop.f32.mrb[111].mxu1  ;;  %v3437_v57 = vpack.c.bf16 %v22817_v15, %v22807_v16 }
 0x1dd   : > { %3344 = vst [vmem:[#allocation2 + $0x48] sm:$0xff] %v22824_v26  ;;  %v2852_v55 = vadd.f32 %v22763_v52, %v2680_v32  ;;  %v2681_v34 = vmax.f32 %v2148_v36, %v2497_v51  ;;  %v3436_v24 = vpack.c.bf16 %v22824_v26, %v22812_v22  ;;  %v21653_v36 = vld [vmem:[%s24996_s4 + $0x58] sm:$0xff]   ;;  %v25066_v51 = vld [vmem:[#allocation31_spill] sm:$0xff]  ;;  %v2161_v26 = vld [vmem:[#allocation2 + $0xd0] sm:$0xff] }
 0x1de   : > { %v2909_v49 = vmax.f32 %v2854_v37, 0.0  ;;  %v2855_v35 = vadd.f32 %v22763_v52, %v2683_v20  ;;  %v8765_v37 = vld [vmem:[#allocation2 + $0x32] sm:$0xff]  ;;  %17025 = vmatpush3.bf16.msra.mxu1 %v21653_v36 }
 0x1df   : > { %v2907_v61 = vmax.f32 %v2852_v55, 0.0  ;;  %v2853_v18 = vadd.f32 %v22763_v52, %v2681_v34  ;;  %16943 = vmatmul.mubr.bf16.gmra.mrb[160].mxu1 %v3434_v3  ;;  %v25065_v3 = vld [vmem:[#allocation33_spill] sm:$0xff]  ;;  %17026 = vmatprep.subr.bf16.mxu1 %v25023_v50 }
 0x1e0   : > { %v22841_v6 = vmul.f32 %v25063_v58, %v2909_v49  ;;  %v2910_v46 = vmax.f32 %v2855_v35, 0.0  ;;  %16946 = vmatprep.mubr.msk.bf16.mxu1 %vm21838_vm0, %v25023_v50  ;;  %v2154_v49 = vld [vmem:[#allocation2 + $0x98] sm:$0xff]  ;;  %v2152_v58 = vld [vmem:[#allocation2 + $0x88] sm:$0xff] }
 0x1e1   : > { %v22846_v7 = vmul.f32 %v25064_v45, %v2907_v61  ;;  %v2908_v5 = vmax.f32 %v2853_v18, 0.0  ;;  %v16880_v33 = vpop.f32.mrb[112].mxu1 }
 0x1e2   : > { %3349 = vst [vmem:[#allocation2 + $0x70] sm:$0xff] %v22841_v6  ;;  %v22854_v32 = vmul.f32 %v25065_v3, %v2910_v46  ;;  %v2686_v8 = vmax.f32 %v2153_v42, %v16880_v33  ;;  %v2510_v4 = vpop.f32.mrb[113].mxu1  ;;  %v8766_v20 = vld [vmem:[#allocation2 + $0x3a] sm:$0xff] }
 0x1e3   : > { %3347 = vst [vmem:[#allocation2 + $0x60] sm:$0xff] %v22846_v7  ;;  %v22861_v55 = vmul.f32 %v25066_v51, %v2908_v5  ;;  %v2684_v34 = vmax.f32 %v2151_v47, %v2510_v4  ;;  %v16881_v35 = vpop.f32.mrb[114].mxu1  ;;  %v8807_v54 = vpack.c.bf16 %v8766_v20, %v8765_v37  ;;  %v21654_v4 = vld [vmem:[%s24996_s4 + $0x60] sm:$0xff]  }
 0x1e4   : > { %3350 = vst [vmem:[#allocation2 + $0x78] sm:$0xff] %v22854_v32  ;;  %v2858_v61 = vadd.f32 %v22763_v52, %v2686_v8  ;;  %v2687_v18 = vmax.f32 %v2154_v49, %v16881_v35  ;;  %v2513_v46 = vpop.f32.mrb[115].mxu1  ;;  %v3439_v45 = vpack.c.bf16 %v22854_v32, %v22841_v6  ;;  %v21644_v8 = vld [vmem:[%s24996_s4 + $0x348] sm:$0xff]   ;;  %v25068_v35 = vld [vmem:[#allocation34_spill] sm:$0xff]  ;;  %17027 = vmatpush3.bf16.msra.mxu1 %v21654_v4 }
 0x1e5   : > { %3348 = vst [vmem:[#allocation2 + $0x68] sm:$0xff] %v22861_v55  ;;  %v2856_v5 = vadd.f32 %v22763_v52, %v2684_v34  ;;  %v2685_v42 = vmax.f32 %v2152_v58, %v2513_v46  ;;  %18135 = vmatmul.mubr.bf16.vlgmr.msra.gmra.mrb[72].mxu0 %v8807_v54  ;;  %v3438_v33 = vpack.c.bf16 %v22861_v55, %v22846_v7  ;;  %v8767_v34 = vld [vmem:[#allocation2 + $0x42] sm:$0xff]  ;;  %v8768_v49 = vld [vmem:[#allocation2 + $0x4a] sm:$0xff] }
 0x1e6   : > { %v2913_v47 = vmax.f32 %v2858_v61, 0.0  ;;  %v2859_v3 = vadd.f32 %v22763_v52, %v2687_v18  ;;  %18219 = vmatpush3.bf16.msra.mxu0 %v21643_v62  ;;  %18138 = vmatprep.mubr.msk.bf16.mxu0 %vm21838_vm0, %v25023_v50  ;;  %v25067_v62 = vld [vmem:[#allocation36_spill] sm:$0xff]  ;;  %v2157_v18 = vld [vmem:[#allocation2 + $0xb0] sm:$0xff]  ;;  %v2155_v46 = vld [vmem:[#allocation2 + $0xa0] sm:$0xff] }
 0x1e7   : > { %v2911_v37 = vmax.f32 %v2856_v5, 0.0  ;;  %v2857_v20 = vadd.f32 %v22763_v52, %v2685_v42  ;;  %16947 = vmatmul.mubr.bf16.gmra.mrb[164].mxu1 %v3435_v44  ;;  %18220 = vmatprep.subr.bf16.mxu0 %v25023_v50  ;;  %v21645_v42 = vld [vmem:[%s24996_s4 + $0x350] sm:$0xff]  }
 0x1e8   : > { %v22886_v36 = vmul.f32 %v25067_v62, %v2913_v47  ;;  %v2914_v51 = vmax.f32 %v2859_v3, 0.0  ;;  %16950 = vmatprep.mubr.msk.bf16.mxu1 %vm21838_vm0, %v25023_v50  ;;  %17028 = vmatprep.subr.bf16.mxu1 %v25023_v50  ;;  %v25070_v47 = vld [vmem:[#allocation35_spill] sm:$0xff]  ;;  %v8808_v62 = vpack.c.bf16 %v8768_v49, %v8767_v34 }
 0x1e9   : > { %v22892_v54 = vmul.f32 %v25068_v35, %v2911_v37  ;;  %v2912_v61 = vmax.f32 %v2857_v20, 0.0  ;;  %v16884_v43 = vpop.f32.mrb[116].mxu1  ;;  %v2158_v37 = vld [vmem:[#allocation2 + $0xb8] sm:$0xff]  ;;  %v2156_v35 = vld [vmem:[#allocation2 + $0xa8] sm:$0xff] }
 0x1ea   : > { %3353 = vst [vmem:[#allocation2 + $0x90] sm:$0xff] %v22886_v36  ;;  %v22896_v44 = vmul.f32 %v25069_v56, %v2914_v51  ;;  %v2690_v58 = vmax.f32 %v2157_v18, %v16884_v43  ;;  %v2526_v5 = vpop.f32.mrb[117].mxu1  ;;  %18221 = vmatpush3.bf16.msra.mxu0 %v21644_v8 }
 0x1eb   : > { %3351 = vst [vmem:[#allocation2 + $0x80] sm:$0xff] %v22892_v54  ;;  %v22904_v3 = vmul.f32 %v25070_v47, %v2912_v61  ;;  %v2688_v4 = vmax.f32 %v2155_v46, %v2526_v5  ;;  %v16885_v20 = vpop.f32.mrb[118].mxu1  ;;  %18222 = vmatprep.subr.bf16.mxu0 %v25023_v50  ;;  %v21655_v61 = vld [vmem:[%s24996_s4 + $0x68] sm:$0xff]   ;;  %v21646_v5 = vld [vmem:[%s24996_s4 + $0x358] sm:$0xff]  }
 0x1ec   : > { %3354 = vst [vmem:[#allocation2 + $0x98] sm:$0xff] %v22896_v44  ;;  %v2862_v8 = vadd.f32 %v22763_v52, %v2690_v58  ;;  %v2691_v51 = vmax.f32 %v2158_v37, %v16885_v20  ;;  %v2529_v18 = vpop.f32.mrb[119].mxu1  ;;  %v3441_v43 = vpack.c.bf16 %v22896_v44, %v22886_v36  ;;  %17029 = vmatpush3.bf16.msra.mxu1 %v21655_v61  ;;  %v8769_v61 = vld [vmem:[#allocation2 + $0x52] sm:$0xff]  ;;  %v2179_v36 = vld [vmem:[#allocation2 + $0x160] sm:$0xff] }
 0x1ed   : > { %3352 = vst [vmem:[#allocation2 + $0x88] sm:$0xff] %v22904_v3  ;;  %v2860_v34 = vadd.f32 %v22763_v52, %v2688_v4  ;;  %v2689_v49 = vmax.f32 %v2156_v35, %v2529_v18  ;;  %18139 = vmatmul.mubr.bf16.gmra.mrb[76].mxu0 %v8808_v62  ;;  %v3440_v56 = vpack.c.bf16 %v22904_v3, %v22892_v54  ;;  %v8770_v62 = vld [vmem:[#allocation2 + $0x5a] sm:$0xff] }
 0x1ee   : > { %v2917_v58 = vmax.f32 %v2862_v8, 0.0  ;;  %v2863_v46 = vadd.f32 %v22763_v52, %v2691_v51  ;;  %18142 = vmatprep.mubr.msk.bf16.mxu0 %vm21838_vm0, %v25023_v50  ;;  %18223 = vmatpush3.bf16.msra.mxu0 %v21645_v42  ;;  %v21656_v42 = vld [vmem:[%s24996_s4 + $0x70] sm:$0xff]   ;;  %v2159_v35 = vld [vmem:[#allocation2 + $0xc0] sm:$0xff] }
 0x1ef   : > { %v2915_v47 = vmax.f32 %v2860_v34, 0.0  ;;  %v2861_v37 = vadd.f32 %v22763_v52, %v2689_v49  ;;  %16951 = vmatmul.mubr.bf16.gmra.mrb[168].mxu1 %v3436_v24  ;;  %18224 = vmatprep.subr.bf16.mxu0 %v25023_v50  ;;  %v25071_v34 = vld [vmem:[#allocation38_spill] sm:$0xff]  ;;  %v2175_v3 = vld [vmem:[#allocation2 + $0x140] sm:$0xff] }
 0x1f0   : > { %v22930_v4 = vmul.f32 %v22593_v10, %v2917_v58  ;;  %v2918_v20 = vmax.f32 %v2863_v46, 0.0  ;;  %16954 = vmatprep.mubr.msk.bf16.mxu1 %vm21838_vm0, %v25023_v50  ;;  %17030 = vmatprep.subr.bf16.mxu1 %v25023_v50  ;;  %v2162_v46 = vld [vmem:[#allocation2 + $0xd8] sm:$0xff] }
 0x1f1   : > { %v22938_v8 = vmul.f32 %v22572_v28, %v2915_v47  ;;  %v2916_v22 = vmax.f32 %v2861_v37, 0.0  ;;  %v16888_v24 = vpop.f32.mrb[120].mxu1  ;;  %v21647_v28 = vld [vmem:[%s24996_s4 + $0x360] sm:$0xff]   ;;  %v8809_v37 = vpack.c.bf16 %v8770_v62, %v8769_v61  ;;  %17031 = vmatpush3.bf16.msra.mxu1 %v21656_v42  ;;  %v21648_v42 = vld [vmem:[%s24996_s4 + $0x368] sm:$0xff]  }
 0x1f2   : > { %3357 = vst [vmem:[#allocation2 + $0xb0] sm:$0xff] %v22930_v4  ;;  %v22943_v10 = vmul.f32 %v22596_v21, %v2918_v20  ;;  %v2694_v51 = vmax.f32 %v2161_v26, %v16888_v24  ;;  %v2542_v18 = vpop.f32.mrb[121].mxu1  ;;  %18225 = vmatpush3.bf16.msra.mxu0 %v21646_v5  ;;  %v2160_v20 = vld [vmem:[#allocation2 + $0xc8] sm:$0xff]  ;;  %17032 = vmatprep.subr.bf16.mxu1 %v25023_v50 }
 0x1f3   : > { %3355 = vst [vmem:[#allocation2 + $0xa0] sm:$0xff] %v22938_v8  ;;  %v22950_v49 = vmul.f32 %v25071_v34, %v2916_v22  ;;  %v2692_v58 = vmax.f32 %v2159_v35, %v2542_v18  ;;  %v16889_v47 = vpop.f32.mrb[122].mxu1  ;;  %18226 = vmatprep.subr.bf16.mxu0 %v25023_v50 }
 0x1f4   : > { %3358 = vst [vmem:[#allocation2 + $0xb8] sm:$0xff] %v22943_v10  ;;  %v2866_v21 = vadd.f32 %v22763_v52, %v2694_v51  ;;  %v2695_v5 = vmax.f32 %v2162_v46, %v16889_v47  ;;  %v2545_v26 = vpop.f32.mrb[123].mxu1  ;;  %v3443_v24 = vpack.c.bf16 %v22943_v10, %v22930_v4  ;;  %v21658_v51 = vld [vmem:[%s24996_s4 + $0x78] sm:$0xff]  }
 0x1f5   : > { %3356 = vst [vmem:[#allocation2 + $0xa8] sm:$0xff] %v22950_v49  ;;  %v2864_v22 = vadd.f32 %v22763_v52, %v2692_v58  ;;  %v2693_v35 = vmax.f32 %v2160_v20, %v2545_v26  ;;  %18143 = vmatmul.mubr.bf16.gmra.mrb[80].mxu0 %v8809_v37  ;;  %v3442_v62 = vpack.c.bf16 %v22950_v49, %v22938_v8  ;;  %v8771_v37 = vld [vmem:[#allocation2 + $0x62] sm:$0xff]  ;;  %v2165_v20 = vld [vmem:[#allocation2 + $0xf0] sm:$0xff] }
 0x1f6   : > { %v2921_v18 = vmax.f32 %v2866_v21, 0.0  ;;  %v2867_v61 = vadd.f32 %v22763_v52, %v2695_v5  ;;  %18146 = vmatprep.mubr.msk.bf16.mxu0 %vm21838_vm0, %v25023_v50  ;;  %18227 = vmatpush3.bf16.msra.mxu0 %v21647_v28  ;;  %v8772_v21 = vld [vmem:[#allocation2 + $0x6a] sm:$0xff] }
 0x1f7   : > { %v2919_v34 = vmax.f32 %v2864_v22, 0.0  ;;  %v2865_v58 = vadd.f32 %v22763_v52, %v2693_v35  ;;  %16955 = vmatmul.mubr.bf16.gmra.mrb[172].mxu1 %v3437_v57  ;;  %18228 = vmatprep.subr.bf16.mxu0 %v25023_v50  ;;  %v2163_v57 = vld [vmem:[#allocation2 + $0xe0] sm:$0xff]  ;;  %v21651_v22 = vld [vmem:[%s24996_s4 + $0x370] sm:$0xff]  }
 0x1f8   : > { %v22976_v46 = vmul.f32 %v22633_v27, %v2921_v18  ;;  %v2922_v47 = vmax.f32 %v2867_v61, 0.0  ;;  %16958 = vmatprep.mubr.msk.bf16.mxu1 %vm21838_vm0, %v25023_v50  ;;  %17033 = vmatpush3.bf16.msra.mxu1 %v21658_v51  ;;  %v2166_v51 = vld [vmem:[#allocation2 + $0xf8] sm:$0xff] }
 0x1f9   : > { %v22982_v28 = vmul.f32 %v22613_v1, %v2919_v34  ;;  %v2920_v5 = vmax.f32 %v2865_v58, 0.0  ;;  %v16892_v16 = vpop.f32.mrb[124].mxu1  ;;  %17118 = vmatprep.subr.bf16.mxu1 %v25023_v50  ;;  %v2164_v34 = vld [vmem:[#allocation2 + $0xe8] sm:$0xff] }
 0x1fa   : > { %3361 = vst [vmem:[#allocation2 + $0xd0] sm:$0xff] %v22976_v46  ;;  %v22986_v27 = vmul.f32 %v22636_v9, %v2922_v47  ;;  %v2698_v15 = vmax.f32 %v2165_v20, %v16892_v16  ;;  %v2558_v26 = vpop.f32.mrb[125].mxu1  ;;  %18229 = vmatpush3.bf16.msra.mxu0 %v21648_v42  ;;  %v8810_v9 = vpack.c.bf16 %v8772_v21, %v8771_v37  ;;  %v21657_v16 = vld [vmem:[%s24996_s4 + $0x378] sm:$0xff]  }
 0x1fb   : > { %3359 = vst [vmem:[#allocation2 + $0xc0] sm:$0xff] %v22982_v28  ;;  %v22994_v1 = vmul.f32 %v22616_v38, %v2920_v5  ;;  %v2696_v35 = vmax.f32 %v2163_v57, %v2558_v26  ;;  %v16893_v18 = vpop.f32.mrb[126].mxu1  ;;  %18230 = vmatprep.subr.bf16.mxu0 %v25023_v50  ;;  %v8781_v49 = vld [vmem:[#allocation2 + $0xb2] sm:$0xff] }
 0x1fc   : > { %3362 = vst [vmem:[#allocation2 + $0xd8] sm:$0xff] %v22986_v27  ;;  %v2870_v61 = vadd.f32 %v22763_v52, %v2698_v15  ;;  %v2699_v42 = vmax.f32 %v2166_v51, %v16893_v18  ;;  %v2561_v58 = vpop.f32.mrb[127].mxu1  ;;  %v3445_v47 = vpack.c.bf16 %v22986_v27, %v22976_v46  ;;  %v8774_v51 = vld [vmem:[#allocation2 + $0x7a] sm:$0xff] }
 0x1fd   : > { %3360 = vst [vmem:[#allocation2 + $0xc8] sm:$0xff] %v22994_v1  ;;  %v2868_v38 = vadd.f32 %v22763_v52, %v2696_v35  ;;  %v2697_v5 = vmax.f32 %v2164_v34, %v2561_v58  ;;  %18147 = vmatmul.mubr.bf16.gmra.mrb[84].mxu0 %v8810_v9  ;;  %v3444_v37 = vpack.c.bf16 %v22994_v1, %v22982_v28  ;;  %v2169_v9 = vld [vmem:[#allocation2 + $0x110] sm:$0xff]  ;;  %v2170_v58 = vld [vmem:[#allocation2 + $0x118] sm:$0xff] }
 0x1fe   : > { %v2925_v21 = vmax.f32 %v2870_v61, 0.0  ;;  %v2871_v20 = vadd.f32 %v22763_v52, %v2699_v42  ;;  %18150 = vmatprep.mubr.msk.bf16.mxu0 %vm21838_vm0, %v25023_v50  ;;  %18231 = vmatpush3.bf16.msra.mxu0 %v21651_v22  ;;  %v8773_v42 = vld [vmem:[#allocation2 + $0x72] sm:$0xff] }
 0x1ff   : > { %v2923_v15 = vmax.f32 %v2868_v38, 0.0  ;;  %v2869_v57 = vadd.f32 %v22763_v52, %v2697_v5  ;;  %16959 = vmatmul.mubr.bf16.gmra.mrb[176].mxu1 %v3438_v33  ;;  %18232 = vmatprep.subr.bf16.mxu0 %v25023_v50  ;;  %v2167_v33 = vld [vmem:[#allocation2 + $0x100] sm:$0xff]  ;;  %v8811_v5 = vpack.c.bf16 %v8774_v51, %v8773_v42  ;;  %v8776_v42 = vld [vmem:[#allocation2 + $0x8a] sm:$0xff] }
 0x200   : > { %v23017_v26 = vmul.f32 %v22673_v59, %v2925_v21  ;;  %v2926_v35 = vmax.f32 %v2871_v20, 0.0  ;;  %16962 = vmatprep.mubr.msk.bf16.mxu1 %vm21838_vm0, %v25023_v50  ;;  %v2168_v20 = vld [vmem:[#allocation2 + $0x108] sm:$0xff] }
 0x201   : > { %v23022_v22 = vmul.f32 %v22653_v17, %v2923_v15  ;;  %v2924_v18 = vmax.f32 %v2869_v57, 0.0  ;;  %v16896_v61 = vpop.f32.mrb[128].mxu1 }
 0x202   : > { %3365 = vst [vmem:[#allocation2 + $0xf0] sm:$0xff] %v23017_v26  ;;  %v23026_v7 = vmul.f32 %v22675_v12, %v2926_v35  ;;  %v2702_v55 = vmax.f32 %v2169_v9, %v16896_v61  ;;  %v2574_v59 = vpop.f32.mrb[129].mxu1  ;;  %18233 = vmatpush3.bf16.msra.mxu0 %v21657_v16 }
 0x203   : > { %3363 = vst [vmem:[#allocation2 + $0xe0] sm:$0xff] %v23022_v22  ;;  %v23030_v34 = vmul.f32 %v22656_v39, %v2924_v18  ;;  %v2700_v17 = vmax.f32 %v2167_v33, %v2574_v59  ;;  %v16897_v38 = vpop.f32.mrb[130].mxu1  ;;  %18318 = vmatprep.subr.bf16.mxu0 %v25023_v50  ;;  %v8775_v59 = vld [vmem:[#allocation2 + $0x82] sm:$0xff] }
 0x204   : > { %3366 = vst [vmem:[#allocation2 + $0xf8] sm:$0xff] %v23026_v7  ;;  %v2874_v12 = vadd.f32 %v22763_v52, %v2702_v55  ;;  %v2703_v21 = vmax.f32 %v2170_v58, %v16897_v38  ;;  %v2577_v15 = vpop.f32.mrb[131].mxu1  ;;  %v3447_v16 = vpack.c.bf16 %v23026_v7, %v23017_v26  ;;  %v2173_v38 = vld [vmem:[#allocation2 + $0x130] sm:$0xff] }
 0x205   : > { %3364 = vst [vmem:[#allocation2 + $0xe8] sm:$0xff] %v23030_v34  ;;  %v2872_v39 = vadd.f32 %v22763_v52, %v2700_v17  ;;  %v2701_v57 = vmax.f32 %v2168_v20, %v2577_v15  ;;  %18151 = vmatmul.mubr.bf16.gmra.mrb[88].mxu0 %v8811_v5  ;;  %v3446_v35 = vpack.c.bf16 %v23030_v34, %v23022_v22  ;;  %v2174_v20 = vld [vmem:[#allocation2 + $0x138] sm:$0xff] }
 0x206   : > { %v2929_v51 = vmax.f32 %v2874_v12, 0.0  ;;  %v2875_v18 = vadd.f32 %v22763_v52, %v2703_v21  ;;  %18154 = vmatprep.mubr.msk.bf16.mxu0 %vm21838_vm0, %v25023_v50  ;;  %v8812_v15 = vpack.c.bf16 %v8776_v42, %v8775_v59 }
 0x207   : > { %v2927_v9 = vmax.f32 %v2872_v39, 0.0  ;;  %v2873_v61 = vadd.f32 %v22763_v52, %v2701_v57  ;;  %16963 = vmatmul.mubr.bf16.gmra.mrb[180].mxu1 %v3439_v45 }
 0x208   : > { %v23049_v55 = vmul.f32 %v22697_v19, %v2929_v51  ;;  %v2930_v33 = vmax.f32 %v2875_v18, 0.0  ;;  %16966 = vmatprep.mubr.msk.bf16.mxu1 %vm21838_vm0, %v25023_v50  ;;  %v2171_v19 = vld [vmem:[#allocation2 + $0x120] sm:$0xff]  ;;  %v2172_v51 = vld [vmem:[#allocation2 + $0x128] sm:$0xff] }
 0x209   : > { %v23054_v17 = vmul.f32 %v22687_v11, %v2927_v9  ;;  %v2928_v58 = vmax.f32 %v2873_v61, 0.0  ;;  %v16900_v5 = vpop.f32.mrb[132].mxu1 }
 0x20a   : > { %3369 = vst [vmem:[#allocation2 + $0x110] sm:$0xff] %v23049_v55  ;;  %v23058_v6 = vmul.f32 %v22703_v23, %v2930_v33  ;;  %v2706_v32 = vmax.f32 %v2173_v38, %v16900_v5  ;;  %v2590_v45 = vpop.f32.mrb[133].mxu1 }
 0x20b   : > { %3367 = vst [vmem:[#allocation2 + $0x100] sm:$0xff] %v23054_v17  ;;  %v23062_v12 = vmul.f32 %v22693_v31, %v2928_v58  ;;  %v2704_v21 = vmax.f32 %v2171_v19, %v2590_v45  ;;  %v16901_v11 = vpop.f32.mrb[134].mxu1  ;;  %v8789_v46 = vld [vmem:[#allocation2 + $0xf2] sm:$0xff] }
 0x20c   : > { %3370 = vst [vmem:[#allocation2 + $0x118] sm:$0xff] %v23058_v6  ;;  %v2878_v39 = vadd.f32 %v22763_v52, %v2706_v32  ;;  %v2707_v57 = vmax.f32 %v2174_v20, %v16901_v11  ;;  %v2593_v23 = vpop.f32.mrb[135].mxu1  ;;  %v3449_v18 = vpack.c.bf16 %v23058_v6, %v23049_v55  ;;  %v8778_v32 = vld [vmem:[#allocation2 + $0x9a] sm:$0xff]  ;;  %v8787_v28 = vld [vmem:[#allocation2 + $0xe2] sm:$0xff]  ;;  %v8788_v1 = vld [vmem:[#allocation2 + $0xea] sm:$0xff] }
 0x20d   : > { %3368 = vst [vmem:[#allocation2 + $0x108] sm:$0xff] %v23062_v12  ;;  %v2876_v9 = vadd.f32 %v22763_v52, %v2704_v21  ;;  %v2705_v31 = vmax.f32 %v2172_v51, %v2593_v23  ;;  %18155 = vmatmul.mubr.bf16.gmra.mrb[92].mxu0 %v8812_v15  ;;  %v3448_v61 = vpack.c.bf16 %v23062_v12, %v23054_v17  ;;  %v2177_v21 = vld [vmem:[#allocation2 + $0x150] sm:$0xff] }
 0x20e   : > { %v2933_v33 = vmax.f32 %v2878_v39, 0.0  ;;  %v2879_v59 = vadd.f32 %v22763_v52, %v2707_v57  ;;  %18158 = vmatprep.mubr.msk.bf16.mxu0 %vm21838_vm0, %v25023_v50 }
 0x20f   : > { %v2931_v42 = vmax.f32 %v2876_v9, 0.0  ;;  %v2877_v58 = vadd.f32 %v22763_v52, %v2705_v31  ;;  %16967 = vmatmul.mubr.bf16.gmra.mrb[184].mxu1 %v3440_v56  ;;  %v8777_v56 = vld [vmem:[#allocation2 + $0x92] sm:$0xff] }
 0x210   : > { %v23080_v38 = vmul.f32 %v22719_v60, %v2933_v33  ;;  %v2934_v5 = vmax.f32 %v2879_v59, 0.0  ;;  %16970 = vmatprep.mubr.msk.bf16.mxu1 %vm21838_vm0, %v25023_v50  ;;  %v8813_v51 = vpack.c.bf16 %v8778_v32, %v8777_v56 }
 0x211   : > { %v23085_v19 = vmul.f32 %v22707_v41, %v2931_v42  ;;  %v2932_v45 = vmax.f32 %v2877_v58, 0.0  ;;  %v16904_v20 = vpop.f32.mrb[136].mxu1  ;;  %v2178_v41 = vld [vmem:[#allocation2 + $0x158] sm:$0xff] }
 0x212   : > { %3373 = vst [vmem:[#allocation2 + $0x130] sm:$0xff] %v23080_v38  ;;  %v23089_v11 = vmul.f32 %v22721_v13, %v2934_v5  ;;  %v2710_v54 = vmax.f32 %v2177_v21, %v16904_v20  ;;  %v2606_v60 = vpop.f32.mrb[137].mxu1  ;;  %v2176_v13 = vld [vmem:[#allocation2 + $0x148] sm:$0xff] }
 0x213   : > { %3371 = vst [vmem:[#allocation2 + $0x120] sm:$0xff] %v23085_v19  ;;  %v23093_v15 = vmul.f32 %v22711_v25, %v2932_v45  ;;  %v2708_v39 = vmax.f32 %v2175_v3, %v2606_v60  ;;  %v16905_v57 = vpop.f32.mrb[138].mxu1  ;;  %v8780_v3 = vld [vmem:[#allocation2 + $0xaa] sm:$0xff]  ;;  %v8793_v26 = vld [vmem:[#allocation2 + $0x112] sm:$0xff] }
 0x214   : > { %3374 = vst [vmem:[#allocation2 + $0x138] sm:$0xff] %v23089_v11  ;;  %v2882_v23 = vadd.f32 %v22763_v52, %v2710_v54  ;;  %v2711_v9 = vmax.f32 %v2178_v41, %v16905_v57  ;;  %v2609_v31 = vpop.f32.mrb[139].mxu1  ;;  %v3451_v33 = vpack.c.bf16 %v23089_v11, %v23080_v38  ;;  %v8779_v54 = vld [vmem:[#allocation2 + $0xa2] sm:$0xff] }
 0x215   : > { %3372 = vst [vmem:[#allocation2 + $0x128] sm:$0xff] %v23093_v15  ;;  %v2880_v59 = vadd.f32 %v22763_v52, %v2708_v39  ;;  %v2709_v25 = vmax.f32 %v2176_v13, %v2609_v31  ;;  %18159 = vmatmul.mubr.bf16.gmra.mrb[96].mxu0 %v8813_v51  ;;  %v3450_v42 = vpack.c.bf16 %v23093_v15, %v23085_v19  ;;  %v2181_v39 = vld [vmem:[#allocation2 + $0x170] sm:$0xff]  ;;  %v3760_v11 = vld [vmem:[#allocation2 + $0x1] sm:$0xff] }
 0x216   : > { %v2937_v58 = vmax.f32 %v2882_v23, 0.0  ;;  %v2883_v5 = vadd.f32 %v22763_v52, %v2711_v9  ;;  %18162 = vmatprep.mubr.msk.bf16.mxu0 %vm21838_vm0, %v25023_v50  ;;  %v2182_v23 = vld [vmem:[#allocation2 + $0x178] sm:$0xff]  ;;  %v8814_v13 = vpack.c.bf16 %v8780_v3, %v8779_v54 }
 0x217   : > { %v2935_v32 = vmax.f32 %v2880_v59, 0.0  ;;  %v2881_v45 = vadd.f32 %v22763_v52, %v2709_v25  ;;  %16971 = vmatmul.mubr.bf16.gmra.mrb[188].mxu1 %v3441_v43  ;;  %v2180_v59 = vld [vmem:[#allocation2 + $0x168] sm:$0xff]  ;;  %v8782_v3 = vld [vmem:[#allocation2 + $0xba] sm:$0xff] }
 0x218   : > { %v3322_v21 = vmul.f32 %v22737_v30, %v2937_v58  ;;  %v2938_v20 = vmax.f32 %v2883_v5, 0.0  ;;  %16974 = vmatprep.mubr.msk.bf16.mxu1 %vm21838_vm0, %v25023_v50 }
 0x219   : > { %v23114_v60 = vmul.f32 %v22729_v53, %v2935_v32  ;;  %v2936_v56 = vmax.f32 %v2881_v45, 0.0  ;;  %v16908_v41 = vpop.f32.mrb[140].mxu1 }
 0x21a   : > { %3377 = vst [vmem:[#allocation2 + $0x150] sm:$0xff] %v3322_v21  ;;  %v3323_v57 = vmul.f32 %v22741_v63, %v2938_v20  ;;  %v2714_v51 = vmax.f32 %v2181_v39, %v16908_v41  ;;  %v2622_v44 = vpop.f32.mrb[141].mxu1  ;;  %v2185_v41 = vld [vmem:[#allocation2 + $0x190] sm:$0xff]  ;;  %v8794_v34 = vld [vmem:[#allocation2 + $0x11a] sm:$0xff] }
 0x21b   : > { %3375 = vst [vmem:[#allocation2 + $0x140] sm:$0xff] %v23114_v60  ;;  %v23119_v30 = vmul.f32 %v22733_v48, %v2936_v56  ;;  %v2712_v43 = vmax.f32 %v2179_v36, %v2622_v44  ;;  %v16909_v9 = vpop.f32.mrb[142].mxu1  ;;  %v8821_v7 = vpack.c.bf16 %v8794_v34, %v8793_v26  ;;  %v8797_v55 = vld [vmem:[#allocation2 + $0x132] sm:$0xff]  ;;  %v3772_v26 = vld [vmem:[#allocation2 + $0x61] sm:$0xff] }
 0x21c   : > { %3378 = vst [vmem:[#allocation2 + $0x158] sm:$0xff] %v3323_v57  ;;  %v2886_v53 = vadd.f32 %v22763_v52, %v2714_v51  ;;  %v2715_v31 = vmax.f32 %v2182_v23, %v16909_v9  ;;  %v2625_v25 = vpop.f32.mrb[143].mxu1  ;;  %v3258_v51 = vpop.permute.xlu0 %3257  ;;  %v2186_v9 = vld [vmem:[#allocation2 + $0x198] sm:$0xff]  ;;  %v9227_v34 = vld [vmem:[#allocation2 + $0x6b] sm:$0xff] }
 0x21d   : > { %3376 = vst [vmem:[#allocation2 + $0x148] sm:$0xff] %v23119_v30  ;;  %v2884_v63 = vadd.f32 %v22763_v52, %v2712_v43  ;;  %v2713_v58 = vmax.f32 %v2180_v59, %v2625_v25  ;;  %18163 = vmatmul.mubr.bf16.gmra.mrb[100].mxu0 %v8814_v13  ;;  %v3452_v48 = vpack.c.bf16 %v23119_v30, %v23114_v60  ;;  %v2183_v43 = vld [vmem:[#allocation2 + $0x180] sm:$0xff]  ;;  %v2184_v59 = vld [vmem:[#allocation2 + $0x188] sm:$0xff] }
 0x21e   : > { %v2941_v5 = vmax.f32 %v2886_v53, 0.0  ;;  %v2887_v32 = vadd.f32 %v22763_v52, %v2715_v31  ;;  %18166 = vmatprep.mubr.msk.bf16.mxu0 %vm21838_vm0, %v25023_v50  ;;  %v8815_v53 = vpack.c.bf16 %v8782_v3, %v8781_v49  ;;  %v8784_v3 = vld [vmem:[#allocation2 + $0xca] sm:$0xff]  ;;  %v21827_v49 = vld [vmem:[%s24995_s3] ss:$0 sm:$0xff] }
 0x21f   : > { %v2939_v45 = vmax.f32 %v2884_v63, 0.0  ;;  %v2885_v21 = vadd.f32 %v22763_v52, %v2713_v58  ;;  %16975 = vmatmul.mubr.bf16.gmra.mrb[192].mxu1 %v3442_v62  ;;  %v3253_v62 = vpop.permute.xlu1 %3252  ;;  %v3763_v60 = vld [vmem:[#allocation2 + $0x19] sm:$0xff] }
 0x220   : > { %v3326_v20 = vmul.f32 %v22753_v29, %v2941_v5  ;;  %v2942_v54 = vmax.f32 %v2887_v32, 0.0  ;;  %16978 = vmatprep.mubr.msk.bf16.mxu1 %vm21838_vm0, %v25023_v50 }
 0x221   : > { %v3324_v56 = vmul.f32 %v22745_v14, %v2939_v45  ;;  %v2940_v39 = vmax.f32 %v2885_v21, 0.0  ;;  %v16912_v57 = vpop.f32.mrb[144].mxu1  ;;  %v3268_v45 = vpop.permute.xlu0 %3267 }
 0x222   : > { %3381 = vst [vmem:[#allocation2 + $0x170] sm:$0xff] %v3326_v20  ;;  %v3327_v36 = vmul.f32 %v22758_v0, %v2942_v54  ;;  %v2718_v44 = vmax.f32 %v2185_v41, %v16912_v57  ;;  %v2638_v8 = vpop.f32.mrb[145].mxu1  ;;  %v8783_v54 = vld [vmem:[#allocation2 + $0xc2] sm:$0xff]  ;;  %v2189_v57 = vld [vmem:[#allocation2 + $0x1b0] sm:$0xff]  ;;  %v8798_v12 = vld [vmem:[#allocation2 + $0x13a] sm:$0xff] }
 0x223   : > { %3379 = vst [vmem:[#allocation2 + $0x160] sm:$0xff] %v3324_v56  ;;  %v3325_v29 = vmul.f32 %v22747_v2, %v2940_v39  ;;  %v2716_v23 = vmax.f32 %v2183_v43, %v2638_v8  ;;  %v16913_v13 = vpop.f32.mrb[146].mxu1  ;;  %v3263_v56 = vpop.permute.xlu1 %3262  ;;  %v2187_v43 = vld [vmem:[#allocation2 + $0x1a0] sm:$0xff]  ;;  %v8816_v8 = vpack.c.bf16 %v8784_v3, %v8783_v54  ;;  %v8823_v6 = vpack.c.bf16 %v8798_v12, %v8797_v55  ;;  %v8801_v38 = vld [vmem:[#allocation2 + $0x152] sm:$0xff] }
 0x224   : > { %3382 = vst [vmem:[#allocation2 + $0x178] sm:$0xff] %v3327_v36  ;;  %v2890_v14 = vadd.f32 %v22763_v52, %v2718_v44  ;;  %v2719_v31 = vmax.f32 %v2186_v9, %v16913_v13  ;;  %v2641_v25 = vpop.f32.mrb[147].mxu1  ;;  %v21673_v12 = vld [vmem:[%s24996_s4 + $0x3b8] sm:$0xff]  }
 0x225   : > { %3380 = vst [vmem:[#allocation2 + $0x168] sm:$0xff] %v3325_v29  ;;  %v2888_v0 = vadd.f32 %v22763_v52, %v2716_v23  ;;  %v2717_v63 = vmax.f32 %v2184_v59, %v2641_v25  ;;  %18167 = vmatmul.mubr.bf16.gmra.mrb[104].mxu0 %v8815_v53  ;;  %v8786_v25 = vld [vmem:[#allocation2 + $0xda] sm:$0xff] }
 0x226   : > { %v2945_v58 = vmax.f32 %v2890_v14, 0.0  ;;  %v2891_v5 = vadd.f32 %v22763_v52, %v2719_v31  ;;  %18170 = vmatprep.mubr.msk.bf16.mxu0 %vm21838_vm0, %v25023_v50  ;;  %v9229_v55 = vld [vmem:[#allocation2 + $0x7b] sm:$0xff] }
 0x227   : > { %v2943_v2 = vmax.f32 %v2888_v0, 0.0  ;;  %v2889_v32 = vadd.f32 %v22763_v52, %v2717_v63  ;;  %16979 = vmatmul.mubr.bf16.gmra.mrb[196].mxu1 %v3443_v24 }
 0x228   : > { %v3330_v21 = vmul.f32 %v3258_v51, %v2945_v58  ;;  %v2946_v20 = vmax.f32 %v2891_v5, 0.0  ;;  %16982 = vmatprep.mubr.msk.bf16.mxu1 %vm21838_vm0, %v25023_v50  ;;  %v3273_v58 = vpop.permute.xlu1 %3272  ;;  %v8785_v5 = vld [vmem:[#allocation2 + $0xd2] sm:$0xff] }
 0x229   : > { %v3328_v39 = vmul.f32 %v22767_v40, %v2943_v2  ;;  %v2944_v41 = vmax.f32 %v2889_v32, 0.0  ;;  %v16916_v36 = vpop.f32.mrb[148].mxu1  ;;  %v2188_v40 = vld [vmem:[#allocation2 + $0x1a8] sm:$0xff]  ;;  %v8817_v32 = vpack.c.bf16 %v8786_v25, %v8785_v5  ;;  %v21661_v25 = vld [vmem:[%s24996_s4 + $0x390] sm:$0xff]   ;;  %v21662_v5 = vld [vmem:[%s24996_s4 + $0x398] sm:$0xff]  }
 0x22a   : > { %3385 = vst [vmem:[#allocation2 + $0x190] sm:$0xff] %v3330_v21  ;;  %v3331_v52 = vmul.f32 %v3263_v56, %v2946_v20  ;;  %v2722_v44 = vmax.f32 %v2189_v57, %v16916_v36  ;;  %v2654_v4 = vpop.f32.mrb[149].mxu1  ;;  %v8792_v21 = vld [vmem:[#allocation2 + $0x10a] sm:$0xff]  ;;  %v8802_v15 = vld [vmem:[#allocation2 + $0x15a] sm:$0xff] }
 0x22b   : > { %3383 = vst [vmem:[#allocation2 + $0x180] sm:$0xff] %v3328_v39  ;;  %v3329_v10 = vmul.f32 %v3253_v62, %v2944_v41  ;;  %v2720_v24 = vmax.f32 %v2187_v43, %v2654_v4  ;;  %v16917_v51 = vpop.f32.mrb[150].mxu1  ;;  %v3278_v62 = vpop.permute.xlu0 %3277  ;;  %v21665_v41 = vld [vmem:[%s24996_s4 + $0x80] sm:$0xff]   ;;  %v8805_v57 = vld [vmem:[#allocation2 + $0x172] sm:$0xff]  ;;  %v21666_v4 = vld [vmem:[%s24996_s4 + $0x88] sm:$0xff]  }
 0x22c   : > { %3386 = vst [vmem:[#allocation2 + $0x198] sm:$0xff] %v3331_v52  ;;  %v2894_v29 = vadd.f32 %v21827_v49, %v2722_v44  ;;  %v2657_v23 = vpop.f32.mrb[151].mxu1  ;;  %v8803_v54 = vld [vmem:[#allocation2 + $0x162] sm:$0xff]  ;;  %v8804_v3 = vld [vmem:[#allocation2 + $0x16a] sm:$0xff]  ;;  %v9220_v51 = vld [vmem:[#allocation2 + $0x33] sm:$0xff] }
 0x22d   : > { %3384 = vst [vmem:[#allocation2 + $0x188] sm:$0xff] %v3329_v10  ;;  %v2892_v9 = vadd.f32 %v21827_v49, %v2720_v24  ;;  %v2721_v13 = vmax.f32 %v2188_v40, %v2657_v23  ;;  %18171 = vmatmul.mubr.bf16.gmra.mrb[108].mxu0 %v8816_v8  ;;  %v8826_v30 = vpack.c.bf16 %v8804_v3, %v8803_v54  ;;  %v3764_v36 = vld [vmem:[#allocation2 + $0x21] sm:$0xff]  ;;  %v3765_v52 = vld [vmem:[#allocation2 + $0x29] sm:$0xff]  ;;  %v3766_v40 = vld [vmem:[#allocation2 + $0x31] sm:$0xff] }
 0x22e   : > { %v2949_v53 = vmax.f32 %v2894_v29, 0.0  ;;  %18174 = vmatprep.mubr.msk.bf16.mxu0 %vm21838_vm0, %v25023_v50  ;;  %v3804_v43 = vpack.c.bf16 %v3765_v52, %v3764_v36  ;;  %v9221_v10 = vld [vmem:[#allocation2 + $0x3b] sm:$0xff]  ;;  %v21668_v24 = vld [vmem:[%s24996_s4 + $0x90] sm:$0xff]  }
 0x22f   : > { %v2947_v14 = vmax.f32 %v2892_v9, 0.0  ;;  %v2893_v31 = vadd.f32 %v21827_v49, %v2721_v13  ;;  %16983 = vmatmul.mubr.bf16.gmra.mrb[200].mxu1 %v3444_v37  ;;  %v8818_v37 = vpack.c.bf16 %v8788_v1, %v8787_v28  ;;  %v21659_v8 = vld [vmem:[%s24996_s4 + $0x380] sm:$0xff]   ;;  %v9262_v29 = vpack.c.bf16 %v9221_v10, %v9220_v51  ;;  %v21669_v9 = vld [vmem:[%s24996_s4 + $0x98] sm:$0xff]   ;;  %v21660_v13 = vld [vmem:[%s24996_s4 + $0x388] sm:$0xff]  }
 0x230   : > { %v3334_v59 = vmul.f32 %v3278_v62, %v2949_v53  ;;  %16986 = vmatprep.mubr.msk.bf16.mxu1 %vm21838_vm0, %v25023_v50  ;;  %v3767_v49 = vld [vmem:[#allocation2 + $0x39] sm:$0xff]  ;;  %v9222_v53 = vld [vmem:[#allocation2 + $0x43] sm:$0xff]  ;;  %v9223_v62 = vld [vmem:[#allocation2 + $0x4b] sm:$0xff] }
 0x231   : > { %v3332_v0 = vmul.f32 %v3268_v45, %v2947_v14  ;;  %v2948_v63 = vmax.f32 %v2893_v31, 0.0  ;;  %v8790_v45 = vld [vmem:[#allocation2 + $0xfa] sm:$0xff]  ;;  %v3805_v23 = vpack.c.bf16 %v3767_v49, %v3766_v40  ;;  %v3781_v52 = vld [vmem:[#allocation2 + $0xa9] sm:$0xff] }
 0x232   : > { %3389 = vst [vmem:[#allocation2 + $0x1b0] sm:$0xff] %v3334_v59  ;;  %v8819_v27 = vpack.c.bf16 %v8790_v45, %v8789_v46  ;;  %v8806_v39 = vld [vmem:[#allocation2 + $0x17a] sm:$0xff]  ;;  %v3769_v59 = vld [vmem:[#allocation2 + $0x49] sm:$0xff]  ;;  %v3770_v46 = vld [vmem:[#allocation2 + $0x51] sm:$0xff] }
 0x233   : > { %3387 = vst [vmem:[#allocation2 + $0x1a0] sm:$0xff] %v3332_v0  ;;  %v3333_v2 = vmul.f32 %v3273_v58, %v2948_v63  ;;  %v8827_v44 = vpack.c.bf16 %v8806_v39, %v8805_v57  ;;  %v21670_v14 = vld [vmem:[%s24996_s4 + $0xa0] sm:$0xff]   ;;  %v9263_v0 = vpack.c.bf16 %v9223_v62, %v9222_v53  ;;  %v21671_v58 = vld [vmem:[%s24996_s4 + $0xa8] sm:$0xff]   ;;  %v9224_v28 = vld [vmem:[#allocation2 + $0x53] sm:$0xff] }
 0x234   : > { %v3768_v31 = vld [vmem:[#allocation2 + $0x41] sm:$0xff]  ;;  %v3771_v1 = vld [vmem:[#allocation2 + $0x59] sm:$0xff]  ;;  %v9235_v57 = vld [vmem:[#allocation2 + $0xab] sm:$0xff] }
 0x235   : > { %3388 = vst [vmem:[#allocation2 + $0x1a8] sm:$0xff] %v3333_v2  ;;  %18175 = vmatmul.mubr.bf16.gmra.mrb[112].mxu0 %v8817_v32  ;;  %v3806_v63 = vpack.c.bf16 %v3769_v59, %v3768_v31  ;;  %v9225_v2 = vld [vmem:[#allocation2 + $0x5b] sm:$0xff]  ;;  %v21672_v32 = vld [vmem:[%s24996_s4 + $0xb0] sm:$0xff]  }
 0x236   : > { %18178 = vmatprep.mubr.msk.bf16.mxu0 %vm21838_vm0, %v25023_v50  ;;  %v9264_v45 = vpack.c.bf16 %v9225_v2, %v9224_v28  ;;  %v9233_v3 = vld [vmem:[#allocation2 + $0x9b] sm:$0xff]  ;;  %v9236_v10 = vld [vmem:[#allocation2 + $0xb3] sm:$0xff]  ;;  %v9239_v40 = vld [vmem:[#allocation2 + $0xcb] sm:$0xff] }
 0x237   : > { %16987 = vmatmul.mubr.bf16.gmra.mrb[204].mxu1 %v3445_v47  ;;  %v8791_v47 = vld [vmem:[#allocation2 + $0x102] sm:$0xff]  ;;  %v3787_v31 = vld [vmem:[#allocation2 + $0xd9] sm:$0xff] }
 0x238   : > { %16990 = vmatprep.mubr.msk.bf16.mxu1 %vm21838_vm0, %v25023_v50  ;;  %v8820_v22 = vpack.c.bf16 %v8792_v21, %v8791_v47  ;;  %v21674_v47 = vld [vmem:[%s24996_s4 + $0xb8] sm:$0xff]   ;;  %v21664_v21 = vld [vmem:[%s24996_s4 + $0x3a8] sm:$0xff]  }
 0x239   : > { %v3780_v36 = vld [vmem:[#allocation2 + $0xa1] sm:$0xff]  ;;  %v3789_v2 = vld [vmem:[#allocation2 + $0xe9] sm:$0xff] }
 0x23a   : > { %v9241_v62 = vld [vmem:[#allocation2 + $0xdb] sm:$0xff] }
 0x23d   : > { %18179 = vmatmul.mubr.bf16.gmra.mrb[116].mxu0 %v8818_v37  ;;  %v21663_v37 = vld [vmem:[%s24996_s4 + $0x3a0] sm:$0xff]  }
 0x23e   : > { %18182 = vmatprep.mubr.msk.bf16.mxu0 %vm21838_vm0, %v25023_v50 }
 0x23f   : > { %16991 = vmatmul.mubr.bf16.gmra.mrb[208].mxu1 %v3446_v35  ;;  %v8796_v35 = vld [vmem:[#allocation2 + $0x12a] sm:$0xff] }
 0x240   : > { %16994 = vmatprep.mubr.msk.bf16.mxu1 %vm21838_vm0, %v25023_v50 }
 0x245   : > { %18183 = vmatmul.mubr.bf16.gmra.mrb[120].mxu0 %v8819_v27  ;;  %v3807_v27 = vpack.c.bf16 %v3771_v1, %v3770_v46  ;;  %v9245_v1 = vld [vmem:[#allocation2 + $0xfb] sm:$0xff] }
 0x246   : > { %18186 = vmatprep.mubr.msk.bf16.mxu0 %vm21838_vm0, %v25023_v50 }
 0x247   : > { %16995 = vmatmul.mubr.bf16.gmra.mrb[212].mxu1 %v3447_v16  ;;  %v8795_v16 = vld [vmem:[#allocation2 + $0x122] sm:$0xff] }
 0x248   : > { %16998 = vmatprep.mubr.msk.bf16.mxu1 %vm21838_vm0, %v25023_v50  ;;  %v8822_v17 = vpack.c.bf16 %v8796_v35, %v8795_v16  ;;  %v21667_v16 = vld [vmem:[%s24996_s4 + $0x3b0] sm:$0xff]  }
 0x24d   : > { %18187 = vmatmul.mubr.bf16.gmra.mrb[124].mxu0 %v8820_v22  ;;  %v9226_v22 = vld [vmem:[#allocation2 + $0x63] sm:$0xff] }
 0x24e   : > { %18190 = vmatprep.mubr.msk.bf16.mxu0 %vm21838_vm0, %v25023_v50  ;;  %v9265_v35 = vpack.c.bf16 %v9227_v34, %v9226_v22  ;;  %v9247_v22 = vld [vmem:[#allocation2 + $0x10b] sm:$0xff]  ;;  %v3792_v34 = vld [vmem:[#allocation2 + $0x101] sm:$0xff] }
 0x24f   : > { %16999 = vmatmul.mubr.bf16.gmra.mrb[216].mxu1 %v3448_v61  ;;  %v8800_v61 = vld [vmem:[#allocation2 + $0x14a] sm:$0xff] }
 0x250   : > { %17002 = vmatprep.mubr.msk.bf16.mxu1 %vm21838_vm0, %v25023_v50 }
 0x255   : > { %18191 = vmatmul.mubr.bf16.gmra.mrb[128].mxu0 %v8821_v7  ;;  %v3773_v7 = vld [vmem:[#allocation2 + $0x69] sm:$0xff] }
 0x256   : > { %18194 = vmatprep.mubr.msk.bf16.mxu0 %vm21838_vm0, %v25023_v50 }
 0x257   : > { %17003 = vmatmul.mubr.bf16.gmra.mrb[220].mxu1 %v3449_v18  ;;  %v8799_v18 = vld [vmem:[#allocation2 + $0x142] sm:$0xff] }
 0x258   : > { %17006 = vmatprep.mubr.msk.bf16.mxu1 %vm21838_vm0, %v25023_v50  ;;  %v8824_v19 = vpack.c.bf16 %v8800_v61, %v8799_v18  ;;  %v3775_v18 = vld [vmem:[#allocation2 + $0x79] sm:$0xff] }
 0x25d   : > { %18195 = vmatmul.mubr.bf16.gmra.mrb[132].mxu0 %v8822_v17  ;;  %v3808_v17 = vpack.c.bf16 %v3773_v7, %v3772_v26  ;;  %v3793_v26 = vld [vmem:[#allocation2 + $0x109] sm:$0xff] }
 0x25e   : > { %18198 = vmatprep.mubr.msk.bf16.mxu0 %vm21838_vm0, %v25023_v50 }
 0x25f   : > { %17007 = vmatmul.mubr.bf16.gmra.mrb[224].mxu1 %v3450_v42  ;;  %v8825_v42 = vpack.c.bf16 %v8802_v15, %v8801_v38  ;;  %v9230_v38 = vld [vmem:[#allocation2 + $0x83] sm:$0xff] }
 0x260   : > { %17010 = vmatprep.mubr.msk.bf16.mxu1 %vm21838_vm0, %v25023_v50 }
 0x265   : > { %18199 = vmatmul.mubr.bf16.gmra.mrb[136].mxu0 %v8823_v6  ;;  %v9228_v6 = vld [vmem:[#allocation2 + $0x73] sm:$0xff] }
 0x266   : > { %18202 = vmatprep.mubr.msk.bf16.mxu0 %vm21838_vm0, %v25023_v50  ;;  %v9266_v61 = vpack.c.bf16 %v9229_v55, %v9228_v6  ;;  %v3794_v6 = vld [vmem:[#allocation2 + $0x111] sm:$0xff] }
 0x267   : > { %17011 = vmatmul.mubr.bf16.gmra.mrb[228].mxu1 %v3451_v33  ;;  %v3761_v33 = vld [vmem:[#allocation2 + $0x9] sm:$0xff] }
 0x268   : > { %17014 = vmatprep.mubr.msk.bf16.mxu1 %vm21838_vm0, %v25023_v50  ;;  %v3802_v20 = vpack.c.bf16 %v3761_v33, %v3760_v11  ;;  %v9231_v11 = vld [vmem:[#allocation2 + $0x8b] sm:$0xff]  ;;  %v3776_v33 = vld [vmem:[#allocation2 + $0x81] sm:$0xff] }
 0x26d   : > { %18203 = vmatmul.mubr.bf16.gmra.mrb[140].mxu0 %v8824_v19  ;;  %v3774_v19 = vld [vmem:[#allocation2 + $0x71] sm:$0xff] }
 0x26e   : > { %18206 = vmatprep.mubr.msk.bf16.mxu0 %vm21838_vm0, %v25023_v50  ;;  %v3809_v15 = vpack.c.bf16 %v3775_v18, %v3774_v19  ;;  %v9251_v19 = vld [vmem:[#allocation2 + $0x12b] sm:$0xff] }
 0x26f   : > { %17015 = vmatmul.mubr.bf16.gmra.mrb[232].mxu1 %v3452_v48  ;;  %v3762_v48 = vld [vmem:[#allocation2 + $0x11] sm:$0xff] }
 0x270   : > { %17034 = vmatprep.mubr.msk.bf16.mxu1 %vm21838_vm0, %v25023_v50  ;;  %v3803_v56 = vpack.c.bf16 %v3763_v60, %v3762_v48  ;;  %v9232_v60 = vld [vmem:[#allocation2 + $0x93] sm:$0xff] }
 0x271   : > { %v9268_v48 = vpack.c.bf16 %v9233_v3, %v9232_v60  ;;  %v3798_v60 = vld [vmem:[#allocation2 + $0x131] sm:$0xff] }
 0x275   : > { %18207 = vmatmul.mubr.bf16.gmra.mrb[144].mxu0 %v8825_v42  ;;  %v3777_v42 = vld [vmem:[#allocation2 + $0x89] sm:$0xff] }
 0x276   : > { %18210 = vmatprep.mubr.msk.bf16.mxu0 %vm21838_vm0, %v25023_v50  ;;  %v3810_v54 = vpack.c.bf16 %v3777_v42, %v3776_v33  ;;  %v9253_v42 = vld [vmem:[#allocation2 + $0x13b] sm:$0xff] }
 0x277   : > { %17035 = vmatmul.mubr.bf16.vlgmr.msra.gmra.mrb[152].mxu1 %v3802_v20  ;;  %v9267_v20 = vpack.c.bf16 %v9231_v11, %v9230_v38  ;;  %v3797_v38 = vld [vmem:[#allocation2 + $0x129] sm:$0xff] }
 0x278   : > { %17038 = vmatprep.mubr.msk.bf16.mxu1 %vm21838_vm0, %v25023_v50  ;;  %17119 = vmatpush3.bf16.msra.mxu1 %v21665_v41  ;;  %v9234_v41 = vld [vmem:[#allocation2 + $0xa3] sm:$0xff] }
 0x279   : > { %17120 = vmatprep.subr.bf16.mxu1 %v25023_v50 }
 0x27c   : > { %17121 = vmatpush3.bf16.msra.mxu1 %v21666_v4  ;;  %v9237_v4 = vld [vmem:[#allocation2 + $0xbb] sm:$0xff] }
 0x27d   : > { %18211 = vmatmul.mubr.bf16.gmra.mrb[148].mxu0 %v8826_v30  ;;  %17122 = vmatprep.subr.bf16.mxu1 %v25023_v50  ;;  %v3779_v30 = vld [vmem:[#allocation2 + $0x99] sm:$0xff]  ;;  %v9270_v51 = vpack.c.bf16 %v9237_v4, %v9236_v10  ;;  %v4216_v4 = vld [vmem:[#allocation2 + $0xa] sm:$0xff] }
 0x27e   : > { %18214 = vmatprep.mubr.msk.bf16.mxu0 %vm21838_vm0, %v25023_v50 }
 0x27f   : > { %17039 = vmatmul.mubr.bf16.gmra.mrb[156].mxu1 %v3803_v56  ;;  %v3778_v56 = vld [vmem:[#allocation2 + $0x91] sm:$0xff] }
 0x280   : > { %17042 = vmatprep.mubr.msk.bf16.mxu1 %vm21838_vm0, %v25023_v50  ;;  %17123 = vmatpush3.bf16.msra.mxu1 %v21668_v24  ;;  %v3811_v39 = vpack.c.bf16 %v3779_v30, %v3778_v56  ;;  %v3783_v24 = vld [vmem:[#allocation2 + $0xb9] sm:$0xff]  ;;  %v9255_v56 = vld [vmem:[#allocation2 + $0x14b] sm:$0xff] }
 0x281   : > { %17124 = vmatprep.subr.bf16.mxu1 %v25023_v50 }
 0x284   : > { %17125 = vmatpush3.bf16.msra.mxu1 %v21669_v9  ;;  %v3785_v9 = vld [vmem:[#allocation2 + $0xc9] sm:$0xff] }
 0x285   : > { %18215 = vmatmul.mubr.bf16.gmra.mrb[152].mxu0 %v8827_v44  ;;  %17126 = vmatprep.subr.bf16.mxu1 %v25023_v50  ;;  %v9269_v44 = vpack.c.bf16 %v9235_v57, %v9234_v41  ;;  %v3801_v41 = vld [vmem:[#allocation2 + $0x149] sm:$0xff] }
 0x286   : > { %18234 = vmatprep.mubr.msk.bf16.mxu0 %vm21838_vm0, %v25023_v50 }
 0x287   : > { %17043 = vmatmul.mubr.bf16.gmra.mrb[160].mxu1 %v3804_v43  ;;  %v3812_v43 = vpack.c.bf16 %v3781_v52, %v3780_v36  ;;  %v9257_v52 = vld [vmem:[#allocation2 + $0x15b] sm:$0xff] }
 0x288   : > { %17046 = vmatprep.mubr.msk.bf16.mxu1 %vm21838_vm0, %v25023_v50  ;;  %17127 = vmatpush3.bf16.msra.mxu1 %v21670_v14  ;;  %v9240_v14 = vld [vmem:[#allocation2 + $0xd3] sm:$0xff] }
 0x289   : > { %17128 = vmatprep.subr.bf16.mxu1 %v25023_v50  ;;  %v9272_v59 = vpack.c.bf16 %v9241_v62, %v9240_v14  ;;  %v4220_v62 = vld [vmem:[#allocation2 + $0x2a] sm:$0xff] }
 0x28c   : > { %17129 = vmatpush3.bf16.msra.mxu1 %v21671_v58  ;;  %v9243_v58 = vld [vmem:[#allocation2 + $0xeb] sm:$0xff] }
 0x28d   : > { %18235 = vmatmul.mubr.bf16.vlgmr.msra.gmra.mrb[72].mxu0 %v9262_v29  ;;  %17130 = vmatprep.subr.bf16.mxu1 %v25023_v50  ;;  %v9238_v29 = vld [vmem:[#allocation2 + $0xc3] sm:$0xff] }
 0x28e   : > { %18319 = vmatpush3.bf16.msra.mxu0 %v21659_v8  ;;  %18238 = vmatprep.mubr.msk.bf16.mxu0 %vm21838_vm0, %v25023_v50  ;;  %v3782_v8 = vld [vmem:[#allocation2 + $0xb1] sm:$0xff] }
 0x28f   : > { %17047 = vmatmul.mubr.bf16.gmra.mrb[164].mxu1 %v3805_v23  ;;  %18320 = vmatprep.subr.bf16.mxu0 %v25023_v50  ;;  %v3813_v49 = vpack.c.bf16 %v3783_v24, %v3782_v8  ;;  %v3784_v23 = vld [vmem:[#allocation2 + $0xc1] sm:$0xff]  ;;  %v9259_v8 = vld [vmem:[#allocation2 + $0x16b] sm:$0xff] }
 0x290   : > { %17050 = vmatprep.mubr.msk.bf16.mxu1 %vm21838_vm0, %v25023_v50  ;;  %17131 = vmatpush3.bf16.msra.mxu1 %v21672_v32  ;;  %v3814_v53 = vpack.c.bf16 %v3785_v9, %v3784_v23  ;;  %v9261_v9 = vld [vmem:[#allocation2 + $0x17b] sm:$0xff] }
 0x291   : > { %17132 = vmatprep.subr.bf16.mxu1 %v25023_v50 }
 0x292   : > { %18321 = vmatpush3.bf16.msra.mxu0 %v21660_v13  ;;  %v9271_v13 = vpack.c.bf16 %v9239_v40, %v9238_v29  ;;  %v4217_v40 = vld [vmem:[#allocation2 + $0x12] sm:$0xff] }
 0x293   : > { %18322 = vmatprep.subr.bf16.mxu0 %v25023_v50 }
 0x294   : > { %17133 = vmatpush3.bf16.msra.mxu1 %v21674_v47 }
 0x295   : > { %18239 = vmatmul.mubr.bf16.gmra.mrb[76].mxu0 %v9263_v0  ;;  %17218 = vmatprep.subr.bf16.mxu1 %v25023_v50 }
 0x296   : > { %18242 = vmatprep.mubr.msk.bf16.mxu0 %vm21838_vm0, %v25023_v50  ;;  %18323 = vmatpush3.bf16.msra.mxu0 %v21661_v25  ;;  %v3786_v25 = vld [vmem:[#allocation2 + $0xd1] sm:$0xff] }
 0x297   : > { %17051 = vmatmul.mubr.bf16.gmra.mrb[168].mxu1 %v3806_v63  ;;  %18324 = vmatprep.subr.bf16.mxu0 %v25023_v50  ;;  %v3815_v0 = vpack.c.bf16 %v3787_v31, %v3786_v25  ;;  %v9242_v63 = vld [vmem:[#allocation2 + $0xe3] sm:$0xff] }
 0x298   : > { %17054 = vmatprep.mubr.msk.bf16.mxu1 %vm21838_vm0, %v25023_v50  ;;  %v9273_v32 = vpack.c.bf16 %v9243_v58, %v9242_v63  ;;  %v21681_v31 = vld [vmem:[%s24996_s4 + $0xc0] sm:$0xff]   ;;  %v21682_v25 = vld [vmem:[%s24996_s4 + $0xc8] sm:$0xff]   ;;  %v9675_v63 = vld [vmem:[#allocation2 + $0x34] sm:$0xff] }
 0x299   : > { %v21675_v58 = vld [vmem:[%s24996_s4 + $0x3c0] sm:$0xff]  }
 0x29a   : > { %18325 = vmatpush3.bf16.msra.mxu0 %v21662_v5  ;;  %v3788_v5 = vld [vmem:[#allocation2 + $0xe1] sm:$0xff] }
 0x29b   : > { %18326 = vmatprep.subr.bf16.mxu0 %v25023_v50  ;;  %v3816_v28 = vpack.c.bf16 %v3789_v2, %v3788_v5  ;;  %v4222_v5 = vld [vmem:[#allocation2 + $0x3a] sm:$0xff] }
 0x29d   : > { %18243 = vmatmul.mubr.bf16.gmra.mrb[80].mxu0 %v9264_v45  ;;  %v3791_v45 = vld [vmem:[#allocation2 + $0xf9] sm:$0xff] }
 0x29e   : > { %18246 = vmatprep.mubr.msk.bf16.mxu0 %vm21838_vm0, %v25023_v50  ;;  %18327 = vmatpush3.bf16.msra.mxu0 %v21663_v37  ;;  %v9244_v37 = vld [vmem:[#allocation2 + $0xf3] sm:$0xff] }
 0x29f   : > { %17055 = vmatmul.mubr.bf16.gmra.mrb[172].mxu1 %v3807_v27  ;;  %18328 = vmatprep.subr.bf16.mxu0 %v25023_v50  ;;  %v9274_v46 = vpack.c.bf16 %v9245_v1, %v9244_v37  ;;  %v3790_v27 = vld [vmem:[#allocation2 + $0xf1] sm:$0xff]  ;;  %v21676_v37 = vld [vmem:[%s24996_s4 + $0x3c8] sm:$0xff]  }
 0x2a0   : > { %17058 = vmatprep.mubr.msk.bf16.mxu1 %vm21838_vm0, %v25023_v50  ;;  %v3817_v47 = vpack.c.bf16 %v3791_v45, %v3790_v27  ;;  %v9677_v45 = vld [vmem:[#allocation2 + $0x44] sm:$0xff]  ;;  %v21685_v27 = vld [vmem:[%s24996_s4 + $0xd8] sm:$0xff]  }
 0x2a2   : > { %18329 = vmatpush3.bf16.msra.mxu0 %v21664_v21  ;;  %v9246_v21 = vld [vmem:[#allocation2 + $0x103] sm:$0xff] }
 0x2a3   : > { %18330 = vmatprep.subr.bf16.mxu0 %v25023_v50  ;;  %v9275_v7 = vpack.c.bf16 %v9247_v22, %v9246_v21  ;;  %v4224_v21 = vld [vmem:[#allocation2 + $0x4a] sm:$0xff] }
 0x2a4   : > { %v21677_v22 = vld [vmem:[%s24996_s4 + $0x3d0] sm:$0xff]  }
 0x2a5   : > { %18247 = vmatmul.mubr.bf16.gmra.mrb[84].mxu0 %v9265_v35  ;;  %v9249_v35 = vld [vmem:[#allocation2 + $0x11b] sm:$0xff] }
 0x2a6   : > { %18250 = vmatprep.mubr.msk.bf16.mxu0 %vm21838_vm0, %v25023_v50  ;;  %18331 = vmatpush3.bf16.msra.mxu0 %v21667_v16  ;;  %v3818_v16 = vpack.c.bf16 %v3793_v26, %v3792_v34  ;;  %v21686_v26 = vld [vmem:[%s24996_s4 + $0xe0] sm:$0xff]  }
 0x2a7   : > { %17059 = vmatmul.mubr.bf16.gmra.mrb[176].mxu1 %v3808_v17  ;;  %18332 = vmatprep.subr.bf16.mxu0 %v25023_v50  ;;  %v9248_v17 = vld [vmem:[#allocation2 + $0x113] sm:$0xff] }
 0x2a8   : > { %17062 = vmatprep.mubr.msk.bf16.mxu1 %vm21838_vm0, %v25023_v50  ;;  %v9276_v55 = vpack.c.bf16 %v9249_v35, %v9248_v17  ;;  %v9680_v35 = vld [vmem:[#allocation2 + $0x5c] sm:$0xff]  ;;  %v21687_v17 = vld [vmem:[%s24996_s4 + $0xe8] sm:$0xff]  }
 0x2aa   : > { %18333 = vmatpush3.bf16.msra.mxu0 %v21673_v12  ;;  %v3795_v12 = vld [vmem:[#allocation2 + $0x119] sm:$0xff] }
 0x2ab   : > { %18418 = vmatprep.subr.bf16.mxu0 %v25023_v50  ;;  %v3819_v18 = vpack.c.bf16 %v3795_v12, %v3794_v6  ;;  %v9679_v12 = vld [vmem:[#allocation2 + $0x54] sm:$0xff]  ;;  %v21679_v6 = vld [vmem:[%s24996_s4 + $0x3e0] sm:$0xff]  }
 0x2ad   : > { %18251 = vmatmul.mubr.bf16.gmra.mrb[88].mxu0 %v9266_v61  ;;  %v9250_v61 = vld [vmem:[#allocation2 + $0x123] sm:$0xff] }
 0x2ae   : > { %18254 = vmatprep.mubr.msk.bf16.mxu0 %vm21838_vm0, %v25023_v50  ;;  %v9277_v11 = vpack.c.bf16 %v9251_v19, %v9250_v61  ;;  %v4225_v61 = vld [vmem:[#allocation2 + $0x52] sm:$0xff] }
 0x2af   : > { %17063 = vmatmul.mubr.bf16.gmra.mrb[180].mxu1 %v3809_v15  ;;  %v3796_v15 = vld [vmem:[#allocation2 + $0x121] sm:$0xff]  ;;  %v21688_v19 = vld [vmem:[%s24996_s4 + $0xf0] sm:$0xff]  }
 0x2b0   : > { %17066 = vmatprep.mubr.msk.bf16.mxu1 %vm21838_vm0, %v25023_v50  ;;  %v3820_v33 = vpack.c.bf16 %v3797_v38, %v3796_v15  ;;  %v21680_v38 = vld [vmem:[%s24996_s4 + $0x3e8] sm:$0xff]  }
 0x2b5   : > { %18255 = vmatmul.mubr.bf16.gmra.mrb[92].mxu0 %v9267_v20  ;;  %v9252_v20 = vld [vmem:[#allocation2 + $0x133] sm:$0xff] }
 0x2b6   : > { %18258 = vmatprep.mubr.msk.bf16.mxu0 %vm21838_vm0, %v25023_v50  ;;  %v9278_v3 = vpack.c.bf16 %v9253_v42, %v9252_v20  ;;  %v21690_v42 = vld [vmem:[%s24996_s4 + $0xf8] sm:$0xff]   ;;  %v4227_v20 = vld [vmem:[#allocation2 + $0x62] sm:$0xff] }
 0x2b7   : > { %17067 = vmatmul.mubr.bf16.gmra.mrb[184].mxu1 %v3810_v54  ;;  %v3799_v54 = vld [vmem:[#allocation2 + $0x139] sm:$0xff] }
 0x2b8   : > { %17070 = vmatprep.mubr.msk.bf16.mxu1 %vm21838_vm0, %v25023_v50  ;;  %v3821_v30 = vpack.c.bf16 %v3799_v54, %v3798_v60  ;;  %v4228_v54 = vld [vmem:[#allocation2 + $0x6a] sm:$0xff] }
 0x2bd   : > { %18259 = vmatmul.mubr.bf16.gmra.mrb[96].mxu0 %v9268_v48  ;;  %v9254_v48 = vld [vmem:[#allocation2 + $0x143] sm:$0xff] }
 0x2be   : > { %18262 = vmatprep.mubr.msk.bf16.mxu0 %vm21838_vm0, %v25023_v50  ;;  %v9279_v57 = vpack.c.bf16 %v9255_v56, %v9254_v48  ;;  %v21689_v48 = vld [vmem:[%s24996_s4 + $0x3f8] sm:$0xff]  }
 0x2bf   : > { %17071 = vmatmul.mubr.bf16.gmra.mrb[188].mxu1 %v3811_v39  ;;  %v3800_v39 = vld [vmem:[#allocation2 + $0x141] sm:$0xff] }
 0x2c0   : > { %17074 = vmatprep.mubr.msk.bf16.mxu1 %vm21838_vm0, %v25023_v50  ;;  %v3822_v36 = vpack.c.bf16 %v3801_v41, %v3800_v39  ;;  %v9684_v56 = vld [vmem:[#allocation2 + $0x7c] sm:$0xff]  ;;  %v9683_v39 = vld [vmem:[#allocation2 + $0x74] sm:$0xff] }
 0x2c1   : > { %v4230_v41 = vld [vmem:[#allocation2 + $0x7a] sm:$0xff] }
 0x2c5   : > { %18263 = vmatmul.mubr.bf16.gmra.mrb[100].mxu0 %v9269_v44  ;;  %v9256_v44 = vld [vmem:[#allocation2 + $0x153] sm:$0xff] }
 0x2c6   : > { %18266 = vmatprep.mubr.msk.bf16.mxu0 %vm21838_vm0, %v25023_v50  ;;  %v9280_v10 = vpack.c.bf16 %v9257_v52, %v9256_v44  ;;  %v9685_v44 = vld [vmem:[#allocation2 + $0x84] sm:$0xff] }
 0x2c7   : > { %17075 = vmatmul.mubr.bf16.gmra.mrb[192].mxu1 %v3812_v43  ;;  %v4215_v43 = vld [vmem:[#allocation2 + $0x2] sm:$0xff] }
 0x2c8   : > { %17078 = vmatprep.mubr.msk.bf16.mxu1 %vm21838_vm0, %v25023_v50  ;;  %v4257_v24 = vpack.c.bf16 %v4216_v4, %v4215_v43  ;;  %v9686_v43 = vld [vmem:[#allocation2 + $0x8c] sm:$0xff]  ;;  %v4231_v4 = vld [vmem:[#allocation2 + $0x82] sm:$0xff] }
 0x2cd   : > { %18267 = vmatmul.mubr.bf16.gmra.mrb[104].mxu0 %v9270_v51  ;;  %v9258_v51 = vld [vmem:[#allocation2 + $0x163] sm:$0xff] }
 0x2ce   : > { %18270 = vmatprep.mubr.msk.bf16.mxu0 %vm21838_vm0, %v25023_v50  ;;  %v9281_v29 = vpack.c.bf16 %v9259_v8, %v9258_v51  ;;  %v9688_v8 = vld [vmem:[#allocation2 + $0x9c] sm:$0xff] }
 0x2cf   : > { %17079 = vmatmul.mubr.bf16.gmra.mrb[196].mxu1 %v3813_v49  ;;  %v4218_v49 = vld [vmem:[#allocation2 + $0x1a] sm:$0xff] }
 0x2d0   : > { %17082 = vmatprep.mubr.msk.bf16.mxu1 %vm21838_vm0, %v25023_v50  ;;  %v4258_v23 = vpack.c.bf16 %v4218_v49, %v4217_v40  ;;  %v9687_v49 = vld [vmem:[#allocation2 + $0x94] sm:$0xff] }
 0x2d1   : > { %v9723_v40 = vpack.c.bf16 %v9688_v8, %v9687_v49  ;;  %v4253_v49 = vld [vmem:[#allocation2 + $0x132] sm:$0xff] }
 0x2d5   : > { %18271 = vmatmul.mubr.bf16.gmra.mrb[108].mxu0 %v9271_v13  ;;  %v9260_v13 = vld [vmem:[#allocation2 + $0x173] sm:$0xff] }
 0x2d6   : > { %18274 = vmatprep.mubr.msk.bf16.mxu0 %vm21838_vm0, %v25023_v50  ;;  %v9282_v14 = vpack.c.bf16 %v9261_v9, %v9260_v13  ;;  %v9689_v13 = vld [vmem:[#allocation2 + $0xa4] sm:$0xff] }
 0x2d7   : > { %17083 = vmatmul.mubr.bf16.gmra.mrb[200].mxu1 %v3814_v53  ;;  %v4219_v53 = vld [vmem:[#allocation2 + $0x22] sm:$0xff] }
 0x2d8   : > { %17086 = vmatprep.mubr.msk.bf16.mxu1 %vm21838_vm0, %v25023_v50 }
 0x2dd   : > { %18275 = vmatmul.mubr.bf16.gmra.mrb[112].mxu0 %v9272_v59  ;;  %v4259_v59 = vpack.c.bf16 %v4220_v62, %v4219_v53  ;;  %v9690_v53 = vld [vmem:[#allocation2 + $0xac] sm:$0xff]  ;;  %v4235_v62 = vld [vmem:[#allocation2 + $0xa2] sm:$0xff] }
 0x2de   : > { %18278 = vmatprep.mubr.msk.bf16.mxu0 %vm21838_vm0, %v25023_v50 }
 0x2df   : > { %17087 = vmatmul.mubr.bf16.gmra.mrb[204].mxu1 %v3815_v0  ;;  %v9676_v0 = vld [vmem:[#allocation2 + $0x3c] sm:$0xff] }
 0x2e0   : > { %17090 = vmatprep.mubr.msk.bf16.mxu1 %vm21838_vm0, %v25023_v50  ;;  %v9717_v2 = vpack.c.bf16 %v9676_v0, %v9675_v63  ;;  %v9691_v0 = vld [vmem:[#allocation2 + $0xb4] sm:$0xff] }
 0x2e1   : > { %v4238_v63 = vld [vmem:[#allocation2 + $0xba] sm:$0xff] }
 0x2e5   : > { %18279 = vmatmul.mubr.bf16.gmra.mrb[116].mxu0 %v9273_v32  ;;  %v4221_v32 = vld [vmem:[#allocation2 + $0x32] sm:$0xff] }
 0x2e6   : > { %18282 = vmatprep.mubr.msk.bf16.mxu0 %vm21838_vm0, %v25023_v50  ;;  %v4260_v1 = vpack.c.bf16 %v4222_v5, %v4221_v32  ;;  %v4237_v5 = vld [vmem:[#allocation2 + $0xb2] sm:$0xff]  ;;  %v9693_v32 = vld [vmem:[#allocation2 + $0xc4] sm:$0xff] }
 0x2e7   : > { %17091 = vmatmul.mubr.bf16.gmra.mrb[208].mxu1 %v3816_v28  ;;  %v21684_v28 = vld [vmem:[%s24996_s4 + $0xd0] sm:$0xff]  }
 0x2e8   : > { %17094 = vmatprep.mubr.msk.bf16.mxu1 %vm21838_vm0, %v25023_v50 }
 0x2ed   : > { %18283 = vmatmul.mubr.bf16.gmra.mrb[120].mxu0 %v9274_v46  ;;  %v9678_v46 = vld [vmem:[#allocation2 + $0x4c] sm:$0xff] }
 0x2ee   : > { %18286 = vmatprep.mubr.msk.bf16.mxu0 %vm21838_vm0, %v25023_v50  ;;  %v9718_v34 = vpack.c.bf16 %v9678_v46, %v9677_v45 }
 0x2ef   : > { %17095 = vmatmul.mubr.bf16.gmra.mrb[212].mxu1 %v3817_v47  ;;  %v4223_v47 = vld [vmem:[#allocation2 + $0x42] sm:$0xff] }
 0x2f0   : > { %17098 = vmatprep.mubr.msk.bf16.mxu1 %vm21838_vm0, %v25023_v50 }
 0x2f5   : > { %18287 = vmatmul.mubr.bf16.gmra.mrb[124].mxu0 %v9275_v7  ;;  %v4261_v7 = vpack.c.bf16 %v4224_v21, %v4223_v47  ;;  %v9695_v47 = vld [vmem:[#allocation2 + $0xd4] sm:$0xff] }
 0x2f6   : > { %18290 = vmatprep.mubr.msk.bf16.mxu0 %vm21838_vm0, %v25023_v50  ;;  %v4242_v21 = vld [vmem:[#allocation2 + $0xda] sm:$0xff] }
 0x2f7   : > { %17099 = vmatmul.mubr.bf16.gmra.mrb[216].mxu1 %v3818_v16  ;;  %v21678_v16 = vld [vmem:[%s24996_s4 + $0x3d8] sm:$0xff]  }
 0x2f8   : > { %17102 = vmatprep.mubr.msk.bf16.mxu1 %vm21838_vm0, %v25023_v50 }
 0x2fd   : > { %18291 = vmatmul.mubr.bf16.gmra.mrb[128].mxu0 %v9276_v55  ;;  %v4226_v55 = vld [vmem:[#allocation2 + $0x5a] sm:$0xff] }
 0x2fe   : > { %18294 = vmatprep.mubr.msk.bf16.mxu0 %vm21838_vm0, %v25023_v50  ;;  %v4262_v15 = vpack.c.bf16 %v4226_v55, %v4225_v61  ;;  %v4246_v61 = vld [vmem:[#allocation2 + $0xfa] sm:$0xff] }
 0x2ff   : > { %17103 = vmatmul.mubr.bf16.gmra.mrb[220].mxu1 %v3819_v18  ;;  %v9719_v18 = vpack.c.bf16 %v9680_v35, %v9679_v12  ;;  %v4243_v35 = vld [vmem:[#allocation2 + $0xe2] sm:$0xff] }
 0x300   : > { %17106 = vmatprep.mubr.msk.bf16.mxu1 %vm21838_vm0, %v25023_v50 }
 0x305   : > { %18295 = vmatmul.mubr.bf16.gmra.mrb[132].mxu0 %v9277_v11  ;;  %v9681_v11 = vld [vmem:[#allocation2 + $0x64] sm:$0xff] }
 0x306   : > { %18298 = vmatprep.mubr.msk.bf16.mxu0 %vm21838_vm0, %v25023_v50 }
 0x307   : > { %17107 = vmatmul.mubr.bf16.gmra.mrb[224].mxu1 %v3820_v33  ;;  %v9682_v33 = vld [vmem:[#allocation2 + $0x6c] sm:$0xff] }
 0x308   : > { %17110 = vmatprep.mubr.msk.bf16.mxu1 %vm21838_vm0, %v25023_v50  ;;  %v9720_v60 = vpack.c.bf16 %v9682_v33, %v9681_v11  ;;  %v9701_v11 = vld [vmem:[#allocation2 + $0x104] sm:$0xff]  ;;  %v9702_v33 = vld [vmem:[#allocation2 + $0x10c] sm:$0xff] }
 0x30d   : > { %18299 = vmatmul.mubr.bf16.gmra.mrb[136].mxu0 %v9278_v3  ;;  %v21683_v3 = vld [vmem:[%s24996_s4 + $0x3f0] sm:$0xff]  }
 0x30e   : > { %18302 = vmatprep.mubr.msk.bf16.mxu0 %vm21838_vm0, %v25023_v50 }
 0x30f   : > { %17111 = vmatmul.mubr.bf16.gmra.mrb[228].mxu1 %v3821_v30  ;;  %v4263_v30 = vpack.c.bf16 %v4228_v54, %v4227_v20  ;;  %v4248_v20 = vld [vmem:[#allocation2 + $0x10a] sm:$0xff]  ;;  %v9730_v54 = vpack.c.bf16 %v9702_v33, %v9701_v11 }
 0x310   : > { %17114 = vmatprep.mubr.msk.bf16.mxu1 %vm21838_vm0, %v25023_v50  ;;  %v4679_v11 = vld [vmem:[#allocation2 + $0x4b] sm:$0xff] }
 0x311   : > { %v21693_v33 = vld [vmem:[%s24996_s4 + $0x410] sm:$0xff]  }
 0x315   : > { %18303 = vmatmul.mubr.bf16.gmra.mrb[140].mxu0 %v9279_v57  ;;  %v9721_v57 = vpack.c.bf16 %v9684_v56, %v9683_v39  ;;  %v4249_v39 = vld [vmem:[#allocation2 + $0x112] sm:$0xff] }
 0x316   : > { %18306 = vmatprep.mubr.msk.bf16.mxu0 %vm21838_vm0, %v25023_v50 }
 0x317   : > { %17115 = vmatmul.mubr.bf16.gmra.mrb[232].mxu1 %v3822_v36  ;;  %v4229_v36 = vld [vmem:[#allocation2 + $0x72] sm:$0xff] }
 0x318   : > { %17134 = vmatprep.mubr.msk.bf16.mxu1 %vm21838_vm0, %v25023_v50  ;;  %v4264_v52 = vpack.c.bf16 %v4230_v41, %v4229_v36  ;;  %v9706_v36 = vld [vmem:[#allocation2 + $0x12c] sm:$0xff] }
 0x31d   : > { %18307 = vmatmul.mubr.bf16.gmra.mrb[144].mxu0 %v9280_v10  ;;  %v4232_v10 = vld [vmem:[#allocation2 + $0x8a] sm:$0xff] }
 0x31e   : > { %18310 = vmatprep.mubr.msk.bf16.mxu0 %vm21838_vm0, %v25023_v50  ;;  %v4265_v51 = vpack.c.bf16 %v4232_v10, %v4231_v4  ;;  %v9708_v10 = vld [vmem:[#allocation2 + $0x13c] sm:$0xff] }
 0x31f   : > { %17135 = vmatmul.mubr.bf16.vlgmr.msra.gmra.mrb[152].mxu1 %v4257_v24  ;;  %v9722_v24 = vpack.c.bf16 %v9686_v43, %v9685_v44  ;;  %v4252_v44 = vld [vmem:[#allocation2 + $0x12a] sm:$0xff] }
 0x320   : > { %17138 = vmatprep.mubr.msk.bf16.mxu1 %vm21838_vm0, %v25023_v50  ;;  %17219 = vmatpush3.bf16.msra.mxu1 %v21681_v31  ;;  %v9724_v31 = vpack.c.bf16 %v9690_v53, %v9689_v13  ;;  %v4256_v13 = vld [vmem:[#allocation2 + $0x14a] sm:$0xff] }
 0x321   : > { %17220 = vmatprep.subr.bf16.mxu1 %v25023_v50 }
 0x324   : > { %17221 = vmatpush3.bf16.msra.mxu1 %v21682_v25  ;;  %v9692_v25 = vld [vmem:[#allocation2 + $0xbc] sm:$0xff] }
 0x325   : > { %18311 = vmatmul.mubr.bf16.gmra.mrb[148].mxu0 %v9281_v29  ;;  %17222 = vmatprep.subr.bf16.mxu1 %v25023_v50  ;;  %v4234_v29 = vld [vmem:[#allocation2 + $0x9a] sm:$0xff] }
 0x326   : > { %18314 = vmatprep.mubr.msk.bf16.mxu0 %vm21838_vm0, %v25023_v50 }
 0x327   : > { %17139 = vmatmul.mubr.bf16.gmra.mrb[156].mxu1 %v4258_v23  ;;  %v4233_v23 = vld [vmem:[#allocation2 + $0x92] sm:$0xff] }
 0x328   : > { %17142 = vmatprep.mubr.msk.bf16.mxu1 %vm21838_vm0, %v25023_v50  ;;  %17223 = vmatpush3.bf16.msra.mxu1 %v21684_v28  ;;  %v4266_v9 = vpack.c.bf16 %v4234_v29, %v4233_v23  ;;  %v9694_v28 = vld [vmem:[#allocation2 + $0xcc] sm:$0xff] }
 0x329   : > { %17224 = vmatprep.subr.bf16.mxu1 %v25023_v50  ;;  %v9726_v45 = vpack.c.bf16 %v9694_v28, %v9693_v32  ;;  %v9710_v23 = vld [vmem:[#allocation2 + $0x14c] sm:$0xff] }
 0x32a   : > { %v4672_v28 = vld [vmem:[#allocation2 + $0x13] sm:$0xff] }
 0x32c   : > { %17225 = vmatpush3.bf16.msra.mxu1 %v21685_v27  ;;  %v9696_v27 = vld [vmem:[#allocation2 + $0xdc] sm:$0xff] }
 0x32d   : > { %18315 = vmatmul.mubr.bf16.gmra.mrb[152].mxu0 %v9282_v14  ;;  %17226 = vmatprep.subr.bf16.mxu1 %v25023_v50  ;;  %v4236_v14 = vld [vmem:[#allocation2 + $0xaa] sm:$0xff] }
 0x32e   : > { %18334 = vmatprep.mubr.msk.bf16.mxu0 %vm21838_vm0, %v25023_v50 }
 0x32f   : > { %17143 = vmatmul.mubr.bf16.gmra.mrb[160].mxu1 %v4259_v59  ;;  %v4267_v59 = vpack.c.bf16 %v4236_v14, %v4235_v62  ;;  %v9712_v14 = vld [vmem:[#allocation2 + $0x15c] sm:$0xff] }
 0x330   : > { %17146 = vmatprep.mubr.msk.bf16.mxu1 %vm21838_vm0, %v25023_v50  ;;  %17227 = vmatpush3.bf16.msra.mxu1 %v21686_v26 }
 0x331   : > { %17228 = vmatprep.subr.bf16.mxu1 %v25023_v50 }
 0x334   : > { %17229 = vmatpush3.bf16.msra.mxu1 %v21687_v17  ;;  %v4244_v17 = vld [vmem:[#allocation2 + $0xea] sm:$0xff] }
 0x335   : > { %18335 = vmatmul.mubr.bf16.vlgmr.msra.gmra.mrb[72].mxu0 %v9717_v2  ;;  %17230 = vmatprep.subr.bf16.mxu1 %v25023_v50  ;;  %v4268_v2 = vpack.c.bf16 %v4238_v63, %v4237_v5  ;;  %v4271_v55 = vpack.c.bf16 %v4244_v17, %v4243_v35  ;;  %v9714_v5 = vld [vmem:[#allocation2 + $0x16c] sm:$0xff]  ;;  %v4677_v35 = vld [vmem:[#allocation2 + $0x3b] sm:$0xff] }
 0x336   : > { %18419 = vmatpush3.bf16.msra.mxu0 %v21675_v58  ;;  %18338 = vmatprep.mubr.msk.bf16.mxu0 %vm21838_vm0, %v25023_v50  ;;  %v9725_v58 = vpack.c.bf16 %v9692_v25, %v9691_v0  ;;  %v4671_v25 = vld [vmem:[#allocation2 + $0xb] sm:$0xff] }
 0x337   : > { %17147 = vmatmul.mubr.bf16.gmra.mrb[164].mxu1 %v4260_v1  ;;  %18420 = vmatprep.subr.bf16.mxu0 %v25023_v50  ;;  %v4239_v1 = vld [vmem:[#allocation2 + $0xc2] sm:$0xff] }
 0x338   : > { %17150 = vmatprep.mubr.msk.bf16.mxu1 %vm21838_vm0, %v25023_v50  ;;  %17231 = vmatpush3.bf16.msra.mxu1 %v21688_v19 }
 0x339   : > { %17232 = vmatprep.subr.bf16.mxu1 %v25023_v50 }
 0x33a   : > { %18421 = vmatpush3.bf16.msra.mxu0 %v21676_v37  ;;  %v4240_v37 = vld [vmem:[#allocation2 + $0xca] sm:$0xff] }
 0x33b   : > { %18422 = vmatprep.subr.bf16.mxu0 %v25023_v50  ;;  %v4269_v46 = vpack.c.bf16 %v4240_v37, %v4239_v1  ;;  %v9716_v37 = vld [vmem:[#allocation2 + $0x17c] sm:$0xff] }
 0x33c   : > { %17233 = vmatpush3.bf16.msra.mxu1 %v21690_v42  ;;  %v4247_v42 = vld [vmem:[#allocation2 + $0x102] sm:$0xff] }
 0x33d   : > { %18339 = vmatmul.mubr.bf16.gmra.mrb[76].mxu0 %v9718_v34  ;;  %17318 = vmatprep.subr.bf16.mxu1 %v25023_v50  ;;  %v4241_v34 = vld [vmem:[#allocation2 + $0xd2] sm:$0xff] }
 0x33e   : > { %18342 = vmatprep.mubr.msk.bf16.mxu0 %vm21838_vm0, %v25023_v50  ;;  %18423 = vmatpush3.bf16.msra.mxu0 %v21677_v22  ;;  %v9727_v22 = vpack.c.bf16 %v9696_v27, %v9695_v47  ;;  %v4270_v26 = vpack.c.bf16 %v4242_v21, %v4241_v34  ;;  %v4675_v27 = vld [vmem:[#allocation2 + $0x2b] sm:$0xff] }
 0x33f   : > { %17151 = vmatmul.mubr.bf16.gmra.mrb[168].mxu1 %v4261_v7  ;;  %18424 = vmatprep.subr.bf16.mxu0 %v25023_v50  ;;  %v9697_v7 = vld [vmem:[#allocation2 + $0xe4] sm:$0xff] }
 0x340   : > { %17154 = vmatprep.mubr.msk.bf16.mxu1 %vm21838_vm0, %v25023_v50  ;;  %v10130_v34 = vld [vmem:[#allocation2 + $0x48] sm:$0xff] }
 0x342   : > { %18425 = vmatpush3.bf16.msra.mxu0 %v21678_v16  ;;  %v9698_v16 = vld [vmem:[#allocation2 + $0xec] sm:$0xff] }
 0x343   : > { %18426 = vmatprep.subr.bf16.mxu0 %v25023_v50  ;;  %v9728_v12 = vpack.c.bf16 %v9698_v16, %v9697_v7  ;;  %v10131_v7 = vld [vmem:[#allocation2 + $0x50] sm:$0xff]  ;;  %v21691_v16 = vld [vmem:[%s24996_s4 + $0x400] sm:$0xff]  }
 0x344   : > { %v10172_v17 = vpack.c.bf16 %v10131_v7, %v10130_v34  ;;  %v10146_v34 = vld [vmem:[#allocation2 + $0xc8] sm:$0xff]  ;;  %v4693_v7 = vld [vmem:[#allocation2 + $0xbb] sm:$0xff] }
 0x345   : > { %18343 = vmatmul.mubr.bf16.gmra.mrb[80].mxu0 %v9719_v18  ;;  %v9699_v18 = vld [vmem:[#allocation2 + $0xf4] sm:$0xff] }
 0x346   : > { %18346 = vmatprep.mubr.msk.bf16.mxu0 %vm21838_vm0, %v25023_v50  ;;  %18427 = vmatpush3.bf16.msra.mxu0 %v21679_v6  ;;  %v9700_v6 = vld [vmem:[#allocation2 + $0xfc] sm:$0xff] }
 0x347   : > { %17155 = vmatmul.mubr.bf16.gmra.mrb[172].mxu1 %v4262_v15  ;;  %18428 = vmatprep.subr.bf16.mxu0 %v25023_v50  ;;  %v9729_v19 = vpack.c.bf16 %v9700_v6, %v9699_v18  ;;  %v4245_v15 = vld [vmem:[#allocation2 + $0xf2] sm:$0xff]  ;;  %v21692_v18 = vld [vmem:[%s24996_s4 + $0x408] sm:$0xff]  }
 0x348   : > { %17158 = vmatprep.mubr.msk.bf16.mxu1 %vm21838_vm0, %v25023_v50  ;;  %v21700_v6 = vld [vmem:[%s24996_s4 + $0x110] sm:$0xff]  }
 0x34a   : > { %18429 = vmatpush3.bf16.msra.mxu0 %v21680_v38  ;;  %v4272_v38 = vpack.c.bf16 %v4246_v61, %v4245_v15  ;;  %v10133_v61 = vld [vmem:[#allocation2 + $0x60] sm:$0xff]  ;;  %v10132_v15 = vld [vmem:[#allocation2 + $0x58] sm:$0xff] }
 0x34b   : > { %18430 = vmatprep.subr.bf16.mxu0 %v25023_v50 }
 0x34d   : > { %18347 = vmatmul.mubr.bf16.gmra.mrb[84].mxu0 %v9720_v60  ;;  %v9704_v60 = vld [vmem:[#allocation2 + $0x11c] sm:$0xff] }
 0x34e   : > { %18350 = vmatprep.mubr.msk.bf16.mxu0 %vm21838_vm0, %v25023_v50  ;;  %18431 = vmatpush3.bf16.msra.mxu0 %v21683_v3  ;;  %v4273_v3 = vpack.c.bf16 %v4248_v20, %v4247_v42  ;;  %v10173_v42 = vpack.c.bf16 %v10133_v61, %v10132_v15  ;;  %v10150_v15 = vld [vmem:[#allocation2 + $0xe8] sm:$0xff] }
 0x34f   : > { %17159 = vmatmul.mubr.bf16.gmra.mrb[176].mxu1 %v4263_v30  ;;  %18432 = vmatprep.subr.bf16.mxu0 %v25023_v50  ;;  %v9703_v30 = vld [vmem:[#allocation2 + $0x114] sm:$0xff] }
 0x350   : > { %17162 = vmatprep.mubr.msk.bf16.mxu1 %vm21838_vm0, %v25023_v50  ;;  %v9731_v56 = vpack.c.bf16 %v9704_v60, %v9703_v30  ;;  %v10134_v60 = vld [vmem:[#allocation2 + $0x68] sm:$0xff] }
 0x351   : > { %v21703_v30 = vld [vmem:[%s24996_s4 + $0x128] sm:$0xff]  }
 0x352   : > { %18433 = vmatpush3.bf16.msra.mxu0 %v21689_v48  ;;  %v4250_v48 = vld [vmem:[#allocation2 + $0x11a] sm:$0xff] }
 0x353   : > { %18518 = vmatprep.subr.bf16.mxu0 %v25023_v50  ;;  %v4274_v41 = vpack.c.bf16 %v4250_v48, %v4249_v39  ;;  %v10135_v48 = vld [vmem:[#allocation2 + $0x70] sm:$0xff]  ;;  %v21695_v39 = vld [vmem:[%s24996_s4 + $0x420] sm:$0xff]  }
 0x355   : > { %18351 = vmatmul.mubr.bf16.gmra.mrb[88].mxu0 %v9721_v57  ;;  %v9705_v57 = vld [vmem:[#allocation2 + $0x124] sm:$0xff] }
 0x356   : > { %18354 = vmatprep.mubr.msk.bf16.mxu0 %vm21838_vm0, %v25023_v50  ;;  %v9732_v43 = vpack.c.bf16 %v9706_v36, %v9705_v57  ;;  %v4680_v57 = vld [vmem:[#allocation2 + $0x53] sm:$0xff] }
 0x357   : > { %17163 = vmatmul.mubr.bf16.gmra.mrb[180].mxu1 %v4264_v52  ;;  %v4251_v52 = vld [vmem:[#allocation2 + $0x122] sm:$0xff] }
 0x358   : > { %17166 = vmatprep.mubr.msk.bf16.mxu1 %vm21838_vm0, %v25023_v50  ;;  %v4275_v4 = vpack.c.bf16 %v4252_v44, %v4251_v52  ;;  %v21704_v52 = vld [vmem:[%s24996_s4 + $0x130] sm:$0xff]   ;;  %v21696_v44 = vld [vmem:[%s24996_s4 + $0x428] sm:$0xff]  }
 0x35d   : > { %18355 = vmatmul.mubr.bf16.gmra.mrb[92].mxu0 %v9722_v24  ;;  %v9707_v24 = vld [vmem:[#allocation2 + $0x134] sm:$0xff] }
 0x35e   : > { %18358 = vmatprep.mubr.msk.bf16.mxu0 %vm21838_vm0, %v25023_v50  ;;  %v9733_v8 = vpack.c.bf16 %v9708_v10, %v9707_v24  ;;  %v10136_v10 = vld [vmem:[#allocation2 + $0x78] sm:$0xff]  ;;  %v4682_v24 = vld [vmem:[#allocation2 + $0x63] sm:$0xff] }
 0x35f   : > { %17167 = vmatmul.mubr.bf16.gmra.mrb[184].mxu1 %v4265_v51  ;;  %v4254_v51 = vld [vmem:[#allocation2 + $0x13a] sm:$0xff] }
 0x360   : > { %17170 = vmatprep.mubr.msk.bf16.mxu1 %vm21838_vm0, %v25023_v50  ;;  %v4276_v29 = vpack.c.bf16 %v4254_v51, %v4253_v49  ;;  %v4683_v51 = vld [vmem:[#allocation2 + $0x6b] sm:$0xff] }
 0x365   : > { %18359 = vmatmul.mubr.bf16.gmra.mrb[96].mxu0 %v9723_v40  ;;  %v9709_v40 = vld [vmem:[#allocation2 + $0x144] sm:$0xff] }
 0x366   : > { %18362 = vmatprep.mubr.msk.bf16.mxu0 %vm21838_vm0, %v25023_v50  ;;  %v9734_v53 = vpack.c.bf16 %v9710_v23, %v9709_v40  ;;  %v21705_v40 = vld [vmem:[%s24996_s4 + $0x438] sm:$0xff]   ;;  %v10138_v23 = vld [vmem:[#allocation2 + $0x88] sm:$0xff] }
 0x367   : > { %17171 = vmatmul.mubr.bf16.gmra.mrb[188].mxu1 %v4266_v9  ;;  %v4255_v9 = vld [vmem:[#allocation2 + $0x142] sm:$0xff] }
 0x368   : > { %17174 = vmatprep.mubr.msk.bf16.mxu1 %vm21838_vm0, %v25023_v50  ;;  %v4277_v62 = vpack.c.bf16 %v4256_v13, %v4255_v9  ;;  %v10139_v9 = vld [vmem:[#allocation2 + $0x90] sm:$0xff]  ;;  %v4685_v13 = vld [vmem:[#allocation2 + $0x7b] sm:$0xff] }
 0x36d   : > { %18363 = vmatmul.mubr.bf16.gmra.mrb[100].mxu0 %v9724_v31  ;;  %v9711_v31 = vld [vmem:[#allocation2 + $0x154] sm:$0xff] }
 0x36e   : > { %18366 = vmatprep.mubr.msk.bf16.mxu0 %vm21838_vm0, %v25023_v50  ;;  %v9735_v0 = vpack.c.bf16 %v9712_v14, %v9711_v31  ;;  %v10141_v31 = vld [vmem:[#allocation2 + $0xa0] sm:$0xff] }
 0x36f   : > { %17175 = vmatmul.mubr.bf16.gmra.mrb[192].mxu1 %v4267_v59  ;;  %v4670_v59 = vld [vmem:[#allocation2 + $0x3] sm:$0xff] }
 0x370   : > { %17178 = vmatprep.mubr.msk.bf16.mxu1 %vm21838_vm0, %v25023_v50  ;;  %v4712_v63 = vpack.c.bf16 %v4671_v25, %v4670_v59  ;;  %v10140_v59 = vld [vmem:[#allocation2 + $0x98] sm:$0xff]  ;;  %v4686_v25 = vld [vmem:[#allocation2 + $0x83] sm:$0xff] }
 0x375   : > { %18367 = vmatmul.mubr.bf16.gmra.mrb[104].mxu0 %v9725_v58  ;;  %v9713_v58 = vld [vmem:[#allocation2 + $0x164] sm:$0xff] }
 0x376   : > { %18370 = vmatprep.mubr.msk.bf16.mxu0 %vm21838_vm0, %v25023_v50  ;;  %v9736_v32 = vpack.c.bf16 %v9714_v5, %v9713_v58  ;;  %v10142_v5 = vld [vmem:[#allocation2 + $0xa8] sm:$0xff] }
 0x377   : > { %17179 = vmatmul.mubr.bf16.gmra.mrb[196].mxu1 %v4268_v2  ;;  %v4673_v2 = vld [vmem:[#allocation2 + $0x1b] sm:$0xff] }
 0x378   : > { %17182 = vmatprep.mubr.msk.bf16.mxu1 %vm21838_vm0, %v25023_v50  ;;  %v4713_v1 = vpack.c.bf16 %v4673_v2, %v4672_v28  ;;  %v10143_v2 = vld [vmem:[#allocation2 + $0xb0] sm:$0xff] }
 0x379   : > { %v10178_v28 = vpack.c.bf16 %v10143_v2, %v10142_v5  ;;  %v4708_v2 = vld [vmem:[#allocation2 + $0x133] sm:$0xff] }
 0x37d   : > { %18371 = vmatmul.mubr.bf16.gmra.mrb[108].mxu0 %v9726_v45  ;;  %v9715_v45 = vld [vmem:[#allocation2 + $0x174] sm:$0xff] }
 0x37e   : > { %18374 = vmatprep.mubr.msk.bf16.mxu0 %vm21838_vm0, %v25023_v50  ;;  %v9737_v47 = vpack.c.bf16 %v9716_v37, %v9715_v45  ;;  %v10145_v45 = vld [vmem:[#allocation2 + $0xc0] sm:$0xff] }
 0x37f   : > { %17183 = vmatmul.mubr.bf16.gmra.mrb[200].mxu1 %v4269_v46  ;;  %v4674_v46 = vld [vmem:[#allocation2 + $0x23] sm:$0xff] }
 0x380   : > { %17186 = vmatprep.mubr.msk.bf16.mxu1 %vm21838_vm0, %v25023_v50  ;;  %v4714_v21 = vpack.c.bf16 %v4675_v27, %v4674_v46  ;;  %v10144_v46 = vld [vmem:[#allocation2 + $0xb8] sm:$0xff]  ;;  %v4690_v27 = vld [vmem:[#allocation2 + $0xa3] sm:$0xff] }
 0x385   : > { %18375 = vmatmul.mubr.bf16.gmra.mrb[112].mxu0 %v9727_v22  ;;  %v21697_v22 = vld [vmem:[%s24996_s4 + $0x100] sm:$0xff]  }
 0x386   : > { %18378 = vmatprep.mubr.msk.bf16.mxu0 %vm21838_vm0, %v25023_v50 }
 0x387   : > { %17187 = vmatmul.mubr.bf16.gmra.mrb[204].mxu1 %v4270_v26  ;;  %v21698_v26 = vld [vmem:[%s24996_s4 + $0x108] sm:$0xff]  }
 0x388   : > { %17190 = vmatprep.mubr.msk.bf16.mxu1 %vm21838_vm0, %v25023_v50 }
 0x38d   : > { %18379 = vmatmul.mubr.bf16.gmra.mrb[116].mxu0 %v9728_v12  ;;  %v4676_v12 = vld [vmem:[#allocation2 + $0x33] sm:$0xff] }
 0x38e   : > { %18382 = vmatprep.mubr.msk.bf16.mxu0 %vm21838_vm0, %v25023_v50 }
 0x38f   : > { %17191 = vmatmul.mubr.bf16.gmra.mrb[208].mxu1 %v4271_v55  ;;  %v4715_v55 = vpack.c.bf16 %v4677_v35, %v4676_v12  ;;  %v4692_v35 = vld [vmem:[#allocation2 + $0xb3] sm:$0xff]  ;;  %v10149_v12 = vld [vmem:[#allocation2 + $0xe0] sm:$0xff] }
 0x390   : > { %17194 = vmatprep.mubr.msk.bf16.mxu1 %vm21838_vm0, %v25023_v50 }
 0x395   : > { %18383 = vmatmul.mubr.bf16.gmra.mrb[120].mxu0 %v9729_v19  ;;  %v21701_v19 = vld [vmem:[%s24996_s4 + $0x118] sm:$0xff]  }
 0x396   : > { %18386 = vmatprep.mubr.msk.bf16.mxu0 %vm21838_vm0, %v25023_v50 }
 0x397   : > { %17195 = vmatmul.mubr.bf16.gmra.mrb[212].mxu1 %v4272_v38  ;;  %v4678_v38 = vld [vmem:[#allocation2 + $0x43] sm:$0xff] }
 0x398   : > { %17198 = vmatprep.mubr.msk.bf16.mxu1 %vm21838_vm0, %v25023_v50  ;;  %v4716_v20 = vpack.c.bf16 %v4679_v11, %v4678_v38  ;;  %v10151_v38 = vld [vmem:[#allocation2 + $0xf0] sm:$0xff]  ;;  %v4697_v11 = vld [vmem:[#allocation2 + $0xdb] sm:$0xff] }
 0x39d   : > { %18387 = vmatmul.mubr.bf16.gmra.mrb[124].mxu0 %v9730_v54  ;;  %v21702_v54 = vld [vmem:[%s24996_s4 + $0x120] sm:$0xff]  }
 0x39e   : > { %18390 = vmatprep.mubr.msk.bf16.mxu0 %vm21838_vm0, %v25023_v50 }
 0x39f   : > { %17199 = vmatmul.mubr.bf16.gmra.mrb[216].mxu1 %v4273_v3  ;;  %v21694_v3 = vld [vmem:[%s24996_s4 + $0x418] sm:$0xff]  }
 0x3a0   : > { %17202 = vmatprep.mubr.msk.bf16.mxu1 %vm21838_vm0, %v25023_v50 }
 0x3a5   : > { %18391 = vmatmul.mubr.bf16.gmra.mrb[128].mxu0 %v9731_v56  ;;  %v4681_v56 = vld [vmem:[#allocation2 + $0x5b] sm:$0xff] }
 0x3a6   : > { %18394 = vmatprep.mubr.msk.bf16.mxu0 %vm21838_vm0, %v25023_v50  ;;  %v4717_v36 = vpack.c.bf16 %v4681_v56, %v4680_v57  ;;  %v4701_v57 = vld [vmem:[#allocation2 + $0xfb] sm:$0xff] }
 0x3a7   : > { %17203 = vmatmul.mubr.bf16.gmra.mrb[220].mxu1 %v4274_v41  ;;  %v10174_v41 = vpack.c.bf16 %v10135_v48, %v10134_v60  ;;  %v4698_v60 = vld [vmem:[#allocation2 + $0xe3] sm:$0xff] }
 0x3a8   : > { %17206 = vmatprep.mubr.msk.bf16.mxu1 %vm21838_vm0, %v25023_v50 }
 0x3ad   : > { %18395 = vmatmul.mubr.bf16.gmra.mrb[132].mxu0 %v9732_v43  ;;  %v10137_v43 = vld [vmem:[#allocation2 + $0x80] sm:$0xff] }
 0x3ae   : > { %18398 = vmatprep.mubr.msk.bf16.mxu0 %vm21838_vm0, %v25023_v50  ;;  %v10175_v49 = vpack.c.bf16 %v10137_v43, %v10136_v10  ;;  %v10157_v43 = vld [vmem:[#allocation2 + $0x120] sm:$0xff] }
 0x3af   : > { %17207 = vmatmul.mubr.bf16.gmra.mrb[224].mxu1 %v4275_v4  ;;  %v21706_v4 = vld [vmem:[%s24996_s4 + $0x138] sm:$0xff]   ;;  %v4702_v10 = vld [vmem:[#allocation2 + $0x103] sm:$0xff] }
 0x3b0   : > { %17210 = vmatprep.mubr.msk.bf16.mxu1 %vm21838_vm0, %v25023_v50 }
 0x3b5   : > { %18399 = vmatmul.mubr.bf16.gmra.mrb[136].mxu0 %v9733_v8  ;;  %v21699_v8 = vld [vmem:[%s24996_s4 + $0x430] sm:$0xff]  }
 0x3b6   : > { %18402 = vmatprep.mubr.msk.bf16.mxu0 %vm21838_vm0, %v25023_v50 }
 0x3b7   : > { %17211 = vmatmul.mubr.bf16.gmra.mrb[228].mxu1 %v4276_v29  ;;  %v4718_v29 = vpack.c.bf16 %v4683_v51, %v4682_v24  ;;  %v4703_v24 = vld [vmem:[#allocation2 + $0x10b] sm:$0xff] }
 0x3b8   : > { %17214 = vmatprep.mubr.msk.bf16.mxu1 %vm21838_vm0, %v25023_v50 }
 0x3bd   : > { %18403 = vmatmul.mubr.bf16.gmra.mrb[140].mxu0 %v9734_v53  ;;  %v10176_v53 = vpack.c.bf16 %v10139_v9, %v10138_v23  ;;  %v4704_v9 = vld [vmem:[#allocation2 + $0x113] sm:$0xff] }
 0x3be   : > { %18406 = vmatprep.mubr.msk.bf16.mxu0 %vm21838_vm0, %v25023_v50 }
 0x3bf   : > { %17215 = vmatmul.mubr.bf16.gmra.mrb[232].mxu1 %v4277_v62  ;;  %v4684_v62 = vld [vmem:[#allocation2 + $0x73] sm:$0xff] }
 0x3c0   : > { %17234 = vmatprep.mubr.msk.bf16.mxu1 %vm21838_vm0, %v25023_v50  ;;  %v4719_v14 = vpack.c.bf16 %v4685_v13, %v4684_v62  ;;  %v10160_v62 = vld [vmem:[#allocation2 + $0x138] sm:$0xff] }
 0x3c5   : > { %18407 = vmatmul.mubr.bf16.gmra.mrb[144].mxu0 %v9735_v0  ;;  %v4687_v0 = vld [vmem:[#allocation2 + $0x8b] sm:$0xff] }
 0x3c6   : > { %18410 = vmatprep.mubr.msk.bf16.mxu0 %vm21838_vm0, %v25023_v50  ;;  %v4720_v58 = vpack.c.bf16 %v4687_v0, %v4686_v25  ;;  %v10162_v0 = vld [vmem:[#allocation2 + $0x148] sm:$0xff] }
 0x3c7   : > { %17235 = vmatmul.mubr.bf16.vlgmr.msra.gmra.mrb[152].mxu1 %v4712_v63  ;;  %v10177_v63 = vpack.c.bf16 %v10141_v31, %v10140_v59  ;;  %v4707_v31 = vld [vmem:[#allocation2 + $0x12b] sm:$0xff] }
 0x3c8   : > { %17238 = vmatprep.mubr.msk.bf16.mxu1 %vm21838_vm0, %v25023_v50  ;;  %17319 = vmatpush3.bf16.msra.mxu1 %v21697_v22 }
 0x3c9   : > { %17320 = vmatprep.subr.bf16.mxu1 %v25023_v50 }
 0x3cc   : > { %17321 = vmatpush3.bf16.msra.mxu1 %v21698_v26  ;;  %v10147_v26 = vld [vmem:[#allocation2 + $0xd0] sm:$0xff] }
 0x3cd   : > { %18411 = vmatmul.mubr.bf16.gmra.mrb[148].mxu0 %v9736_v32  ;;  %17322 = vmatprep.subr.bf16.mxu1 %v25023_v50  ;;  %v4689_v32 = vld [vmem:[#allocation2 + $0x9b] sm:$0xff] }
 0x3ce   : > { %18414 = vmatprep.mubr.msk.bf16.mxu0 %vm21838_vm0, %v25023_v50 }
 0x3cf   : > { %17239 = vmatmul.mubr.bf16.gmra.mrb[156].mxu1 %v4713_v1  ;;  %v4688_v1 = vld [vmem:[#allocation2 + $0x93] sm:$0xff] }
 0x3d0   : > { %17242 = vmatprep.mubr.msk.bf16.mxu1 %vm21838_vm0, %v25023_v50  ;;  %17323 = vmatpush3.bf16.msra.mxu1 %v21700_v6  ;;  %v4721_v37 = vpack.c.bf16 %v4689_v32, %v4688_v1  ;;  %v4694_v6 = vld [vmem:[#allocation2 + $0xc3] sm:$0xff]  ;;  %v10164_v1 = vld [vmem:[#allocation2 + $0x158] sm:$0xff] }
 0x3d1   : > { %17324 = vmatprep.subr.bf16.mxu1 %v25023_v50 }
 0x3d4   : > { %17325 = vmatpush3.bf16.msra.mxu1 %v21701_v19 }
 0x3d5   : > { %18415 = vmatmul.mubr.bf16.gmra.mrb[152].mxu0 %v9737_v47  ;;  %17326 = vmatprep.subr.bf16.mxu1 %v25023_v50  ;;  %v4691_v47 = vld [vmem:[#allocation2 + $0xab] sm:$0xff] }
 0x3d6   : > { %18434 = vmatprep.mubr.msk.bf16.mxu0 %vm21838_vm0, %v25023_v50  ;;  %v4722_v22 = vpack.c.bf16 %v4691_v47, %v4690_v27  ;;  %v10166_v47 = vld [vmem:[#allocation2 + $0x168] sm:$0xff] }
 0x3d7   : > { %17243 = vmatmul.mubr.bf16.gmra.mrb[160].mxu1 %v4714_v21  ;;  %v10179_v21 = vpack.c.bf16 %v10145_v45, %v10144_v46  ;;  %v4711_v45 = vld [vmem:[#allocation2 + $0x14b] sm:$0xff] }
 0x3d8   : > { %17246 = vmatprep.mubr.msk.bf16.mxu1 %vm21838_vm0, %v25023_v50  ;;  %17327 = vmatpush3.bf16.msra.mxu1 %v21702_v54  ;;  %v10153_v54 = vld [vmem:[#allocation2 + $0x100] sm:$0xff] }
 0x3d9   : > { %17328 = vmatprep.subr.bf16.mxu1 %v25023_v50 }
 0x3dc   : > { %17329 = vmatpush3.bf16.msra.mxu1 %v21703_v30  ;;  %v4699_v30 = vld [vmem:[#allocation2 + $0xeb] sm:$0xff] }
 0x3dd   : > { %18435 = vmatmul.mubr.bf16.vlgmr.msra.gmra.mrb[72].mxu0 %v10172_v17  ;;  %17330 = vmatprep.subr.bf16.mxu1 %v25023_v50  ;;  %v4723_v17 = vpack.c.bf16 %v4693_v7, %v4692_v35  ;;  %v4726_v56 = vpack.c.bf16 %v4699_v30, %v4698_v60  ;;  %v10168_v35 = vld [vmem:[#allocation2 + $0x178] sm:$0xff] }
 0x3de   : > { %18519 = vmatpush3.bf16.msra.mxu0 %v21691_v16  ;;  %18438 = vmatprep.mubr.msk.bf16.mxu0 %vm21838_vm0, %v25023_v50  ;;  %v10180_v16 = vpack.c.bf16 %v10147_v26, %v10146_v34  ;;  %v5126_v34 = vld [vmem:[#allocation2 + $0xc] sm:$0xff]  ;;  %v5132_v60 = vld [vmem:[#allocation2 + $0x3c] sm:$0xff] }
 0x3df   : > { %17247 = vmatmul.mubr.bf16.gmra.mrb[164].mxu1 %v4715_v55  ;;  %18520 = vmatprep.subr.bf16.mxu0 %v25023_v50  ;;  %v10148_v55 = vld [vmem:[#allocation2 + $0xd8] sm:$0xff] }
 0x3e0   : > { %17250 = vmatprep.mubr.msk.bf16.mxu1 %vm21838_vm0, %v25023_v50  ;;  %17331 = vmatpush3.bf16.msra.mxu1 %v21704_v52  ;;  %v10181_v61 = vpack.c.bf16 %v10149_v12, %v10148_v55  ;;  %v4700_v52 = vld [vmem:[#allocation2 + $0xf3] sm:$0xff] }
 0x3e1   : > { %17332 = vmatprep.subr.bf16.mxu1 %v25023_v50  ;;  %v5127_v55 = vld [vmem:[#allocation2 + $0x14] sm:$0xff] }
 0x3e2   : > { %18521 = vmatpush3.bf16.msra.mxu0 %v21692_v18  ;;  %v4695_v18 = vld [vmem:[#allocation2 + $0xcb] sm:$0xff] }
 0x3e3   : > { %18522 = vmatprep.subr.bf16.mxu0 %v25023_v50  ;;  %v4724_v19 = vpack.c.bf16 %v4695_v18, %v4694_v6  ;;  %v10170_v18 = vld [vmem:[#allocation2 + $0x188] sm:$0xff] }
 0x3e4   : > { %17333 = vmatpush3.bf16.msra.mxu1 %v21706_v4  ;;  %v10156_v4 = vld [vmem:[#allocation2 + $0x118] sm:$0xff] }
 0x3e5   : > { %18439 = vmatmul.mubr.bf16.gmra.mrb[76].mxu0 %v10173_v42  ;;  %17418 = vmatprep.subr.bf16.mxu1 %v25023_v50  ;;  %v4696_v42 = vld [vmem:[#allocation2 + $0xd3] sm:$0xff]  ;;  %v10185_v51 = vpack.c.bf16 %v10157_v43, %v10156_v4 }
 0x3e6   : > { %18442 = vmatprep.mubr.msk.bf16.mxu0 %vm21838_vm0, %v25023_v50  ;;  %18523 = vmatpush3.bf16.msra.mxu0 %v21693_v33  ;;  %v10182_v33 = vpack.c.bf16 %v10151_v38, %v10150_v15  ;;  %v5130_v15 = vld [vmem:[#allocation2 + $0x2c] sm:$0xff] }
 0x3e7   : > { %17251 = vmatmul.mubr.bf16.gmra.mrb[168].mxu1 %v4716_v20  ;;  %18524 = vmatprep.subr.bf16.mxu0 %v25023_v50  ;;  %v4725_v20 = vpack.c.bf16 %v4697_v11, %v4696_v42  ;;  %v10585_v42 = vld [vmem:[#allocation2 + $0x49] sm:$0xff] }
 0x3e8   : > { %17254 = vmatprep.mubr.msk.bf16.mxu1 %vm21838_vm0, %v25023_v50  ;;  %v5134_v43 = vld [vmem:[#allocation2 + $0x4c] sm:$0xff] }
 0x3e9   : > { %v21709_v4 = vld [vmem:[%s24996_s4 + $0x450] sm:$0xff]  }
 0x3ea   : > { %18525 = vmatpush3.bf16.msra.mxu0 %v21694_v3  ;;  %v10152_v3 = vld [vmem:[#allocation2 + $0xf8] sm:$0xff] }
 0x3eb   : > { %18526 = vmatprep.subr.bf16.mxu0 %v25023_v50  ;;  %v10183_v48 = vpack.c.bf16 %v10153_v54, %v10152_v3  ;;  %v21714_v54 = vld [vmem:[%s24996_s4 + $0x148] sm:$0xff]   ;;  %v21707_v3 = vld [vmem:[%s24996_s4 + $0x440] sm:$0xff]  }
 0x3ed   : > { %18443 = vmatmul.mubr.bf16.gmra.mrb[80].mxu0 %v10174_v41  ;;  %v10155_v41 = vld [vmem:[#allocation2 + $0x110] sm:$0xff] }
 0x3ee   : > { %18446 = vmatprep.mubr.msk.bf16.mxu0 %vm21838_vm0, %v25023_v50  ;;  %18527 = vmatpush3.bf16.msra.mxu0 %v21695_v39  ;;  %v10154_v39 = vld [vmem:[#allocation2 + $0x108] sm:$0xff] }
 0x3ef   : > { %17255 = vmatmul.mubr.bf16.gmra.mrb[172].mxu1 %v4717_v36  ;;  %18528 = vmatprep.subr.bf16.mxu0 %v25023_v50  ;;  %v10184_v36 = vpack.c.bf16 %v10155_v41, %v10154_v39  ;;  %v21716_v39 = vld [vmem:[%s24996_s4 + $0x150] sm:$0xff]   ;;  %v21708_v41 = vld [vmem:[%s24996_s4 + $0x448] sm:$0xff]  }
 0x3f0   : > { %17258 = vmatprep.mubr.msk.bf16.mxu1 %vm21838_vm0, %v25023_v50 }
 0x3f2   : > { %18529 = vmatpush3.bf16.msra.mxu0 %v21696_v44  ;;  %v4727_v44 = vpack.c.bf16 %v4701_v57, %v4700_v52  ;;  %v10588_v57 = vld [vmem:[#allocation2 + $0x61] sm:$0xff]  ;;  %v10587_v52 = vld [vmem:[#allocation2 + $0x59] sm:$0xff] }
 0x3f3   : > { %18530 = vmatprep.subr.bf16.mxu0 %v25023_v50 }
 0x3f5   : > { %18447 = vmatmul.mubr.bf16.gmra.mrb[84].mxu0 %v10175_v49  ;;  %v10158_v49 = vld [vmem:[#allocation2 + $0x128] sm:$0xff] }
 0x3f6   : > { %18450 = vmatprep.mubr.msk.bf16.mxu0 %vm21838_vm0, %v25023_v50  ;;  %18531 = vmatpush3.bf16.msra.mxu0 %v21699_v8  ;;  %v4728_v8 = vpack.c.bf16 %v4703_v24, %v4702_v10  ;;  %v10628_v10 = vpack.c.bf16 %v10588_v57, %v10587_v52  ;;  %v10605_v52 = vld [vmem:[#allocation2 + $0xe9] sm:$0xff] }
 0x3f7   : > { %17259 = vmatmul.mubr.bf16.gmra.mrb[176].mxu1 %v4718_v29  ;;  %18532 = vmatprep.subr.bf16.mxu0 %v25023_v50  ;;  %v10159_v29 = vld [vmem:[#allocation2 + $0x130] sm:$0xff] }
 0x3f8   : > { %17262 = vmatprep.mubr.msk.bf16.mxu1 %vm21838_vm0, %v25023_v50  ;;  %v10186_v23 = vpack.c.bf16 %v10159_v29, %v10158_v49  ;;  %v10589_v49 = vld [vmem:[#allocation2 + $0x69] sm:$0xff]  ;;  %v10590_v29 = vld [vmem:[#allocation2 + $0x71] sm:$0xff] }
 0x3fa   : > { %18533 = vmatpush3.bf16.msra.mxu0 %v21705_v40  ;;  %v4705_v40 = vld [vmem:[#allocation2 + $0x11b] sm:$0xff] }
 0x3fb   : > { %18618 = vmatprep.subr.bf16.mxu0 %v25023_v50  ;;  %v4729_v13 = vpack.c.bf16 %v4705_v40, %v4704_v9  ;;  %v21719_v40 = vld [vmem:[%s24996_s4 + $0x168] sm:$0xff]   ;;  %v21711_v9 = vld [vmem:[%s24996_s4 + $0x460] sm:$0xff]  }
 0x3fd   : > { %18451 = vmatmul.mubr.bf16.gmra.mrb[88].mxu0 %v10176_v53  ;;  %v10161_v53 = vld [vmem:[#allocation2 + $0x140] sm:$0xff] }
 0x3fe   : > { %18454 = vmatprep.mubr.msk.bf16.mxu0 %vm21838_vm0, %v25023_v50  ;;  %v10187_v59 = vpack.c.bf16 %v10161_v53, %v10160_v62  ;;  %v5135_v53 = vld [vmem:[#allocation2 + $0x54] sm:$0xff] }
 0x3ff   : > { %17263 = vmatmul.mubr.bf16.gmra.mrb[180].mxu1 %v4719_v14  ;;  %v4706_v14 = vld [vmem:[#allocation2 + $0x123] sm:$0xff] }
 0x400   : > { %17266 = vmatprep.mubr.msk.bf16.mxu1 %vm21838_vm0, %v25023_v50  ;;  %v4730_v25 = vpack.c.bf16 %v4707_v31, %v4706_v14  ;;  %v21720_v14 = vld [vmem:[%s24996_s4 + $0x170] sm:$0xff]   ;;  %v21712_v31 = vld [vmem:[%s24996_s4 + $0x468] sm:$0xff]  }
 0x405   : > { %18455 = vmatmul.mubr.bf16.gmra.mrb[92].mxu0 %v10177_v63  ;;  %v10163_v63 = vld [vmem:[#allocation2 + $0x150] sm:$0xff] }
 0x406   : > { %18458 = vmatprep.mubr.msk.bf16.mxu0 %vm21838_vm0, %v25023_v50  ;;  %v10188_v5 = vpack.c.bf16 %v10163_v63, %v10162_v0  ;;  %v10591_v0 = vld [vmem:[#allocation2 + $0x79] sm:$0xff]  ;;  %v5137_v63 = vld [vmem:[#allocation2 + $0x64] sm:$0xff] }
 0x407   : > { %17267 = vmatmul.mubr.bf16.gmra.mrb[184].mxu1 %v4720_v58  ;;  %v4709_v58 = vld [vmem:[#allocation2 + $0x13b] sm:$0xff] }
 0x408   : > { %17270 = vmatprep.mubr.msk.bf16.mxu1 %vm21838_vm0, %v25023_v50  ;;  %v4731_v32 = vpack.c.bf16 %v4709_v58, %v4708_v2  ;;  %v5138_v58 = vld [vmem:[#allocation2 + $0x6c] sm:$0xff] }
 0x40d   : > { %18459 = vmatmul.mubr.bf16.gmra.mrb[96].mxu0 %v10178_v28  ;;  %v10165_v28 = vld [vmem:[#allocation2 + $0x160] sm:$0xff] }
 0x40e   : > { %18462 = vmatprep.mubr.msk.bf16.mxu0 %vm21838_vm0, %v25023_v50  ;;  %v10189_v46 = vpack.c.bf16 %v10165_v28, %v10164_v1  ;;  %v21721_v28 = vld [vmem:[%s24996_s4 + $0x478] sm:$0xff]   ;;  %v10593_v1 = vld [vmem:[#allocation2 + $0x89] sm:$0xff] }
 0x40f   : > { %17271 = vmatmul.mubr.bf16.gmra.mrb[188].mxu1 %v4721_v37  ;;  %v4710_v37 = vld [vmem:[#allocation2 + $0x143] sm:$0xff] }
 0x410   : > { %17274 = vmatprep.mubr.msk.bf16.mxu1 %vm21838_vm0, %v25023_v50  ;;  %v4732_v27 = vpack.c.bf16 %v4711_v45, %v4710_v37  ;;  %v10594_v37 = vld [vmem:[#allocation2 + $0x91] sm:$0xff]  ;;  %v5140_v45 = vld [vmem:[#allocation2 + $0x7c] sm:$0xff] }
 0x415   : > { %18463 = vmatmul.mubr.bf16.gmra.mrb[100].mxu0 %v10179_v21  ;;  %v10167_v21 = vld [vmem:[#allocation2 + $0x170] sm:$0xff] }
 0x416   : > { %18466 = vmatprep.mubr.msk.bf16.mxu0 %vm21838_vm0, %v25023_v50  ;;  %v10190_v26 = vpack.c.bf16 %v10167_v21, %v10166_v47  ;;  %v10596_v21 = vld [vmem:[#allocation2 + $0xa1] sm:$0xff] }
 0x417   : > { %17275 = vmatmul.mubr.bf16.gmra.mrb[192].mxu1 %v4722_v22  ;;  %v5125_v22 = vld [vmem:[#allocation2 + $0x4] sm:$0xff] }
 0x418   : > { %17278 = vmatprep.mubr.msk.bf16.mxu1 %vm21838_vm0, %v25023_v50  ;;  %v5167_v7 = vpack.c.bf16 %v5126_v34, %v5125_v22  ;;  %v10595_v22 = vld [vmem:[#allocation2 + $0x99] sm:$0xff]  ;;  %v5141_v34 = vld [vmem:[#allocation2 + $0x84] sm:$0xff] }
 0x41d   : > { %18467 = vmatmul.mubr.bf16.gmra.mrb[104].mxu0 %v10180_v16  ;;  %v10169_v16 = vld [vmem:[#allocation2 + $0x180] sm:$0xff] }
 0x41e   : > { %18470 = vmatprep.mubr.msk.bf16.mxu0 %vm21838_vm0, %v25023_v50  ;;  %v10191_v12 = vpack.c.bf16 %v10169_v16, %v10168_v35  ;;  %v10597_v35 = vld [vmem:[#allocation2 + $0xa9] sm:$0xff] }
 0x41f   : > { %17279 = vmatmul.mubr.bf16.gmra.mrb[196].mxu1 %v4723_v17  ;;  %v5128_v17 = vld [vmem:[#allocation2 + $0x1c] sm:$0xff] }
 0x420   : > { %17282 = vmatprep.mubr.msk.bf16.mxu1 %vm21838_vm0, %v25023_v50  ;;  %v5168_v6 = vpack.c.bf16 %v5128_v17, %v5127_v55  ;;  %v10598_v17 = vld [vmem:[#allocation2 + $0xb1] sm:$0xff] }
 0x421   : > { %v10633_v55 = vpack.c.bf16 %v10598_v17, %v10597_v35  ;;  %v5163_v17 = vld [vmem:[#allocation2 + $0x134] sm:$0xff] }
 0x425   : > { %18471 = vmatmul.mubr.bf16.gmra.mrb[108].mxu0 %v10181_v61  ;;  %v10171_v61 = vld [vmem:[#allocation2 + $0x190] sm:$0xff] }
 0x426   : > { %18474 = vmatprep.mubr.msk.bf16.mxu0 %vm21838_vm0, %v25023_v50  ;;  %v10192_v38 = vpack.c.bf16 %v10171_v61, %v10170_v18  ;;  %v10600_v61 = vld [vmem:[#allocation2 + $0xc1] sm:$0xff] }
 0x427   : > { %17283 = vmatmul.mubr.bf16.gmra.mrb[200].mxu1 %v4724_v19  ;;  %v5129_v19 = vld [vmem:[#allocation2 + $0x24] sm:$0xff] }
 0x428   : > { %17286 = vmatprep.mubr.msk.bf16.mxu1 %vm21838_vm0, %v25023_v50  ;;  %v5169_v11 = vpack.c.bf16 %v5130_v15, %v5129_v19  ;;  %v10599_v19 = vld [vmem:[#allocation2 + $0xb9] sm:$0xff]  ;;  %v5145_v15 = vld [vmem:[#allocation2 + $0xa4] sm:$0xff] }
 0x42d   : > { %18475 = vmatmul.mubr.bf16.gmra.mrb[112].mxu0 %v10182_v33  ;;  %v21713_v33 = vld [vmem:[%s24996_s4 + $0x140] sm:$0xff]  }
 0x42e   : > { %18478 = vmatprep.mubr.msk.bf16.mxu0 %vm21838_vm0, %v25023_v50 }
 0x42f   : > { %17287 = vmatmul.mubr.bf16.gmra.mrb[204].mxu1 %v4725_v20  ;;  %v10586_v20 = vld [vmem:[#allocation2 + $0x51] sm:$0xff] }
 0x430   : > { %17290 = vmatprep.mubr.msk.bf16.mxu1 %vm21838_vm0, %v25023_v50  ;;  %v10627_v30 = vpack.c.bf16 %v10586_v20, %v10585_v42  ;;  %v10601_v42 = vld [vmem:[#allocation2 + $0xc9] sm:$0xff]  ;;  %v10602_v20 = vld [vmem:[#allocation2 + $0xd1] sm:$0xff] }
 0x435   : > { %18479 = vmatmul.mubr.bf16.gmra.mrb[116].mxu0 %v10183_v48  ;;  %v5131_v48 = vld [vmem:[#allocation2 + $0x34] sm:$0xff] }
 0x436   : > { %18482 = vmatprep.mubr.msk.bf16.mxu0 %vm21838_vm0, %v25023_v50 }
 0x437   : > { %17291 = vmatmul.mubr.bf16.gmra.mrb[208].mxu1 %v4726_v56  ;;  %v5170_v56 = vpack.c.bf16 %v5132_v60, %v5131_v48  ;;  %v5147_v60 = vld [vmem:[#allocation2 + $0xb4] sm:$0xff]  ;;  %v10604_v48 = vld [vmem:[#allocation2 + $0xe1] sm:$0xff] }
 0x438   : > { %17294 = vmatprep.mubr.msk.bf16.mxu1 %vm21838_vm0, %v25023_v50 }
 0x43d   : > { %18483 = vmatmul.mubr.bf16.gmra.mrb[120].mxu0 %v10184_v36  ;;  %v21717_v36 = vld [vmem:[%s24996_s4 + $0x158] sm:$0xff]  }
 0x43e   : > { %18486 = vmatprep.mubr.msk.bf16.mxu0 %vm21838_vm0, %v25023_v50 }
 0x43f   : > { %17295 = vmatmul.mubr.bf16.gmra.mrb[212].mxu1 %v4727_v44  ;;  %v5133_v44 = vld [vmem:[#allocation2 + $0x44] sm:$0xff] }
 0x440   : > { %17298 = vmatprep.mubr.msk.bf16.mxu1 %vm21838_vm0, %v25023_v50  ;;  %v5171_v24 = vpack.c.bf16 %v5134_v43, %v5133_v44  ;;  %v10606_v44 = vld [vmem:[#allocation2 + $0xf1] sm:$0xff]  ;;  %v5152_v43 = vld [vmem:[#allocation2 + $0xdc] sm:$0xff] }
 0x445   : > { %18487 = vmatmul.mubr.bf16.gmra.mrb[124].mxu0 %v10185_v51  ;;  %v21718_v51 = vld [vmem:[%s24996_s4 + $0x160] sm:$0xff]  }
 0x446   : > { %18490 = vmatprep.mubr.msk.bf16.mxu0 %vm21838_vm0, %v25023_v50 }
 0x447   : > { %17299 = vmatmul.mubr.bf16.gmra.mrb[216].mxu1 %v4728_v8  ;;  %v21710_v8 = vld [vmem:[%s24996_s4 + $0x458] sm:$0xff]  }
 0x448   : > { %17302 = vmatprep.mubr.msk.bf16.mxu1 %vm21838_vm0, %v25023_v50 }
 0x44d   : > { %18491 = vmatmul.mubr.bf16.gmra.mrb[128].mxu0 %v10186_v23  ;;  %v5136_v23 = vld [vmem:[#allocation2 + $0x5c] sm:$0xff] }
 0x44e   : > { %18494 = vmatprep.mubr.msk.bf16.mxu0 %vm21838_vm0, %v25023_v50  ;;  %v5172_v62 = vpack.c.bf16 %v5136_v23, %v5135_v53  ;;  %v5156_v53 = vld [vmem:[#allocation2 + $0xfc] sm:$0xff] }
 0x44f   : > { %17303 = vmatmul.mubr.bf16.gmra.mrb[220].mxu1 %v4729_v13  ;;  %v10629_v13 = vpack.c.bf16 %v10590_v29, %v10589_v49  ;;  %v5153_v49 = vld [vmem:[#allocation2 + $0xe4] sm:$0xff]  ;;  %v5154_v29 = vld [vmem:[#allocation2 + $0xec] sm:$0xff] }
 0x450   : > { %17306 = vmatprep.mubr.msk.bf16.mxu1 %vm21838_vm0, %v25023_v50  ;;  %v5181_v23 = vpack.c.bf16 %v5154_v29, %v5153_v49  ;;  %v5586_v49 = vld [vmem:[#allocation2 + $0x48] sm:$0xff] }
 0x455   : > { %18495 = vmatmul.mubr.bf16.gmra.mrb[132].mxu0 %v10187_v59  ;;  %v10592_v59 = vld [vmem:[#allocation2 + $0x81] sm:$0xff] }
 0x456   : > { %18498 = vmatprep.mubr.msk.bf16.mxu0 %vm21838_vm0, %v25023_v50  ;;  %v10630_v2 = vpack.c.bf16 %v10592_v59, %v10591_v0  ;;  %v10612_v59 = vld [vmem:[#allocation2 + $0x121] sm:$0xff] }
 0x457   : > { %17307 = vmatmul.mubr.bf16.gmra.mrb[224].mxu1 %v4730_v25  ;;  %v21722_v25 = vld [vmem:[%s24996_s4 + $0x178] sm:$0xff]   ;;  %v5157_v0 = vld [vmem:[#allocation2 + $0x104] sm:$0xff] }
 0x458   : > { %17310 = vmatprep.mubr.msk.bf16.mxu1 %vm21838_vm0, %v25023_v50 }
 0x45d   : > { %18499 = vmatmul.mubr.bf16.gmra.mrb[136].mxu0 %v10188_v5  ;;  %v21715_v5 = vld [vmem:[%s24996_s4 + $0x470] sm:$0xff]  }
 0x45e   : > { %18502 = vmatprep.mubr.msk.bf16.mxu0 %vm21838_vm0, %v25023_v50 }
 0x45f   : > { %17311 = vmatmul.mubr.bf16.gmra.mrb[228].mxu1 %v4731_v32  ;;  %v5173_v32 = vpack.c.bf16 %v5138_v58, %v5137_v63  ;;  %v5158_v63 = vld [vmem:[#allocation2 + $0x10c] sm:$0xff] }
 0x460   : > { %17314 = vmatprep.mubr.msk.bf16.mxu1 %vm21838_vm0, %v25023_v50 }
 0x465   : > { %18503 = vmatmul.mubr.bf16.gmra.mrb[140].mxu0 %v10189_v46  ;;  %v10631_v46 = vpack.c.bf16 %v10594_v37, %v10593_v1  ;;  %v5159_v37 = vld [vmem:[#allocation2 + $0x114] sm:$0xff] }
 0x466   : > { %18506 = vmatprep.mubr.msk.bf16.mxu0 %vm21838_vm0, %v25023_v50 }
 0x467   : > { %17315 = vmatmul.mubr.bf16.gmra.mrb[232].mxu1 %v4732_v27  ;;  %v5139_v27 = vld [vmem:[#allocation2 + $0x74] sm:$0xff] }
 0x468   : > { %17334 = vmatprep.mubr.msk.bf16.mxu1 %vm21838_vm0, %v25023_v50  ;;  %v5174_v47 = vpack.c.bf16 %v5140_v45, %v5139_v27  ;;  %v10615_v27 = vld [vmem:[#allocation2 + $0x139] sm:$0xff] }
 0x46d   : > { %18507 = vmatmul.mubr.bf16.gmra.mrb[144].mxu0 %v10190_v26  ;;  %v5142_v26 = vld [vmem:[#allocation2 + $0x8c] sm:$0xff] }
 0x46e   : > { %18510 = vmatprep.mubr.msk.bf16.mxu0 %vm21838_vm0, %v25023_v50  ;;  %v5175_v16 = vpack.c.bf16 %v5142_v26, %v5141_v34  ;;  %v10617_v26 = vld [vmem:[#allocation2 + $0x149] sm:$0xff] }
 0x46f   : > { %17335 = vmatmul.mubr.bf16.vlgmr.msra.gmra.mrb[152].mxu1 %v5167_v7  ;;  %v10632_v7 = vpack.c.bf16 %v10596_v21, %v10595_v22  ;;  %v5162_v21 = vld [vmem:[#allocation2 + $0x12c] sm:$0xff] }
 0x470   : > { %17338 = vmatprep.mubr.msk.bf16.mxu1 %vm21838_vm0, %v25023_v50  ;;  %17419 = vmatpush3.bf16.msra.mxu1 %v21713_v33 }
 0x471   : > { %17420 = vmatprep.subr.bf16.mxu1 %v25023_v50 }
 0x474   : > { %17421 = vmatpush3.bf16.msra.mxu1 %v21714_v54  ;;  %v5148_v54 = vld [vmem:[#allocation2 + $0xbc] sm:$0xff] }
 0x475   : > { %18511 = vmatmul.mubr.bf16.gmra.mrb[148].mxu0 %v10191_v12  ;;  %17422 = vmatprep.subr.bf16.mxu1 %v25023_v50  ;;  %v5144_v12 = vld [vmem:[#allocation2 + $0x9c] sm:$0xff] }
 0x476   : > { %18514 = vmatprep.mubr.msk.bf16.mxu0 %vm21838_vm0, %v25023_v50 }
 0x477   : > { %17339 = vmatmul.mubr.bf16.gmra.mrb[156].mxu1 %v5168_v6  ;;  %v5143_v6 = vld [vmem:[#allocation2 + $0x94] sm:$0xff] }
 0x478   : > { %17342 = vmatprep.mubr.msk.bf16.mxu1 %vm21838_vm0, %v25023_v50  ;;  %17423 = vmatpush3.bf16.msra.mxu1 %v21716_v39  ;;  %v5176_v18 = vpack.c.bf16 %v5144_v12, %v5143_v6  ;;  %v5149_v39 = vld [vmem:[#allocation2 + $0xc4] sm:$0xff]  ;;  %v10619_v6 = vld [vmem:[#allocation2 + $0x159] sm:$0xff] }
 0x479   : > { %17424 = vmatprep.subr.bf16.mxu1 %v25023_v50 }
 0x47c   : > { %17425 = vmatpush3.bf16.msra.mxu1 %v21717_v36 }
 0x47d   : > { %18515 = vmatmul.mubr.bf16.gmra.mrb[152].mxu0 %v10192_v38  ;;  %17426 = vmatprep.subr.bf16.mxu1 %v25023_v50  ;;  %v5146_v38 = vld [vmem:[#allocation2 + $0xac] sm:$0xff] }
 0x47e   : > { %18534 = vmatprep.mubr.msk.bf16.mxu0 %vm21838_vm0, %v25023_v50  ;;  %v5177_v33 = vpack.c.bf16 %v5146_v38, %v5145_v15  ;;  %v10621_v38 = vld [vmem:[#allocation2 + $0x169] sm:$0xff] }
 0x47f   : > { %17343 = vmatmul.mubr.bf16.gmra.mrb[160].mxu1 %v5169_v11  ;;  %v10634_v11 = vpack.c.bf16 %v10600_v61, %v10599_v19  ;;  %v5166_v61 = vld [vmem:[#allocation2 + $0x14c] sm:$0xff] }
 0x480   : > { %17346 = vmatprep.mubr.msk.bf16.mxu1 %vm21838_vm0, %v25023_v50  ;;  %17427 = vmatpush3.bf16.msra.mxu1 %v21718_v51  ;;  %v10608_v51 = vld [vmem:[#allocation2 + $0x101] sm:$0xff] }
 0x481   : > { %17428 = vmatprep.subr.bf16.mxu1 %v25023_v50 }
 0x484   : > { %17429 = vmatpush3.bf16.msra.mxu1 %v21719_v40 }
 0x485   : > { %18535 = vmatmul.mubr.bf16.vlgmr.msra.gmra.mrb[72].mxu0 %v10627_v30  ;;  %17430 = vmatprep.subr.bf16.mxu1 %v25023_v50  ;;  %v5178_v30 = vpack.c.bf16 %v5148_v54, %v5147_v60  ;;  %v10623_v60 = vld [vmem:[#allocation2 + $0x179] sm:$0xff] }
 0x486   : > { %18619 = vmatpush3.bf16.msra.mxu0 %v21707_v3  ;;  %18538 = vmatprep.mubr.msk.bf16.mxu0 %vm21838_vm0, %v25023_v50  ;;  %v10635_v3 = vpack.c.bf16 %v10602_v20, %v10601_v42  ;;  %v5580_v20 = vld [vmem:[#allocation2 + $0x18] sm:$0xff] }
 0x487   : > { %17347 = vmatmul.mubr.bf16.gmra.mrb[164].mxu1 %v5170_v56  ;;  %18620 = vmatprep.subr.bf16.mxu0 %v25023_v50  ;;  %v10603_v56 = vld [vmem:[#allocation2 + $0xd9] sm:$0xff] }
 0x488   : > { %17350 = vmatprep.mubr.msk.bf16.mxu1 %vm21838_vm0, %v25023_v50  ;;  %17431 = vmatpush3.bf16.msra.mxu1 %v21720_v14  ;;  %v10636_v57 = vpack.c.bf16 %v10604_v48, %v10603_v56  ;;  %v5155_v14 = vld [vmem:[#allocation2 + $0xf4] sm:$0xff] }
 0x489   : > { %17432 = vmatprep.subr.bf16.mxu1 %v25023_v50  ;;  %v5583_v56 = vld [vmem:[#allocation2 + $0x30] sm:$0xff] }
 0x48a   : > { %18621 = vmatpush3.bf16.msra.mxu0 %v21708_v41  ;;  %v5150_v41 = vld [vmem:[#allocation2 + $0xcc] sm:$0xff] }
 0x48b   : > { %18622 = vmatprep.subr.bf16.mxu0 %v25023_v50  ;;  %v5179_v36 = vpack.c.bf16 %v5150_v41, %v5149_v39  ;;  %v10625_v41 = vld [vmem:[#allocation2 + $0x189] sm:$0xff] }
 0x48c   : > { %17433 = vmatpush3.bf16.msra.mxu1 %v21722_v25  ;;  %v10611_v25 = vld [vmem:[#allocation2 + $0x119] sm:$0xff] }
 0x48d   : > { %18539 = vmatmul.mubr.bf16.gmra.mrb[76].mxu0 %v10628_v10  ;;  %17518 = vmatprep.subr.bf16.mxu1 %v25023_v50  ;;  %v5151_v10 = vld [vmem:[#allocation2 + $0xd4] sm:$0xff]  ;;  %v10640_v58 = vpack.c.bf16 %v10612_v59, %v10611_v25 }
 0x48e   : > { %18542 = vmatprep.mubr.msk.bf16.mxu0 %vm21838_vm0, %v25023_v50  ;;  %18623 = vmatpush3.bf16.msra.mxu0 %v21709_v4  ;;  %v10637_v4 = vpack.c.bf16 %v10606_v44, %v10605_v52  ;;  %v5584_v44 = vld [vmem:[#allocation2 + $0x38] sm:$0xff]  ;;  %v21725_v59 = vld [vmem:[%s24996_s4 + $0x490] sm:$0xff]  }
 0x48f   : > { %17351 = vmatmul.mubr.bf16.gmra.mrb[168].mxu1 %v5171_v24  ;;  %18624 = vmatprep.subr.bf16.mxu0 %v25023_v50  ;;  %v5180_v24 = vpack.c.bf16 %v5152_v43, %v5151_v10  ;;  %v11040_v10 = vld [vmem:[#allocation2 + $0x4a] sm:$0xff] }
 0x490   : > { %17354 = vmatprep.mubr.msk.bf16.mxu1 %vm21838_vm0, %v25023_v50 }
 0x492   : > { %18625 = vmatpush3.bf16.msra.mxu0 %v21710_v8  ;;  %v10607_v8 = vld [vmem:[#allocation2 + $0xf9] sm:$0xff] }
 0x493   : > { %18626 = vmatprep.subr.bf16.mxu0 %v25023_v50  ;;  %v10638_v40 = vpack.c.bf16 %v10608_v51, %v10607_v8  ;;  %v21730_v51 = vld [vmem:[%s24996_s4 + $0x188] sm:$0xff]   ;;  %v21723_v8 = vld [vmem:[%s24996_s4 + $0x480] sm:$0xff]  }
 0x495   : > { %18543 = vmatmul.mubr.bf16.gmra.mrb[80].mxu0 %v10629_v13  ;;  %v10610_v13 = vld [vmem:[#allocation2 + $0x111] sm:$0xff] }
 0x496   : > { %18546 = vmatprep.mubr.msk.bf16.mxu0 %vm21838_vm0, %v25023_v50  ;;  %18627 = vmatpush3.bf16.msra.mxu0 %v21711_v9  ;;  %v10609_v9 = vld [vmem:[#allocation2 + $0x109] sm:$0xff] }
 0x497   : > { %17355 = vmatmul.mubr.bf16.gmra.mrb[172].mxu1 %v5172_v62  ;;  %18628 = vmatprep.subr.bf16.mxu0 %v25023_v50  ;;  %v10639_v62 = vpack.c.bf16 %v10610_v13, %v10609_v9  ;;  %v21732_v9 = vld [vmem:[%s24996_s4 + $0x190] sm:$0xff]   ;;  %v21724_v13 = vld [vmem:[%s24996_s4 + $0x488] sm:$0xff]  }
 0x498   : > { %17358 = vmatprep.mubr.msk.bf16.mxu1 %vm21838_vm0, %v25023_v50 }
 0x49a   : > { %18629 = vmatpush3.bf16.msra.mxu0 %v21712_v31  ;;  %v5182_v31 = vpack.c.bf16 %v5156_v53, %v5155_v14  ;;  %v11043_v53 = vld [vmem:[#allocation2 + $0x62] sm:$0xff]  ;;  %v11042_v14 = vld [vmem:[#allocation2 + $0x5a] sm:$0xff] }
 0x49b   : > { %18630 = vmatprep.subr.bf16.mxu0 %v25023_v50  ;;  %v11083_v25 = vpack.c.bf16 %v11043_v53, %v11042_v14  ;;  %v5604_v53 = vld [vmem:[#allocation2 + $0xd8] sm:$0xff]  ;;  %v11060_v14 = vld [vmem:[#allocation2 + $0xea] sm:$0xff] }
 0x49d   : > { %18547 = vmatmul.mubr.bf16.gmra.mrb[84].mxu0 %v10630_v2  ;;  %v10613_v2 = vld [vmem:[#allocation2 + $0x129] sm:$0xff] }
 0x49e   : > { %18550 = vmatprep.mubr.msk.bf16.mxu0 %vm21838_vm0, %v25023_v50  ;;  %18631 = vmatpush3.bf16.msra.mxu0 %v21715_v5  ;;  %v5183_v5 = vpack.c.bf16 %v5158_v63, %v5157_v0  ;;  %v5588_v0 = vld [vmem:[#allocation2 + $0x58] sm:$0xff] }
 0x49f   : > { %17359 = vmatmul.mubr.bf16.gmra.mrb[176].mxu1 %v5173_v32  ;;  %18632 = vmatprep.subr.bf16.mxu0 %v25023_v50  ;;  %v10614_v32 = vld [vmem:[#allocation2 + $0x131] sm:$0xff] }
 0x4a0   : > { %17362 = vmatprep.mubr.msk.bf16.mxu1 %vm21838_vm0, %v25023_v50  ;;  %v10641_v1 = vpack.c.bf16 %v10614_v32, %v10613_v2  ;;  %v11044_v2 = vld [vmem:[#allocation2 + $0x6a] sm:$0xff]  ;;  %v11045_v32 = vld [vmem:[#allocation2 + $0x72] sm:$0xff] }
 0x4a2   : > { %18633 = vmatpush3.bf16.msra.mxu0 %v21721_v28  ;;  %v5160_v28 = vld [vmem:[#allocation2 + $0x11c] sm:$0xff] }
 0x4a3   : > { %18718 = vmatprep.subr.bf16.mxu0 %v25023_v50  ;;  %v5184_v45 = vpack.c.bf16 %v5160_v28, %v5159_v37  ;;  %v21735_v28 = vld [vmem:[%s24996_s4 + $0x1a8] sm:$0xff]   ;;  %v21727_v37 = vld [vmem:[%s24996_s4 + $0x4a0] sm:$0xff]  }
 0x4a5   : > { %18551 = vmatmul.mubr.bf16.gmra.mrb[88].mxu0 %v10631_v46  ;;  %v10616_v46 = vld [vmem:[#allocation2 + $0x141] sm:$0xff] }
 0x4a6   : > { %18554 = vmatprep.mubr.msk.bf16.mxu0 %vm21838_vm0, %v25023_v50  ;;  %v10642_v22 = vpack.c.bf16 %v10616_v46, %v10615_v27  ;;  %v5591_v46 = vld [vmem:[#allocation2 + $0x70] sm:$0xff] }
 0x4a7   : > { %17363 = vmatmul.mubr.bf16.gmra.mrb[180].mxu1 %v5174_v47  ;;  %v5161_v47 = vld [vmem:[#allocation2 + $0x124] sm:$0xff] }
 0x4a8   : > { %17366 = vmatprep.mubr.msk.bf16.mxu1 %vm21838_vm0, %v25023_v50  ;;  %v5185_v34 = vpack.c.bf16 %v5162_v21, %v5161_v47  ;;  %v21736_v47 = vld [vmem:[%s24996_s4 + $0x1b0] sm:$0xff]   ;;  %v21728_v21 = vld [vmem:[%s24996_s4 + $0x4a8] sm:$0xff]  }
 0x4ad   : > { %18555 = vmatmul.mubr.bf16.gmra.mrb[92].mxu0 %v10632_v7  ;;  %v10618_v7 = vld [vmem:[#allocation2 + $0x151] sm:$0xff] }
 0x4ae   : > { %18558 = vmatprep.mubr.msk.bf16.mxu0 %vm21838_vm0, %v25023_v50  ;;  %v10643_v35 = vpack.c.bf16 %v10618_v7, %v10617_v26  ;;  %v11046_v26 = vld [vmem:[#allocation2 + $0x7a] sm:$0xff] }
 0x4af   : > { %17367 = vmatmul.mubr.bf16.gmra.mrb[184].mxu1 %v5175_v16  ;;  %v5164_v16 = vld [vmem:[#allocation2 + $0x13c] sm:$0xff] }
 0x4b0   : > { %17370 = vmatprep.mubr.msk.bf16.mxu1 %vm21838_vm0, %v25023_v50  ;;  %v5186_v12 = vpack.c.bf16 %v5164_v16, %v5163_v17  ;;  %v5593_v7 = vld [vmem:[#allocation2 + $0x80] sm:$0xff]  ;;  %v21731_v16 = vld [vmem:[%s24996_s4 + $0x4b0] sm:$0xff]   ;;  %v5592_v17 = vld [vmem:[#allocation2 + $0x78] sm:$0xff] }
 0x4b5   : > { %18559 = vmatmul.mubr.bf16.gmra.mrb[96].mxu0 %v10633_v55  ;;  %v10620_v55 = vld [vmem:[#allocation2 + $0x161] sm:$0xff] }
 0x4b6   : > { %18562 = vmatprep.mubr.msk.bf16.mxu0 %vm21838_vm0, %v25023_v50  ;;  %v10644_v19 = vpack.c.bf16 %v10620_v55, %v10619_v6  ;;  %v21737_v55 = vld [vmem:[%s24996_s4 + $0x4b8] sm:$0xff]   ;;  %v11048_v6 = vld [vmem:[#allocation2 + $0x8a] sm:$0xff] }
 0x4b7   : > { %17371 = vmatmul.mubr.bf16.gmra.mrb[188].mxu1 %v5176_v18  ;;  %v5165_v18 = vld [vmem:[#allocation2 + $0x144] sm:$0xff] }
 0x4b8   : > { %17374 = vmatprep.mubr.msk.bf16.mxu1 %vm21838_vm0, %v25023_v50  ;;  %v5187_v15 = vpack.c.bf16 %v5166_v61, %v5165_v18  ;;  %v11049_v18 = vld [vmem:[#allocation2 + $0x92] sm:$0xff]  ;;  %v5594_v61 = vld [vmem:[#allocation2 + $0x88] sm:$0xff] }
 0x4bd   : > { %18563 = vmatmul.mubr.bf16.gmra.mrb[100].mxu0 %v10634_v11  ;;  %v10622_v11 = vld [vmem:[#allocation2 + $0x171] sm:$0xff] }
 0x4be   : > { %18566 = vmatprep.mubr.msk.bf16.mxu0 %vm21838_vm0, %v25023_v50  ;;  %v10645_v42 = vpack.c.bf16 %v10622_v11, %v10621_v38  ;;  %v11051_v11 = vld [vmem:[#allocation2 + $0xa2] sm:$0xff] }
 0x4bf   : > { %17375 = vmatmul.mubr.bf16.gmra.mrb[192].mxu1 %v5177_v33  ;;  %v5581_v33 = vld [vmem:[#allocation2 + $0x20] sm:$0xff] }
 0x4c0   : > { %17378 = vmatprep.mubr.msk.bf16.mxu1 %vm21838_vm0, %v25023_v50  ;;  %v5622_v54 = vpack.c.bf16 %v5581_v33, %v5580_v20  ;;  %v11050_v33 = vld [vmem:[#allocation2 + $0x9a] sm:$0xff] }
 0x4c1   : > { %v11087_v20 = vpack.c.bf16 %v11051_v11, %v11050_v33  ;;  %v5616_v33 = vld [vmem:[#allocation2 + $0x138] sm:$0xff] }
 0x4c5   : > { %18567 = vmatmul.mubr.bf16.gmra.mrb[104].mxu0 %v10635_v3  ;;  %v10624_v3 = vld [vmem:[#allocation2 + $0x181] sm:$0xff] }
 0x4c6   : > { %18570 = vmatprep.mubr.msk.bf16.mxu0 %vm21838_vm0, %v25023_v50  ;;  %v10646_v48 = vpack.c.bf16 %v10624_v3, %v10623_v60  ;;  %v11052_v60 = vld [vmem:[#allocation2 + $0xaa] sm:$0xff] }
 0x4c7   : > { %17379 = vmatmul.mubr.bf16.gmra.mrb[196].mxu1 %v5178_v30  ;;  %v5582_v30 = vld [vmem:[#allocation2 + $0x28] sm:$0xff] }
 0x4c8   : > { %17382 = vmatprep.mubr.msk.bf16.mxu1 %vm21838_vm0, %v25023_v50  ;;  %v5623_v39 = vpack.c.bf16 %v5583_v56, %v5582_v30  ;;  %v11053_v30 = vld [vmem:[#allocation2 + $0xb2] sm:$0xff] }
 0x4c9   : > { %v11088_v56 = vpack.c.bf16 %v11053_v30, %v11052_v60  ;;  %v5619_v30 = vld [vmem:[#allocation2 + $0x150] sm:$0xff] }
 0x4cd   : > { %18571 = vmatmul.mubr.bf16.gmra.mrb[108].mxu0 %v10636_v57  ;;  %v10626_v57 = vld [vmem:[#allocation2 + $0x191] sm:$0xff] }
 0x4ce   : > { %18574 = vmatprep.mubr.msk.bf16.mxu0 %vm21838_vm0, %v25023_v50  ;;  %v10647_v52 = vpack.c.bf16 %v10626_v57, %v10625_v41  ;;  %v11055_v57 = vld [vmem:[#allocation2 + $0xc2] sm:$0xff] }
 0x4cf   : > { %17383 = vmatmul.mubr.bf16.gmra.mrb[200].mxu1 %v5179_v36  ;;  %v5585_v36 = vld [vmem:[#allocation2 + $0x40] sm:$0xff] }
 0x4d0   : > { %17386 = vmatprep.mubr.msk.bf16.mxu1 %vm21838_vm0, %v25023_v50  ;;  %v5624_v43 = vpack.c.bf16 %v5585_v36, %v5584_v44  ;;  %v11054_v36 = vld [vmem:[#allocation2 + $0xba] sm:$0xff] }
 0x4d1   : > { %v11089_v44 = vpack.c.bf16 %v11055_v57, %v11054_v36  ;;  %v5620_v36 = vld [vmem:[#allocation2 + $0x158] sm:$0xff] }
 0x4d5   : > { %18575 = vmatmul.mubr.bf16.gmra.mrb[112].mxu0 %v10637_v4  ;;  %v21729_v4 = vld [vmem:[%s24996_s4 + $0x180] sm:$0xff]  }
 0x4d6   : > { %18578 = vmatprep.mubr.msk.bf16.mxu0 %vm21838_vm0, %v25023_v50 }
 0x4d7   : > { %17387 = vmatmul.mubr.bf16.gmra.mrb[204].mxu1 %v5180_v24  ;;  %v11041_v24 = vld [vmem:[#allocation2 + $0x52] sm:$0xff] }
 0x4d8   : > { %17390 = vmatprep.mubr.msk.bf16.mxu1 %vm21838_vm0, %v25023_v50  ;;  %v11082_v29 = vpack.c.bf16 %v11041_v24, %v11040_v10  ;;  %v11056_v10 = vld [vmem:[#allocation2 + $0xca] sm:$0xff]  ;;  %v11057_v24 = vld [vmem:[#allocation2 + $0xd2] sm:$0xff] }
 0x4dd   : > { %18579 = vmatmul.mubr.bf16.gmra.mrb[116].mxu0 %v10638_v40  ;;  %v5587_v40 = vld [vmem:[#allocation2 + $0x50] sm:$0xff] }
 0x4de   : > { %18582 = vmatprep.mubr.msk.bf16.mxu0 %vm21838_vm0, %v25023_v50 }
 0x4df   : > { %17391 = vmatmul.mubr.bf16.gmra.mrb[208].mxu1 %v5181_v23  ;;  %v5625_v23 = vpack.c.bf16 %v5587_v40, %v5586_v49  ;;  %v5603_v49 = vld [vmem:[#allocation2 + $0xd0] sm:$0xff]  ;;  %v11059_v40 = vld [vmem:[#allocation2 + $0xe2] sm:$0xff] }
 0x4e0   : > { %17394 = vmatprep.mubr.msk.bf16.mxu1 %vm21838_vm0, %v25023_v50 }
 0x4e5   : > { %18583 = vmatmul.mubr.bf16.gmra.mrb[120].mxu0 %v10639_v62  ;;  %v21733_v62 = vld [vmem:[%s24996_s4 + $0x198] sm:$0xff]  }
 0x4e6   : > { %18586 = vmatprep.mubr.msk.bf16.mxu0 %vm21838_vm0, %v25023_v50 }
 0x4e7   : > { %17395 = vmatmul.mubr.bf16.gmra.mrb[212].mxu1 %v5182_v31  ;;  %v5589_v31 = vld [vmem:[#allocation2 + $0x60] sm:$0xff] }
 0x4e8   : > { %17398 = vmatprep.mubr.msk.bf16.mxu1 %vm21838_vm0, %v25023_v50  ;;  %v5626_v63 = vpack.c.bf16 %v5589_v31, %v5588_v0  ;;  %v11061_v31 = vld [vmem:[#allocation2 + $0xf2] sm:$0xff] }
 0x4e9   : > { %v5607_v0 = vld [vmem:[#allocation2 + $0xf0] sm:$0xff] }
 0x4ed   : > { %18587 = vmatmul.mubr.bf16.gmra.mrb[124].mxu0 %v10640_v58  ;;  %v21734_v58 = vld [vmem:[%s24996_s4 + $0x1a0] sm:$0xff]  }
 0x4ee   : > { %18590 = vmatprep.mubr.msk.bf16.mxu0 %vm21838_vm0, %v25023_v50 }
 0x4ef   : > { %17399 = vmatmul.mubr.bf16.gmra.mrb[216].mxu1 %v5183_v5  ;;  %v21726_v5 = vld [vmem:[%s24996_s4 + $0x498] sm:$0xff]  }
 0x4f0   : > { %17402 = vmatprep.mubr.msk.bf16.mxu1 %vm21838_vm0, %v25023_v50 }
 0x4f5   : > { %18591 = vmatmul.mubr.bf16.gmra.mrb[128].mxu0 %v10641_v1  ;;  %v5590_v1 = vld [vmem:[#allocation2 + $0x68] sm:$0xff] }
 0x4f6   : > { %18594 = vmatprep.mubr.msk.bf16.mxu0 %vm21838_vm0, %v25023_v50  ;;  %v5627_v27 = vpack.c.bf16 %v5591_v46, %v5590_v1  ;;  %v5610_v46 = vld [vmem:[#allocation2 + $0x108] sm:$0xff] }
 0x4f7   : > { %17403 = vmatmul.mubr.bf16.gmra.mrb[220].mxu1 %v5184_v45  ;;  %v11084_v45 = vpack.c.bf16 %v11045_v32, %v11044_v2  ;;  %v5609_v2 = vld [vmem:[#allocation2 + $0x100] sm:$0xff] }
 0x4f8   : > { %17406 = vmatprep.mubr.msk.bf16.mxu1 %vm21838_vm0, %v25023_v50 }
 0x4fd   : > { %18595 = vmatmul.mubr.bf16.gmra.mrb[132].mxu0 %v10642_v22  ;;  %v11047_v22 = vld [vmem:[#allocation2 + $0x82] sm:$0xff] }
 0x4fe   : > { %18598 = vmatprep.mubr.msk.bf16.mxu0 %vm21838_vm0, %v25023_v50 }
 0x4ff   : > { %17407 = vmatmul.mubr.bf16.gmra.mrb[224].mxu1 %v5185_v34  ;;  %v21738_v34 = vld [vmem:[%s24996_s4 + $0x1b8] sm:$0xff]  }
 0x500   : > { %17410 = vmatprep.mubr.msk.bf16.mxu1 %vm21838_vm0, %v25023_v50 }
 0x505   : > { %18599 = vmatmul.mubr.bf16.gmra.mrb[136].mxu0 %v10643_v35  ;;  %v11085_v35 = vpack.c.bf16 %v11047_v22, %v11046_v26  ;;  %v11067_v22 = vld [vmem:[#allocation2 + $0x122] sm:$0xff] }
 0x506   : > { %18602 = vmatprep.mubr.msk.bf16.mxu0 %vm21838_vm0, %v25023_v50  ;;  %v5613_v26 = vld [vmem:[#allocation2 + $0x120] sm:$0xff] }
 0x507   : > { %17411 = vmatmul.mubr.bf16.gmra.mrb[228].mxu1 %v5186_v12  ;;  %v5628_v12 = vpack.c.bf16 %v5593_v7, %v5592_v17  ;;  %v11068_v17 = vld [vmem:[#allocation2 + $0x12a] sm:$0xff] }
 0x508   : > { %17414 = vmatprep.mubr.msk.bf16.mxu1 %vm21838_vm0, %v25023_v50 }
 0x50d   : > { %18603 = vmatmul.mubr.bf16.gmra.mrb[140].mxu0 %v10644_v19  ;;  %v11086_v19 = vpack.c.bf16 %v11049_v18, %v11048_v6  ;;  %v5615_v18 = vld [vmem:[#allocation2 + $0x130] sm:$0xff] }
 0x50e   : > { %18606 = vmatprep.mubr.msk.bf16.mxu0 %vm21838_vm0, %v25023_v50 }
 0x50f   : > { %17415 = vmatmul.mubr.bf16.gmra.mrb[232].mxu1 %v5187_v15  ;;  %v5595_v15 = vld [vmem:[#allocation2 + $0x90] sm:$0xff] }
 0x510   : > { %17434 = vmatprep.mubr.msk.bf16.mxu1 %vm21838_vm0, %v25023_v50  ;;  %v5629_v38 = vpack.c.bf16 %v5595_v15, %v5594_v61  ;;  %v11070_v15 = vld [vmem:[#allocation2 + $0x13a] sm:$0xff] }
 0x515   : > { %18607 = vmatmul.mubr.bf16.gmra.mrb[144].mxu0 %v10645_v42  ;;  %v5597_v42 = vld [vmem:[#allocation2 + $0xa0] sm:$0xff] }
 0x516   : > { %18610 = vmatprep.mubr.msk.bf16.mxu0 %vm21838_vm0, %v25023_v50 }
 0x517   : > { %17435 = vmatmul.mubr.bf16.vlgmr.msra.gmra.mrb[152].mxu1 %v5622_v54  ;;  %v5596_v54 = vld [vmem:[#allocation2 + $0x98] sm:$0xff] }
 0x518   : > { %17438 = vmatprep.mubr.msk.bf16.mxu1 %vm21838_vm0, %v25023_v50  ;;  %17519 = vmatpush3.bf16.msra.mxu1 %v21729_v4  ;;  %v5630_v3 = vpack.c.bf16 %v5597_v42, %v5596_v54  ;;  %v11073_v54 = vld [vmem:[#allocation2 + $0x152] sm:$0xff] }
 0x519   : > { %17520 = vmatprep.subr.bf16.mxu1 %v25023_v50 }
 0x51c   : > { %17521 = vmatpush3.bf16.msra.mxu1 %v21730_v51  ;;  %v5602_v51 = vld [vmem:[#allocation2 + $0xc8] sm:$0xff] }
 0x51d   : > { %18611 = vmatmul.mubr.bf16.gmra.mrb[148].mxu0 %v10646_v48  ;;  %17522 = vmatprep.subr.bf16.mxu1 %v25023_v50  ;;  %v5598_v48 = vld [vmem:[#allocation2 + $0xa8] sm:$0xff] }
 0x51e   : > { %18614 = vmatprep.mubr.msk.bf16.mxu0 %vm21838_vm0, %v25023_v50 }
 0x51f   : > { %17439 = vmatmul.mubr.bf16.gmra.mrb[156].mxu1 %v5623_v39  ;;  %v5599_v39 = vld [vmem:[#allocation2 + $0xb0] sm:$0xff] }
 0x520   : > { %17442 = vmatprep.mubr.msk.bf16.mxu1 %vm21838_vm0, %v25023_v50  ;;  %17523 = vmatpush3.bf16.msra.mxu1 %v21732_v9  ;;  %v5631_v41 = vpack.c.bf16 %v5599_v39, %v5598_v48  ;;  %v5605_v9 = vld [vmem:[#allocation2 + $0xe0] sm:$0xff] }
 0x521   : > { %17524 = vmatprep.subr.bf16.mxu1 %v25023_v50  ;;  %v11074_v39 = vld [vmem:[#allocation2 + $0x15a] sm:$0xff] }
 0x524   : > { %17525 = vmatpush3.bf16.msra.mxu1 %v21733_v62  ;;  %v5634_v62 = vpack.c.bf16 %v5605_v9, %v5604_v53  ;;  %v11081_v53 = vld [vmem:[#allocation2 + $0x192] sm:$0xff] }
 0x525   : > { %18615 = vmatmul.mubr.bf16.gmra.mrb[152].mxu0 %v10647_v52  ;;  %17526 = vmatprep.subr.bf16.mxu1 %v25023_v50  ;;  %v5601_v52 = vld [vmem:[#allocation2 + $0xc0] sm:$0xff] }
 0x526   : > { %18634 = vmatprep.mubr.msk.bf16.mxu0 %vm21838_vm0, %v25023_v50 }
 0x527   : > { %17443 = vmatmul.mubr.bf16.gmra.mrb[160].mxu1 %v5624_v43  ;;  %v5600_v43 = vld [vmem:[#allocation2 + $0xb8] sm:$0xff] }
 0x528   : > { %17446 = vmatprep.mubr.msk.bf16.mxu1 %vm21838_vm0, %v25023_v50  ;;  %17527 = vmatpush3.bf16.msra.mxu1 %v21734_v58  ;;  %v5632_v4 = vpack.c.bf16 %v5601_v52, %v5600_v43  ;;  %v11063_v58 = vld [vmem:[#allocation2 + $0x102] sm:$0xff]  ;;  %v11077_v43 = vld [vmem:[#allocation2 + $0x172] sm:$0xff] }
 0x529   : > { %17528 = vmatprep.subr.bf16.mxu1 %v25023_v50 }
 0x52c   : > { %17529 = vmatpush3.bf16.msra.mxu1 %v21735_v28  ;;  %v5608_v28 = vld [vmem:[#allocation2 + $0xf8] sm:$0xff] }
 0x52d   : > { %18635 = vmatmul.mubr.bf16.vlgmr.msra.gmra.mrb[72].mxu0 %v11082_v29  ;;  %17530 = vmatprep.subr.bf16.mxu1 %v25023_v50  ;;  %v5633_v29 = vpack.c.bf16 %v5603_v49, %v5602_v51  ;;  %v5636_v1 = vpack.c.bf16 %v5609_v2, %v5608_v28  ;;  %v11078_v49 = vld [vmem:[#allocation2 + $0x17a] sm:$0xff]  ;;  %v6041_v2 = vld [vmem:[#allocation2 + $0x49] sm:$0xff] }
 0x52e   : > { %18719 = vmatpush3.bf16.msra.mxu0 %v21723_v8  ;;  %18638 = vmatprep.mubr.msk.bf16.mxu0 %vm21838_vm0, %v25023_v50  ;;  %v11090_v8 = vpack.c.bf16 %v11057_v24, %v11056_v10  ;;  %v6035_v24 = vld [vmem:[#allocation2 + $0x19] sm:$0xff] }
 0x52f   : > { %17447 = vmatmul.mubr.bf16.gmra.mrb[164].mxu1 %v5625_v23  ;;  %18720 = vmatprep.subr.bf16.mxu0 %v25023_v50  ;;  %v11058_v23 = vld [vmem:[#allocation2 + $0xda] sm:$0xff] }
 0x530   : > { %17450 = vmatprep.mubr.msk.bf16.mxu1 %vm21838_vm0, %v25023_v50  ;;  %17531 = vmatpush3.bf16.msra.mxu1 %v21736_v47  ;;  %v5611_v47 = vld [vmem:[#allocation2 + $0x110] sm:$0xff] }
 0x531   : > { %17532 = vmatprep.subr.bf16.mxu1 %v25023_v50 }
 0x532   : > { %18721 = vmatpush3.bf16.msra.mxu0 %v21724_v13  ;;  %v11091_v13 = vpack.c.bf16 %v11059_v40, %v11058_v23  ;;  %v6038_v40 = vld [vmem:[#allocation2 + $0x31] sm:$0xff] }
 0x533   : > { %18722 = vmatprep.subr.bf16.mxu0 %v25023_v50 }
 0x534   : > { %17533 = vmatpush3.bf16.msra.mxu1 %v21738_v34  ;;  %v11066_v34 = vld [vmem:[#allocation2 + $0x11a] sm:$0xff] }
 0x535   : > { %18639 = vmatmul.mubr.bf16.gmra.mrb[76].mxu0 %v11083_v25  ;;  %17618 = vmatprep.subr.bf16.mxu1 %v25023_v50  ;;  %v11092_v25 = vpack.c.bf16 %v11061_v31, %v11060_v14  ;;  %v11095_v7 = vpack.c.bf16 %v11067_v22, %v11066_v34  ;;  %v6039_v31 = vld [vmem:[#allocation2 + $0x39] sm:$0xff]  ;;  %v21741_v22 = vld [vmem:[%s24996_s4 + $0x4d0] sm:$0xff]  }
 0x536   : > { %18642 = vmatprep.mubr.msk.bf16.mxu0 %vm21838_vm0, %v25023_v50  ;;  %18723 = vmatpush3.bf16.msra.mxu0 %v21725_v59  ;;  %v5606_v59 = vld [vmem:[#allocation2 + $0xe8] sm:$0xff] }
 0x537   : > { %17451 = vmatmul.mubr.bf16.gmra.mrb[168].mxu1 %v5626_v63  ;;  %18724 = vmatprep.subr.bf16.mxu0 %v25023_v50  ;;  %v5635_v63 = vpack.c.bf16 %v5607_v0, %v5606_v59  ;;  %v11495_v0 = vld [vmem:[#allocation2 + $0x4b] sm:$0xff] }
 0x538   : > { %17454 = vmatprep.mubr.msk.bf16.mxu1 %vm21838_vm0, %v25023_v50 }
 0x53a   : > { %18725 = vmatpush3.bf16.msra.mxu0 %v21726_v5  ;;  %v11062_v5 = vld [vmem:[#allocation2 + $0xfa] sm:$0xff] }
 0x53b   : > { %18726 = vmatprep.subr.bf16.mxu0 %v25023_v50  ;;  %v11093_v32 = vpack.c.bf16 %v11063_v58, %v11062_v5  ;;  %v21746_v58 = vld [vmem:[%s24996_s4 + $0x1c8] sm:$0xff]   ;;  %v21739_v5 = vld [vmem:[%s24996_s4 + $0x4c0] sm:$0xff]  }
 0x53d   : > { %18643 = vmatmul.mubr.bf16.gmra.mrb[80].mxu0 %v11084_v45  ;;  %v11065_v45 = vld [vmem:[#allocation2 + $0x112] sm:$0xff] }
 0x53e   : > { %18646 = vmatprep.mubr.msk.bf16.mxu0 %vm21838_vm0, %v25023_v50  ;;  %18727 = vmatpush3.bf16.msra.mxu0 %v21727_v37  ;;  %v11064_v37 = vld [vmem:[#allocation2 + $0x10a] sm:$0xff] }
 0x53f   : > { %17455 = vmatmul.mubr.bf16.gmra.mrb[172].mxu1 %v5627_v27  ;;  %18728 = vmatprep.subr.bf16.mxu0 %v25023_v50  ;;  %v11094_v27 = vpack.c.bf16 %v11065_v45, %v11064_v37  ;;  %v21748_v37 = vld [vmem:[%s24996_s4 + $0x1d0] sm:$0xff]   ;;  %v21740_v45 = vld [vmem:[%s24996_s4 + $0x4c8] sm:$0xff]  }
 0x540   : > { %17458 = vmatprep.mubr.msk.bf16.mxu1 %vm21838_vm0, %v25023_v50 }
 0x542   : > { %18729 = vmatpush3.bf16.msra.mxu0 %v21728_v21  ;;  %v5637_v21 = vpack.c.bf16 %v5611_v47, %v5610_v46  ;;  %v11498_v46 = vld [vmem:[#allocation2 + $0x63] sm:$0xff]  ;;  %v11497_v47 = vld [vmem:[#allocation2 + $0x5b] sm:$0xff] }
 0x543   : > { %18730 = vmatprep.subr.bf16.mxu0 %v25023_v50  ;;  %v11538_v34 = vpack.c.bf16 %v11498_v46, %v11497_v47  ;;  %v6059_v46 = vld [vmem:[#allocation2 + $0xd9] sm:$0xff]  ;;  %v11515_v47 = vld [vmem:[#allocation2 + $0xeb] sm:$0xff] }
 0x545   : > { %18647 = vmatmul.mubr.bf16.gmra.mrb[84].mxu0 %v11085_v35 }
 0x546   : > { %18650 = vmatprep.mubr.msk.bf16.mxu0 %vm21838_vm0, %v25023_v50  ;;  %18731 = vmatpush3.bf16.msra.mxu0 %v21731_v16  ;;  %v5612_v16 = vld [vmem:[#allocation2 + $0x118] sm:$0xff] }
 0x547   : > { %17459 = vmatmul.mubr.bf16.gmra.mrb[176].mxu1 %v5628_v12  ;;  %18732 = vmatprep.subr.bf16.mxu0 %v25023_v50  ;;  %v5638_v35 = vpack.c.bf16 %v5613_v26, %v5612_v16  ;;  %v11069_v12 = vld [vmem:[#allocation2 + $0x132] sm:$0xff]  ;;  %v21750_v16 = vld [vmem:[%s24996_s4 + $0x1e0] sm:$0xff]  }
 0x548   : > { %17462 = vmatprep.mubr.msk.bf16.mxu1 %vm21838_vm0, %v25023_v50  ;;  %v11096_v6 = vpack.c.bf16 %v11069_v12, %v11068_v17  ;;  %v6043_v26 = vld [vmem:[#allocation2 + $0x59] sm:$0xff]  ;;  %v11499_v17 = vld [vmem:[#allocation2 + $0x6b] sm:$0xff] }
 0x549   : > { %v11500_v12 = vld [vmem:[#allocation2 + $0x73] sm:$0xff] }
 0x54a   : > { %18733 = vmatpush3.bf16.msra.mxu0 %v21737_v55  ;;  %v5614_v55 = vld [vmem:[#allocation2 + $0x128] sm:$0xff] }
 0x54b   : > { %18818 = vmatprep.subr.bf16.mxu0 %v25023_v50  ;;  %v5639_v61 = vpack.c.bf16 %v5615_v18, %v5614_v55  ;;  %v21751_v55 = vld [vmem:[%s24996_s4 + $0x1e8] sm:$0xff]   ;;  %v6046_v18 = vld [vmem:[#allocation2 + $0x71] sm:$0xff] }
 0x54d   : > { %18651 = vmatmul.mubr.bf16.gmra.mrb[88].mxu0 %v11086_v19  ;;  %v11071_v19 = vld [vmem:[#allocation2 + $0x142] sm:$0xff] }
 0x54e   : > { %18654 = vmatprep.mubr.msk.bf16.mxu0 %vm21838_vm0, %v25023_v50  ;;  %v11097_v11 = vpack.c.bf16 %v11071_v19, %v11070_v15  ;;  %v11539_v19 = vpack.c.bf16 %v11500_v12, %v11499_v17  ;;  %v6064_v17 = vld [vmem:[#allocation2 + $0x101] sm:$0xff] }
 0x54f   : > { %17463 = vmatmul.mubr.bf16.gmra.mrb[180].mxu1 %v5629_v38  ;;  %v5617_v38 = vld [vmem:[#allocation2 + $0x140] sm:$0xff] }
 0x550   : > { %17466 = vmatprep.mubr.msk.bf16.mxu1 %vm21838_vm0, %v25023_v50  ;;  %v5640_v42 = vpack.c.bf16 %v5617_v38, %v5616_v33  ;;  %v21752_v38 = vld [vmem:[%s24996_s4 + $0x1f0] sm:$0xff]   ;;  %v11502_v33 = vld [vmem:[#allocation2 + $0x83] sm:$0xff] }
 0x555   : > { %18655 = vmatmul.mubr.bf16.gmra.mrb[92].mxu0 %v11087_v20  ;;  %v11072_v20 = vld [vmem:[#allocation2 + $0x14a] sm:$0xff] }
 0x556   : > { %18658 = vmatprep.mubr.msk.bf16.mxu0 %vm21838_vm0, %v25023_v50  ;;  %v11098_v60 = vpack.c.bf16 %v11073_v54, %v11072_v20  ;;  %v11501_v20 = vld [vmem:[#allocation2 + $0x7b] sm:$0xff] }
 0x557   : > { %17467 = vmatmul.mubr.bf16.gmra.mrb[184].mxu1 %v5630_v3  ;;  %v5618_v3 = vld [vmem:[#allocation2 + $0x148] sm:$0xff] }
 0x558   : > { %17470 = vmatprep.mubr.msk.bf16.mxu1 %vm21838_vm0, %v25023_v50  ;;  %v5641_v48 = vpack.c.bf16 %v5619_v30, %v5618_v3  ;;  %v6048_v54 = vld [vmem:[#allocation2 + $0x81] sm:$0xff]  ;;  %v21747_v3 = vld [vmem:[%s24996_s4 + $0x4f0] sm:$0xff]   ;;  %v6047_v30 = vld [vmem:[#allocation2 + $0x79] sm:$0xff] }
 0x55d   : > { %18659 = vmatmul.mubr.bf16.gmra.mrb[96].mxu0 %v11088_v56  ;;  %v11075_v56 = vld [vmem:[#allocation2 + $0x162] sm:$0xff] }
 0x55e   : > { %18662 = vmatprep.mubr.msk.bf16.mxu0 %vm21838_vm0, %v25023_v50  ;;  %v11099_v57 = vpack.c.bf16 %v11075_v56, %v11074_v39  ;;  %v21753_v56 = vld [vmem:[%s24996_s4 + $0x4f8] sm:$0xff]   ;;  %v11503_v39 = vld [vmem:[#allocation2 + $0x8b] sm:$0xff] }
 0x55f   : > { %17471 = vmatmul.mubr.bf16.gmra.mrb[188].mxu1 %v5631_v41  ;;  %v5621_v41 = vld [vmem:[#allocation2 + $0x160] sm:$0xff] }
 0x560   : > { %17474 = vmatprep.mubr.msk.bf16.mxu1 %vm21838_vm0, %v25023_v50  ;;  %v5642_v52 = vpack.c.bf16 %v5621_v41, %v5620_v36  ;;  %v11504_v41 = vld [vmem:[#allocation2 + $0x93] sm:$0xff] }
 0x561   : > { %v6050_v36 = vld [vmem:[#allocation2 + $0x91] sm:$0xff] }
 0x565   : > { %18663 = vmatmul.mubr.bf16.gmra.mrb[100].mxu0 %v11089_v44  ;;  %v11076_v44 = vld [vmem:[#allocation2 + $0x16a] sm:$0xff] }
 0x566   : > { %18666 = vmatprep.mubr.msk.bf16.mxu0 %vm21838_vm0, %v25023_v50  ;;  %v11100_v10 = vpack.c.bf16 %v11077_v43, %v11076_v44  ;;  %v11506_v43 = vld [vmem:[#allocation2 + $0xa3] sm:$0xff] }
 0x567   : > { %17475 = vmatmul.mubr.bf16.gmra.mrb[192].mxu1 %v5632_v4  ;;  %v6036_v4 = vld [vmem:[#allocation2 + $0x21] sm:$0xff] }
 0x568   : > { %17478 = vmatprep.mubr.msk.bf16.mxu1 %vm21838_vm0, %v25023_v50  ;;  %v6077_v51 = vpack.c.bf16 %v6036_v4, %v6035_v24  ;;  %v11505_v4 = vld [vmem:[#allocation2 + $0x9b] sm:$0xff] }
 0x569   : > { %v11542_v24 = vpack.c.bf16 %v11506_v43, %v11505_v4  ;;  %v6071_v4 = vld [vmem:[#allocation2 + $0x139] sm:$0xff] }
 0x56d   : > { %18667 = vmatmul.mubr.bf16.gmra.mrb[104].mxu0 %v11090_v8  ;;  %v11079_v8 = vld [vmem:[#allocation2 + $0x182] sm:$0xff] }
 0x56e   : > { %18670 = vmatprep.mubr.msk.bf16.mxu0 %vm21838_vm0, %v25023_v50  ;;  %v11101_v23 = vpack.c.bf16 %v11079_v8, %v11078_v49  ;;  %v11507_v49 = vld [vmem:[#allocation2 + $0xab] sm:$0xff] }
 0x56f   : > { %17479 = vmatmul.mubr.bf16.gmra.mrb[196].mxu1 %v5633_v29  ;;  %v6037_v29 = vld [vmem:[#allocation2 + $0x29] sm:$0xff] }
 0x570   : > { %17482 = vmatprep.mubr.msk.bf16.mxu1 %vm21838_vm0, %v25023_v50  ;;  %v6078_v9 = vpack.c.bf16 %v6038_v40, %v6037_v29  ;;  %v11508_v29 = vld [vmem:[#allocation2 + $0xb3] sm:$0xff]  ;;  %v6053_v40 = vld [vmem:[#allocation2 + $0xa9] sm:$0xff] }
 0x575   : > { %18671 = vmatmul.mubr.bf16.gmra.mrb[108].mxu0 %v11091_v13  ;;  %v11080_v13 = vld [vmem:[#allocation2 + $0x18a] sm:$0xff] }
 0x576   : > { %18674 = vmatprep.mubr.msk.bf16.mxu0 %vm21838_vm0, %v25023_v50  ;;  %v11102_v14 = vpack.c.bf16 %v11081_v53, %v11080_v13  ;;  %v11510_v53 = vld [vmem:[#allocation2 + $0xc3] sm:$0xff] }
 0x577   : > { %17483 = vmatmul.mubr.bf16.gmra.mrb[200].mxu1 %v5634_v62  ;;  %v6040_v62 = vld [vmem:[#allocation2 + $0x41] sm:$0xff] }
 0x578   : > { %17486 = vmatprep.mubr.msk.bf16.mxu1 %vm21838_vm0, %v25023_v50  ;;  %v6079_v59 = vpack.c.bf16 %v6040_v62, %v6039_v31  ;;  %v11509_v62 = vld [vmem:[#allocation2 + $0xbb] sm:$0xff] }
 0x579   : > { %v11544_v31 = vpack.c.bf16 %v11510_v53, %v11509_v62  ;;  %v6075_v62 = vld [vmem:[#allocation2 + $0x159] sm:$0xff] }
 0x57d   : > { %18675 = vmatmul.mubr.bf16.gmra.mrb[112].mxu0 %v11092_v25  ;;  %v21745_v25 = vld [vmem:[%s24996_s4 + $0x1c0] sm:$0xff]  }
 0x57e   : > { %18678 = vmatprep.mubr.msk.bf16.mxu0 %vm21838_vm0, %v25023_v50 }
 0x57f   : > { %17487 = vmatmul.mubr.bf16.gmra.mrb[204].mxu1 %v5635_v63  ;;  %v11496_v63 = vld [vmem:[#allocation2 + $0x53] sm:$0xff] }
 0x580   : > { %17490 = vmatprep.mubr.msk.bf16.mxu1 %vm21838_vm0, %v25023_v50  ;;  %v11537_v28 = vpack.c.bf16 %v11496_v63, %v11495_v0  ;;  %v11511_v0 = vld [vmem:[#allocation2 + $0xcb] sm:$0xff]  ;;  %v11512_v63 = vld [vmem:[#allocation2 + $0xd3] sm:$0xff] }
 0x585   : > { %18679 = vmatmul.mubr.bf16.gmra.mrb[116].mxu0 %v11093_v32  ;;  %v6042_v32 = vld [vmem:[#allocation2 + $0x51] sm:$0xff] }
 0x586   : > { %18682 = vmatprep.mubr.msk.bf16.mxu0 %vm21838_vm0, %v25023_v50 }
 0x587   : > { %17491 = vmatmul.mubr.bf16.gmra.mrb[208].mxu1 %v5636_v1  ;;  %v6080_v1 = vpack.c.bf16 %v6042_v32, %v6041_v2  ;;  %v11545_v2 = vpack.c.bf16 %v11512_v63, %v11511_v0  ;;  %v6490_v63 = vld [vmem:[#allocation2 + $0x1a] sm:$0xff] }
 0x588   : > { %17494 = vmatprep.mubr.msk.bf16.mxu1 %vm21838_vm0, %v25023_v50 }
 0x58d   : > { %18683 = vmatmul.mubr.bf16.gmra.mrb[120].mxu0 %v11094_v27  ;;  %v21749_v27 = vld [vmem:[%s24996_s4 + $0x1d8] sm:$0xff]  }
 0x58e   : > { %18686 = vmatprep.mubr.msk.bf16.mxu0 %vm21838_vm0, %v25023_v50 }
 0x58f   : > { %17495 = vmatmul.mubr.bf16.gmra.mrb[212].mxu1 %v5637_v21  ;;  %v6044_v21 = vld [vmem:[#allocation2 + $0x61] sm:$0xff] }
 0x590   : > { %17498 = vmatprep.mubr.msk.bf16.mxu1 %vm21838_vm0, %v25023_v50 }
 0x595   : > { %18687 = vmatmul.mubr.bf16.gmra.mrb[124].mxu0 %v11095_v7  ;;  %v6081_v7 = vpack.c.bf16 %v6044_v21, %v6043_v26  ;;  %v11516_v21 = vld [vmem:[#allocation2 + $0xf3] sm:$0xff] }
 0x596   : > { %18690 = vmatprep.mubr.msk.bf16.mxu0 %vm21838_vm0, %v25023_v50  ;;  %v11547_v26 = vpack.c.bf16 %v11516_v21, %v11515_v47  ;;  %v6494_v21 = vld [vmem:[#allocation2 + $0x3a] sm:$0xff] }
 0x597   : > { %17499 = vmatmul.mubr.bf16.gmra.mrb[216].mxu1 %v5638_v35  ;;  %v21742_v35 = vld [vmem:[%s24996_s4 + $0x4d8] sm:$0xff]  }
 0x598   : > { %17502 = vmatprep.mubr.msk.bf16.mxu1 %vm21838_vm0, %v25023_v50 }
 0x59d   : > { %18691 = vmatmul.mubr.bf16.gmra.mrb[128].mxu0 %v11096_v6  ;;  %v6045_v6 = vld [vmem:[#allocation2 + $0x69] sm:$0xff] }
 0x59e   : > { %18694 = vmatprep.mubr.msk.bf16.mxu0 %vm21838_vm0, %v25023_v50  ;;  %v6082_v15 = vpack.c.bf16 %v6046_v18, %v6045_v6  ;;  %v11519_v18 = vld [vmem:[#allocation2 + $0x10b] sm:$0xff] }
 0x59f   : > { %17503 = vmatmul.mubr.bf16.gmra.mrb[220].mxu1 %v5639_v61  ;;  %v21743_v61 = vld [vmem:[%s24996_s4 + $0x4e0] sm:$0xff]  }
 0x5a0   : > { %17506 = vmatprep.mubr.msk.bf16.mxu1 %vm21838_vm0, %v25023_v50 }
 0x5a5   : > { %18695 = vmatmul.mubr.bf16.gmra.mrb[132].mxu0 %v11097_v11  ;;  %v21744_v11 = vld [vmem:[%s24996_s4 + $0x4e8] sm:$0xff]  }
 0x5a6   : > { %18698 = vmatprep.mubr.msk.bf16.mxu0 %vm21838_vm0, %v25023_v50 }
 0x5a7   : > { %17507 = vmatmul.mubr.bf16.gmra.mrb[224].mxu1 %v5640_v42  ;;  %v21754_v42 = vld [vmem:[%s24996_s4 + $0x1f8] sm:$0xff]  }
 0x5a8   : > { %17510 = vmatprep.mubr.msk.bf16.mxu1 %vm21838_vm0, %v25023_v50 }
 0x5ad   : > { %18699 = vmatmul.mubr.bf16.gmra.mrb[136].mxu0 %v11098_v60  ;;  %v11540_v60 = vpack.c.bf16 %v11502_v33, %v11501_v20  ;;  %v11522_v33 = vld [vmem:[#allocation2 + $0x123] sm:$0xff] }
 0x5ae   : > { %18702 = vmatprep.mubr.msk.bf16.mxu0 %vm21838_vm0, %v25023_v50  ;;  %v6068_v20 = vld [vmem:[#allocation2 + $0x121] sm:$0xff] }
 0x5af   : > { %17511 = vmatmul.mubr.bf16.gmra.mrb[228].mxu1 %v5641_v48  ;;  %v6083_v48 = vpack.c.bf16 %v6048_v54, %v6047_v30  ;;  %v11523_v30 = vld [vmem:[#allocation2 + $0x12b] sm:$0xff] }
 0x5b0   : > { %17514 = vmatprep.mubr.msk.bf16.mxu1 %vm21838_vm0, %v25023_v50 }
 0x5b5   : > { %18703 = vmatmul.mubr.bf16.gmra.mrb[140].mxu0 %v11099_v57  ;;  %v6049_v57 = vld [vmem:[#allocation2 + $0x89] sm:$0xff] }
 0x5b6   : > { %18706 = vmatprep.mubr.msk.bf16.mxu0 %vm21838_vm0, %v25023_v50  ;;  %v6084_v44 = vpack.c.bf16 %v6050_v36, %v6049_v57  ;;  %v11526_v36 = vld [vmem:[#allocation2 + $0x143] sm:$0xff] }
 0x5b7   : > { %17515 = vmatmul.mubr.bf16.gmra.mrb[232].mxu1 %v5642_v52  ;;  %v11541_v52 = vpack.c.bf16 %v11504_v41, %v11503_v39  ;;  %v6070_v39 = vld [vmem:[#allocation2 + $0x131] sm:$0xff] }
 0x5b8   : > { %17534 = vmatprep.mubr.msk.bf16.mxu1 %vm21838_vm0, %v25023_v50 }
 0x5bd   : > { %18707 = vmatmul.mubr.bf16.gmra.mrb[144].mxu0 %v11100_v10  ;;  %v6052_v10 = vld [vmem:[#allocation2 + $0xa1] sm:$0xff] }
 0x5be   : > { %18710 = vmatprep.mubr.msk.bf16.mxu0 %vm21838_vm0, %v25023_v50 }
 0x5bf   : > { %17535 = vmatmul.mubr.bf16.vlgmr.msra.gmra.mrb[152].mxu1 %v6077_v51  ;;  %v6051_v51 = vld [vmem:[#allocation2 + $0x99] sm:$0xff] }
 0x5c0   : > { %17538 = vmatprep.mubr.msk.bf16.mxu1 %vm21838_vm0, %v25023_v50  ;;  %17619 = vmatpush3.bf16.msra.mxu1 %v21745_v25  ;;  %v6085_v8 = vpack.c.bf16 %v6052_v10, %v6051_v51  ;;  %v11528_v51 = vld [vmem:[#allocation2 + $0x153] sm:$0xff] }
 0x5c1   : > { %17620 = vmatprep.subr.bf16.mxu1 %v25023_v50 }
 0x5c4   : > { %17621 = vmatpush3.bf16.msra.mxu1 %v21746_v58  ;;  %v6057_v58 = vld [vmem:[#allocation2 + $0xc9] sm:$0xff] }
 0x5c5   : > { %18711 = vmatmul.mubr.bf16.gmra.mrb[148].mxu0 %v11101_v23  ;;  %17622 = vmatprep.subr.bf16.mxu1 %v25023_v50  ;;  %v6054_v23 = vld [vmem:[#allocation2 + $0xb1] sm:$0xff] }
 0x5c6   : > { %18714 = vmatprep.mubr.msk.bf16.mxu0 %vm21838_vm0, %v25023_v50  ;;  %v6086_v13 = vpack.c.bf16 %v6054_v23, %v6053_v40  ;;  %v11530_v23 = vld [vmem:[#allocation2 + $0x163] sm:$0xff] }
 0x5c7   : > { %17539 = vmatmul.mubr.bf16.gmra.mrb[156].mxu1 %v6078_v9  ;;  %v11543_v9 = vpack.c.bf16 %v11508_v29, %v11507_v49  ;;  %v6074_v49 = vld [vmem:[#allocation2 + $0x151] sm:$0xff] }
 0x5c8   : > { %17542 = vmatprep.mubr.msk.bf16.mxu1 %vm21838_vm0, %v25023_v50  ;;  %17623 = vmatpush3.bf16.msra.mxu1 %v21748_v37  ;;  %v6060_v37 = vld [vmem:[#allocation2 + $0xe1] sm:$0xff] }
 0x5c9   : > { %17624 = vmatprep.subr.bf16.mxu1 %v25023_v50 }
 0x5cc   : > { %17625 = vmatpush3.bf16.msra.mxu1 %v21749_v27  ;;  %v6089_v27 = vpack.c.bf16 %v6060_v37, %v6059_v46  ;;  %v11536_v46 = vld [vmem:[#allocation2 + $0x193] sm:$0xff] }
 0x5cd   : > { %18715 = vmatmul.mubr.bf16.gmra.mrb[152].mxu0 %v11102_v14  ;;  %17626 = vmatprep.subr.bf16.mxu1 %v25023_v50  ;;  %v6056_v14 = vld [vmem:[#allocation2 + $0xc1] sm:$0xff] }
 0x5ce   : > { %18734 = vmatprep.mubr.msk.bf16.mxu0 %vm21838_vm0, %v25023_v50 }
 0x5cf   : > { %17543 = vmatmul.mubr.bf16.gmra.mrb[160].mxu1 %v6079_v59  ;;  %v6055_v59 = vld [vmem:[#allocation2 + $0xb9] sm:$0xff] }
 0x5d0   : > { %17546 = vmatprep.mubr.msk.bf16.mxu1 %vm21838_vm0, %v25023_v50  ;;  %17627 = vmatpush3.bf16.msra.mxu1 %v21750_v16  ;;  %v6087_v25 = vpack.c.bf16 %v6056_v14, %v6055_v59  ;;  %v11518_v16 = vld [vmem:[#allocation2 + $0x103] sm:$0xff]  ;;  %v11532_v59 = vld [vmem:[#allocation2 + $0x173] sm:$0xff] }
 0x5d1   : > { %17628 = vmatprep.subr.bf16.mxu1 %v25023_v50 }
 0x5d4   : > { %17629 = vmatpush3.bf16.msra.mxu1 %v21751_v55  ;;  %v6063_v55 = vld [vmem:[#allocation2 + $0xf9] sm:$0xff] }
 0x5d5   : > { %18735 = vmatmul.mubr.bf16.vlgmr.msra.gmra.mrb[72].mxu0 %v11537_v28  ;;  %17630 = vmatprep.subr.bf16.mxu1 %v25023_v50  ;;  %v11514_v28 = vld [vmem:[#allocation2 + $0xe3] sm:$0xff]  ;;  %v6091_v6 = vpack.c.bf16 %v6064_v17, %v6063_v55 }
 0x5d6   : > { %18819 = vmatpush3.bf16.msra.mxu0 %v21739_v5  ;;  %18738 = vmatprep.mubr.msk.bf16.mxu0 %vm21838_vm0, %v25023_v50  ;;  %v6058_v5 = vld [vmem:[#allocation2 + $0xd1] sm:$0xff] }
 0x5d7   : > { %17547 = vmatmul.mubr.bf16.gmra.mrb[164].mxu1 %v6080_v1  ;;  %18820 = vmatprep.subr.bf16.mxu0 %v25023_v50  ;;  %v6088_v32 = vpack.c.bf16 %v6058_v5, %v6057_v58  ;;  %v11513_v1 = vld [vmem:[#allocation2 + $0xdb] sm:$0xff]  ;;  %v11534_v5 = vld [vmem:[#allocation2 + $0x183] sm:$0xff] }
 0x5d8   : > { %17550 = vmatprep.mubr.msk.bf16.mxu1 %vm21838_vm0, %v25023_v50  ;;  %17631 = vmatpush3.bf16.msra.mxu1 %v21752_v38  ;;  %v6496_v17 = vld [vmem:[#allocation2 + $0x4a] sm:$0xff] }
 0x5d9   : > { %17632 = vmatprep.subr.bf16.mxu1 %v25023_v50 }
 0x5da   : > { %18821 = vmatpush3.bf16.msra.mxu0 %v21740_v45  ;;  %v11546_v45 = vpack.c.bf16 %v11514_v28, %v11513_v1  ;;  %v6493_v28 = vld [vmem:[#allocation2 + $0x32] sm:$0xff] }
 0x5db   : > { %18822 = vmatprep.subr.bf16.mxu0 %v25023_v50 }
 0x5dc   : > { %17633 = vmatpush3.bf16.msra.mxu1 %v21754_v42  ;;  %v11521_v42 = vld [vmem:[#allocation2 + $0x11b] sm:$0xff] }
 0x5dd   : > { %18739 = vmatmul.mubr.bf16.gmra.mrb[76].mxu0 %v11538_v34  ;;  %17718 = vmatprep.subr.bf16.mxu1 %v25023_v50  ;;  %v6062_v34 = vld [vmem:[#allocation2 + $0xf1] sm:$0xff]  ;;  %v11550_v54 = vpack.c.bf16 %v11522_v33, %v11521_v42 }
 0x5de   : > { %18742 = vmatprep.mubr.msk.bf16.mxu0 %vm21838_vm0, %v25023_v50  ;;  %18823 = vmatpush3.bf16.msra.mxu0 %v21741_v22  ;;  %v6061_v22 = vld [vmem:[#allocation2 + $0xe9] sm:$0xff] }
 0x5df   : > { %17551 = vmatmul.mubr.bf16.gmra.mrb[168].mxu1 %v6081_v7  ;;  %18824 = vmatprep.subr.bf16.mxu0 %v25023_v50  ;;  %v6090_v7 = vpack.c.bf16 %v6062_v34, %v6061_v22  ;;  %v21761_v34 = vld [vmem:[%s24996_s4 + $0x200] sm:$0xff]   ;;  %v21757_v33 = vld [vmem:[%s24996_s4 + $0x510] sm:$0xff]  }
 0x5e0   : > { %17554 = vmatprep.mubr.msk.bf16.mxu1 %vm21838_vm0, %v25023_v50 }
 0x5e2   : > { %18825 = vmatpush3.bf16.msra.mxu0 %v21742_v35  ;;  %v11517_v35 = vld [vmem:[#allocation2 + $0xfb] sm:$0xff] }
 0x5e3   : > { %18826 = vmatprep.subr.bf16.mxu0 %v25023_v50  ;;  %v11548_v12 = vpack.c.bf16 %v11518_v16, %v11517_v35  ;;  %v21762_v16 = vld [vmem:[%s24996_s4 + $0x208] sm:$0xff]   ;;  %v21755_v35 = vld [vmem:[%s24996_s4 + $0x500] sm:$0xff]  }
 0x5e5   : > { %18743 = vmatmul.mubr.bf16.gmra.mrb[80].mxu0 %v11539_v19  ;;  %v6065_v19 = vld [vmem:[#allocation2 + $0x109] sm:$0xff] }
 0x5e6   : > { %18746 = vmatprep.mubr.msk.bf16.mxu0 %vm21838_vm0, %v25023_v50  ;;  %18827 = vmatpush3.bf16.msra.mxu0 %v21743_v61  ;;  %v11520_v61 = vld [vmem:[#allocation2 + $0x113] sm:$0xff] }
 0x5e7   : > { %17555 = vmatmul.mubr.bf16.gmra.mrb[172].mxu1 %v6082_v15  ;;  %18828 = vmatprep.subr.bf16.mxu0 %v25023_v50  ;;  %v6066_v15 = vld [vmem:[#allocation2 + $0x111] sm:$0xff]  ;;  %v11549_v38 = vpack.c.bf16 %v11520_v61, %v11519_v18  ;;  %v21756_v61 = vld [vmem:[%s24996_s4 + $0x508] sm:$0xff]  }
 0x5e8   : > { %17558 = vmatprep.mubr.msk.bf16.mxu1 %vm21838_vm0, %v25023_v50  ;;  %v21764_v18 = vld [vmem:[%s24996_s4 + $0x210] sm:$0xff]  }
 0x5ea   : > { %18829 = vmatpush3.bf16.msra.mxu0 %v21744_v11  ;;  %v6092_v11 = vpack.c.bf16 %v6066_v15, %v6065_v19  ;;  %v11953_v19 = vld [vmem:[#allocation2 + $0x64] sm:$0xff]  ;;  %v21765_v15 = vld [vmem:[%s24996_s4 + $0x218] sm:$0xff]  }
 0x5eb   : > { %18830 = vmatprep.subr.bf16.mxu0 %v25023_v50 }
 0x5ed   : > { %18747 = vmatmul.mubr.bf16.gmra.mrb[84].mxu0 %v11540_v60 }
 0x5ee   : > { %18750 = vmatprep.mubr.msk.bf16.mxu0 %vm21838_vm0, %v25023_v50  ;;  %18831 = vmatpush3.bf16.msra.mxu0 %v21747_v3  ;;  %v6067_v3 = vld [vmem:[#allocation2 + $0x119] sm:$0xff] }
 0x5ef   : > { %17559 = vmatmul.mubr.bf16.gmra.mrb[176].mxu1 %v6083_v48  ;;  %18832 = vmatprep.subr.bf16.mxu0 %v25023_v50  ;;  %v6093_v60 = vpack.c.bf16 %v6068_v20, %v6067_v3  ;;  %v11524_v48 = vld [vmem:[#allocation2 + $0x133] sm:$0xff]  ;;  %v21766_v3 = vld [vmem:[%s24996_s4 + $0x220] sm:$0xff]  }
 0x5f0   : > { %17562 = vmatprep.mubr.msk.bf16.mxu1 %vm21838_vm0, %v25023_v50  ;;  %v11551_v41 = vpack.c.bf16 %v11524_v48, %v11523_v30  ;;  %v6498_v20 = vld [vmem:[#allocation2 + $0x5a] sm:$0xff]  ;;  %v11954_v30 = vld [vmem:[#allocation2 + $0x6c] sm:$0xff] }
 0x5f1   : > { %v11955_v48 = vld [vmem:[#allocation2 + $0x74] sm:$0xff] }
 0x5f2   : > { %18833 = vmatpush3.bf16.msra.mxu0 %v21753_v56  ;;  %v6069_v56 = vld [vmem:[#allocation2 + $0x129] sm:$0xff] }
 0x5f3   : > { %18918 = vmatprep.subr.bf16.mxu0 %v25023_v50  ;;  %v6094_v57 = vpack.c.bf16 %v6070_v39, %v6069_v56  ;;  %v21767_v56 = vld [vmem:[%s24996_s4 + $0x228] sm:$0xff]  }
 0x5f4   : > { %v6500_v39 = vld [vmem:[#allocation2 + $0x6a] sm:$0xff] }
 0x5f5   : > { %18751 = vmatmul.mubr.bf16.gmra.mrb[88].mxu0 %v11541_v52  ;;  %v11525_v52 = vld [vmem:[#allocation2 + $0x13b] sm:$0xff] }
 0x5f6   : > { %18754 = vmatprep.mubr.msk.bf16.mxu0 %vm21838_vm0, %v25023_v50  ;;  %v11552_v43 = vpack.c.bf16 %v11526_v36, %v11525_v52  ;;  %v11994_v36 = vpack.c.bf16 %v11955_v48, %v11954_v30  ;;  %v6519_v30 = vld [vmem:[#allocation2 + $0x102] sm:$0xff] }
 0x5f7   : > { %17563 = vmatmul.mubr.bf16.gmra.mrb[180].mxu1 %v6084_v44  ;;  %v6072_v44 = vld [vmem:[#allocation2 + $0x141] sm:$0xff] }
 0x5f8   : > { %17566 = vmatprep.mubr.msk.bf16.mxu1 %vm21838_vm0, %v25023_v50  ;;  %v6095_v10 = vpack.c.bf16 %v6072_v44, %v6071_v4  ;;  %v21768_v44 = vld [vmem:[%s24996_s4 + $0x230] sm:$0xff]   ;;  %v11957_v4 = vld [vmem:[#allocation2 + $0x84] sm:$0xff] }
 0x5fd   : > { %18755 = vmatmul.mubr.bf16.gmra.mrb[92].mxu0 %v11542_v24  ;;  %v11527_v24 = vld [vmem:[#allocation2 + $0x14b] sm:$0xff] }
 0x5fe   : > { %18758 = vmatprep.mubr.msk.bf16.mxu0 %vm21838_vm0, %v25023_v50  ;;  %v11553_v29 = vpack.c.bf16 %v11528_v51, %v11527_v24  ;;  %v11956_v24 = vld [vmem:[#allocation2 + $0x7c] sm:$0xff] }
 0x5ff   : > { %17567 = vmatmul.mubr.bf16.gmra.mrb[184].mxu1 %v6085_v8  ;;  %v6073_v8 = vld [vmem:[#allocation2 + $0x149] sm:$0xff] }
 0x600   : > { %17570 = vmatprep.mubr.msk.bf16.mxu1 %vm21838_vm0, %v25023_v50  ;;  %v6096_v40 = vpack.c.bf16 %v6074_v49, %v6073_v8  ;;  %v6503_v51 = vld [vmem:[#allocation2 + $0x82] sm:$0xff]  ;;  %v21763_v8 = vld [vmem:[%s24996_s4 + $0x530] sm:$0xff]   ;;  %v11995_v49 = vpack.c.bf16 %v11957_v4, %v11956_v24 }
 0x601   : > { %v11977_v4 = vld [vmem:[#allocation2 + $0x124] sm:$0xff] }
 0x602   : > { %v6523_v24 = vld [vmem:[#allocation2 + $0x122] sm:$0xff] }
 0x605   : > { %18759 = vmatmul.mubr.bf16.gmra.mrb[96].mxu0 %v11543_v9  ;;  %v11529_v9 = vld [vmem:[#allocation2 + $0x15b] sm:$0xff] }
 0x606   : > { %18762 = vmatprep.mubr.msk.bf16.mxu0 %vm21838_vm0, %v25023_v50  ;;  %v11554_v53 = vpack.c.bf16 %v11530_v23, %v11529_v9  ;;  %v21769_v23 = vld [vmem:[%s24996_s4 + $0x538] sm:$0xff]   ;;  %v11958_v9 = vld [vmem:[#allocation2 + $0x8c] sm:$0xff] }
 0x607   : > { %17571 = vmatmul.mubr.bf16.gmra.mrb[188].mxu1 %v6086_v13  ;;  %v6076_v13 = vld [vmem:[#allocation2 + $0x161] sm:$0xff] }
 0x608   : > { %17574 = vmatprep.mubr.msk.bf16.mxu1 %vm21838_vm0, %v25023_v50  ;;  %v6097_v14 = vpack.c.bf16 %v6076_v13, %v6075_v62  ;;  %v11959_v13 = vld [vmem:[#allocation2 + $0x94] sm:$0xff] }
 0x609   : > { %v6505_v62 = vld [vmem:[#allocation2 + $0x92] sm:$0xff] }
 0x60d   : > { %18763 = vmatmul.mubr.bf16.gmra.mrb[100].mxu0 %v11544_v31  ;;  %v11531_v31 = vld [vmem:[#allocation2 + $0x16b] sm:$0xff] }
 0x60e   : > { %18766 = vmatprep.mubr.msk.bf16.mxu0 %vm21838_vm0, %v25023_v50  ;;  %v11555_v0 = vpack.c.bf16 %v11532_v59, %v11531_v31  ;;  %v11961_v59 = vld [vmem:[#allocation2 + $0xa4] sm:$0xff] }
 0x60f   : > { %17575 = vmatmul.mubr.bf16.gmra.mrb[192].mxu1 %v6087_v25  ;;  %v6491_v25 = vld [vmem:[#allocation2 + $0x22] sm:$0xff] }
 0x610   : > { %17578 = vmatprep.mubr.msk.bf16.mxu1 %vm21838_vm0, %v25023_v50  ;;  %v6532_v58 = vpack.c.bf16 %v6491_v25, %v6490_v63  ;;  %v11960_v25 = vld [vmem:[#allocation2 + $0x9c] sm:$0xff] }
 0x611   : > { %v11997_v63 = vpack.c.bf16 %v11961_v59, %v11960_v25  ;;  %v6526_v25 = vld [vmem:[#allocation2 + $0x13a] sm:$0xff] }
 0x615   : > { %18767 = vmatmul.mubr.bf16.gmra.mrb[104].mxu0 %v11545_v2  ;;  %v11533_v2 = vld [vmem:[#allocation2 + $0x17b] sm:$0xff] }
 0x616   : > { %18770 = vmatprep.mubr.msk.bf16.mxu0 %vm21838_vm0, %v25023_v50  ;;  %v11556_v1 = vpack.c.bf16 %v11534_v5, %v11533_v2  ;;  %v11962_v2 = vld [vmem:[#allocation2 + $0xac] sm:$0xff] }
 0x617   : > { %17579 = vmatmul.mubr.bf16.gmra.mrb[196].mxu1 %v6088_v32  ;;  %v6492_v32 = vld [vmem:[#allocation2 + $0x2a] sm:$0xff] }
 0x618   : > { %17582 = vmatprep.mubr.msk.bf16.mxu1 %vm21838_vm0, %v25023_v50  ;;  %v6533_v37 = vpack.c.bf16 %v6493_v28, %v6492_v32  ;;  %v11963_v32 = vld [vmem:[#allocation2 + $0xb4] sm:$0xff]  ;;  %v6508_v28 = vld [vmem:[#allocation2 + $0xaa] sm:$0xff] }
 0x61d   : > { %18771 = vmatmul.mubr.bf16.gmra.mrb[108].mxu0 %v11546_v45  ;;  %v11535_v45 = vld [vmem:[#allocation2 + $0x18b] sm:$0xff] }
 0x61e   : > { %18774 = vmatprep.mubr.msk.bf16.mxu0 %vm21838_vm0, %v25023_v50  ;;  %v11557_v47 = vpack.c.bf16 %v11536_v46, %v11535_v45  ;;  %v11965_v46 = vld [vmem:[#allocation2 + $0xc4] sm:$0xff] }
 0x61f   : > { %17583 = vmatmul.mubr.bf16.gmra.mrb[200].mxu1 %v6089_v27  ;;  %v6495_v27 = vld [vmem:[#allocation2 + $0x42] sm:$0xff] }
 0x620   : > { %17586 = vmatprep.mubr.msk.bf16.mxu1 %vm21838_vm0, %v25023_v50  ;;  %v6534_v22 = vpack.c.bf16 %v6495_v27, %v6494_v21  ;;  %v11964_v27 = vld [vmem:[#allocation2 + $0xbc] sm:$0xff] }
 0x621   : > { %v11999_v21 = vpack.c.bf16 %v11965_v46, %v11964_v27  ;;  %v6530_v27 = vld [vmem:[#allocation2 + $0x15a] sm:$0xff] }
 0x625   : > { %18775 = vmatmul.mubr.bf16.gmra.mrb[112].mxu0 %v11547_v26  ;;  %v11950_v26 = vld [vmem:[#allocation2 + $0x4c] sm:$0xff] }
 0x626   : > { %18778 = vmatprep.mubr.msk.bf16.mxu0 %vm21838_vm0, %v25023_v50 }
 0x627   : > { %17587 = vmatmul.mubr.bf16.gmra.mrb[204].mxu1 %v6090_v7  ;;  %v11951_v7 = vld [vmem:[#allocation2 + $0x54] sm:$0xff] }
 0x628   : > { %17590 = vmatprep.mubr.msk.bf16.mxu1 %vm21838_vm0, %v25023_v50  ;;  %v11992_v55 = vpack.c.bf16 %v11951_v7, %v11950_v26  ;;  %v11966_v26 = vld [vmem:[#allocation2 + $0xcc] sm:$0xff]  ;;  %v11967_v7 = vld [vmem:[#allocation2 + $0xd4] sm:$0xff] }
 0x62d   : > { %18779 = vmatmul.mubr.bf16.gmra.mrb[116].mxu0 %v11548_v12  ;;  %v6497_v12 = vld [vmem:[#allocation2 + $0x52] sm:$0xff] }
 0x62e   : > { %18782 = vmatprep.mubr.msk.bf16.mxu0 %vm21838_vm0, %v25023_v50 }
 0x62f   : > { %17591 = vmatmul.mubr.bf16.gmra.mrb[208].mxu1 %v6091_v6  ;;  %v6535_v6 = vpack.c.bf16 %v6497_v12, %v6496_v17  ;;  %v12000_v17 = vpack.c.bf16 %v11967_v7, %v11966_v26  ;;  %v6945_v7 = vld [vmem:[#allocation2 + $0x1b] sm:$0xff] }
 0x630   : > { %17594 = vmatprep.mubr.msk.bf16.mxu1 %vm21838_vm0, %v25023_v50 }
 0x635   : > { %18783 = vmatmul.mubr.bf16.gmra.mrb[120].mxu0 %v11549_v38  ;;  %v11952_v38 = vld [vmem:[#allocation2 + $0x5c] sm:$0xff] }
 0x636   : > { %18786 = vmatprep.mubr.msk.bf16.mxu0 %vm21838_vm0, %v25023_v50  ;;  %v11993_v42 = vpack.c.bf16 %v11953_v19, %v11952_v38  ;;  %v6514_v19 = vld [vmem:[#allocation2 + $0xda] sm:$0xff]  ;;  %v11970_v38 = vld [vmem:[#allocation2 + $0xec] sm:$0xff] }
 0x637   : > { %17595 = vmatmul.mubr.bf16.gmra.mrb[212].mxu1 %v6092_v11  ;;  %v6499_v11 = vld [vmem:[#allocation2 + $0x62] sm:$0xff] }
 0x638   : > { %17598 = vmatprep.mubr.msk.bf16.mxu1 %vm21838_vm0, %v25023_v50 }
 0x63d   : > { %18787 = vmatmul.mubr.bf16.gmra.mrb[124].mxu0 %v11550_v54  ;;  %v6536_v54 = vpack.c.bf16 %v6499_v11, %v6498_v20  ;;  %v11971_v11 = vld [vmem:[#allocation2 + $0xf4] sm:$0xff] }
 0x63e   : > { %18790 = vmatprep.mubr.msk.bf16.mxu0 %vm21838_vm0, %v25023_v50  ;;  %v12002_v20 = vpack.c.bf16 %v11971_v11, %v11970_v38  ;;  %v6949_v11 = vld [vmem:[#allocation2 + $0x3b] sm:$0xff] }
 0x63f   : > { %17599 = vmatmul.mubr.bf16.gmra.mrb[216].mxu1 %v6093_v60  ;;  %v21758_v60 = vld [vmem:[%s24996_s4 + $0x518] sm:$0xff]  }
 0x640   : > { %17602 = vmatprep.mubr.msk.bf16.mxu1 %vm21838_vm0, %v25023_v50 }
 0x645   : > { %18791 = vmatmul.mubr.bf16.gmra.mrb[128].mxu0 %v11551_v41  ;;  %v6501_v41 = vld [vmem:[#allocation2 + $0x72] sm:$0xff] }
 0x646   : > { %18794 = vmatprep.mubr.msk.bf16.mxu0 %vm21838_vm0, %v25023_v50  ;;  %v6537_v52 = vpack.c.bf16 %v6501_v41, %v6500_v39  ;;  %v11974_v41 = vld [vmem:[#allocation2 + $0x10c] sm:$0xff] }
 0x647   : > { %17603 = vmatmul.mubr.bf16.gmra.mrb[220].mxu1 %v6094_v57  ;;  %v21759_v57 = vld [vmem:[%s24996_s4 + $0x520] sm:$0xff]  }
 0x648   : > { %17606 = vmatprep.mubr.msk.bf16.mxu1 %vm21838_vm0, %v25023_v50 }
 0x64d   : > { %18795 = vmatmul.mubr.bf16.gmra.mrb[132].mxu0 %v11552_v43  ;;  %v21760_v43 = vld [vmem:[%s24996_s4 + $0x528] sm:$0xff]  }
 0x64e   : > { %18798 = vmatprep.mubr.msk.bf16.mxu0 %vm21838_vm0, %v25023_v50 }
 0x64f   : > { %17607 = vmatmul.mubr.bf16.gmra.mrb[224].mxu1 %v6095_v10  ;;  %v21770_v10 = vld [vmem:[%s24996_s4 + $0x238] sm:$0xff]  }
 0x650   : > { %17610 = vmatprep.mubr.msk.bf16.mxu1 %vm21838_vm0, %v25023_v50 }
 0x655   : > { %18799 = vmatmul.mubr.bf16.gmra.mrb[136].mxu0 %v11553_v29  ;;  %v6502_v29 = vld [vmem:[#allocation2 + $0x7a] sm:$0xff] }
 0x656   : > { %18802 = vmatprep.mubr.msk.bf16.mxu0 %vm21838_vm0, %v25023_v50 }
 0x657   : > { %17611 = vmatmul.mubr.bf16.gmra.mrb[228].mxu1 %v6096_v40  ;;  %v6538_v40 = vpack.c.bf16 %v6503_v51, %v6502_v29  ;;  %v11978_v29 = vld [vmem:[#allocation2 + $0x12c] sm:$0xff] }
 0x658   : > { %17614 = vmatprep.mubr.msk.bf16.mxu1 %vm21838_vm0, %v25023_v50 }
 0x65d   : > { %18803 = vmatmul.mubr.bf16.gmra.mrb[140].mxu0 %v11554_v53  ;;  %v6504_v53 = vld [vmem:[#allocation2 + $0x8a] sm:$0xff] }
 0x65e   : > { %18806 = vmatprep.mubr.msk.bf16.mxu0 %vm21838_vm0, %v25023_v50  ;;  %v6539_v31 = vpack.c.bf16 %v6505_v62, %v6504_v53  ;;  %v11981_v62 = vld [vmem:[#allocation2 + $0x144] sm:$0xff] }
 0x65f   : > { %17615 = vmatmul.mubr.bf16.gmra.mrb[232].mxu1 %v6097_v14  ;;  %v11996_v14 = vpack.c.bf16 %v11959_v13, %v11958_v9  ;;  %v6525_v9 = vld [vmem:[#allocation2 + $0x132] sm:$0xff] }
 0x660   : > { %17634 = vmatprep.mubr.msk.bf16.mxu1 %vm21838_vm0, %v25023_v50 }
 0x665   : > { %18807 = vmatmul.mubr.bf16.gmra.mrb[144].mxu0 %v11555_v0  ;;  %v6507_v0 = vld [vmem:[#allocation2 + $0xa2] sm:$0xff] }
 0x666   : > { %18810 = vmatprep.mubr.msk.bf16.mxu0 %vm21838_vm0, %v25023_v50 }
 0x667   : > { %17635 = vmatmul.mubr.bf16.vlgmr.msra.gmra.mrb[152].mxu1 %v6532_v58  ;;  %v6506_v58 = vld [vmem:[#allocation2 + $0x9a] sm:$0xff] }
 0x668   : > { %17638 = vmatprep.mubr.msk.bf16.mxu1 %vm21838_vm0, %v25023_v50  ;;  %17719 = vmatpush3.bf16.msra.mxu1 %v21761_v34  ;;  %v6540_v5 = vpack.c.bf16 %v6507_v0, %v6506_v58  ;;  %v11983_v58 = vld [vmem:[#allocation2 + $0x154] sm:$0xff] }
 0x669   : > { %17720 = vmatprep.subr.bf16.mxu1 %v25023_v50 }
 0x66c   : > { %17721 = vmatpush3.bf16.msra.mxu1 %v21762_v16  ;;  %v6512_v16 = vld [vmem:[#allocation2 + $0xca] sm:$0xff] }
 0x66d   : > { %18811 = vmatmul.mubr.bf16.gmra.mrb[148].mxu0 %v11556_v1  ;;  %17722 = vmatprep.subr.bf16.mxu1 %v25023_v50  ;;  %v6509_v1 = vld [vmem:[#allocation2 + $0xb2] sm:$0xff] }
 0x66e   : > { %18814 = vmatprep.mubr.msk.bf16.mxu0 %vm21838_vm0, %v25023_v50  ;;  %v6541_v45 = vpack.c.bf16 %v6509_v1, %v6508_v28  ;;  %v11985_v1 = vld [vmem:[#allocation2 + $0x164] sm:$0xff] }
 0x66f   : > { %17639 = vmatmul.mubr.bf16.gmra.mrb[156].mxu1 %v6533_v37  ;;  %v11998_v37 = vpack.c.bf16 %v11963_v32, %v11962_v2  ;;  %v6529_v2 = vld [vmem:[#allocation2 + $0x152] sm:$0xff] }
 0x670   : > { %17642 = vmatprep.mubr.msk.bf16.mxu1 %vm21838_vm0, %v25023_v50  ;;  %17723 = vmatpush3.bf16.msra.mxu1 %v21764_v18  ;;  %v6515_v18 = vld [vmem:[#allocation2 + $0xe2] sm:$0xff] }
 0x671   : > { %17724 = vmatprep.subr.bf16.mxu1 %v25023_v50 }
 0x674   : > { %17725 = vmatpush3.bf16.msra.mxu1 %v21765_v15  ;;  %v6544_v15 = vpack.c.bf16 %v6515_v18, %v6514_v19  ;;  %v11991_v19 = vld [vmem:[#allocation2 + $0x194] sm:$0xff] }
 0x675   : > { %18815 = vmatmul.mubr.bf16.gmra.mrb[152].mxu0 %v11557_v47  ;;  %17726 = vmatprep.subr.bf16.mxu1 %v25023_v50  ;;  %v6511_v47 = vld [vmem:[#allocation2 + $0xc2] sm:$0xff] }
 0x676   : > { %18834 = vmatprep.mubr.msk.bf16.mxu0 %vm21838_vm0, %v25023_v50 }
 0x677   : > { %17643 = vmatmul.mubr.bf16.gmra.mrb[160].mxu1 %v6534_v22  ;;  %v6510_v22 = vld [vmem:[#allocation2 + $0xba] sm:$0xff] }
 0x678   : > { %17646 = vmatprep.mubr.msk.bf16.mxu1 %vm21838_vm0, %v25023_v50  ;;  %17727 = vmatpush3.bf16.msra.mxu1 %v21766_v3  ;;  %v6542_v34 = vpack.c.bf16 %v6511_v47, %v6510_v22  ;;  %v11973_v3 = vld [vmem:[#allocation2 + $0x104] sm:$0xff]  ;;  %v11987_v22 = vld [vmem:[#allocation2 + $0x174] sm:$0xff] }
 0x679   : > { %17728 = vmatprep.subr.bf16.mxu1 %v25023_v50 }
 0x67c   : > { %17729 = vmatpush3.bf16.msra.mxu1 %v21767_v56  ;;  %v6518_v56 = vld [vmem:[#allocation2 + $0xfa] sm:$0xff] }
 0x67d   : > { %18835 = vmatmul.mubr.bf16.vlgmr.msra.gmra.mrb[72].mxu0 %v11992_v55  ;;  %17730 = vmatprep.subr.bf16.mxu1 %v25023_v50  ;;  %v11969_v55 = vld [vmem:[#allocation2 + $0xe4] sm:$0xff]  ;;  %v6546_v39 = vpack.c.bf16 %v6519_v30, %v6518_v56 }
 0x67e   : > { %18919 = vmatpush3.bf16.msra.mxu0 %v21755_v35  ;;  %18838 = vmatprep.mubr.msk.bf16.mxu0 %vm21838_vm0, %v25023_v50  ;;  %v6513_v35 = vld [vmem:[#allocation2 + $0xd2] sm:$0xff] }
 0x67f   : > { %17647 = vmatmul.mubr.bf16.gmra.mrb[164].mxu1 %v6535_v6  ;;  %18920 = vmatprep.subr.bf16.mxu0 %v25023_v50  ;;  %v6543_v12 = vpack.c.bf16 %v6513_v35, %v6512_v16  ;;  %v11968_v6 = vld [vmem:[#allocation2 + $0xdc] sm:$0xff]  ;;  %v11989_v35 = vld [vmem:[#allocation2 + $0x184] sm:$0xff] }
 0x680   : > { %17650 = vmatprep.mubr.msk.bf16.mxu1 %vm21838_vm0, %v25023_v50  ;;  %17731 = vmatpush3.bf16.msra.mxu1 %v21768_v44  ;;  %v6951_v30 = vld [vmem:[#allocation2 + $0x4b] sm:$0xff] }
 0x681   : > { %17732 = vmatprep.subr.bf16.mxu1 %v25023_v50 }
 0x682   : > { %18921 = vmatpush3.bf16.msra.mxu0 %v21756_v61  ;;  %v12001_v61 = vpack.c.bf16 %v11969_v55, %v11968_v6  ;;  %v6948_v55 = vld [vmem:[#allocation2 + $0x33] sm:$0xff] }
 0x683   : > { %18922 = vmatprep.subr.bf16.mxu0 %v25023_v50 }
 0x684   : > { %17733 = vmatpush3.bf16.msra.mxu1 %v21770_v10  ;;  %v11976_v10 = vld [vmem:[#allocation2 + $0x11c] sm:$0xff] }
 0x685   : > { %18839 = vmatmul.mubr.bf16.gmra.mrb[76].mxu0 %v11993_v42  ;;  %17818 = vmatprep.subr.bf16.mxu1 %v25023_v50  ;;  %v6517_v42 = vld [vmem:[#allocation2 + $0xf2] sm:$0xff]  ;;  %v12005_v51 = vpack.c.bf16 %v11977_v4, %v11976_v10 }
 0x686   : > { %18842 = vmatprep.mubr.msk.bf16.mxu0 %vm21838_vm0, %v25023_v50  ;;  %18923 = vmatpush3.bf16.msra.mxu0 %v21757_v33  ;;  %v6516_v33 = vld [vmem:[#allocation2 + $0xea] sm:$0xff] }
 0x687   : > { %17651 = vmatmul.mubr.bf16.gmra.mrb[168].mxu1 %v6536_v54  ;;  %18924 = vmatprep.subr.bf16.mxu0 %v25023_v50  ;;  %v6545_v54 = vpack.c.bf16 %v6517_v42, %v6516_v33  ;;  %v21777_v42 = vld [vmem:[%s24996_s4 + $0x240] sm:$0xff]   ;;  %v21773_v4 = vld [vmem:[%s24996_s4 + $0x550] sm:$0xff]  }
 0x688   : > { %17654 = vmatprep.mubr.msk.bf16.mxu1 %vm21838_vm0, %v25023_v50 }
 0x68a   : > { %18925 = vmatpush3.bf16.msra.mxu0 %v21758_v60  ;;  %v11972_v60 = vld [vmem:[#allocation2 + $0xfc] sm:$0xff] }
 0x68b   : > { %18926 = vmatprep.subr.bf16.mxu0 %v25023_v50  ;;  %v12003_v48 = vpack.c.bf16 %v11973_v3, %v11972_v60  ;;  %v12405_v3 = vld [vmem:[#allocation2 + $0x60] sm:$0xff] }
 0x68c   : > { %v21771_v60 = vld [vmem:[%s24996_s4 + $0x540] sm:$0xff]  }
 0x68d   : > { %18843 = vmatmul.mubr.bf16.gmra.mrb[80].mxu0 %v11994_v36  ;;  %v6520_v36 = vld [vmem:[#allocation2 + $0x10a] sm:$0xff] }
 0x68e   : > { %18846 = vmatprep.mubr.msk.bf16.mxu0 %vm21838_vm0, %v25023_v50  ;;  %18927 = vmatpush3.bf16.msra.mxu0 %v21759_v57  ;;  %v11975_v57 = vld [vmem:[#allocation2 + $0x114] sm:$0xff] }
 0x68f   : > { %17655 = vmatmul.mubr.bf16.gmra.mrb[172].mxu1 %v6537_v52  ;;  %18928 = vmatprep.subr.bf16.mxu0 %v25023_v50  ;;  %v6521_v52 = vld [vmem:[#allocation2 + $0x112] sm:$0xff]  ;;  %v12004_v44 = vpack.c.bf16 %v11975_v57, %v11974_v41  ;;  %v21772_v57 = vld [vmem:[%s24996_s4 + $0x548] sm:$0xff]  }
 0x690   : > { %17658 = vmatprep.mubr.msk.bf16.mxu1 %vm21838_vm0, %v25023_v50  ;;  %v21780_v41 = vld [vmem:[%s24996_s4 + $0x250] sm:$0xff]  }
 0x692   : > { %18929 = vmatpush3.bf16.msra.mxu0 %v21760_v43  ;;  %v6547_v43 = vpack.c.bf16 %v6521_v52, %v6520_v36  ;;  %v12408_v36 = vld [vmem:[#allocation2 + $0x78] sm:$0xff] }
 0x693   : > { %18930 = vmatprep.subr.bf16.mxu0 %v25023_v50  ;;  %v21781_v52 = vld [vmem:[%s24996_s4 + $0x258] sm:$0xff]  }
 0x695   : > { %18847 = vmatmul.mubr.bf16.gmra.mrb[84].mxu0 %v11995_v49 }
 0x696   : > { %18850 = vmatprep.mubr.msk.bf16.mxu0 %vm21838_vm0, %v25023_v50  ;;  %18931 = vmatpush3.bf16.msra.mxu0 %v21763_v8  ;;  %v6522_v8 = vld [vmem:[#allocation2 + $0x11a] sm:$0xff] }
 0x697   : > { %17659 = vmatmul.mubr.bf16.gmra.mrb[176].mxu1 %v6538_v40  ;;  %18932 = vmatprep.subr.bf16.mxu0 %v25023_v50  ;;  %v6548_v49 = vpack.c.bf16 %v6523_v24, %v6522_v8  ;;  %v11979_v40 = vld [vmem:[#allocation2 + $0x134] sm:$0xff]  ;;  %v21782_v8 = vld [vmem:[%s24996_s4 + $0x260] sm:$0xff]  }
 0x698   : > { %17662 = vmatprep.mubr.msk.bf16.mxu1 %vm21838_vm0, %v25023_v50  ;;  %v12006_v13 = vpack.c.bf16 %v11979_v40, %v11978_v29  ;;  %v6953_v24 = vld [vmem:[#allocation2 + $0x5b] sm:$0xff]  ;;  %v12410_v29 = vld [vmem:[#allocation2 + $0x88] sm:$0xff] }
 0x699   : > { %v21783_v40 = vld [vmem:[%s24996_s4 + $0x268] sm:$0xff]  }
 0x69a   : > { %18933 = vmatpush3.bf16.msra.mxu0 %v21769_v23  ;;  %v6524_v23 = vld [vmem:[#allocation2 + $0x12a] sm:$0xff] }
 0x69b   : > { %19018 = vmatprep.subr.bf16.mxu0 %v25023_v50  ;;  %v6549_v53 = vpack.c.bf16 %v6525_v9, %v6524_v23  ;;  %v12409_v23 = vld [vmem:[#allocation2 + $0x80] sm:$0xff]  ;;  %v6955_v9 = vld [vmem:[#allocation2 + $0x6b] sm:$0xff] }
 0x69d   : > { %18851 = vmatmul.mubr.bf16.gmra.mrb[88].mxu0 %v11996_v14  ;;  %v11980_v14 = vld [vmem:[#allocation2 + $0x13c] sm:$0xff] }
 0x69e   : > { %18854 = vmatprep.mubr.msk.bf16.mxu0 %vm21838_vm0, %v25023_v50  ;;  %v12007_v59 = vpack.c.bf16 %v11981_v62, %v11980_v14  ;;  %v12449_v62 = vpack.c.bf16 %v12410_v29, %v12409_v23  ;;  %v6974_v29 = vld [vmem:[#allocation2 + $0x103] sm:$0xff]  ;;  %v6973_v23 = vld [vmem:[#allocation2 + $0xfb] sm:$0xff] }
 0x69f   : > { %17663 = vmatmul.mubr.bf16.gmra.mrb[180].mxu1 %v6539_v31  ;;  %v6527_v31 = vld [vmem:[#allocation2 + $0x142] sm:$0xff] }
 0x6a0   : > { %17666 = vmatprep.mubr.msk.bf16.mxu1 %vm21838_vm0, %v25023_v50  ;;  %v6550_v0 = vpack.c.bf16 %v6527_v31, %v6526_v25  ;;  %v21784_v31 = vld [vmem:[%s24996_s4 + $0x270] sm:$0xff]   ;;  %v12412_v25 = vld [vmem:[#allocation2 + $0x98] sm:$0xff] }
 0x6a5   : > { %18855 = vmatmul.mubr.bf16.gmra.mrb[92].mxu0 %v11997_v63  ;;  %v11982_v63 = vld [vmem:[#allocation2 + $0x14c] sm:$0xff] }
 0x6a6   : > { %18858 = vmatprep.mubr.msk.bf16.mxu0 %vm21838_vm0, %v25023_v50  ;;  %v12008_v32 = vpack.c.bf16 %v11983_v58, %v11982_v63  ;;  %v12411_v63 = vld [vmem:[#allocation2 + $0x90] sm:$0xff]  ;;  %v6958_v58 = vld [vmem:[#allocation2 + $0x83] sm:$0xff] }
 0x6a7   : > { %17667 = vmatmul.mubr.bf16.gmra.mrb[184].mxu1 %v6540_v5  ;;  %v6528_v5 = vld [vmem:[#allocation2 + $0x14a] sm:$0xff] }
 0x6a8   : > { %17670 = vmatprep.mubr.msk.bf16.mxu1 %vm21838_vm0, %v25023_v50  ;;  %v6551_v28 = vpack.c.bf16 %v6529_v2, %v6528_v5  ;;  %v21779_v5 = vld [vmem:[%s24996_s4 + $0x570] sm:$0xff]   ;;  %v12450_v2 = vpack.c.bf16 %v12412_v25, %v12411_v63  ;;  %v12432_v25 = vld [vmem:[#allocation2 + $0x138] sm:$0xff]  ;;  %v6978_v63 = vld [vmem:[#allocation2 + $0x123] sm:$0xff] }
 0x6ad   : > { %18859 = vmatmul.mubr.bf16.gmra.mrb[96].mxu0 %v11998_v37  ;;  %v11984_v37 = vld [vmem:[#allocation2 + $0x15c] sm:$0xff] }
 0x6ae   : > { %18862 = vmatprep.mubr.msk.bf16.mxu0 %vm21838_vm0, %v25023_v50  ;;  %v12009_v46 = vpack.c.bf16 %v11985_v1, %v11984_v37  ;;  %v21785_v1 = vld [vmem:[%s24996_s4 + $0x578] sm:$0xff]   ;;  %v12414_v37 = vld [vmem:[#allocation2 + $0xa8] sm:$0xff] }
 0x6af   : > { %17671 = vmatmul.mubr.bf16.gmra.mrb[188].mxu1 %v6541_v45  ;;  %v6531_v45 = vld [vmem:[#allocation2 + $0x162] sm:$0xff] }
 0x6b0   : > { %17674 = vmatprep.mubr.msk.bf16.mxu1 %vm21838_vm0, %v25023_v50  ;;  %v6552_v47 = vpack.c.bf16 %v6531_v45, %v6530_v27  ;;  %v12413_v45 = vld [vmem:[#allocation2 + $0xa0] sm:$0xff]  ;;  %v6960_v27 = vld [vmem:[#allocation2 + $0x93] sm:$0xff] }
 0x6b5   : > { %18863 = vmatmul.mubr.bf16.gmra.mrb[100].mxu0 %v11999_v21  ;;  %v11986_v21 = vld [vmem:[#allocation2 + $0x16c] sm:$0xff] }
 0x6b6   : > { %18866 = vmatprep.mubr.msk.bf16.mxu0 %vm21838_vm0, %v25023_v50  ;;  %v12010_v26 = vpack.c.bf16 %v11987_v22, %v11986_v21  ;;  %v12416_v22 = vld [vmem:[#allocation2 + $0xb8] sm:$0xff] }
 0x6b7   : > { %17675 = vmatmul.mubr.bf16.gmra.mrb[192].mxu1 %v6542_v34  ;;  %v6946_v34 = vld [vmem:[#allocation2 + $0x23] sm:$0xff] }
 0x6b8   : > { %17678 = vmatprep.mubr.msk.bf16.mxu1 %vm21838_vm0, %v25023_v50  ;;  %v6987_v16 = vpack.c.bf16 %v6946_v34, %v6945_v7  ;;  %v12415_v34 = vld [vmem:[#allocation2 + $0xb0] sm:$0xff] }
 0x6b9   : > { %v12452_v7 = vpack.c.bf16 %v12416_v22, %v12415_v34  ;;  %v6981_v34 = vld [vmem:[#allocation2 + $0x13b] sm:$0xff] }
 0x6bd   : > { %18867 = vmatmul.mubr.bf16.gmra.mrb[104].mxu0 %v12000_v17  ;;  %v11988_v17 = vld [vmem:[#allocation2 + $0x17c] sm:$0xff] }
 0x6be   : > { %18870 = vmatprep.mubr.msk.bf16.mxu0 %vm21838_vm0, %v25023_v50  ;;  %v12011_v6 = vpack.c.bf16 %v11989_v35, %v11988_v17  ;;  %v12418_v17 = vld [vmem:[#allocation2 + $0xc8] sm:$0xff] }
 0x6bf   : > { %17679 = vmatmul.mubr.bf16.gmra.mrb[196].mxu1 %v6543_v12  ;;  %v6947_v12 = vld [vmem:[#allocation2 + $0x2b] sm:$0xff] }
 0x6c0   : > { %17682 = vmatprep.mubr.msk.bf16.mxu1 %vm21838_vm0, %v25023_v50  ;;  %v6988_v18 = vpack.c.bf16 %v6948_v55, %v6947_v12  ;;  %v12417_v12 = vld [vmem:[#allocation2 + $0xc0] sm:$0xff]  ;;  %v6963_v55 = vld [vmem:[#allocation2 + $0xab] sm:$0xff] }
 0x6c5   : > { %18871 = vmatmul.mubr.bf16.gmra.mrb[108].mxu0 %v12001_v61  ;;  %v11990_v61 = vld [vmem:[#allocation2 + $0x18c] sm:$0xff] }
 0x6c6   : > { %18874 = vmatprep.mubr.msk.bf16.mxu0 %vm21838_vm0, %v25023_v50  ;;  %v12012_v38 = vpack.c.bf16 %v11991_v19, %v11990_v61  ;;  %v12420_v19 = vld [vmem:[#allocation2 + $0xd8] sm:$0xff] }
 0x6c7   : > { %17683 = vmatmul.mubr.bf16.gmra.mrb[200].mxu1 %v6544_v15  ;;  %v6950_v15 = vld [vmem:[#allocation2 + $0x43] sm:$0xff] }
 0x6c8   : > { %17686 = vmatprep.mubr.msk.bf16.mxu1 %vm21838_vm0, %v25023_v50  ;;  %v6989_v33 = vpack.c.bf16 %v6950_v15, %v6949_v11  ;;  %v12419_v15 = vld [vmem:[#allocation2 + $0xd0] sm:$0xff] }
 0x6c9   : > { %v12454_v11 = vpack.c.bf16 %v12420_v19, %v12419_v15  ;;  %v6985_v15 = vld [vmem:[#allocation2 + $0x15b] sm:$0xff] }
 0x6cd   : > { %18875 = vmatmul.mubr.bf16.gmra.mrb[112].mxu0 %v12002_v20  ;;  %v12406_v20 = vld [vmem:[#allocation2 + $0x68] sm:$0xff] }
 0x6ce   : > { %18878 = vmatprep.mubr.msk.bf16.mxu0 %vm21838_vm0, %v25023_v50  ;;  %v12447_v56 = vpack.c.bf16 %v12406_v20, %v12405_v3  ;;  %v12422_v20 = vld [vmem:[#allocation2 + $0xe8] sm:$0xff] }
 0x6cf   : > { %17687 = vmatmul.mubr.bf16.gmra.mrb[204].mxu1 %v6545_v54  ;;  %v21778_v54 = vld [vmem:[%s24996_s4 + $0x248] sm:$0xff]  }
 0x6d0   : > { %17690 = vmatprep.mubr.msk.bf16.mxu1 %vm21838_vm0, %v25023_v50  ;;  %v6967_v3 = vld [vmem:[#allocation2 + $0xcb] sm:$0xff] }
 0x6d5   : > { %18879 = vmatmul.mubr.bf16.gmra.mrb[116].mxu0 %v12003_v48  ;;  %v6952_v48 = vld [vmem:[#allocation2 + $0x53] sm:$0xff] }
 0x6d6   : > { %18882 = vmatprep.mubr.msk.bf16.mxu0 %vm21838_vm0, %v25023_v50 }
 0x6d7   : > { %17691 = vmatmul.mubr.bf16.gmra.mrb[208].mxu1 %v6546_v39  ;;  %v6990_v39 = vpack.c.bf16 %v6952_v48, %v6951_v30 }
 0x6d8   : > { %17694 = vmatprep.mubr.msk.bf16.mxu1 %vm21838_vm0, %v25023_v50 }
 0x6dd   : > { %18883 = vmatmul.mubr.bf16.gmra.mrb[120].mxu0 %v12004_v44  ;;  %v12407_v44 = vld [vmem:[#allocation2 + $0x70] sm:$0xff] }
 0x6de   : > { %18886 = vmatprep.mubr.msk.bf16.mxu0 %vm21838_vm0, %v25023_v50  ;;  %v12448_v10 = vpack.c.bf16 %v12408_v36, %v12407_v44  ;;  %v6969_v36 = vld [vmem:[#allocation2 + $0xdb] sm:$0xff]  ;;  %v12426_v44 = vld [vmem:[#allocation2 + $0x108] sm:$0xff] }
 0x6df   : > { %17695 = vmatmul.mubr.bf16.gmra.mrb[212].mxu1 %v6547_v43  ;;  %v6954_v43 = vld [vmem:[#allocation2 + $0x63] sm:$0xff] }
 0x6e0   : > { %17698 = vmatprep.mubr.msk.bf16.mxu1 %vm21838_vm0, %v25023_v50 }
 0x6e5   : > { %18887 = vmatmul.mubr.bf16.gmra.mrb[124].mxu0 %v12005_v51  ;;  %v6991_v51 = vpack.c.bf16 %v6954_v43, %v6953_v24  ;;  %v12425_v43 = vld [vmem:[#allocation2 + $0x100] sm:$0xff] }
 0x6e6   : > { %18890 = vmatprep.mubr.msk.bf16.mxu0 %vm21838_vm0, %v25023_v50  ;;  %v12457_v24 = vpack.c.bf16 %v12426_v44, %v12425_v43  ;;  %v7404_v43 = vld [vmem:[#allocation2 + $0x3c] sm:$0xff] }
 0x6e7   : > { %17699 = vmatmul.mubr.bf16.gmra.mrb[216].mxu1 %v6548_v49  ;;  %v21774_v49 = vld [vmem:[%s24996_s4 + $0x558] sm:$0xff]  }
 0x6e8   : > { %17702 = vmatprep.mubr.msk.bf16.mxu1 %vm21838_vm0, %v25023_v50 }
 0x6ed   : > { %18891 = vmatmul.mubr.bf16.gmra.mrb[128].mxu0 %v12006_v13  ;;  %v6956_v13 = vld [vmem:[#allocation2 + $0x73] sm:$0xff] }
 0x6ee   : > { %18894 = vmatprep.mubr.msk.bf16.mxu0 %vm21838_vm0, %v25023_v50  ;;  %v6992_v14 = vpack.c.bf16 %v6956_v13, %v6955_v9  ;;  %v7001_v9 = vpack.c.bf16 %v6974_v29, %v6973_v23  ;;  %v12430_v13 = vld [vmem:[#allocation2 + $0x128] sm:$0xff] }
 0x6ef   : > { %17703 = vmatmul.mubr.bf16.gmra.mrb[220].mxu1 %v6549_v53  ;;  %v21775_v53 = vld [vmem:[%s24996_s4 + $0x560] sm:$0xff]   ;;  %v7406_v29 = vld [vmem:[#allocation2 + $0x4c] sm:$0xff] }
 0x6f0   : > { %17706 = vmatprep.mubr.msk.bf16.mxu1 %vm21838_vm0, %v25023_v50 }
 0x6f5   : > { %18895 = vmatmul.mubr.bf16.gmra.mrb[132].mxu0 %v12007_v59  ;;  %v21776_v59 = vld [vmem:[%s24996_s4 + $0x568] sm:$0xff]  }
 0x6f6   : > { %18898 = vmatprep.mubr.msk.bf16.mxu0 %vm21838_vm0, %v25023_v50 }
 0x6f7   : > { %17707 = vmatmul.mubr.bf16.gmra.mrb[224].mxu1 %v6550_v0  ;;  %v21786_v0 = vld [vmem:[%s24996_s4 + $0x278] sm:$0xff]  }
 0x6f8   : > { %17710 = vmatprep.mubr.msk.bf16.mxu1 %vm21838_vm0, %v25023_v50 }
 0x6fd   : > { %18899 = vmatmul.mubr.bf16.gmra.mrb[136].mxu0 %v12008_v32  ;;  %v6957_v32 = vld [vmem:[#allocation2 + $0x7b] sm:$0xff] }
 0x6fe   : > { %18902 = vmatprep.mubr.msk.bf16.mxu0 %vm21838_vm0, %v25023_v50 }
 0x6ff   : > { %17711 = vmatmul.mubr.bf16.gmra.mrb[228].mxu1 %v6551_v28  ;;  %v6993_v28 = vpack.c.bf16 %v6958_v58, %v6957_v32  ;;  %v12434_v32 = vld [vmem:[#allocation2 + $0x148] sm:$0xff] }
 0x700   : > { %17714 = vmatprep.mubr.msk.bf16.mxu1 %vm21838_vm0, %v25023_v50 }
 0x705   : > { %18903 = vmatmul.mubr.bf16.gmra.mrb[140].mxu0 %v12009_v46  ;;  %v6959_v46 = vld [vmem:[#allocation2 + $0x8b] sm:$0xff] }
 0x706   : > { %18906 = vmatprep.mubr.msk.bf16.mxu0 %vm21838_vm0, %v25023_v50  ;;  %v6994_v21 = vpack.c.bf16 %v6960_v27, %v6959_v46  ;;  %v12436_v27 = vld [vmem:[#allocation2 + $0x158] sm:$0xff] }
 0x707   : > { %17715 = vmatmul.mubr.bf16.gmra.mrb[232].mxu1 %v6552_v47  ;;  %v12451_v47 = vpack.c.bf16 %v12414_v37, %v12413_v45  ;;  %v6980_v37 = vld [vmem:[#allocation2 + $0x133] sm:$0xff] }
 0x708   : > { %17734 = vmatprep.mubr.msk.bf16.mxu1 %vm21838_vm0, %v25023_v50 }
 0x70d   : > { %18907 = vmatmul.mubr.bf16.gmra.mrb[144].mxu0 %v12010_v26  ;;  %v6962_v26 = vld [vmem:[#allocation2 + $0xa3] sm:$0xff] }
 0x70e   : > { %18910 = vmatprep.mubr.msk.bf16.mxu0 %vm21838_vm0, %v25023_v50 }
 0x70f   : > { %17735 = vmatmul.mubr.bf16.vlgmr.msra.gmra.mrb[152].mxu1 %v6987_v16  ;;  %v6961_v16 = vld [vmem:[#allocation2 + $0x9b] sm:$0xff] }
 0x710   : > { %17738 = vmatprep.mubr.msk.bf16.mxu1 %vm21838_vm0, %v25023_v50  ;;  %17819 = vmatpush3.bf16.msra.mxu1 %v21777_v42  ;;  %v6995_v35 = vpack.c.bf16 %v6962_v26, %v6961_v16  ;;  %v12437_v16 = vld [vmem:[#allocation2 + $0x160] sm:$0xff] }
 0x711   : > { %17820 = vmatprep.subr.bf16.mxu1 %v25023_v50 }
 0x714   : > { %17821 = vmatpush3.bf16.msra.mxu1 %v21778_v54  ;;  %v12421_v54 = vld [vmem:[#allocation2 + $0xe0] sm:$0xff] }
 0x715   : > { %18911 = vmatmul.mubr.bf16.gmra.mrb[148].mxu0 %v12011_v6  ;;  %17822 = vmatprep.subr.bf16.mxu1 %v25023_v50  ;;  %v6964_v6 = vld [vmem:[#allocation2 + $0xb3] sm:$0xff]  ;;  %v12455_v30 = vpack.c.bf16 %v12422_v20, %v12421_v54  ;;  %v7400_v54 = vld [vmem:[#allocation2 + $0x1c] sm:$0xff] }
 0x716   : > { %18914 = vmatprep.mubr.msk.bf16.mxu0 %vm21838_vm0, %v25023_v50  ;;  %v6996_v61 = vpack.c.bf16 %v6964_v6, %v6963_v55  ;;  %v12440_v6 = vld [vmem:[#allocation2 + $0x178] sm:$0xff] }
 0x717   : > { %17739 = vmatmul.mubr.bf16.gmra.mrb[156].mxu1 %v6988_v18  ;;  %v12453_v18 = vpack.c.bf16 %v12418_v17, %v12417_v12  ;;  %v6984_v17 = vld [vmem:[#allocation2 + $0x153] sm:$0xff] }
 0x718   : > { %17742 = vmatprep.mubr.msk.bf16.mxu1 %vm21838_vm0, %v25023_v50  ;;  %17823 = vmatpush3.bf16.msra.mxu1 %v21780_v41  ;;  %v6970_v41 = vld [vmem:[#allocation2 + $0xe3] sm:$0xff] }
 0x719   : > { %17824 = vmatprep.subr.bf16.mxu1 %v25023_v50 }
 0x71c   : > { %17825 = vmatpush3.bf16.msra.mxu1 %v21781_v52  ;;  %v6999_v52 = vpack.c.bf16 %v6970_v41, %v6969_v36  ;;  %v12445_v36 = vld [vmem:[#allocation2 + $0x1a0] sm:$0xff] }
 0x71d   : > { %18915 = vmatmul.mubr.bf16.gmra.mrb[152].mxu0 %v12012_v38  ;;  %17826 = vmatprep.subr.bf16.mxu1 %v25023_v50  ;;  %v6966_v38 = vld [vmem:[#allocation2 + $0xc3] sm:$0xff] }
 0x71e   : > { %18934 = vmatprep.mubr.msk.bf16.mxu0 %vm21838_vm0, %v25023_v50 }
 0x71f   : > { %17743 = vmatmul.mubr.bf16.gmra.mrb[160].mxu1 %v6989_v33  ;;  %v6965_v33 = vld [vmem:[#allocation2 + $0xbb] sm:$0xff] }
 0x720   : > { %17746 = vmatprep.mubr.msk.bf16.mxu1 %vm21838_vm0, %v25023_v50  ;;  %17827 = vmatpush3.bf16.msra.mxu1 %v21782_v8  ;;  %v6997_v42 = vpack.c.bf16 %v6966_v38, %v6965_v33  ;;  %v12428_v8 = vld [vmem:[#allocation2 + $0x118] sm:$0xff]  ;;  %v12441_v33 = vld [vmem:[#allocation2 + $0x180] sm:$0xff] }
 0x721   : > { %17828 = vmatprep.subr.bf16.mxu1 %v25023_v50 }
 0x724   : > { %17829 = vmatpush3.bf16.msra.mxu1 %v21783_v40 }
 0x725   : > { %18935 = vmatmul.mubr.bf16.vlgmr.msra.gmra.mrb[72].mxu0 %v12447_v56  ;;  %17830 = vmatprep.subr.bf16.mxu1 %v25023_v50  ;;  %v12424_v56 = vld [vmem:[#allocation2 + $0xf8] sm:$0xff] }
 0x726   : > { %19019 = vmatpush3.bf16.msra.mxu0 %v21771_v60  ;;  %18938 = vmatprep.mubr.msk.bf16.mxu0 %vm21838_vm0, %v25023_v50  ;;  %v6968_v60 = vld [vmem:[#allocation2 + $0xd3] sm:$0xff] }
 0x727   : > { %17747 = vmatmul.mubr.bf16.gmra.mrb[164].mxu1 %v6990_v39  ;;  %19020 = vmatprep.subr.bf16.mxu0 %v25023_v50  ;;  %v6998_v48 = vpack.c.bf16 %v6968_v60, %v6967_v3  ;;  %v12423_v39 = vld [vmem:[#allocation2 + $0xf0] sm:$0xff]  ;;  %v12444_v60 = vld [vmem:[#allocation2 + $0x198] sm:$0xff] }
 0x728   : > { %17750 = vmatprep.mubr.msk.bf16.mxu1 %vm21838_vm0, %v25023_v50  ;;  %17831 = vmatpush3.bf16.msra.mxu1 %v21784_v31 }
 0x729   : > { %17832 = vmatprep.subr.bf16.mxu1 %v25023_v50 }
 0x72a   : > { %19021 = vmatpush3.bf16.msra.mxu0 %v21772_v57  ;;  %v12456_v57 = vpack.c.bf16 %v12424_v56, %v12423_v39  ;;  %v7403_v56 = vld [vmem:[#allocation2 + $0x34] sm:$0xff] }
 0x72b   : > { %19022 = vmatprep.subr.bf16.mxu0 %v25023_v50 }
 0x72c   : > { %17833 = vmatpush3.bf16.msra.mxu1 %v21786_v0  ;;  %v12431_v0 = vld [vmem:[#allocation2 + $0x130] sm:$0xff] }
 0x72d   : > { %18939 = vmatmul.mubr.bf16.gmra.mrb[76].mxu0 %v12448_v10  ;;  %17918 = vmatprep.subr.bf16.mxu1 %v25023_v50  ;;  %v6972_v10 = vld [vmem:[#allocation2 + $0xf3] sm:$0xff]  ;;  %v12460_v58 = vpack.c.bf16 %v12432_v25, %v12431_v0 }
 0x72e   : > { %18942 = vmatprep.mubr.msk.bf16.mxu0 %vm21838_vm0, %v25023_v50  ;;  %19023 = vmatpush3.bf16.msra.mxu0 %v21773_v4  ;;  %v6971_v4 = vld [vmem:[#allocation2 + $0xeb] sm:$0xff] }
 0x72f   : > { %17751 = vmatmul.mubr.bf16.gmra.mrb[168].mxu1 %v6991_v51  ;;  %19024 = vmatprep.subr.bf16.mxu0 %v25023_v50  ;;  %v7000_v51 = vpack.c.bf16 %v6972_v10, %v6971_v4  ;;  %v21793_v10 = vld [vmem:[%s24996_s4 + $0x280] sm:$0xff]   ;;  %v21789_v25 = vld [vmem:[%s24996_s4 + $0x590] sm:$0xff]  }
 0x730   : > { %17754 = vmatprep.mubr.msk.bf16.mxu1 %vm21838_vm0, %v25023_v50 }
 0x732   : > { %19025 = vmatpush3.bf16.msra.mxu0 %v21774_v49  ;;  %v12427_v49 = vld [vmem:[#allocation2 + $0x110] sm:$0xff] }
 0x733   : > { %19026 = vmatprep.subr.bf16.mxu0 %v25023_v50  ;;  %v12458_v40 = vpack.c.bf16 %v12428_v8, %v12427_v49  ;;  %v21794_v8 = vld [vmem:[%s24996_s4 + $0x288] sm:$0xff]   ;;  %v21787_v49 = vld [vmem:[%s24996_s4 + $0x580] sm:$0xff]  }
 0x735   : > { %18943 = vmatmul.mubr.bf16.gmra.mrb[80].mxu0 %v12449_v62  ;;  %v6975_v62 = vld [vmem:[#allocation2 + $0x10b] sm:$0xff] }
 0x736   : > { %18946 = vmatprep.mubr.msk.bf16.mxu0 %vm21838_vm0, %v25023_v50  ;;  %19027 = vmatpush3.bf16.msra.mxu0 %v21775_v53  ;;  %v12429_v53 = vld [vmem:[#allocation2 + $0x120] sm:$0xff] }
 0x737   : > { %17755 = vmatmul.mubr.bf16.gmra.mrb[172].mxu1 %v6992_v14  ;;  %19028 = vmatprep.subr.bf16.mxu0 %v25023_v50  ;;  %v6976_v14 = vld [vmem:[#allocation2 + $0x113] sm:$0xff]  ;;  %v12459_v31 = vpack.c.bf16 %v12430_v13, %v12429_v53  ;;  %v21788_v53 = vld [vmem:[%s24996_s4 + $0x588] sm:$0xff]  }
 0x738   : > { %17758 = vmatprep.mubr.msk.bf16.mxu1 %vm21838_vm0, %v25023_v50  ;;  %v21796_v13 = vld [vmem:[%s24996_s4 + $0x290] sm:$0xff]  }
 0x73a   : > { %19029 = vmatpush3.bf16.msra.mxu0 %v21776_v59  ;;  %v7002_v59 = vpack.c.bf16 %v6976_v14, %v6975_v62  ;;  %v12863_v62 = vld [vmem:[#allocation2 + $0x79] sm:$0xff] }
 0x73b   : > { %19030 = vmatprep.subr.bf16.mxu0 %v25023_v50  ;;  %v21797_v14 = vld [vmem:[%s24996_s4 + $0x298] sm:$0xff]  }
 0x73d   : > { %18947 = vmatmul.mubr.bf16.gmra.mrb[84].mxu0 %v12450_v2 }
 0x73e   : > { %18950 = vmatprep.mubr.msk.bf16.mxu0 %vm21838_vm0, %v25023_v50  ;;  %19031 = vmatpush3.bf16.msra.mxu0 %v21779_v5  ;;  %v6977_v5 = vld [vmem:[#allocation2 + $0x11b] sm:$0xff] }
 0x73f   : > { %17759 = vmatmul.mubr.bf16.gmra.mrb[176].mxu1 %v6993_v28  ;;  %19032 = vmatprep.subr.bf16.mxu0 %v25023_v50  ;;  %v7003_v2 = vpack.c.bf16 %v6978_v63, %v6977_v5  ;;  %v12433_v28 = vld [vmem:[#allocation2 + $0x140] sm:$0xff] }
 0x740   : > { %17762 = vmatprep.mubr.msk.bf16.mxu1 %vm21838_vm0, %v25023_v50  ;;  %v12461_v45 = vpack.c.bf16 %v12434_v32, %v12433_v28  ;;  %v7408_v63 = vld [vmem:[#allocation2 + $0x5c] sm:$0xff]  ;;  %v12865_v28 = vld [vmem:[#allocation2 + $0x89] sm:$0xff] }
 0x741   : > { %v21798_v5 = vld [vmem:[%s24996_s4 + $0x2a0] sm:$0xff]  }
 0x742   : > { %19033 = vmatpush3.bf16.msra.mxu0 %v21785_v1  ;;  %v6979_v1 = vld [vmem:[#allocation2 + $0x12b] sm:$0xff]  ;;  %v12864_v32 = vld [vmem:[#allocation2 + $0x81] sm:$0xff] }
 0x743   : > { %19118 = vmatprep.subr.bf16.mxu0 %v25023_v50  ;;  %v7004_v46 = vpack.c.bf16 %v6980_v37, %v6979_v1  ;;  %v21799_v1 = vld [vmem:[%s24996_s4 + $0x2a8] sm:$0xff]  }
 0x744   : > { %v7410_v37 = vld [vmem:[#allocation2 + $0x6c] sm:$0xff] }
 0x745   : > { %18951 = vmatmul.mubr.bf16.gmra.mrb[88].mxu0 %v12451_v47  ;;  %v12435_v47 = vld [vmem:[#allocation2 + $0x150] sm:$0xff] }
 0x746   : > { %18954 = vmatprep.mubr.msk.bf16.mxu0 %vm21838_vm0, %v25023_v50  ;;  %v12462_v22 = vpack.c.bf16 %v12436_v27, %v12435_v47  ;;  %v12904_v27 = vpack.c.bf16 %v12865_v28, %v12864_v32  ;;  %v7429_v32 = vld [vmem:[#allocation2 + $0x104] sm:$0xff] }
 0x747   : > { %17763 = vmatmul.mubr.bf16.gmra.mrb[180].mxu1 %v6994_v21  ;;  %v6982_v21 = vld [vmem:[#allocation2 + $0x143] sm:$0xff] }
 0x748   : > { %17766 = vmatprep.mubr.msk.bf16.mxu1 %vm21838_vm0, %v25023_v50  ;;  %v7005_v26 = vpack.c.bf16 %v6982_v21, %v6981_v34  ;;  %v21800_v21 = vld [vmem:[%s24996_s4 + $0x2b0] sm:$0xff]   ;;  %v12867_v34 = vld [vmem:[#allocation2 + $0x99] sm:$0xff] }
 0x74d   : > { %18955 = vmatmul.mubr.bf16.gmra.mrb[92].mxu0 %v12452_v7  ;;  %v12438_v7 = vld [vmem:[#allocation2 + $0x168] sm:$0xff] }
 0x74e   : > { %18958 = vmatprep.mubr.msk.bf16.mxu0 %vm21838_vm0, %v25023_v50  ;;  %v12463_v12 = vpack.c.bf16 %v12438_v7, %v12437_v16  ;;  %v12866_v7 = vld [vmem:[#allocation2 + $0x91] sm:$0xff]  ;;  %v7413_v16 = vld [vmem:[#allocation2 + $0x84] sm:$0xff] }
 0x74f   : > { %17767 = vmatmul.mubr.bf16.gmra.mrb[184].mxu1 %v6995_v35  ;;  %v6983_v35 = vld [vmem:[#allocation2 + $0x14b] sm:$0xff] }
 0x750   : > { %17770 = vmatprep.mubr.msk.bf16.mxu1 %vm21838_vm0, %v25023_v50  ;;  %v7006_v55 = vpack.c.bf16 %v6984_v17, %v6983_v35  ;;  %v21795_v35 = vld [vmem:[%s24996_s4 + $0x5b0] sm:$0xff]   ;;  %v12905_v17 = vpack.c.bf16 %v12867_v34, %v12866_v7  ;;  %v12887_v34 = vld [vmem:[#allocation2 + $0x139] sm:$0xff]  ;;  %v7433_v7 = vld [vmem:[#allocation2 + $0x124] sm:$0xff] }
 0x755   : > { %18959 = vmatmul.mubr.bf16.gmra.mrb[96].mxu0 %v12453_v18  ;;  %v12439_v18 = vld [vmem:[#allocation2 + $0x170] sm:$0xff] }
 0x756   : > { %18962 = vmatprep.mubr.msk.bf16.mxu0 %vm21838_vm0, %v25023_v50  ;;  %v12464_v19 = vpack.c.bf16 %v12440_v6, %v12439_v18  ;;  %v21801_v6 = vld [vmem:[%s24996_s4 + $0x5b8] sm:$0xff]   ;;  %v12868_v18 = vld [vmem:[#allocation2 + $0xa1] sm:$0xff] }
 0x757   : > { %17771 = vmatmul.mubr.bf16.gmra.mrb[188].mxu1 %v6996_v61  ;;  %v6986_v61 = vld [vmem:[#allocation2 + $0x163] sm:$0xff] }
 0x758   : > { %17774 = vmatprep.mubr.msk.bf16.mxu1 %vm21838_vm0, %v25023_v50  ;;  %v7007_v38 = vpack.c.bf16 %v6986_v61, %v6985_v15  ;;  %v12869_v61 = vld [vmem:[#allocation2 + $0xa9] sm:$0xff]  ;;  %v7415_v15 = vld [vmem:[#allocation2 + $0x94] sm:$0xff] }
 0x75d   : > { %18963 = vmatmul.mubr.bf16.gmra.mrb[100].mxu0 %v12454_v11  ;;  %v12442_v11 = vld [vmem:[#allocation2 + $0x188] sm:$0xff] }
 0x75e   : > { %18966 = vmatprep.mubr.msk.bf16.mxu0 %vm21838_vm0, %v25023_v50  ;;  %v12465_v20 = vpack.c.bf16 %v12442_v11, %v12441_v33  ;;  %v12871_v33 = vld [vmem:[#allocation2 + $0xb9] sm:$0xff] }
 0x75f   : > { %17775 = vmatmul.mubr.bf16.gmra.mrb[192].mxu1 %v6997_v42  ;;  %v7401_v42 = vld [vmem:[#allocation2 + $0x24] sm:$0xff] }
 0x760   : > { %17778 = vmatprep.mubr.msk.bf16.mxu1 %vm21838_vm0, %v25023_v50  ;;  %v7442_v3 = vpack.c.bf16 %v7401_v42, %v7400_v54  ;;  %v12870_v42 = vld [vmem:[#allocation2 + $0xb1] sm:$0xff] }
 0x761   : > { %v12907_v54 = vpack.c.bf16 %v12871_v33, %v12870_v42  ;;  %v7436_v42 = vld [vmem:[#allocation2 + $0x13c] sm:$0xff] }
 0x765   : > { %18967 = vmatmul.mubr.bf16.gmra.mrb[104].mxu0 %v12455_v30  ;;  %v12443_v30 = vld [vmem:[#allocation2 + $0x190] sm:$0xff] }
 0x766   : > { %18970 = vmatprep.mubr.msk.bf16.mxu0 %vm21838_vm0, %v25023_v50  ;;  %v12466_v39 = vpack.c.bf16 %v12444_v60, %v12443_v30  ;;  %v12872_v30 = vld [vmem:[#allocation2 + $0xc1] sm:$0xff] }
 0x767   : > { %17779 = vmatmul.mubr.bf16.gmra.mrb[196].mxu1 %v6998_v48  ;;  %v7402_v48 = vld [vmem:[#allocation2 + $0x2c] sm:$0xff] }
 0x768   : > { %17782 = vmatprep.mubr.msk.bf16.mxu1 %vm21838_vm0, %v25023_v50  ;;  %v7443_v41 = vpack.c.bf16 %v7403_v56, %v7402_v48  ;;  %v12873_v48 = vld [vmem:[#allocation2 + $0xc9] sm:$0xff] }
 0x769   : > { %v7418_v56 = vld [vmem:[#allocation2 + $0xac] sm:$0xff] }
 0x76d   : > { %18971 = vmatmul.mubr.bf16.gmra.mrb[108].mxu0 %v12456_v57  ;;  %v12446_v57 = vld [vmem:[#allocation2 + $0x1a8] sm:$0xff] }
 0x76e   : > { %18974 = vmatprep.mubr.msk.bf16.mxu0 %vm21838_vm0, %v25023_v50  ;;  %v12467_v44 = vpack.c.bf16 %v12446_v57, %v12445_v36  ;;  %v12875_v36 = vld [vmem:[#allocation2 + $0xd9] sm:$0xff] }
 0x76f   : > { %17783 = vmatmul.mubr.bf16.gmra.mrb[200].mxu1 %v6999_v52  ;;  %v7405_v52 = vld [vmem:[#allocation2 + $0x44] sm:$0xff] }
 0x770   : > { %17786 = vmatprep.mubr.msk.bf16.mxu1 %vm21838_vm0, %v25023_v50  ;;  %v7444_v4 = vpack.c.bf16 %v7405_v52, %v7404_v43  ;;  %v12874_v52 = vld [vmem:[#allocation2 + $0xd1] sm:$0xff] }
 0x771   : > { %v12909_v43 = vpack.c.bf16 %v12875_v36, %v12874_v52  ;;  %v7440_v52 = vld [vmem:[#allocation2 + $0x15c] sm:$0xff] }
 0x775   : > { %18975 = vmatmul.mubr.bf16.gmra.mrb[112].mxu0 %v12457_v24  ;;  %v12860_v24 = vld [vmem:[#allocation2 + $0x61] sm:$0xff] }
 0x776   : > { %18978 = vmatprep.mubr.msk.bf16.mxu0 %vm21838_vm0, %v25023_v50 }
 0x777   : > { %17787 = vmatmul.mubr.bf16.gmra.mrb[204].mxu1 %v7000_v51  ;;  %v12861_v51 = vld [vmem:[#allocation2 + $0x69] sm:$0xff] }
 0x778   : > { %17790 = vmatprep.mubr.msk.bf16.mxu1 %vm21838_vm0, %v25023_v50  ;;  %v12902_v23 = vpack.c.bf16 %v12861_v51, %v12860_v24  ;;  %v12876_v24 = vld [vmem:[#allocation2 + $0xe1] sm:$0xff]  ;;  %v12877_v51 = vld [vmem:[#allocation2 + $0xe9] sm:$0xff] }
 0x77d   : > { %18979 = vmatmul.mubr.bf16.gmra.mrb[116].mxu0 %v12458_v40  ;;  %v7407_v40 = vld [vmem:[#allocation2 + $0x54] sm:$0xff] }
 0x77e   : > { %18982 = vmatprep.mubr.msk.bf16.mxu0 %vm21838_vm0, %v25023_v50 }
 0x77f   : > { %17791 = vmatmul.mubr.bf16.gmra.mrb[208].mxu1 %v7001_v9  ;;  %v7445_v9 = vpack.c.bf16 %v7407_v40, %v7406_v29  ;;  %v12910_v29 = vpack.c.bf16 %v12877_v51, %v12876_v24  ;;  %v7855_v51 = vld [vmem:[#allocation2 + $0x30] sm:$0xff] }
 0x780   : > { %17794 = vmatprep.mubr.msk.bf16.mxu1 %vm21838_vm0, %v25023_v50 }
 0x785   : > { %18983 = vmatmul.mubr.bf16.gmra.mrb[120].mxu0 %v12459_v31  ;;  %v12862_v31 = vld [vmem:[#allocation2 + $0x71] sm:$0xff] }
 0x786   : > { %18986 = vmatprep.mubr.msk.bf16.mxu0 %vm21838_vm0, %v25023_v50  ;;  %v12903_v0 = vpack.c.bf16 %v12863_v62, %v12862_v31  ;;  %v7424_v62 = vld [vmem:[#allocation2 + $0xdc] sm:$0xff] }
 0x787   : > { %17795 = vmatmul.mubr.bf16.gmra.mrb[212].mxu1 %v7002_v59  ;;  %v7409_v59 = vld [vmem:[#allocation2 + $0x64] sm:$0xff] }
 0x788   : > { %17798 = vmatprep.mubr.msk.bf16.mxu1 %vm21838_vm0, %v25023_v50  ;;  %v12880_v31 = vld [vmem:[#allocation2 + $0x101] sm:$0xff] }
 0x78d   : > { %18987 = vmatmul.mubr.bf16.gmra.mrb[124].mxu0 %v12460_v58  ;;  %v7446_v58 = vpack.c.bf16 %v7409_v59, %v7408_v63  ;;  %v12881_v59 = vld [vmem:[#allocation2 + $0x109] sm:$0xff] }
 0x78e   : > { %18990 = vmatprep.mubr.msk.bf16.mxu0 %vm21838_vm0, %v25023_v50  ;;  %v12912_v63 = vpack.c.bf16 %v12881_v59, %v12880_v31  ;;  %v7859_v59 = vld [vmem:[#allocation2 + $0x50] sm:$0xff] }
 0x78f   : > { %17799 = vmatmul.mubr.bf16.gmra.mrb[216].mxu1 %v7003_v2  ;;  %v21790_v2 = vld [vmem:[%s24996_s4 + $0x598] sm:$0xff]  }
 0x790   : > { %17802 = vmatprep.mubr.msk.bf16.mxu1 %vm21838_vm0, %v25023_v50 }
 0x795   : > { %18991 = vmatmul.mubr.bf16.gmra.mrb[128].mxu0 %v12461_v45  ;;  %v7411_v45 = vld [vmem:[#allocation2 + $0x74] sm:$0xff] }
 0x796   : > { %18994 = vmatprep.mubr.msk.bf16.mxu0 %vm21838_vm0, %v25023_v50  ;;  %v7447_v47 = vpack.c.bf16 %v7411_v45, %v7410_v37  ;;  %v12884_v45 = vld [vmem:[#allocation2 + $0x121] sm:$0xff] }
 0x797   : > { %17803 = vmatmul.mubr.bf16.gmra.mrb[220].mxu1 %v7004_v46  ;;  %v21791_v46 = vld [vmem:[%s24996_s4 + $0x5a0] sm:$0xff]  }
 0x798   : > { %17806 = vmatprep.mubr.msk.bf16.mxu1 %vm21838_vm0, %v25023_v50 }
 0x79d   : > { %18995 = vmatmul.mubr.bf16.gmra.mrb[132].mxu0 %v12462_v22  ;;  %v21792_v22 = vld [vmem:[%s24996_s4 + $0x5a8] sm:$0xff]  }
 0x79e   : > { %18998 = vmatprep.mubr.msk.bf16.mxu0 %vm21838_vm0, %v25023_v50 }
 0x79f   : > { %17807 = vmatmul.mubr.bf16.gmra.mrb[224].mxu1 %v7005_v26  ;;  %v21802_v26 = vld [vmem:[%s24996_s4 + $0x2b8] sm:$0xff]  }
 0x7a0   : > { %17810 = vmatprep.mubr.msk.bf16.mxu1 %vm21838_vm0, %v25023_v50 }
 0x7a5   : > { %18999 = vmatmul.mubr.bf16.gmra.mrb[136].mxu0 %v12463_v12  ;;  %v7412_v12 = vld [vmem:[#allocation2 + $0x7c] sm:$0xff] }
 0x7a6   : > { %19002 = vmatprep.mubr.msk.bf16.mxu0 %vm21838_vm0, %v25023_v50 }
 0x7a7   : > { %17811 = vmatmul.mubr.bf16.gmra.mrb[228].mxu1 %v7006_v55  ;;  %v7448_v55 = vpack.c.bf16 %v7413_v16, %v7412_v12  ;;  %v12888_v12 = vld [vmem:[#allocation2 + $0x141] sm:$0xff] }
 0x7a8   : > { %17814 = vmatprep.mubr.msk.bf16.mxu1 %vm21838_vm0, %v25023_v50 }
 0x7ad   : > { %19003 = vmatmul.mubr.bf16.gmra.mrb[140].mxu0 %v12464_v19  ;;  %v7414_v19 = vld [vmem:[#allocation2 + $0x8c] sm:$0xff] }
 0x7ae   : > { %19006 = vmatprep.mubr.msk.bf16.mxu0 %vm21838_vm0, %v25023_v50  ;;  %v7449_v11 = vpack.c.bf16 %v7415_v15, %v7414_v19  ;;  %v12891_v15 = vld [vmem:[#allocation2 + $0x159] sm:$0xff] }
 0x7af   : > { %17815 = vmatmul.mubr.bf16.gmra.mrb[232].mxu1 %v7007_v38  ;;  %v12906_v38 = vpack.c.bf16 %v12869_v61, %v12868_v18  ;;  %v7435_v18 = vld [vmem:[#allocation2 + $0x134] sm:$0xff] }
 0x7b0   : > { %17834 = vmatprep.mubr.msk.bf16.mxu1 %vm21838_vm0, %v25023_v50 }
 0x7b5   : > { %19007 = vmatmul.mubr.bf16.gmra.mrb[144].mxu0 %v12465_v20  ;;  %v7417_v20 = vld [vmem:[#allocation2 + $0xa4] sm:$0xff] }
 0x7b6   : > { %19010 = vmatprep.mubr.msk.bf16.mxu0 %vm21838_vm0, %v25023_v50 }
 0x7b7   : > { %17835 = vmatmul.mubr.bf16.vlgmr.msra.gmra.mrb[152].mxu1 %v7442_v3  ;;  %v7416_v3 = vld [vmem:[#allocation2 + $0x9c] sm:$0xff] }
 0x7b8   : > { %17838 = vmatprep.mubr.msk.bf16.mxu1 %vm21838_vm0, %v25023_v50  ;;  %17919 = vmatpush3.bf16.msra.mxu1 %v21793_v10  ;;  %v7450_v60 = vpack.c.bf16 %v7417_v20, %v7416_v3  ;;  %v12893_v3 = vld [vmem:[#allocation2 + $0x169] sm:$0xff] }
 0x7b9   : > { %17920 = vmatprep.subr.bf16.mxu1 %v25023_v50 }
 0x7bc   : > { %17921 = vmatpush3.bf16.msra.mxu1 %v21794_v8  ;;  %v7422_v8 = vld [vmem:[#allocation2 + $0xcc] sm:$0xff] }
 0x7bd   : > { %19011 = vmatmul.mubr.bf16.gmra.mrb[148].mxu0 %v12466_v39  ;;  %17922 = vmatprep.subr.bf16.mxu1 %v25023_v50  ;;  %v7419_v39 = vld [vmem:[#allocation2 + $0xb4] sm:$0xff] }
 0x7be   : > { %19014 = vmatprep.mubr.msk.bf16.mxu0 %vm21838_vm0, %v25023_v50  ;;  %v7451_v57 = vpack.c.bf16 %v7419_v39, %v7418_v56  ;;  %v12895_v39 = vld [vmem:[#allocation2 + $0x179] sm:$0xff] }
 0x7bf   : > { %17839 = vmatmul.mubr.bf16.gmra.mrb[156].mxu1 %v7443_v41  ;;  %v12908_v41 = vpack.c.bf16 %v12873_v48, %v12872_v30  ;;  %v7439_v30 = vld [vmem:[#allocation2 + $0x154] sm:$0xff] }
 0x7c0   : > { %17842 = vmatprep.mubr.msk.bf16.mxu1 %vm21838_vm0, %v25023_v50  ;;  %17923 = vmatpush3.bf16.msra.mxu1 %v21796_v13  ;;  %v7425_v13 = vld [vmem:[#allocation2 + $0xe4] sm:$0xff] }
 0x7c1   : > { %17924 = vmatprep.subr.bf16.mxu1 %v25023_v50 }
 0x7c4   : > { %17925 = vmatpush3.bf16.msra.mxu1 %v21797_v14  ;;  %v7454_v14 = vpack.c.bf16 %v7425_v13, %v7424_v62  ;;  %v12901_v62 = vld [vmem:[#allocation2 + $0x1a9] sm:$0xff] }
 0x7c5   : > { %19015 = vmatmul.mubr.bf16.gmra.mrb[152].mxu0 %v12467_v44  ;;  %17926 = vmatprep.subr.bf16.mxu1 %v25023_v50  ;;  %v7421_v44 = vld [vmem:[#allocation2 + $0xc4] sm:$0xff] }
 0x7c6   : > { %19034 = vmatprep.mubr.msk.bf16.mxu0 %vm21838_vm0, %v25023_v50 }
 0x7c7   : > { %17843 = vmatmul.mubr.bf16.gmra.mrb[160].mxu1 %v7444_v4  ;;  %v7420_v4 = vld [vmem:[#allocation2 + $0xbc] sm:$0xff] }
 0x7c8   : > { %17846 = vmatprep.mubr.msk.bf16.mxu1 %vm21838_vm0, %v25023_v50  ;;  %17927 = vmatpush3.bf16.msra.mxu1 %v21798_v5  ;;  %v7452_v10 = vpack.c.bf16 %v7421_v44, %v7420_v4  ;;  %v12883_v5 = vld [vmem:[#allocation2 + $0x119] sm:$0xff]  ;;  %v12897_v4 = vld [vmem:[#allocation2 + $0x189] sm:$0xff] }
 0x7c9   : > { %17928 = vmatprep.subr.bf16.mxu1 %v25023_v50 }
 0x7cc   : > { %17929 = vmatpush3.bf16.msra.mxu1 %v21799_v1  ;;  %v7428_v1 = vld [vmem:[#allocation2 + $0xfc] sm:$0xff] }
 0x7cd   : > { %19035 = vmatmul.mubr.bf16.vlgmr.msra.gmra.mrb[72].mxu0 %v12902_v23  ;;  %17930 = vmatprep.subr.bf16.mxu1 %v25023_v50  ;;  %v12879_v23 = vld [vmem:[#allocation2 + $0xf9] sm:$0xff]  ;;  %v7456_v37 = vpack.c.bf16 %v7429_v32, %v7428_v1  ;;  %v7862_v32 = vld [vmem:[#allocation2 + $0x68] sm:$0xff] }
 0x7ce   : > { %19119 = vmatpush3.bf16.msra.mxu0 %v21787_v49  ;;  %19038 = vmatprep.mubr.msk.bf16.mxu0 %vm21838_vm0, %v25023_v50  ;;  %v7423_v49 = vld [vmem:[#allocation2 + $0xd4] sm:$0xff]  ;;  %v7861_v1 = vld [vmem:[#allocation2 + $0x60] sm:$0xff] }
 0x7cf   : > { %17847 = vmatmul.mubr.bf16.gmra.mrb[164].mxu1 %v7445_v9  ;;  %19120 = vmatprep.subr.bf16.mxu0 %v25023_v50  ;;  %v7453_v40 = vpack.c.bf16 %v7423_v49, %v7422_v8  ;;  %v12878_v9 = vld [vmem:[#allocation2 + $0xf1] sm:$0xff]  ;;  %v12899_v49 = vld [vmem:[#allocation2 + $0x199] sm:$0xff] }
 0x7d0   : > { %17850 = vmatprep.mubr.msk.bf16.mxu1 %vm21838_vm0, %v25023_v50  ;;  %17931 = vmatpush3.bf16.msra.mxu1 %v21800_v21 }
 0x7d1   : > { %17932 = vmatprep.subr.bf16.mxu1 %v25023_v50 }
 0x7d2   : > { %19121 = vmatpush3.bf16.msra.mxu0 %v21788_v53  ;;  %v12911_v53 = vpack.c.bf16 %v12879_v23, %v12878_v9  ;;  %v7857_v9 = vld [vmem:[#allocation2 + $0x40] sm:$0xff] }
 0x7d3   : > { %19122 = vmatprep.subr.bf16.mxu0 %v25023_v50 }
 0x7d4   : > { %17933 = vmatpush3.bf16.msra.mxu1 %v21802_v26  ;;  %v12886_v26 = vld [vmem:[#allocation2 + $0x131] sm:$0xff] }
 0x7d5   : > { %19039 = vmatmul.mubr.bf16.gmra.mrb[76].mxu0 %v12903_v0  ;;  %18018 = vmatprep.subr.bf16.mxu1 %v25023_v50  ;;  %v7427_v0 = vld [vmem:[#allocation2 + $0xf4] sm:$0xff]  ;;  %v12915_v16 = vpack.c.bf16 %v12887_v34, %v12886_v26 }
 0x7d6   : > { %19042 = vmatprep.mubr.msk.bf16.mxu0 %vm21838_vm0, %v25023_v50  ;;  %19123 = vmatpush3.bf16.msra.mxu0 %v21789_v25  ;;  %v7426_v25 = vld [vmem:[#allocation2 + $0xec] sm:$0xff] }
 0x7d7   : > { %17851 = vmatmul.mubr.bf16.gmra.mrb[168].mxu1 %v7446_v58  ;;  %19124 = vmatprep.subr.bf16.mxu0 %v25023_v50  ;;  %v7455_v58 = vpack.c.bf16 %v7427_v0, %v7426_v25  ;;  %v21809_v0 = vld [vmem:[%s24996_s4 + $0x2c0] sm:$0xff]   ;;  %v21805_v34 = vld [vmem:[%s24996_s4 + $0x5d0] sm:$0xff]  }
 0x7d8   : > { %17854 = vmatprep.mubr.msk.bf16.mxu1 %vm21838_vm0, %v25023_v50 }
 0x7da   : > { %19125 = vmatpush3.bf16.msra.mxu0 %v21790_v2  ;;  %v12882_v2 = vld [vmem:[#allocation2 + $0x111] sm:$0xff] }
 0x7db   : > { %19126 = vmatprep.subr.bf16.mxu0 %v25023_v50  ;;  %v12913_v28 = vpack.c.bf16 %v12883_v5, %v12882_v2  ;;  %v21810_v5 = vld [vmem:[%s24996_s4 + $0x2c8] sm:$0xff]   ;;  %v21803_v2 = vld [vmem:[%s24996_s4 + $0x5c0] sm:$0xff]  }
 0x7dd   : > { %19043 = vmatmul.mubr.bf16.gmra.mrb[80].mxu0 %v12904_v27  ;;  %v7430_v27 = vld [vmem:[#allocation2 + $0x10c] sm:$0xff] }
 0x7de   : > { %19046 = vmatprep.mubr.msk.bf16.mxu0 %vm21838_vm0, %v25023_v50  ;;  %19127 = vmatpush3.bf16.msra.mxu0 %v21791_v46  ;;  %v12885_v46 = vld [vmem:[#allocation2 + $0x129] sm:$0xff] }
 0x7df   : > { %17855 = vmatmul.mubr.bf16.gmra.mrb[172].mxu1 %v7447_v47  ;;  %19128 = vmatprep.subr.bf16.mxu0 %v25023_v50  ;;  %v7431_v47 = vld [vmem:[#allocation2 + $0x114] sm:$0xff]  ;;  %v12914_v21 = vpack.c.bf16 %v12885_v46, %v12884_v45  ;;  %v21804_v46 = vld [vmem:[%s24996_s4 + $0x5c8] sm:$0xff]  }
 0x7e0   : > { %17858 = vmatprep.mubr.msk.bf16.mxu1 %vm21838_vm0, %v25023_v50  ;;  %v21812_v45 = vld [vmem:[%s24996_s4 + $0x2d0] sm:$0xff]  }
 0x7e2   : > { %19129 = vmatpush3.bf16.msra.mxu0 %v21792_v22  ;;  %v7457_v22 = vpack.c.bf16 %v7431_v47, %v7430_v27  ;;  %v13318_v27 = vld [vmem:[#allocation2 + $0x7a] sm:$0xff] }
 0x7e3   : > { %19130 = vmatprep.subr.bf16.mxu0 %v25023_v50  ;;  %v21813_v47 = vld [vmem:[%s24996_s4 + $0x2d8] sm:$0xff]  }
 0x7e5   : > { %19047 = vmatmul.mubr.bf16.gmra.mrb[84].mxu0 %v12905_v17 }
 0x7e6   : > { %19050 = vmatprep.mubr.msk.bf16.mxu0 %vm21838_vm0, %v25023_v50  ;;  %19131 = vmatpush3.bf16.msra.mxu0 %v21795_v35  ;;  %v7432_v35 = vld [vmem:[#allocation2 + $0x11c] sm:$0xff] }
 0x7e7   : > { %17859 = vmatmul.mubr.bf16.gmra.mrb[176].mxu1 %v7448_v55  ;;  %19132 = vmatprep.subr.bf16.mxu0 %v25023_v50  ;;  %v7458_v17 = vpack.c.bf16 %v7433_v7, %v7432_v35  ;;  %v12889_v55 = vld [vmem:[#allocation2 + $0x149] sm:$0xff]  ;;  %v21814_v35 = vld [vmem:[%s24996_s4 + $0x2e0] sm:$0xff]  }
 0x7e8   : > { %17862 = vmatprep.mubr.msk.bf16.mxu1 %vm21838_vm0, %v25023_v50  ;;  %v12916_v61 = vpack.c.bf16 %v12889_v55, %v12888_v12  ;;  %v7863_v7 = vld [vmem:[#allocation2 + $0x70] sm:$0xff]  ;;  %v13319_v12 = vld [vmem:[#allocation2 + $0x82] sm:$0xff] }
 0x7e9   : > { %v13320_v55 = vld [vmem:[#allocation2 + $0x8a] sm:$0xff] }
 0x7ea   : > { %19133 = vmatpush3.bf16.msra.mxu0 %v21801_v6  ;;  %v7434_v6 = vld [vmem:[#allocation2 + $0x12c] sm:$0xff] }
 0x7eb   : > { %19218 = vmatprep.subr.bf16.mxu0 %v25023_v50  ;;  %v7459_v19 = vpack.c.bf16 %v7435_v18, %v7434_v6  ;;  %v21815_v6 = vld [vmem:[%s24996_s4 + $0x2e8] sm:$0xff]  }
 0x7ec   : > { %v7866_v18 = vld [vmem:[#allocation2 + $0x88] sm:$0xff] }
 0x7ed   : > { %19051 = vmatmul.mubr.bf16.gmra.mrb[88].mxu0 %v12906_v38  ;;  %v12890_v38 = vld [vmem:[#allocation2 + $0x151] sm:$0xff] }
 0x7ee   : > { %19054 = vmatprep.mubr.msk.bf16.mxu0 %vm21838_vm0, %v25023_v50  ;;  %v12917_v33 = vpack.c.bf16 %v12891_v15, %v12890_v38  ;;  %v7865_v15 = vld [vmem:[#allocation2 + $0x80] sm:$0xff] }
 0x7ef   : > { %17863 = vmatmul.mubr.bf16.gmra.mrb[180].mxu1 %v7449_v11  ;;  %v7437_v11 = vld [vmem:[#allocation2 + $0x144] sm:$0xff]  ;;  %v7902_v38 = vpack.c.bf16 %v7866_v18, %v7865_v15 }
 0x7f0   : > { %17866 = vmatprep.mubr.msk.bf16.mxu1 %vm21838_vm0, %v25023_v50  ;;  %v7460_v20 = vpack.c.bf16 %v7437_v11, %v7436_v42  ;;  %v21816_v11 = vld [vmem:[%s24996_s4 + $0x2f0] sm:$0xff]   ;;  %v13322_v42 = vld [vmem:[#allocation2 + $0x9a] sm:$0xff]  ;;  %v7886_v15 = vld [vmem:[#allocation2 + $0x128] sm:$0xff] }
 0x7f5   : > { %19055 = vmatmul.mubr.bf16.gmra.mrb[92].mxu0 %v12907_v54  ;;  %v12892_v54 = vld [vmem:[#allocation2 + $0x161] sm:$0xff] }
 0x7f6   : > { %19058 = vmatprep.mubr.msk.bf16.mxu0 %vm21838_vm0, %v25023_v50  ;;  %v12918_v48 = vpack.c.bf16 %v12893_v3, %v12892_v54  ;;  %v13321_v54 = vld [vmem:[#allocation2 + $0x92] sm:$0xff] }
 0x7f7   : > { %17867 = vmatmul.mubr.bf16.gmra.mrb[184].mxu1 %v7450_v60  ;;  %v7438_v60 = vld [vmem:[#allocation2 + $0x14c] sm:$0xff]  ;;  %v7868_v3 = vld [vmem:[#allocation2 + $0x98] sm:$0xff] }
 0x7f8   : > { %17870 = vmatprep.mubr.msk.bf16.mxu1 %vm21838_vm0, %v25023_v50  ;;  %v7461_v56 = vpack.c.bf16 %v7439_v30, %v7438_v60  ;;  %v21811_v60 = vld [vmem:[%s24996_s4 + $0x5f0] sm:$0xff]   ;;  %v13360_v30 = vpack.c.bf16 %v13322_v42, %v13321_v54  ;;  %v13342_v42 = vld [vmem:[#allocation2 + $0x13a] sm:$0xff] }
 0x7f9   : > { %v7888_v54 = vld [vmem:[#allocation2 + $0x138] sm:$0xff] }
 0x7fd   : > { %19059 = vmatmul.mubr.bf16.gmra.mrb[96].mxu0 %v12908_v41  ;;  %v12894_v41 = vld [vmem:[#allocation2 + $0x171] sm:$0xff] }
 0x7fe   : > { %19062 = vmatprep.mubr.msk.bf16.mxu0 %vm21838_vm0, %v25023_v50  ;;  %v12919_v36 = vpack.c.bf16 %v12895_v39, %v12894_v41  ;;  %v21817_v39 = vld [vmem:[%s24996_s4 + $0x5f8] sm:$0xff]   ;;  %v13323_v41 = vld [vmem:[#allocation2 + $0xa2] sm:$0xff] }
 0x7ff   : > { %17871 = vmatmul.mubr.bf16.gmra.mrb[188].mxu1 %v7451_v57  ;;  %v7441_v57 = vld [vmem:[#allocation2 + $0x164] sm:$0xff] }
 0x800   : > { %17874 = vmatprep.mubr.msk.bf16.mxu1 %vm21838_vm0, %v25023_v50  ;;  %v7462_v44 = vpack.c.bf16 %v7441_v57, %v7440_v52  ;;  %v13324_v57 = vld [vmem:[#allocation2 + $0xaa] sm:$0xff] }
 0x801   : > { %v13361_v52 = vpack.c.bf16 %v13324_v57, %v13323_v41  ;;  %v7889_v57 = vld [vmem:[#allocation2 + $0x140] sm:$0xff] }
 0x805   : > { %19063 = vmatmul.mubr.bf16.gmra.mrb[100].mxu0 %v12909_v43  ;;  %v12896_v43 = vld [vmem:[#allocation2 + $0x181] sm:$0xff] }
 0x806   : > { %19066 = vmatprep.mubr.msk.bf16.mxu0 %vm21838_vm0, %v25023_v50  ;;  %v12920_v24 = vpack.c.bf16 %v12897_v4, %v12896_v43  ;;  %v13326_v4 = vld [vmem:[#allocation2 + $0xba] sm:$0xff] }
 0x807   : > { %17875 = vmatmul.mubr.bf16.gmra.mrb[192].mxu1 %v7452_v10  ;;  %v7856_v10 = vld [vmem:[#allocation2 + $0x38] sm:$0xff] }
 0x808   : > { %17878 = vmatprep.mubr.msk.bf16.mxu1 %vm21838_vm0, %v25023_v50  ;;  %v7897_v8 = vpack.c.bf16 %v7856_v10, %v7855_v51  ;;  %v13325_v10 = vld [vmem:[#allocation2 + $0xb2] sm:$0xff] }
 0x809   : > { %v13362_v51 = vpack.c.bf16 %v13326_v4, %v13325_v10  ;;  %v7891_v10 = vld [vmem:[#allocation2 + $0x150] sm:$0xff] }
 0x80d   : > { %19067 = vmatmul.mubr.bf16.gmra.mrb[104].mxu0 %v12910_v29  ;;  %v12898_v29 = vld [vmem:[#allocation2 + $0x191] sm:$0xff] }
 0x80e   : > { %19070 = vmatprep.mubr.msk.bf16.mxu0 %vm21838_vm0, %v25023_v50  ;;  %v12921_v23 = vpack.c.bf16 %v12899_v49, %v12898_v29  ;;  %v13327_v29 = vld [vmem:[#allocation2 + $0xc2] sm:$0xff] }
 0x80f   : > { %17879 = vmatmul.mubr.bf16.gmra.mrb[196].mxu1 %v7453_v40  ;;  %v7858_v40 = vld [vmem:[#allocation2 + $0x48] sm:$0xff] }
 0x810   : > { %17882 = vmatprep.mubr.msk.bf16.mxu1 %vm21838_vm0, %v25023_v50  ;;  %v7898_v13 = vpack.c.bf16 %v7858_v40, %v7857_v9  ;;  %v13328_v40 = vld [vmem:[#allocation2 + $0xca] sm:$0xff] }
 0x811   : > { %v13363_v9 = vpack.c.bf16 %v13328_v40, %v13327_v29  ;;  %v7893_v40 = vld [vmem:[#allocation2 + $0x160] sm:$0xff] }
 0x815   : > { %19071 = vmatmul.mubr.bf16.gmra.mrb[108].mxu0 %v12911_v53  ;;  %v12900_v53 = vld [vmem:[#allocation2 + $0x1a1] sm:$0xff] }
 0x816   : > { %19074 = vmatprep.mubr.msk.bf16.mxu0 %vm21838_vm0, %v25023_v50  ;;  %v12922_v31 = vpack.c.bf16 %v12901_v62, %v12900_v53  ;;  %v13330_v62 = vld [vmem:[#allocation2 + $0xda] sm:$0xff] }
 0x817   : > { %17883 = vmatmul.mubr.bf16.gmra.mrb[200].mxu1 %v7454_v14  ;;  %v7860_v14 = vld [vmem:[#allocation2 + $0x58] sm:$0xff] }
 0x818   : > { %17886 = vmatprep.mubr.msk.bf16.mxu1 %vm21838_vm0, %v25023_v50  ;;  %v7899_v25 = vpack.c.bf16 %v7860_v14, %v7859_v59  ;;  %v13329_v14 = vld [vmem:[#allocation2 + $0xd2] sm:$0xff] }
 0x819   : > { %v13364_v59 = vpack.c.bf16 %v13330_v62, %v13329_v14  ;;  %v7895_v14 = vld [vmem:[#allocation2 + $0x170] sm:$0xff] }
 0x81d   : > { %19075 = vmatmul.mubr.bf16.gmra.mrb[112].mxu0 %v12912_v63  ;;  %v13315_v63 = vld [vmem:[#allocation2 + $0x62] sm:$0xff] }
 0x81e   : > { %19078 = vmatprep.mubr.msk.bf16.mxu0 %vm21838_vm0, %v25023_v50 }
 0x81f   : > { %17887 = vmatmul.mubr.bf16.gmra.mrb[204].mxu1 %v7455_v58  ;;  %v13316_v58 = vld [vmem:[#allocation2 + $0x6a] sm:$0xff] }
 0x820   : > { %17890 = vmatprep.mubr.msk.bf16.mxu1 %vm21838_vm0, %v25023_v50 }
 0x825   : > { %19079 = vmatmul.mubr.bf16.gmra.mrb[116].mxu0 %v12913_v28  ;;  %v13357_v28 = vpack.c.bf16 %v13316_v58, %v13315_v63  ;;  %v13331_v63 = vld [vmem:[#allocation2 + $0xe2] sm:$0xff]  ;;  %v13332_v58 = vld [vmem:[#allocation2 + $0xea] sm:$0xff] }
 0x826   : > { %19082 = vmatprep.mubr.msk.bf16.mxu0 %vm21838_vm0, %v25023_v50 }
 0x827   : > { %17891 = vmatmul.mubr.bf16.gmra.mrb[208].mxu1 %v7456_v37  ;;  %v7900_v37 = vpack.c.bf16 %v7862_v32, %v7861_v1  ;;  %v7877_v32 = vld [vmem:[#allocation2 + $0xe0] sm:$0xff] }
 0x828   : > { %17894 = vmatprep.mubr.msk.bf16.mxu1 %vm21838_vm0, %v25023_v50  ;;  %v13334_v1 = vld [vmem:[#allocation2 + $0xfa] sm:$0xff] }
 0x82d   : > { %19083 = vmatmul.mubr.bf16.gmra.mrb[120].mxu0 %v12914_v21  ;;  %v13317_v21 = vld [vmem:[#allocation2 + $0x72] sm:$0xff] }
 0x82e   : > { %19086 = vmatprep.mubr.msk.bf16.mxu0 %vm21838_vm0, %v25023_v50  ;;  %v13358_v26 = vpack.c.bf16 %v13318_v27, %v13317_v21  ;;  %v7879_v27 = vld [vmem:[#allocation2 + $0xf0] sm:$0xff]  ;;  %v13335_v21 = vld [vmem:[#allocation2 + $0x102] sm:$0xff] }
 0x82f   : > { %17895 = vmatmul.mubr.bf16.gmra.mrb[212].mxu1 %v7457_v22  ;;  %v7864_v22 = vld [vmem:[#allocation2 + $0x78] sm:$0xff] }
 0x830   : > { %17898 = vmatprep.mubr.msk.bf16.mxu1 %vm21838_vm0, %v25023_v50 }
 0x835   : > { %19087 = vmatmul.mubr.bf16.gmra.mrb[124].mxu0 %v12915_v16  ;;  %v7901_v16 = vpack.c.bf16 %v7864_v22, %v7863_v7  ;;  %v13336_v22 = vld [vmem:[#allocation2 + $0x10a] sm:$0xff]  ;;  %v7881_v7 = vld [vmem:[#allocation2 + $0x100] sm:$0xff] }
 0x836   : > { %19090 = vmatprep.mubr.msk.bf16.mxu0 %vm21838_vm0, %v25023_v50 }
 0x837   : > { %17899 = vmatmul.mubr.bf16.gmra.mrb[216].mxu1 %v7458_v17  ;;  %v21806_v17 = vld [vmem:[%s24996_s4 + $0x5d8] sm:$0xff]  }
 0x838   : > { %17902 = vmatprep.mubr.msk.bf16.mxu1 %vm21838_vm0, %v25023_v50 }
 0x83d   : > { %19091 = vmatmul.mubr.bf16.gmra.mrb[128].mxu0 %v12916_v61  ;;  %v21807_v61 = vld [vmem:[%s24996_s4 + $0x5e0] sm:$0xff]  }
 0x83e   : > { %19094 = vmatprep.mubr.msk.bf16.mxu0 %vm21838_vm0, %v25023_v50 }
 0x83f   : > { %17903 = vmatmul.mubr.bf16.gmra.mrb[220].mxu1 %v7459_v19  ;;  %v13359_v19 = vpack.c.bf16 %v13320_v55, %v13319_v12  ;;  %v7884_v12 = vld [vmem:[#allocation2 + $0x118] sm:$0xff] }
 0x840   : > { %17906 = vmatprep.mubr.msk.bf16.mxu1 %vm21838_vm0, %v25023_v50 }
 0x845   : > { %19095 = vmatmul.mubr.bf16.gmra.mrb[132].mxu0 %v12917_v33  ;;  %v21808_v33 = vld [vmem:[%s24996_s4 + $0x5e8] sm:$0xff]  }
 0x846   : > { %19098 = vmatprep.mubr.msk.bf16.mxu0 %vm21838_vm0, %v25023_v50 }
 0x847   : > { %17907 = vmatmul.mubr.bf16.gmra.mrb[224].mxu1 %v7460_v20  ;;  %v21818_v20 = vld [vmem:[%s24996_s4 + $0x2f8] sm:$0xff]  }
 0x848   : > { %17910 = vmatprep.mubr.msk.bf16.mxu1 %vm21838_vm0, %v25023_v50 }
 0x84d   : > { %19099 = vmatmul.mubr.bf16.gmra.mrb[136].mxu0 %v12918_v48  ;;  %v7867_v48 = vld [vmem:[#allocation2 + $0x90] sm:$0xff] }
 0x84e   : > { %19102 = vmatprep.mubr.msk.bf16.mxu0 %vm21838_vm0, %v25023_v50 }
 0x84f   : > { %17911 = vmatmul.mubr.bf16.gmra.mrb[228].mxu1 %v7461_v56  ;;  %v7903_v56 = vpack.c.bf16 %v7868_v3, %v7867_v48  ;;  %v13343_v48 = vld [vmem:[#allocation2 + $0x142] sm:$0xff] }
 0x850   : > { %17914 = vmatprep.mubr.msk.bf16.mxu1 %vm21838_vm0, %v25023_v50 }
 0x855   : > { %19103 = vmatmul.mubr.bf16.gmra.mrb[140].mxu0 %v12919_v36  ;;  %v7870_v36 = vld [vmem:[#allocation2 + $0xa8] sm:$0xff] }
 0x856   : > { %19106 = vmatprep.mubr.msk.bf16.mxu0 %vm21838_vm0, %v25023_v50 }
 0x857   : > { %17915 = vmatmul.mubr.bf16.gmra.mrb[232].mxu1 %v7462_v44  ;;  %v7869_v44 = vld [vmem:[#allocation2 + $0xa0] sm:$0xff] }
 0x858   : > { %17934 = vmatprep.mubr.msk.bf16.mxu1 %vm21838_vm0, %v25023_v50  ;;  %v7904_v43 = vpack.c.bf16 %v7870_v36, %v7869_v44  ;;  %v13345_v44 = vld [vmem:[#allocation2 + $0x152] sm:$0xff] }
 0x85d   : > { %19107 = vmatmul.mubr.bf16.gmra.mrb[144].mxu0 %v12920_v24  ;;  %v7872_v24 = vld [vmem:[#allocation2 + $0xb8] sm:$0xff] }
 0x85e   : > { %19110 = vmatprep.mubr.msk.bf16.mxu0 %vm21838_vm0, %v25023_v50 }
 0x85f   : > { %17935 = vmatmul.mubr.bf16.vlgmr.msra.gmra.mrb[152].mxu1 %v7897_v8  ;;  %v7871_v8 = vld [vmem:[#allocation2 + $0xb0] sm:$0xff] }
 0x860   : > { %17938 = vmatprep.mubr.msk.bf16.mxu1 %vm21838_vm0, %v25023_v50  ;;  %18019 = vmatpush3.bf16.msra.mxu1 %v21809_v0  ;;  %v7905_v49 = vpack.c.bf16 %v7872_v24, %v7871_v8  ;;  %v13348_v8 = vld [vmem:[#allocation2 + $0x16a] sm:$0xff] }
 0x861   : > { %18020 = vmatprep.subr.bf16.mxu1 %v25023_v50 }
 0x864   : > { %18021 = vmatpush3.bf16.msra.mxu1 %v21810_v5  ;;  %v7878_v5 = vld [vmem:[#allocation2 + $0xe8] sm:$0xff] }
 0x865   : > { %19111 = vmatmul.mubr.bf16.gmra.mrb[148].mxu0 %v12921_v23  ;;  %18022 = vmatprep.subr.bf16.mxu1 %v25023_v50  ;;  %v7874_v23 = vld [vmem:[#allocation2 + $0xc8] sm:$0xff] }
 0x866   : > { %19114 = vmatprep.mubr.msk.bf16.mxu0 %vm21838_vm0, %v25023_v50 }
 0x867   : > { %17939 = vmatmul.mubr.bf16.gmra.mrb[156].mxu1 %v7898_v13  ;;  %v7873_v13 = vld [vmem:[#allocation2 + $0xc0] sm:$0xff] }
 0x868   : > { %17942 = vmatprep.mubr.msk.bf16.mxu1 %vm21838_vm0, %v25023_v50  ;;  %18023 = vmatpush3.bf16.msra.mxu1 %v21812_v45  ;;  %v7906_v53 = vpack.c.bf16 %v7874_v23, %v7873_v13  ;;  %v7880_v45 = vld [vmem:[#allocation2 + $0xf8] sm:$0xff] }
 0x869   : > { %18024 = vmatprep.subr.bf16.mxu1 %v25023_v50  ;;  %v13349_v13 = vld [vmem:[#allocation2 + $0x172] sm:$0xff] }
 0x86c   : > { %18025 = vmatpush3.bf16.msra.mxu1 %v21813_v47  ;;  %v7909_v47 = vpack.c.bf16 %v7880_v45, %v7879_v27  ;;  %v13356_v27 = vld [vmem:[#allocation2 + $0x1aa] sm:$0xff] }
 0x86d   : > { %19115 = vmatmul.mubr.bf16.gmra.mrb[152].mxu0 %v12922_v31  ;;  %18026 = vmatprep.subr.bf16.mxu1 %v25023_v50  ;;  %v7876_v31 = vld [vmem:[#allocation2 + $0xd8] sm:$0xff] }
 0x86e   : > { %19134 = vmatprep.mubr.msk.bf16.mxu0 %vm21838_vm0, %v25023_v50 }
 0x86f   : > { %17943 = vmatmul.mubr.bf16.gmra.mrb[160].mxu1 %v7899_v25  ;;  %v7875_v25 = vld [vmem:[#allocation2 + $0xd0] sm:$0xff] }
 0x870   : > { %17946 = vmatprep.mubr.msk.bf16.mxu1 %vm21838_vm0, %v25023_v50  ;;  %18027 = vmatpush3.bf16.msra.mxu1 %v21814_v35  ;;  %v7907_v0 = vpack.c.bf16 %v7876_v31, %v7875_v25  ;;  %v13338_v35 = vld [vmem:[#allocation2 + $0x11a] sm:$0xff]  ;;  %v13352_v25 = vld [vmem:[#allocation2 + $0x18a] sm:$0xff] }
 0x871   : > { %18028 = vmatprep.subr.bf16.mxu1 %v25023_v50 }
 0x874   : > { %18029 = vmatpush3.bf16.msra.mxu1 %v21815_v6  ;;  %v7883_v6 = vld [vmem:[#allocation2 + $0x110] sm:$0xff] }
 0x875   : > { %19135 = vmatmul.mubr.bf16.vlgmr.msra.gmra.mrb[72].mxu0 %v13357_v28  ;;  %18030 = vmatprep.subr.bf16.mxu1 %v25023_v50  ;;  %v7908_v28 = vpack.c.bf16 %v7878_v5, %v7877_v32  ;;  %v7911_v18 = vpack.c.bf16 %v7884_v12, %v7883_v6  ;;  %v13353_v32 = vld [vmem:[#allocation2 + $0x192] sm:$0xff]  ;;  %v21820_v6 = vld [vmem:[%s24996_s4 + $0x608] sm:$0xff]  }
 0x876   : > { %19219 = vmatpush3.bf16.msra.mxu0 %v21803_v2  ;;  %19138 = vmatprep.mubr.msk.bf16.mxu0 %vm21838_vm0, %v25023_v50  ;;  %v13365_v2 = vpack.c.bf16 %v13332_v58, %v13331_v63  ;;  %v8310_v58 = vld [vmem:[#allocation2 + $0x31] sm:$0xff] }
 0x877   : > { %17947 = vmatmul.mubr.bf16.gmra.mrb[164].mxu1 %v7900_v37  ;;  %19220 = vmatprep.subr.bf16.mxu0 %v25023_v50  ;;  %v13333_v37 = vld [vmem:[#allocation2 + $0xf2] sm:$0xff] }
 0x878   : > { %17950 = vmatprep.mubr.msk.bf16.mxu1 %vm21838_vm0, %v25023_v50  ;;  %18031 = vmatpush3.bf16.msra.mxu1 %v21816_v11  ;;  %v7885_v11 = vld [vmem:[#allocation2 + $0x120] sm:$0xff] }
 0x879   : > { %18032 = vmatprep.subr.bf16.mxu1 %v25023_v50 }
 0x87a   : > { %19221 = vmatpush3.bf16.msra.mxu0 %v21804_v46  ;;  %v13366_v46 = vpack.c.bf16 %v13334_v1, %v13333_v37  ;;  %v8313_v1 = vld [vmem:[#allocation2 + $0x49] sm:$0xff] }
 0x87b   : > { %19222 = vmatprep.subr.bf16.mxu0 %v25023_v50 }
 0x87c   : > { %18033 = vmatpush3.bf16.msra.mxu1 %v21818_v20  ;;  %v13341_v20 = vld [vmem:[#allocation2 + $0x132] sm:$0xff] }
 0x87d   : > { %19139 = vmatmul.mubr.bf16.gmra.mrb[76].mxu0 %v13358_v26  ;;  %v13367_v26 = vpack.c.bf16 %v13336_v22, %v13335_v21  ;;  %v13370_v3 = vpack.c.bf16 %v13342_v42, %v13341_v20  ;;  %v8314_v22 = vld [vmem:[#allocation2 + $0x51] sm:$0xff]  ;;  %v13774_v20 = vld [vmem:[#allocation2 + $0x83] sm:$0xff] }
 0x87e   : > { %19142 = vmatprep.mubr.msk.bf16.mxu0 %vm21838_vm0, %v25023_v50  ;;  %19223 = vmatpush3.bf16.msra.mxu0 %v21805_v34  ;;  %v7882_v34 = vld [vmem:[#allocation2 + $0x108] sm:$0xff]  ;;  %v21822_v42 = vld [vmem:[%s24996_s4 + $0x618] sm:$0xff]  }
 0x87f   : > { %17951 = vmatmul.mubr.bf16.gmra.mrb[168].mxu1 %v7901_v16  ;;  %19224 = vmatprep.subr.bf16.mxu0 %v25023_v50  ;;  %v7910_v16 = vpack.c.bf16 %v7882_v34, %v7881_v7  ;;  %v13771_v7 = vld [vmem:[#allocation2 + $0x6b] sm:$0xff] }
 0x880   : > { %17954 = vmatprep.mubr.msk.bf16.mxu1 %vm21838_vm0, %v25023_v50 }
 0x882   : > { %19225 = vmatpush3.bf16.msra.mxu0 %v21806_v17  ;;  %v13337_v17 = vld [vmem:[#allocation2 + $0x112] sm:$0xff] }
 0x883   : > { %19226 = vmatprep.subr.bf16.mxu0 %v25023_v50  ;;  %v13368_v55 = vpack.c.bf16 %v13338_v35, %v13337_v17  ;;  %v8316_v35 = vld [vmem:[#allocation2 + $0x61] sm:$0xff]  ;;  %v8317_v17 = vld [vmem:[#allocation2 + $0x69] sm:$0xff] }
 0x885   : > { %19143 = vmatmul.mubr.bf16.gmra.mrb[80].mxu0 %v13359_v19  ;;  %v13340_v19 = vld [vmem:[#allocation2 + $0x12a] sm:$0xff] }
 0x886   : > { %19146 = vmatprep.mubr.msk.bf16.mxu0 %vm21838_vm0, %v25023_v50  ;;  %19227 = vmatpush3.bf16.msra.mxu0 %v21807_v61  ;;  %v13339_v61 = vld [vmem:[#allocation2 + $0x122] sm:$0xff] }
 0x887   : > { %17955 = vmatmul.mubr.bf16.gmra.mrb[172].mxu1 %v7902_v38  ;;  %19228 = vmatprep.subr.bf16.mxu0 %v25023_v50  ;;  %v13369_v38 = vpack.c.bf16 %v13340_v19, %v13339_v61  ;;  %v13772_v61 = vld [vmem:[#allocation2 + $0x73] sm:$0xff] }
 0x888   : > { %17958 = vmatprep.mubr.msk.bf16.mxu1 %vm21838_vm0, %v25023_v50  ;;  %v8319_v19 = vld [vmem:[#allocation2 + $0x79] sm:$0xff] }
 0x88a   : > { %19229 = vmatpush3.bf16.msra.mxu0 %v21808_v33  ;;  %v7912_v33 = vpack.c.bf16 %v7886_v15, %v7885_v11  ;;  %v21821_v15 = vld [vmem:[%s24996_s4 + $0x610] sm:$0xff]  }
 0x88b   : > { %19230 = vmatprep.subr.bf16.mxu0 %v25023_v50  ;;  %v8318_v11 = vld [vmem:[#allocation2 + $0x71] sm:$0xff] }
 0x88d   : > { %19147 = vmatmul.mubr.bf16.gmra.mrb[84].mxu0 %v13360_v30 }
 0x88e   : > { %19150 = vmatprep.mubr.msk.bf16.mxu0 %vm21838_vm0, %v25023_v50  ;;  %19231 = vmatpush3.bf16.msra.mxu0 %v21811_v60  ;;  %v7887_v60 = vld [vmem:[#allocation2 + $0x130] sm:$0xff] }
 0x88f   : > { %17959 = vmatmul.mubr.bf16.gmra.mrb[176].mxu1 %v7903_v56  ;;  %19232 = vmatprep.subr.bf16.mxu0 %v25023_v50  ;;  %v7913_v30 = vpack.c.bf16 %v7888_v54, %v7887_v60  ;;  %v13344_v56 = vld [vmem:[#allocation2 + $0x14a] sm:$0xff] }
 0x890   : > { %17962 = vmatprep.mubr.msk.bf16.mxu1 %vm21838_vm0, %v25023_v50  ;;  %v13371_v41 = vpack.c.bf16 %v13344_v56, %v13343_v48  ;;  %v13775_v54 = vld [vmem:[#allocation2 + $0x8b] sm:$0xff] }
 0x891   : > { %v8321_v60 = vld [vmem:[#allocation2 + $0x89] sm:$0xff]  ;;  %v13814_v48 = vpack.c.bf16 %v13775_v54, %v13774_v20 }
 0x892   : > { %19233 = vmatpush3.bf16.msra.mxu0 %v21817_v39  ;;  %v7890_v39 = vld [vmem:[#allocation2 + $0x148] sm:$0xff] }
 0x893   : > { %19318 = vmatprep.subr.bf16.mxu0 %v25023_v50  ;;  %v7914_v36 = vpack.c.bf16 %v7890_v39, %v7889_v57  ;;  %v21824_v39 = vld [vmem:[%s24996_s4 + $0x628] sm:$0xff]   ;;  %v13776_v57 = vld [vmem:[#allocation2 + $0x93] sm:$0xff] }
 0x894   : > { %v13794_v54 = vld [vmem:[#allocation2 + $0x123] sm:$0xff] }
 0x895   : > { %19151 = vmatmul.mubr.bf16.gmra.mrb[88].mxu0 %v13361_v52  ;;  %v13346_v52 = vld [vmem:[#allocation2 + $0x15a] sm:$0xff] }
 0x896   : > { %19154 = vmatprep.mubr.msk.bf16.mxu0 %vm21838_vm0, %v25023_v50  ;;  %v13372_v4 = vpack.c.bf16 %v13346_v52, %v13345_v44  ;;  %v21825_v52 = vld [vmem:[%s24996_s4 + $0x630] sm:$0xff]  }
 0x897   : > { %17963 = vmatmul.mubr.bf16.gmra.mrb[180].mxu1 %v7904_v43  ;;  %v7892_v43 = vld [vmem:[#allocation2 + $0x158] sm:$0xff] }
 0x898   : > { %17966 = vmatprep.mubr.msk.bf16.mxu1 %vm21838_vm0, %v25023_v50  ;;  %v7915_v24 = vpack.c.bf16 %v7892_v43, %v7891_v10  ;;  %v8322_v43 = vld [vmem:[#allocation2 + $0x91] sm:$0xff] }
 0x899   : > { %v21826_v10 = vld [vmem:[%s24996_s4 + $0x638] sm:$0xff]  }
 0x89d   : > { %19155 = vmatmul.mubr.bf16.gmra.mrb[92].mxu0 %v13362_v51  ;;  %v13347_v51 = vld [vmem:[#allocation2 + $0x162] sm:$0xff] }
 0x89e   : > { %19158 = vmatprep.mubr.msk.bf16.mxu0 %vm21838_vm0, %v25023_v50  ;;  %v13373_v29 = vpack.c.bf16 %v13348_v8, %v13347_v51  ;;  %v13779_v51 = vld [vmem:[#allocation2 + $0xab] sm:$0xff]  ;;  %v8324_v8 = vld [vmem:[#allocation2 + $0xa1] sm:$0xff] }
 0x89f   : > { %17967 = vmatmul.mubr.bf16.gmra.mrb[184].mxu1 %v7905_v49  ;;  %v7894_v49 = vld [vmem:[#allocation2 + $0x168] sm:$0xff] }
 0x8a0   : > { %17970 = vmatprep.mubr.msk.bf16.mxu1 %vm21838_vm0, %v25023_v50  ;;  %v7916_v23 = vpack.c.bf16 %v7894_v49, %v7893_v40  ;;  %v8325_v49 = vld [vmem:[#allocation2 + $0xa9] sm:$0xff] }
 0x8a1   : > { %v8359_v40 = vpack.c.bf16 %v8325_v49, %v8324_v8  ;;  %v13801_v49 = vld [vmem:[#allocation2 + $0x15b] sm:$0xff] }
 0x8a5   : > { %19159 = vmatmul.mubr.bf16.gmra.mrb[96].mxu0 %v13363_v9  ;;  %v13350_v9 = vld [vmem:[#allocation2 + $0x17a] sm:$0xff] }
 0x8a6   : > { %19162 = vmatprep.mubr.msk.bf16.mxu0 %vm21838_vm0, %v25023_v50  ;;  %v13374_v62 = vpack.c.bf16 %v13350_v9, %v13349_v13  ;;  %v13780_v9 = vld [vmem:[#allocation2 + $0xb3] sm:$0xff] }
 0x8a7   : > { %17971 = vmatmul.mubr.bf16.gmra.mrb[188].mxu1 %v7906_v53  ;;  %v7896_v53 = vld [vmem:[#allocation2 + $0x178] sm:$0xff] }
 0x8a8   : > { %17974 = vmatprep.mubr.msk.bf16.mxu1 %vm21838_vm0, %v25023_v50  ;;  %v7917_v31 = vpack.c.bf16 %v7896_v53, %v7895_v14  ;;  %v8327_v13 = vld [vmem:[#allocation2 + $0xb9] sm:$0xff] }
 0x8ad   : > { %19163 = vmatmul.mubr.bf16.gmra.mrb[100].mxu0 %v13364_v59  ;;  %v13351_v59 = vld [vmem:[#allocation2 + $0x182] sm:$0xff] }
 0x8ae   : > { %19166 = vmatprep.mubr.msk.bf16.mxu0 %vm21838_vm0, %v25023_v50  ;;  %v13375_v63 = vpack.c.bf16 %v13352_v25, %v13351_v59  ;;  %v13783_v59 = vld [vmem:[#allocation2 + $0xcb] sm:$0xff]  ;;  %v8328_v25 = vld [vmem:[#allocation2 + $0xc1] sm:$0xff] }
 0x8af   : > { %17975 = vmatmul.mubr.bf16.gmra.mrb[192].mxu1 %v7907_v0  ;;  %v8311_v0 = vld [vmem:[#allocation2 + $0x39] sm:$0xff] }
 0x8b0   : > { %17978 = vmatprep.mubr.msk.bf16.mxu1 %vm21838_vm0, %v25023_v50  ;;  %v8352_v5 = vpack.c.bf16 %v8311_v0, %v8310_v58  ;;  %v8329_v0 = vld [vmem:[#allocation2 + $0xc9] sm:$0xff] }
 0x8b1   : > { %v8361_v58 = vpack.c.bf16 %v8329_v0, %v8328_v25  ;;  %v13805_v0 = vld [vmem:[#allocation2 + $0x17b] sm:$0xff] }
 0x8b5   : > { %19167 = vmatmul.mubr.bf16.gmra.mrb[104].mxu0 %v13365_v2  ;;  %v13354_v2 = vld [vmem:[#allocation2 + $0x19a] sm:$0xff] }
 0x8b6   : > { %19170 = vmatprep.mubr.msk.bf16.mxu0 %vm21838_vm0, %v25023_v50  ;;  %v13376_v37 = vpack.c.bf16 %v13354_v2, %v13353_v32  ;;  %v13784_v2 = vld [vmem:[#allocation2 + $0xd3] sm:$0xff] }
 0x8b7   : > { %17979 = vmatmul.mubr.bf16.gmra.mrb[196].mxu1 %v7908_v28  ;;  %v8312_v28 = vld [vmem:[#allocation2 + $0x41] sm:$0xff]  ;;  %v8331_v32 = vld [vmem:[#allocation2 + $0xd9] sm:$0xff] }
 0x8b8   : > { %17982 = vmatprep.mubr.msk.bf16.mxu1 %vm21838_vm0, %v25023_v50  ;;  %v8353_v45 = vpack.c.bf16 %v8313_v1, %v8312_v28  ;;  %v8330_v1 = vld [vmem:[#allocation2 + $0xd1] sm:$0xff] }
 0x8bd   : > { %19171 = vmatmul.mubr.bf16.gmra.mrb[108].mxu0 %v13366_v46  ;;  %v13355_v46 = vld [vmem:[#allocation2 + $0x1a2] sm:$0xff] }
 0x8be   : > { %19174 = vmatprep.mubr.msk.bf16.mxu0 %vm21838_vm0, %v25023_v50  ;;  %v13377_v21 = vpack.c.bf16 %v13356_v27, %v13355_v46  ;;  %v13787_v46 = vld [vmem:[#allocation2 + $0xeb] sm:$0xff]  ;;  %v8332_v27 = vld [vmem:[#allocation2 + $0xe1] sm:$0xff] }
 0x8bf   : > { %17983 = vmatmul.mubr.bf16.gmra.mrb[200].mxu1 %v7909_v47  ;;  %v8315_v47 = vld [vmem:[#allocation2 + $0x59] sm:$0xff] }
 0x8c0   : > { %17986 = vmatprep.mubr.msk.bf16.mxu1 %vm21838_vm0, %v25023_v50  ;;  %v8354_v34 = vpack.c.bf16 %v8315_v47, %v8314_v22  ;;  %v8333_v47 = vld [vmem:[#allocation2 + $0xe9] sm:$0xff] }
 0x8c1   : > { %v8363_v22 = vpack.c.bf16 %v8333_v47, %v8332_v27  ;;  %v13810_v47 = vld [vmem:[#allocation2 + $0x1a3] sm:$0xff] }
 0x8c5   : > { %19175 = vmatmul.mubr.bf16.gmra.mrb[112].mxu0 %v13367_v26  ;;  %v13770_v26 = vld [vmem:[#allocation2 + $0x63] sm:$0xff] }
 0x8c6   : > { %19178 = vmatprep.mubr.msk.bf16.mxu0 %vm21838_vm0, %v25023_v50  ;;  %v13812_v12 = vpack.c.bf16 %v13771_v7, %v13770_v26  ;;  %v13788_v26 = vld [vmem:[#allocation2 + $0xf3] sm:$0xff] }
 0x8c7   : > { %17987 = vmatmul.mubr.bf16.gmra.mrb[204].mxu1 %v7910_v16  ;;  %v21819_v16 = vld [vmem:[%s24996_s4 + $0x600] sm:$0xff]  }
 0x8c8   : > { %17990 = vmatprep.mubr.msk.bf16.mxu1 %vm21838_vm0, %v25023_v50  ;;  %v8335_v7 = vld [vmem:[#allocation2 + $0xf9] sm:$0xff] }
 0x8cd   : > { %19179 = vmatmul.mubr.bf16.gmra.mrb[116].mxu0 %v13368_v55  ;;  %v8355_v55 = vpack.c.bf16 %v8317_v17, %v8316_v35  ;;  %v8334_v35 = vld [vmem:[#allocation2 + $0xf1] sm:$0xff] }
 0x8ce   : > { %19182 = vmatprep.mubr.msk.bf16.mxu0 %vm21838_vm0, %v25023_v50  ;;  %v8364_v17 = vpack.c.bf16 %v8335_v7, %v8334_v35  ;;  %v14227_v35 = vld [vmem:[#allocation2 + $0x74] sm:$0xff] }
 0x8cf   : > { %17991 = vmatmul.mubr.bf16.gmra.mrb[208].mxu1 %v7911_v18  ;;  %v13773_v18 = vld [vmem:[#allocation2 + $0x7b] sm:$0xff] }
 0x8d0   : > { %17994 = vmatprep.mubr.msk.bf16.mxu1 %vm21838_vm0, %v25023_v50 }
 0x8d5   : > { %19183 = vmatmul.mubr.bf16.gmra.mrb[120].mxu0 %v13369_v38  ;;  %v13813_v38 = vpack.c.bf16 %v13773_v18, %v13772_v61  ;;  %v8337_v18 = vld [vmem:[#allocation2 + $0x109] sm:$0xff] }
 0x8d6   : > { %19186 = vmatprep.mubr.msk.bf16.mxu0 %vm21838_vm0, %v25023_v50 }
 0x8d7   : > { %17995 = vmatmul.mubr.bf16.gmra.mrb[212].mxu1 %v7912_v33  ;;  %v8356_v33 = vpack.c.bf16 %v8319_v19, %v8318_v11  ;;  %v8339_v11 = vld [vmem:[#allocation2 + $0x119] sm:$0xff] }
 0x8d8   : > { %17998 = vmatprep.mubr.msk.bf16.mxu1 %vm21838_vm0, %v25023_v50 }
 0x8dd   : > { %19187 = vmatmul.mubr.bf16.gmra.mrb[124].mxu0 %v13370_v3  ;;  %v8320_v3 = vld [vmem:[#allocation2 + $0x81] sm:$0xff] }
 0x8de   : > { %19190 = vmatprep.mubr.msk.bf16.mxu0 %vm21838_vm0, %v25023_v50  ;;  %v8357_v56 = vpack.c.bf16 %v8321_v60, %v8320_v3  ;;  %v13795_v3 = vld [vmem:[#allocation2 + $0x12b] sm:$0xff]  ;;  %v8340_v60 = vld [vmem:[#allocation2 + $0x121] sm:$0xff] }
 0x8df   : > { %17999 = vmatmul.mubr.bf16.gmra.mrb[216].mxu1 %v7913_v30  ;;  %v21823_v30 = vld [vmem:[%s24996_s4 + $0x620] sm:$0xff]  }
 0x8e0   : > { %18002 = vmatprep.mubr.msk.bf16.mxu1 %vm21838_vm0, %v25023_v50 }
 0x8e5   : > { %19191 = vmatmul.mubr.bf16.gmra.mrb[128].mxu0 %v13371_v41  ;;  %v13777_v41 = vld [vmem:[#allocation2 + $0x9b] sm:$0xff] }
 0x8e6   : > { %19194 = vmatprep.mubr.msk.bf16.mxu0 %vm21838_vm0, %v25023_v50  ;;  %v13815_v44 = vpack.c.bf16 %v13777_v41, %v13776_v57  ;;  %v13796_v41 = vld [vmem:[#allocation2 + $0x133] sm:$0xff] }
 0x8e7   : > { %18003 = vmatmul.mubr.bf16.gmra.mrb[220].mxu1 %v7914_v36  ;;  %v8323_v36 = vld [vmem:[#allocation2 + $0x99] sm:$0xff] }
 0x8e8   : > { %18006 = vmatprep.mubr.msk.bf16.mxu1 %vm21838_vm0, %v25023_v50  ;;  %v8343_v57 = vld [vmem:[#allocation2 + $0x139] sm:$0xff] }
 0x8ed   : > { %19195 = vmatmul.mubr.bf16.gmra.mrb[132].mxu0 %v13372_v4  ;;  %v8358_v4 = vpack.c.bf16 %v8323_v36, %v8322_v43  ;;  %v13798_v43 = vld [vmem:[#allocation2 + $0x143] sm:$0xff] }
 0x8ee   : > { %19198 = vmatprep.mubr.msk.bf16.mxu0 %vm21838_vm0, %v25023_v50 }
 0x8ef   : > { %18007 = vmatmul.mubr.bf16.gmra.mrb[224].mxu1 %v7915_v24  ;;  %v13778_v24 = vld [vmem:[#allocation2 + $0xa3] sm:$0xff] }
 0x8f0   : > { %18010 = vmatprep.mubr.msk.bf16.mxu1 %vm21838_vm0, %v25023_v50 }
 0x8f5   : > { %19199 = vmatmul.mubr.bf16.gmra.mrb[136].mxu0 %v13373_v29  ;;  %v13816_v29 = vpack.c.bf16 %v13779_v51, %v13778_v24  ;;  %v8345_v24 = vld [vmem:[#allocation2 + $0x149] sm:$0xff] }
 0x8f6   : > { %19202 = vmatprep.mubr.msk.bf16.mxu0 %vm21838_vm0, %v25023_v50 }
 0x8f7   : > { %18011 = vmatmul.mubr.bf16.gmra.mrb[228].mxu1 %v7916_v23  ;;  %v13781_v23 = vld [vmem:[#allocation2 + $0xbb] sm:$0xff] }
 0x8f8   : > { %18014 = vmatprep.mubr.msk.bf16.mxu1 %vm21838_vm0, %v25023_v50  ;;  %v13817_v53 = vpack.c.bf16 %v13781_v23, %v13780_v9  ;;  %v8346_v9 = vld [vmem:[#allocation2 + $0x151] sm:$0xff] }
 0x8fd   : > { %19203 = vmatmul.mubr.bf16.gmra.mrb[140].mxu0 %v13374_v62  ;;  %v8326_v62 = vld [vmem:[#allocation2 + $0xb1] sm:$0xff] }
 0x8fe   : > { %19206 = vmatprep.mubr.msk.bf16.mxu0 %vm21838_vm0, %v25023_v50  ;;  %v8360_v14 = vpack.c.bf16 %v8327_v13, %v8326_v62  ;;  %v13803_v62 = vld [vmem:[#allocation2 + $0x16b] sm:$0xff] }
 0x8ff   : > { %18015 = vmatmul.mubr.bf16.gmra.mrb[232].mxu1 %v7917_v31  ;;  %v13782_v31 = vld [vmem:[#allocation2 + $0xc3] sm:$0xff] }
 0x900   : > { %18034 = vmatprep.mubr.msk.bf16.mxu1 %vm21838_vm0, %v25023_v50 }
 0x905   : > { %19207 = vmatmul.mubr.bf16.gmra.mrb[144].mxu0 %v13375_v63  ;;  %v13818_v63 = vpack.c.bf16 %v13783_v59, %v13782_v31  ;;  %v8349_v31 = vld [vmem:[#allocation2 + $0x169] sm:$0xff] }
 0x906   : > { %19210 = vmatprep.mubr.msk.bf16.mxu0 %vm21838_vm0, %v25023_v50 }
 0x907   : > { %18035 = vmatmul.mubr.bf16.vlgmr.msra.gmra.mrb[152].mxu1 %v8352_v5  ;;  %v13785_v5 = vld [vmem:[#allocation2 + $0xdb] sm:$0xff] }
 0x908   : > { %18038 = vmatprep.mubr.msk.bf16.mxu1 %vm21838_vm0, %v25023_v50  ;;  %v13819_v28 = vpack.c.bf16 %v13785_v5, %v13784_v2  ;;  %v8350_v2 = vld [vmem:[#allocation2 + $0x171] sm:$0xff] }
 0x90d   : > { %19211 = vmatmul.mubr.bf16.gmra.mrb[148].mxu0 %v13376_v37  ;;  %v8362_v37 = vpack.c.bf16 %v8331_v32, %v8330_v1  ;;  %v13807_v1 = vld [vmem:[#allocation2 + $0x18b] sm:$0xff] }
 0x90e   : > { %19214 = vmatprep.mubr.msk.bf16.mxu0 %vm21838_vm0, %v25023_v50 }
 0x90f   : > { %18039 = vmatmul.mubr.bf16.gmra.mrb[156].mxu1 %v8353_v45  ;;  %v13786_v45 = vld [vmem:[#allocation2 + $0xe3] sm:$0xff] }
 0x910   : > { %18042 = vmatprep.mubr.msk.bf16.mxu1 %vm21838_vm0, %v25023_v50 }
 0x915   : > { %19215 = vmatmul.mubr.bf16.gmra.mrb[152].mxu0 %v13377_v21  ;;  %v13820_v21 = vpack.c.bf16 %v13787_v46, %v13786_v45  ;;  %v13809_v45 = vld [vmem:[#allocation2 + $0x19b] sm:$0xff]  ;;  %v13808_v46 = vld [vmem:[#allocation2 + $0x193] sm:$0xff] }
 0x916   : > { %19234 = vmatprep.mubr.msk.bf16.mxu0 %vm21838_vm0, %v25023_v50  ;;  %v13831_v27 = vpack.c.bf16 %v13809_v45, %v13808_v46  ;;  %v14245_v46 = vld [vmem:[#allocation2 + $0x104] sm:$0xff] }
 0x917   : > { %18043 = vmatmul.mubr.bf16.gmra.mrb[160].mxu1 %v8354_v34  ;;  %v13789_v34 = vld [vmem:[#allocation2 + $0xfb] sm:$0xff] }
 0x918   : > { %18046 = vmatprep.mubr.msk.bf16.mxu1 %vm21838_vm0, %v25023_v50 }
 0x91d   : > { %19235 = vmatmul.mubr.bf16.vlgmr.msra.gmra.mrb[72].mxu0 %v13812_v12  ;;  %v13790_v12 = vld [vmem:[#allocation2 + $0x103] sm:$0xff] }
 0x91e   : > { %19319 = vmatpush3.bf16.msra.mxu0 %v21819_v16  ;;  %19238 = vmatprep.mubr.msk.bf16.mxu0 %vm21838_vm0, %v25023_v50  ;;  %v13821_v16 = vpack.c.bf16 %v13789_v34, %v13788_v26  ;;  %v14225_v34 = vld [vmem:[#allocation2 + $0x64] sm:$0xff]  ;;  %v14226_v26 = vld [vmem:[#allocation2 + $0x6c] sm:$0xff] }
 0x91f   : > { %18047 = vmatmul.mubr.bf16.gmra.mrb[164].mxu1 %v8355_v55  ;;  %19320 = vmatprep.subr.bf16.mxu0 %v25023_v50  ;;  %v13791_v55 = vld [vmem:[#allocation2 + $0x10b] sm:$0xff]  ;;  %v14267_v7 = vpack.c.bf16 %v14226_v26, %v14225_v34 }
 0x920   : > { %18050 = vmatprep.mubr.msk.bf16.mxu1 %vm21838_vm0, %v25023_v50  ;;  %v13822_v61 = vpack.c.bf16 %v13791_v55, %v13790_v12  ;;  %v14229_v12 = vld [vmem:[#allocation2 + $0x84] sm:$0xff]  ;;  %v14230_v55 = vld [vmem:[#allocation2 + $0x8c] sm:$0xff] }
 0x922   : > { %19321 = vmatpush3.bf16.msra.mxu0 %v21820_v6  ;;  %v8336_v6 = vld [vmem:[#allocation2 + $0x101] sm:$0xff] }
 0x923   : > { %19322 = vmatprep.subr.bf16.mxu0 %v25023_v50  ;;  %v8365_v19 = vpack.c.bf16 %v8337_v18, %v8336_v6  ;;  %v14269_v6 = vpack.c.bf16 %v14230_v55, %v14229_v12  ;;  %v14232_v18 = vld [vmem:[#allocation2 + $0x9c] sm:$0xff] }
 0x925   : > { %19239 = vmatmul.mubr.bf16.gmra.mrb[76].mxu0 %v13813_v38  ;;  %v13792_v38 = vld [vmem:[#allocation2 + $0x113] sm:$0xff] }
 0x926   : > { %19242 = vmatprep.mubr.msk.bf16.mxu0 %vm21838_vm0, %v25023_v50  ;;  %19323 = vmatpush3.bf16.msra.mxu0 %v21821_v15  ;;  %v13793_v15 = vld [vmem:[#allocation2 + $0x11b] sm:$0xff] }
 0x927   : > { %18051 = vmatmul.mubr.bf16.gmra.mrb[168].mxu1 %v8356_v33  ;;  %19324 = vmatprep.subr.bf16.mxu0 %v25023_v50  ;;  %v13823_v33 = vpack.c.bf16 %v13793_v15, %v13792_v38 }
 0x928   : > { %18054 = vmatprep.mubr.msk.bf16.mxu1 %vm21838_vm0, %v25023_v50 }
 0x92a   : > { %19325 = vmatpush3.bf16.msra.mxu0 %v21822_v42  ;;  %v8338_v42 = vld [vmem:[#allocation2 + $0x111] sm:$0xff] }
 0x92b   : > { %19326 = vmatprep.subr.bf16.mxu0 %v25023_v50  ;;  %v8366_v20 = vpack.c.bf16 %v8339_v11, %v8338_v42  ;;  %v14233_v42 = vld [vmem:[#allocation2 + $0xa4] sm:$0xff] }
 0x92d   : > { %19243 = vmatmul.mubr.bf16.gmra.mrb[80].mxu0 %v13814_v48  ;;  %v13824_v48 = vpack.c.bf16 %v13795_v3, %v13794_v54 }
 0x92e   : > { %19246 = vmatprep.mubr.msk.bf16.mxu0 %vm21838_vm0, %v25023_v50  ;;  %19327 = vmatpush3.bf16.msra.mxu0 %v21823_v30  ;;  %v8341_v30 = vld [vmem:[#allocation2 + $0x129] sm:$0xff] }
 0x92f   : > { %18055 = vmatmul.mubr.bf16.gmra.mrb[172].mxu1 %v8357_v56  ;;  %19328 = vmatprep.subr.bf16.mxu0 %v25023_v50  ;;  %v8367_v56 = vpack.c.bf16 %v8341_v30, %v8340_v60 }
 0x930   : > { %18058 = vmatprep.mubr.msk.bf16.mxu1 %vm21838_vm0, %v25023_v50 }
 0x932   : > { %19329 = vmatpush3.bf16.msra.mxu0 %v21824_v39  ;;  %v13797_v39 = vld [vmem:[#allocation2 + $0x13b] sm:$0xff] }
 0x933   : > { %19330 = vmatprep.subr.bf16.mxu0 %v25023_v50  ;;  %v13825_v36 = vpack.c.bf16 %v13797_v39, %v13796_v41  ;;  %v14235_v39 = vld [vmem:[#allocation2 + $0xb4] sm:$0xff] }
 0x935   : > { %19247 = vmatmul.mubr.bf16.gmra.mrb[84].mxu0 %v13815_v44 }
 0x936   : > { %19250 = vmatprep.mubr.msk.bf16.mxu0 %vm21838_vm0, %v25023_v50  ;;  %19331 = vmatpush3.bf16.msra.mxu0 %v21825_v52  ;;  %v8342_v52 = vld [vmem:[#allocation2 + $0x131] sm:$0xff] }
 0x937   : > { %18059 = vmatmul.mubr.bf16.gmra.mrb[176].mxu1 %v8358_v4  ;;  %19332 = vmatprep.subr.bf16.mxu0 %v25023_v50  ;;  %v8368_v44 = vpack.c.bf16 %v8343_v57, %v8342_v52  ;;  %v13799_v4 = vld [vmem:[#allocation2 + $0x14b] sm:$0xff] }
 0x938   : > { %18062 = vmatprep.mubr.msk.bf16.mxu1 %vm21838_vm0, %v25023_v50  ;;  %v13826_v51 = vpack.c.bf16 %v13799_v4, %v13798_v43  ;;  %v14237_v43 = vld [vmem:[#allocation2 + $0xc4] sm:$0xff]  ;;  %v14238_v4 = vld [vmem:[#allocation2 + $0xcc] sm:$0xff] }
 0x93a   : > { %19333 = vmatpush3.bf16.msra.mxu0 %v21826_v10  ;;  %v8344_v10 = vld [vmem:[#allocation2 + $0x141] sm:$0xff] }
 0x93b   : > { %v8369_v8 = vpack.c.bf16 %v8345_v24, %v8344_v10  ;;  %v14273_v24 = vpack.c.bf16 %v14238_v4, %v14237_v43 }
 0x93d   : > { %19251 = vmatmul.mubr.bf16.gmra.mrb[88].mxu0 %v13816_v29  ;;  %v13800_v29 = vld [vmem:[#allocation2 + $0x153] sm:$0xff] }
 0x93e   : > { %19254 = vmatprep.mubr.msk.bf16.mxu0 %vm21838_vm0, %v25023_v50  ;;  %v13827_v23 = vpack.c.bf16 %v13801_v49, %v13800_v29  ;;  %v14240_v29 = vld [vmem:[#allocation2 + $0xdc] sm:$0xff] }
 0x93f   : > { %18063 = vmatmul.mubr.bf16.gmra.mrb[180].mxu1 %v8359_v40  ;;  %v8347_v40 = vld [vmem:[#allocation2 + $0x159] sm:$0xff] }
 0x940   : > { %18066 = vmatprep.mubr.msk.bf16.mxu1 %vm21838_vm0, %v25023_v50  ;;  %v8370_v13 = vpack.c.bf16 %v8347_v40, %v8346_v9  ;;  %v14239_v40 = vld [vmem:[#allocation2 + $0xd4] sm:$0xff] }
 0x941   : > { %v14274_v9 = vpack.c.bf16 %v14240_v29, %v14239_v40  ;;  %v14255_v29 = vld [vmem:[#allocation2 + $0x154] sm:$0xff] }
 0x945   : > { %19255 = vmatmul.mubr.bf16.gmra.mrb[92].mxu0 %v13817_v53  ;;  %v13802_v53 = vld [vmem:[#allocation2 + $0x163] sm:$0xff] }
 0x946   : > { %19258 = vmatprep.mubr.msk.bf16.mxu0 %vm21838_vm0, %v25023_v50  ;;  %v13828_v59 = vpack.c.bf16 %v13803_v62, %v13802_v53 }
 0x947   : > { %18067 = vmatmul.mubr.bf16.gmra.mrb[184].mxu1 %v8360_v14  ;;  %v8348_v14 = vld [vmem:[#allocation2 + $0x161] sm:$0xff] }
 0x948   : > { %18070 = vmatprep.mubr.msk.bf16.mxu1 %vm21838_vm0, %v25023_v50  ;;  %v8371_v25 = vpack.c.bf16 %v8349_v31, %v8348_v14  ;;  %v14241_v14 = vld [vmem:[#allocation2 + $0xe4] sm:$0xff]  ;;  %v14242_v31 = vld [vmem:[#allocation2 + $0xec] sm:$0xff] }
 0x94d   : > { %19259 = vmatmul.mubr.bf16.gmra.mrb[96].mxu0 %v13818_v63  ;;  %v13804_v63 = vld [vmem:[#allocation2 + $0x173] sm:$0xff] }
 0x94e   : > { %19262 = vmatprep.mubr.msk.bf16.mxu0 %vm21838_vm0, %v25023_v50  ;;  %v13829_v5 = vpack.c.bf16 %v13805_v0, %v13804_v63 }
 0x94f   : > { %18071 = vmatmul.mubr.bf16.gmra.mrb[188].mxu1 %v8361_v58  ;;  %v8351_v58 = vld [vmem:[#allocation2 + $0x179] sm:$0xff] }
 0x950   : > { %18074 = vmatprep.mubr.msk.bf16.mxu1 %vm21838_vm0, %v25023_v50  ;;  %v8372_v32 = vpack.c.bf16 %v8351_v58, %v8350_v2  ;;  %v14243_v2 = vld [vmem:[#allocation2 + $0xf4] sm:$0xff] }
 0x955   : > { %19263 = vmatmul.mubr.bf16.gmra.mrb[100].mxu0 %v13819_v28  ;;  %v13806_v28 = vld [vmem:[#allocation2 + $0x183] sm:$0xff] }
 0x956   : > { %19266 = vmatprep.mubr.msk.bf16.mxu0 %vm21838_vm0, %v25023_v50 }
 0x957   : > { %18075 = vmatmul.mubr.bf16.gmra.mrb[192].mxu1 %v8362_v37  ;;  %v13830_v37 = vpack.c.bf16 %v13807_v1, %v13806_v28 }
 0x958   : > { %18078 = vmatprep.mubr.msk.bf16.mxu1 %vm21838_vm0, %v25023_v50 }
 0x95d   : > { %19267 = vmatmul.mubr.bf16.gmra.mrb[104].mxu0 %v13820_v21  ;;  %v13811_v21 = vld [vmem:[#allocation2 + $0x1ab] sm:$0xff] }
 0x95e   : > { %19270 = vmatprep.mubr.msk.bf16.mxu0 %vm21838_vm0, %v25023_v50 }
 0x95f   : > { %18079 = vmatmul.mubr.bf16.gmra.mrb[196].mxu1 %v8363_v22  ;;  %v13832_v22 = vpack.c.bf16 %v13811_v21, %v13810_v47 }
 0x960   : > { %18082 = vmatprep.mubr.msk.bf16.mxu1 %vm21838_vm0, %v25023_v50 }
 0x965   : > { %19271 = vmatmul.mubr.bf16.gmra.mrb[108].mxu0 %v13821_v16  ;;  %v14228_v16 = vld [vmem:[#allocation2 + $0x7c] sm:$0xff] }
 0x966   : > { %19274 = vmatprep.mubr.msk.bf16.mxu0 %vm21838_vm0, %v25023_v50 }
 0x967   : > { %18083 = vmatmul.mubr.bf16.gmra.mrb[200].mxu1 %v8364_v17  ;;  %v14268_v17 = vpack.c.bf16 %v14228_v16, %v14227_v35  ;;  %v14247_v16 = vld [vmem:[#allocation2 + $0x114] sm:$0xff] }
 0x968   : > { %18086 = vmatprep.mubr.msk.bf16.mxu1 %vm21838_vm0, %v25023_v50 }
 0x96d   : > { %19275 = vmatmul.mubr.bf16.gmra.mrb[112].mxu0 %v13822_v61  ;;  %v14231_v61 = vld [vmem:[#allocation2 + $0x94] sm:$0xff] }
 0x96e   : > { %19278 = vmatprep.mubr.msk.bf16.mxu0 %vm21838_vm0, %v25023_v50  ;;  %v14270_v15 = vpack.c.bf16 %v14232_v18, %v14231_v61  ;;  %v14249_v18 = vld [vmem:[#allocation2 + $0x124] sm:$0xff]  ;;  %v14250_v61 = vld [vmem:[#allocation2 + $0x12c] sm:$0xff] }
 0x96f   : > { %18087 = vmatmul.mubr.bf16.gmra.mrb[204].mxu1 %v8365_v19 }
 0x970   : > { %18090 = vmatprep.mubr.msk.bf16.mxu1 %vm21838_vm0, %v25023_v50 }
 0x975   : > { %19279 = vmatmul.mubr.bf16.gmra.mrb[116].mxu0 %v13823_v33 }
 0x976   : > { %19282 = vmatprep.mubr.msk.bf16.mxu0 %vm21838_vm0, %v25023_v50 }
 0x977   : > { %18091 = vmatmul.mubr.bf16.gmra.mrb[208].mxu1 %v8366_v20  ;;  %v14234_v20 = vld [vmem:[#allocation2 + $0xac] sm:$0xff] }
 0x978   : > { %18094 = vmatprep.mubr.msk.bf16.mxu1 %vm21838_vm0, %v25023_v50  ;;  %v14271_v3 = vpack.c.bf16 %v14234_v20, %v14233_v42 }
 0x97d   : > { %19283 = vmatmul.mubr.bf16.gmra.mrb[120].mxu0 %v13824_v48 }
 0x97e   : > { %19286 = vmatprep.mubr.msk.bf16.mxu0 %vm21838_vm0, %v25023_v50 }
 0x97f   : > { %18095 = vmatmul.mubr.bf16.gmra.mrb[212].mxu1 %v8367_v56  ;;  %v14236_v56 = vld [vmem:[#allocation2 + $0xbc] sm:$0xff] }
 0x980   : > { %18098 = vmatprep.mubr.msk.bf16.mxu1 %vm21838_vm0, %v25023_v50  ;;  %v14272_v57 = vpack.c.bf16 %v14236_v56, %v14235_v39 }
 0x985   : > { %19287 = vmatmul.mubr.bf16.gmra.mrb[124].mxu0 %v13825_v36 }
 0x986   : > { %19290 = vmatprep.mubr.msk.bf16.mxu0 %vm21838_vm0, %v25023_v50 }
 0x987   : > { %18099 = vmatmul.mubr.bf16.gmra.mrb[216].mxu1 %v8368_v44 }
 0x988   : > { %18102 = vmatprep.mubr.msk.bf16.mxu1 %vm21838_vm0, %v25023_v50 }
 0x98d   : > { %19291 = vmatmul.mubr.bf16.gmra.mrb[128].mxu0 %v13826_v51 }
 0x98e   : > { %19294 = vmatprep.mubr.msk.bf16.mxu0 %vm21838_vm0, %v25023_v50 }
 0x98f   : > { %18103 = vmatmul.mubr.bf16.gmra.mrb[220].mxu1 %v8369_v8 }
 0x990   : > { %18106 = vmatprep.mubr.msk.bf16.mxu1 %vm21838_vm0, %v25023_v50 }
 0x995   : > { %19295 = vmatmul.mubr.bf16.gmra.mrb[132].mxu0 %v13827_v23 }
 0x996   : > { %19298 = vmatprep.mubr.msk.bf16.mxu0 %vm21838_vm0, %v25023_v50 }
 0x997   : > { %18107 = vmatmul.mubr.bf16.gmra.mrb[224].mxu1 %v8370_v13 }
 0x998   : > { %18110 = vmatprep.mubr.msk.bf16.mxu1 %vm21838_vm0, %v25023_v50 }
 0x99d   : > { %19299 = vmatmul.mubr.bf16.gmra.mrb[136].mxu0 %v13828_v59 }
 0x99e   : > { %19302 = vmatprep.mubr.msk.bf16.mxu0 %vm21838_vm0, %v25023_v50 }
 0x99f   : > { %18111 = vmatmul.mubr.bf16.gmra.mrb[228].mxu1 %v8371_v25  ;;  %v14275_v25 = vpack.c.bf16 %v14242_v31, %v14241_v14  ;;  %v14257_v14 = vld [vmem:[#allocation2 + $0x164] sm:$0xff]  ;;  %v14258_v31 = vld [vmem:[#allocation2 + $0x16c] sm:$0xff] }
 0x9a0   : > { %18114 = vmatprep.mubr.msk.bf16.mxu1 %vm21838_vm0, %v25023_v50 }
 0x9a5   : > { %19303 = vmatmul.mubr.bf16.gmra.mrb[140].mxu0 %v13829_v5  ;;  %v14244_v5 = vld [vmem:[#allocation2 + $0xfc] sm:$0xff] }
 0x9a6   : > { %19306 = vmatprep.mubr.msk.bf16.mxu0 %vm21838_vm0, %v25023_v50  ;;  %v14276_v28 = vpack.c.bf16 %v14244_v5, %v14243_v2  ;;  %v14260_v2 = vld [vmem:[#allocation2 + $0x17c] sm:$0xff] }
 0x9a7   : > { %18115 = vmatmul.mubr.bf16.gmra.mrb[232].mxu1 %v8372_v32 }
 0x9ad   : > { %19307 = vmatmul.mubr.bf16.gmra.mrb[144].mxu0 %v13830_v37 }
 0x9ae   : > { %19310 = vmatprep.mubr.msk.bf16.mxu0 %vm21838_vm0, %v25023_v50 }
 0x9b5   : > { %19311 = vmatmul.mubr.bf16.gmra.mrb[148].mxu0 %v13831_v27  ;;  %v14246_v27 = vld [vmem:[#allocation2 + $0x10c] sm:$0xff] }
 0x9b6   : > { %19314 = vmatprep.mubr.msk.bf16.mxu0 %vm21838_vm0, %v25023_v50  ;;  %v14277_v21 = vpack.c.bf16 %v14246_v27, %v14245_v46 }
 0x9bd   : > { %19315 = vmatmul.mubr.bf16.gmra.mrb[152].mxu0 %v13832_v22 }
 0x9be   : > { %19334 = vmatprep.mubr.msk.bf16.mxu0 %vm21838_vm0, %v25023_v50 }
 0x9c5   : > { %19335 = vmatmul.mubr.bf16.vlgmr.msra.gmra.mrb[72].mxu0 %v14267_v7  ;;  %v14248_v7 = vld [vmem:[#allocation2 + $0x11c] sm:$0xff] }
 0x9c6   : > { %19338 = vmatprep.mubr.msk.bf16.mxu0 %vm21838_vm0, %v25023_v50 }
 0x9cd   : > { %19339 = vmatmul.mubr.bf16.gmra.mrb[76].mxu0 %v14268_v17  ;;  %v14278_v17 = vpack.c.bf16 %v14248_v7, %v14247_v16 }
 0x9ce   : > { %19342 = vmatprep.mubr.msk.bf16.mxu0 %vm21838_vm0, %v25023_v50 }
 0x9d5   : > { %19343 = vmatmul.mubr.bf16.gmra.mrb[80].mxu0 %v14269_v6 }
 0x9d6   : > { %19346 = vmatprep.mubr.msk.bf16.mxu0 %vm21838_vm0, %v25023_v50 }
 0x9da   : > { %v24821_v19 = vpop.f32.mrb[152].mxu1 }
 0x9db   : > { %v18036_v38 = vpop.f32.mrb[153].mxu1 }
 0x9dc   : > { %v24823_v11 = vpop.f32.mrb[154].mxu1  ;;  %v14279_v38 = vpack.c.bf16 %v14250_v61, %v14249_v18 }
 0x9dd   : > { %19347 = vmatmul.mubr.bf16.gmra.mrb[84].mxu0 %v14270_v15  ;;  %v18037_v33 = vpop.f32.mrb[155].mxu1 }
 0x9de   : > { %19350 = vmatprep.mubr.msk.bf16.mxu0 %vm21838_vm0, %v25023_v50 }
 0x9e2   : > { %v8480_v54 = vpop.f32.mrb[156].mxu1 }
 0x9e3   : > { %v18040_v60 = vpop.f32.mrb[157].mxu1  ;;  %v14252_v54 = vld [vmem:[#allocation2 + $0x13c] sm:$0xff] }
 0x9e4   : > { %v24827_v30 = vpop.f32.mrb[158].mxu1 }
 0x9e5   : > { %19351 = vmatmul.mubr.bf16.gmra.mrb[88].mxu0 %v14271_v3  ;;  %v18041_v48 = vpop.f32.mrb[159].mxu1  ;;  %v14251_v3 = vld [vmem:[#allocation2 + $0x134] sm:$0xff] }
 0x9e6   : > { %19354 = vmatprep.mubr.msk.bf16.mxu0 %vm21838_vm0, %v25023_v50  ;;  %v14280_v48 = vpack.c.bf16 %v14252_v54, %v14251_v3  ;;  %v14265_v54 = vld [vmem:[#allocation2 + $0x1a4] sm:$0xff]  ;;  %v14266_v3 = vld [vmem:[#allocation2 + $0x1ac] sm:$0xff] }
 0x9ea   : > { %v24831_v41 = vpop.f32.mrb[160].mxu1 }
 0x9eb   : > { %v18044_v36 = vpop.f32.mrb[161].mxu1 }
 0x9ec   : > { %v8491_v52 = vpop.f32.mrb[162].mxu1  ;;  %v14253_v36 = vld [vmem:[#allocation2 + $0x144] sm:$0xff] }
 0x9ed   : > { %19355 = vmatmul.mubr.bf16.gmra.mrb[92].mxu0 %v14272_v57  ;;  %v18045_v44 = vpop.f32.mrb[163].mxu1  ;;  %v14254_v52 = vld [vmem:[#allocation2 + $0x14c] sm:$0xff] }
 0x9ee   : > { %19358 = vmatprep.mubr.msk.bf16.mxu0 %vm21838_vm0, %v25023_v50  ;;  %v14281_v43 = vpack.c.bf16 %v14254_v52, %v14253_v36 }
 0x9f2   : > { %v24835_v10 = vpop.f32.mrb[164].mxu1 }
 0x9f3   : > { %v18048_v51 = vpop.f32.mrb[165].mxu1 }
 0x9f4   : > { %v24837_v8 = vpop.f32.mrb[166].mxu1 }
 0x9f5   : > { %19359 = vmatmul.mubr.bf16.gmra.mrb[96].mxu0 %v14273_v24  ;;  %v18049_v49 = vpop.f32.mrb[167].mxu1 }
 0x9f6   : > { %19362 = vmatprep.mubr.msk.bf16.mxu0 %vm21838_vm0, %v25023_v50  ;;  %v14256_v49 = vld [vmem:[#allocation2 + $0x15c] sm:$0xff] }
 0x9fa   : > { %v8504_v23 = vpop.f32.mrb[168].mxu1 }
 0x9fb   : > { %v18052_v13 = vpop.f32.mrb[169].mxu1  ;;  %v14282_v23 = vpack.c.bf16 %v14256_v49, %v14255_v29 }
 0x9fc   : > { %v24841_v53 = vpop.f32.mrb[170].mxu1 }
 0x9fd   : > { %19363 = vmatmul.mubr.bf16.gmra.mrb[100].mxu0 %v14274_v9  ;;  %v18053_v62 = vpop.f32.mrb[171].mxu1 }
 0x9fe   : > { %19366 = vmatprep.mubr.msk.bf16.mxu0 %vm21838_vm0, %v25023_v50 }
 0xa02   : > { %v24845_v59 = vpop.f32.mrb[172].mxu1 }
 0xa03   : > { %v18056_v0 = vpop.f32.mrb[173].mxu1 }
 0xa04   : > { %v8515_v63 = vpop.f32.mrb[174].mxu1  ;;  %v14283_v0 = vpack.c.bf16 %v14258_v31, %v14257_v14 }
 0xa05   : > { %19367 = vmatmul.mubr.bf16.gmra.mrb[104].mxu0 %v14275_v25  ;;  %v18057_v58 = vpop.f32.mrb[175].mxu1 }
 0xa06   : > { %19370 = vmatprep.mubr.msk.bf16.mxu0 %vm21838_vm0, %v25023_v50 }
 0xa0a   : > { %v24849_v32 = vpop.f32.mrb[176].mxu1 }
 0xa0b   : > { %v18060_v1 = vpop.f32.mrb[177].mxu1 }
 0xa0c   : > { %v24851_v37 = vpop.f32.mrb[178].mxu1 }
 0xa0d   : > { %19371 = vmatmul.mubr.bf16.gmra.mrb[108].mxu0 %v14276_v28  ;;  %v18061_v45 = vpop.f32.mrb[179].mxu1  ;;  %v14259_v28 = vld [vmem:[#allocation2 + $0x174] sm:$0xff] }
 0xa0e   : > { %19374 = vmatprep.mubr.msk.bf16.mxu0 %vm21838_vm0, %v25023_v50  ;;  %v14284_v45 = vpack.c.bf16 %v14260_v2, %v14259_v28 }
 0xa12   : > { %v8528_v47 = vpop.f32.mrb[180].mxu1 }
 0xa13   : > { %v18064_v22 = vpop.f32.mrb[181].mxu1 }
 0xa14   : > { %v24855_v34 = vpop.f32.mrb[182].mxu1  ;;  %v14262_v22 = vld [vmem:[#allocation2 + $0x18c] sm:$0xff] }
 0xa15   : > { %19375 = vmatmul.mubr.bf16.gmra.mrb[112].mxu0 %v14277_v21  ;;  %v18065_v26 = vpop.f32.mrb[183].mxu1  ;;  %v14261_v21 = vld [vmem:[#allocation2 + $0x184] sm:$0xff] }
 0xa16   : > { %19378 = vmatprep.mubr.msk.bf16.mxu0 %vm21838_vm0, %v25023_v50  ;;  %v14285_v7 = vpack.c.bf16 %v14262_v22, %v14261_v21 }
 0xa1a   : > { %v24859_v35 = vpop.f32.mrb[184].mxu1 }
 0xa1b   : > { %v18068_v12 = vpop.f32.mrb[185].mxu1 }
 0xa1c   : > { %v8539_v55 = vpop.f32.mrb[186].mxu1 }
 0xa1d   : > { %19379 = vmatmul.mubr.bf16.gmra.mrb[116].mxu0 %v14278_v17  ;;  %v18069_v6 = vpop.f32.mrb[187].mxu1  ;;  %v14264_v55 = vld [vmem:[#allocation2 + $0x19c] sm:$0xff] }
 0xa1e   : > { %19382 = vmatprep.mubr.msk.bf16.mxu0 %vm21838_vm0, %v25023_v50  ;;  %v14263_v6 = vld [vmem:[#allocation2 + $0x194] sm:$0xff] }
 0xa1f   : > { %v14286_v61 = vpack.c.bf16 %v14264_v55, %v14263_v6 }
 0xa22   : > { %v24863_v15 = vpop.f32.mrb[188].mxu1 }
 0xa23   : > { %v18072_v33 = vpop.f32.mrb[189].mxu1 }
 0xa24   : > { %v24865_v42 = vpop.f32.mrb[190].mxu1 }
 0xa25   : > { %19383 = vmatmul.mubr.bf16.gmra.mrb[120].mxu0 %v14279_v38  ;;  %v18073_v20 = vpop.f32.mrb[191].mxu1 }
 0xa26   : > { %19386 = vmatprep.mubr.msk.bf16.mxu0 %vm21838_vm0, %v25023_v50 }
 0xa2a   : > { %v8552_v60 = vpop.f32.mrb[192].mxu1 }
 0xa2b   : > { %v18076_v56 = vpop.f32.mrb[193].mxu1 }
 0xa2c   : > { %v24869_v39 = vpop.f32.mrb[194].mxu1 }
 0xa2d   : > { %19387 = vmatmul.mubr.bf16.gmra.mrb[124].mxu0 %v14280_v48  ;;  %v18077_v57 = vpop.f32.mrb[195].mxu1  ;;  %v14287_v48 = vpack.c.bf16 %v14266_v3, %v14265_v54 }
 0xa2e   : > { %19390 = vmatprep.mubr.msk.bf16.mxu0 %vm21838_vm0, %v25023_v50 }
 0xa32   : > { %v24873_v44 = vpop.f32.mrb[196].mxu1 }
 0xa33   : > { %v18080_v4 = vpop.f32.mrb[197].mxu1 }
 0xa34   : > { %v8563_v24 = vpop.f32.mrb[198].mxu1 }
 0xa35   : > { %19391 = vmatmul.mubr.bf16.gmra.mrb[128].mxu0 %v14281_v43  ;;  %v18081_v51 = vpop.f32.mrb[199].mxu1 }
 0xa36   : > { %19394 = vmatprep.mubr.msk.bf16.mxu0 %vm21838_vm0, %v25023_v50 }
 0xa3a   : > { %v24877_v40 = vpop.f32.mrb[200].mxu1 }
 0xa3b   : > { %v18084_v9 = vpop.f32.mrb[201].mxu1 }
 0xa3c   : > { %v24879_v13 = vpop.f32.mrb[202].mxu1 }
 0xa3d   : > { %19395 = vmatmul.mubr.bf16.gmra.mrb[132].mxu0 %v14282_v23  ;;  %v18085_v62 = vpop.f32.mrb[203].mxu1 }
 0xa3e   : > { %19398 = vmatprep.mubr.msk.bf16.mxu0 %vm21838_vm0, %v25023_v50 }
 0xa42   : > { %v8576_v25 = vpop.f32.mrb[204].mxu1 }
 0xa43   : > { %v18088_v63 = vpop.f32.mrb[205].mxu1 }
 0xa44   : > { %v24883_v58 = vpop.f32.mrb[206].mxu1 }
 0xa45   : > { %19399 = vmatmul.mubr.bf16.gmra.mrb[136].mxu0 %v14283_v0  ;;  %v18089_v5 = vpop.f32.mrb[207].mxu1 }
 0xa46   : > { %19402 = vmatprep.mubr.msk.bf16.mxu0 %vm21838_vm0, %v25023_v50 }
 0xa4a   : > { %v24887_v1 = vpop.f32.mrb[208].mxu1 }
 0xa4b   : > { %v18092_v46 = vpop.f32.mrb[209].mxu1 }
 0xa4c   : > { %v8587_v27 = vpop.f32.mrb[210].mxu1 }
 0xa4d   : > { %19403 = vmatmul.mubr.bf16.gmra.mrb[140].mxu0 %v14284_v45  ;;  %v18093_v47 = vpop.f32.mrb[211].mxu1 }
 0xa4e   : > { %19406 = vmatprep.mubr.msk.bf16.mxu0 %vm21838_vm0, %v25023_v50 }
 0xa52   : > { %v24891_v26 = vpop.f32.mrb[212].mxu1 }
 0xa53   : > { %v18096_v16 = vpop.f32.mrb[213].mxu1 }
 0xa54   : > { %v24893_v17 = vpop.f32.mrb[214].mxu1 }
 0xa55   : > { %19407 = vmatmul.mubr.bf16.gmra.mrb[144].mxu0 %v14285_v7  ;;  %v18097_v12 = vpop.f32.mrb[215].mxu1 }
 0xa56   : > { %19410 = vmatprep.mubr.msk.bf16.mxu0 %vm21838_vm0, %v25023_v50 }
 0xa5a   : > { %v8600_v18 = vpop.f32.mrb[216].mxu1 }
 0xa5b   : > { %v18100_v38 = vpop.f32.mrb[217].mxu1 }
 0xa5c   : > { %v24897_v33 = vpop.f32.mrb[218].mxu1 }
 0xa5d   : > { %19411 = vmatmul.mubr.bf16.gmra.mrb[148].mxu0 %v14286_v61  ;;  %v18101_v20 = vpop.f32.mrb[219].mxu1 }
 0xa5e   : > { %19414 = vmatprep.mubr.msk.bf16.mxu0 %vm21838_vm0, %v25023_v50 }
 0xa62   : > { %v24901_v60 = vpop.f32.mrb[220].mxu1 }
 0xa63   : > { %v18104_v56 = vpop.f32.mrb[221].mxu1 }
 0xa64   : > { %v8611_v57 = vpop.f32.mrb[222].mxu1 }
 0xa65   : > { %19415 = vmatmul.mubr.bf16.gmra.mrb[152].mxu0 %v14287_v48  ;;  %v18105_v36 = vpop.f32.mrb[223].mxu1 }
 0xa6a   : > { %v24903_v52 = vpop.f32.mrb[224].mxu1 }
 0xa6b   : > { %v18108_v43 = vpop.f32.mrb[225].mxu1 }
 0xa6c   : > { %v24905_v4 = vpop.f32.mrb[226].mxu1 }
 0xa6d   : > { %v18109_v24 = vpop.f32.mrb[227].mxu1 }
 0xa72   : > { %v8624_v51 = vpop.f32.mrb[228].mxu1 }
 0xa73   : > { %v18112_v49 = vpop.f32.mrb[229].mxu1 }
 0xa74   : > { %v24907_v29 = vpop.f32.mrb[230].mxu1 }
 0xa75   : > { %v18113_v50 = vpop.f32.mrb[231].mxu1 }
 0xa7a   : > { %v24909_v23 = vpop.f32.mrb[232].mxu1 }
 0xa7b   : > { %v18116_v9 = vpop.f32.mrb[233].mxu1 }
 0xa7c   : > { %v8635_v62 = vpop.f32.mrb[234].mxu1 }
 0xa7d   : > { %v18117_v14 = vpop.f32.mrb[235].mxu1 }
 0xa98   : > { %v14387_v31 = vpop.f32.mrb[72].mxu0 }
 0xa99   : > { %v19436_v25 = vadd.f32 %v14387_v31, %v24821_v19  ;;  %v19336_v0 = vpop.f32.mrb[73].mxu0 }
 0xa9a   : > { %v14390_v63 = vpop.f32.mrb[74].mxu0 }
 0xa9b   : > { %14638 = vst [vmem:[#allocation3] sm:$0xff] %v19436_v25  ;;  %v19439_v5 = vadd.f32 %v14390_v63, %v24823_v11  ;;  %v19337_v2 = vpop.f32.mrb[75].mxu0 }
 0xa9d   : > { %14639 = vst [vmem:[#allocation3 + $0x8] sm:$0xff] %v19439_v5 }
 0xaa0   : > { %v14395_v28 = vpop.f32.mrb[76].mxu0 }
 0xaa1   : > { %v19340_v45 = vpop.f32.mrb[77].mxu0 }
 0xaa2   : > { %v14398_v46 = vpop.f32.mrb[78].mxu0 }
 0xaa3   : > { %v19445_v27 = vadd.f32 %v14398_v46, %v24827_v30  ;;  %v19341_v47 = vpop.f32.mrb[79].mxu0 }
 0xaa4   : > { %v14681_v12 = vld [vmem:[#allocation3] ss:$2 sm:$0x7f]  ;;  %v14683_v55 = vld [vmem:[#allocation3 + $0x1] ss:$2 sm:$0x7f] }
 0xaa5   : > { %14641 = vst [vmem:[#allocation3 + $0x18] sm:$0xff] %v19445_v27  ;;  %v14684_v6 = vmax.f32 %v14681_v12, %v14683_v55 }
 0xaa8   : > { %v14403_v21 = vpop.f32.mrb[80].mxu0 }
 0xaa9   : > { %v19448_v22 = vadd.f32 %v14403_v21, %v24831_v41  ;;  %v19344_v7 = vpop.f32.mrb[81].mxu0  ;;  %v24920_v41 = vld [vmem:[%s24997_s5] ss:$0 sm:$0xff] }
 0xaaa   : > { %v14406_v19 = vpop.f32.mrb[82].mxu0 }
 0xaab   : > { %14642 = vst [vmem:[#allocation3 + $0x20] sm:$0xff] %v19448_v22  ;;  %v19345_v16 = vpop.f32.mrb[83].mxu0 }
 0xab0   : > { %v14411_v11 = vpop.f32.mrb[84].mxu0 }
 0xab1   : > { %v19454_v18 = vadd.f32 %v14411_v11, %v24835_v10  ;;  %v19348_v61 = vpop.f32.mrb[85].mxu0 }
 0xab2   : > { %v14686_v38 = vld [vmem:[#allocation3 + $0x18] ss:$2 sm:$0x7f]  ;;  %v14414_v20 = vpop.f32.mrb[86].mxu0 }
 0xab3   : > { %v14687_v30 = vmax.f32 %v14684_v6, %v14686_v38  ;;  %14644 = vst [vmem:[#allocation3 + $0x30] sm:$0xff] %v19454_v18  ;;  %v14689_v54 = vld [vmem:[#allocation3 + $0x19] ss:$2 sm:$0x7f]  ;;  %v19457_v3 = vadd.f32 %v14414_v20, %v24837_v8  ;;  %v19349_v48 = vpop.f32.mrb[87].mxu0 }
 0xab4   : > { %v14703_v8 = vld [vmem:[%s24926_s16] sm:$0xf]  ;;  %v15747_v6 = vld [vmem:[%s24926_s16 + $0x4] sm:$0xf] }
 0xab5   : > { %v14690_v56 = vmax.f32 %v14687_v30, %v14689_v54  ;;  %14645 = vst [vmem:[#allocation3 + $0x38] sm:$0xff] %v19457_v3 }
 0xab7   : > { %v14697_v10 = vadd.f32 %v24920_v41, %v14690_v56 }
 0xab8   : > { %v14419_v57 = vpop.f32.mrb[88].mxu0 }
 0xab9   : > { %v14698_v36 = vmax.f32 %v14697_v10, 0.0  ;;  %v19352_v43 = vpop.f32.mrb[89].mxu0 }
 0xaba   : > { %v14422_v51 = vpop.f32.mrb[90].mxu0 }
 0xabb   : > { %v14699_v49 = vpack.c.bf16 %v14698_v36, %v14698_v36  ;;  %v19463_v50 = vadd.f32 %v14422_v51, %v24841_v53  ;;  %v19353_v9 = vpop.f32.mrb[91].mxu0 }
 0xabc   : > { %v14707_v5 = vld [vmem:[#allocation3 + $0x30] ss:$2 sm:$0x7f]  ;;  %v14709_v2 = vld [vmem:[#allocation3 + $0x31] ss:$2 sm:$0x7f] }
 0xabd   : > { %v14704_v62 = vsel %vm24929_vm3, %v14699_v49, %v14703_v8  ;;  %14647 = vst [vmem:[#allocation3 + $0x48] sm:$0xff] %v19463_v50  ;;  %v14710_v45 = vmax.f32 %v14707_v5, %v14709_v2 }
 0xabe   : > { %14705 = vst [vmem:[%s24926_s16] sm:$0xf] %v14704_v62 }
 0xac0   : > { %v14427_v14 = vpop.f32.mrb[92].mxu0 }
 0xac1   : > { %v19466_v31 = vadd.f32 %v14427_v14, %v24845_v59  ;;  %v19356_v25 = vpop.f32.mrb[93].mxu0 }
 0xac2   : > { %v14430_v0 = vpop.f32.mrb[94].mxu0 }
 0xac3   : > { %14648 = vst [vmem:[#allocation3 + $0x50] sm:$0xff] %v19466_v31  ;;  %v19357_v63 = vpop.f32.mrb[95].mxu0 }
 0xac4   : > { %v15749_v63 = vld [vmem:[%s24926_s16 + $0x8] sm:$0xf] }
 0xac8   : > { %v14435_v28 = vpop.f32.mrb[96].mxu0 }
 0xac9   : > { %v19472_v53 = vadd.f32 %v14435_v28, %v24849_v32  ;;  %v19360_v46 = vpop.f32.mrb[97].mxu0 }
 0xaca   : > { %v14712_v27 = vld [vmem:[#allocation3 + $0x48] ss:$2 sm:$0x7f]  ;;  %v14438_v21 = vpop.f32.mrb[98].mxu0 }
 0xacb   : > { %v14713_v47 = vmax.f32 %v14710_v45, %v14712_v27  ;;  %14650 = vst [vmem:[#allocation3 + $0x60] sm:$0xff] %v19472_v53  ;;  %v14715_v22 = vld [vmem:[#allocation3 + $0x49] ss:$2 sm:$0x7f]  ;;  %v19475_v59 = vadd.f32 %v14438_v21, %v24851_v37  ;;  %v19361_v7 = vpop.f32.mrb[99].mxu0 }
 0xacd   : > { %v14716_v19 = vmax.f32 %v14713_v47, %v14715_v22  ;;  %14651 = vst [vmem:[#allocation3 + $0x68] sm:$0xff] %v19475_v59 }
 0xacf   : > { %v14717_v16 = vadd.f32 %v24920_v41, %v14716_v19 }
 0xad0   : > { %v14443_v12 = vpop.f32.mrb[100].mxu0 }
 0xad1   : > { %v14718_v55 = vmax.f32 %v14717_v16, 0.0  ;;  %v19364_v11 = vpop.f32.mrb[101].mxu0 }
 0xad2   : > { %v14446_v18 = vpop.f32.mrb[102].mxu0 }
 0xad3   : > { %v14719_v32 = vpack.c.bf16 %v14718_v55, %v14718_v55  ;;  %v19481_v61 = vadd.f32 %v14446_v18, %v24855_v34  ;;  %v19365_v38 = vpop.f32.mrb[103].mxu0 }
 0xad4   : > { %v14725_v56 = vld [vmem:[#allocation3 + $0x60] ss:$2 sm:$0x7f]  ;;  %v14727_v10 = vld [vmem:[#allocation3 + $0x61] ss:$2 sm:$0x7f] }
 0xad5   : > { %v14722_v30 = vsel %vm24929_vm3, %v14719_v32, %v15747_v6  ;;  %14653 = vst [vmem:[#allocation3 + $0x78] sm:$0xff] %v19481_v61  ;;  %v14728_v36 = vmax.f32 %v14725_v56, %v14727_v10 }
 0xad6   : > { %15748 = vst [vmem:[%s24926_s16 + $0x4] sm:$0xf] %v14722_v30 }
 0xad8   : > { %v14451_v37 = vpop.f32.mrb[104].mxu0 }
 0xad9   : > { %v19484_v20 = vadd.f32 %v14451_v37, %v24859_v35  ;;  %v19368_v54 = vpop.f32.mrb[105].mxu0  ;;  %v15751_v37 = vld [vmem:[%s24926_s16 + $0xc] sm:$0xf] }
 0xada   : > { %v14454_v3 = vpop.f32.mrb[106].mxu0 }
 0xadb   : > { %14654 = vst [vmem:[#allocation3 + $0x80] sm:$0xff] %v19484_v20  ;;  %v19369_v48 = vpop.f32.mrb[107].mxu0 }
 0xae0   : > { %v14459_v57 = vpop.f32.mrb[108].mxu0 }
 0xae1   : > { %v19490_v34 = vadd.f32 %v14459_v57, %v24863_v15  ;;  %v19372_v43 = vpop.f32.mrb[109].mxu0 }
 0xae2   : > { %v14730_v8 = vld [vmem:[#allocation3 + $0x78] ss:$2 sm:$0x7f]  ;;  %v14462_v49 = vpop.f32.mrb[110].mxu0 }
 0xae3   : > { %v14731_v51 = vmax.f32 %v14728_v36, %v14730_v8  ;;  %14656 = vst [vmem:[#allocation3 + $0x90] sm:$0xff] %v19490_v34  ;;  %v14733_v50 = vld [vmem:[#allocation3 + $0x79] ss:$2 sm:$0x7f]  ;;  %v19493_v35 = vadd.f32 %v14462_v49, %v24865_v42  ;;  %v19373_v9 = vpop.f32.mrb[111].mxu0 }
 0xae5   : > { %v14734_v62 = vmax.f32 %v14731_v51, %v14733_v50  ;;  %14657 = vst [vmem:[#allocation3 + $0x98] sm:$0xff] %v19493_v35 }
 0xae7   : > { %v14735_v14 = vadd.f32 %v24920_v41, %v14734_v62 }
 0xae8   : > { %v14467_v31 = vpop.f32.mrb[112].mxu0 }
 0xae9   : > { %v14736_v25 = vmax.f32 %v14735_v14, 0.0  ;;  %v19376_v0 = vpop.f32.mrb[113].mxu0 }
 0xaea   : > { %v14470_v5 = vpop.f32.mrb[114].mxu0 }
 0xaeb   : > { %v14737_v15 = vpack.c.bf16 %v14736_v25, %v14736_v25  ;;  %v19499_v2 = vadd.f32 %v14470_v5, %v24869_v39  ;;  %v19377_v28 = vpop.f32.mrb[115].mxu0 }
 0xaec   : > { %v14743_v21 = vld [vmem:[#allocation3 + $0x90] ss:$2 sm:$0x7f]  ;;  %v14745_v22 = vld [vmem:[#allocation3 + $0x91] ss:$2 sm:$0x7f] }
 0xaed   : > { %v14740_v45 = vsel %vm24929_vm3, %v14737_v15, %v15749_v63  ;;  %14659 = vst [vmem:[#allocation3 + $0xa8] sm:$0xff] %v19499_v2  ;;  %v14746_v7 = vmax.f32 %v14743_v21, %v14745_v22  ;;  %v15753_v15 = vld [vmem:[%s24926_s16 + $0x10] sm:$0xf] }
 0xaee   : > { %15750 = vst [vmem:[%s24926_s16 + $0x8] sm:$0xf] %v14740_v45 }
 0xaf0   : > { %v14475_v42 = vpop.f32.mrb[116].mxu0 }
 0xaf1   : > { %v19502_v53 = vadd.f32 %v14475_v42, %v24873_v44  ;;  %v19380_v46 = vpop.f32.mrb[117].mxu0 }
 0xaf2   : > { %v14478_v27 = vpop.f32.mrb[118].mxu0 }
 0xaf3   : > { %14660 = vst [vmem:[#allocation3 + $0xb0] sm:$0xff] %v19502_v53  ;;  %v19381_v47 = vpop.f32.mrb[119].mxu0 }
 0xaf8   : > { %v14483_v59 = vpop.f32.mrb[120].mxu0 }
 0xaf9   : > { %v19508_v39 = vadd.f32 %v14483_v59, %v24877_v40  ;;  %v19384_v19 = vpop.f32.mrb[121].mxu0 }
 0xafa   : > { %v14748_v16 = vld [vmem:[#allocation3 + $0xa8] ss:$2 sm:$0x7f]  ;;  %v14486_v55 = vpop.f32.mrb[122].mxu0 }
 0xafb   : > { %v14749_v12 = vmax.f32 %v14746_v7, %v14748_v16  ;;  %14662 = vst [vmem:[#allocation3 + $0xc0] sm:$0xff] %v19508_v39  ;;  %v14751_v11 = vld [vmem:[#allocation3 + $0xa9] ss:$2 sm:$0x7f]  ;;  %v19511_v44 = vadd.f32 %v14486_v55, %v24879_v13  ;;  %v19385_v6 = vpop.f32.mrb[123].mxu0 }
 0xafd   : > { %v14752_v18 = vmax.f32 %v14749_v12, %v14751_v11  ;;  %14663 = vst [vmem:[#allocation3 + $0xc8] sm:$0xff] %v19511_v44 }
 0xaff   : > { %v14753_v32 = vadd.f32 %v24920_v41, %v14752_v18 }
 0xb00   : > { %v14491_v61 = vpop.f32.mrb[124].mxu0 }
 0xb01   : > { %v14754_v38 = vmax.f32 %v14753_v32, 0.0  ;;  %v19388_v30 = vpop.f32.mrb[125].mxu0 }
 0xb02   : > { %v14494_v20 = vpop.f32.mrb[126].mxu0 }
 0xb03   : > { %v14755_v40 = vpack.c.bf16 %v14754_v38, %v14754_v38  ;;  %v19517_v54 = vadd.f32 %v14494_v20, %v24883_v58  ;;  %v19389_v3 = vpop.f32.mrb[127].mxu0  ;;  %v15755_v38 = vld [vmem:[%s24926_s16 + $0x14] sm:$0xf] }
 0xb04   : > { %v14761_v34 = vld [vmem:[#allocation3 + $0xc0] ss:$2 sm:$0x7f]  ;;  %v14763_v43 = vld [vmem:[#allocation3 + $0xc1] ss:$2 sm:$0x7f] }
 0xb05   : > { %v14758_v48 = vsel %vm24929_vm3, %v14755_v40, %v15751_v37  ;;  %14665 = vst [vmem:[#allocation3 + $0xd8] sm:$0xff] %v19517_v54  ;;  %v14764_v51 = vmax.f32 %v14761_v34, %v14763_v43 }
 0xb06   : > { %15752 = vst [vmem:[%s24926_s16 + $0xc] sm:$0xf] %v14758_v48 }
 0xb08   : > { %v14499_v13 = vpop.f32.mrb[128].mxu0 }
 0xb09   : > { %v19520_v56 = vadd.f32 %v14499_v13, %v24887_v1  ;;  %v19392_v10 = vpop.f32.mrb[129].mxu0 }
 0xb0a   : > { %v14502_v57 = vpop.f32.mrb[130].mxu0 }
 0xb0b   : > { %14666 = vst [vmem:[#allocation3 + $0xe0] sm:$0xff] %v19520_v56  ;;  %v19393_v36 = vpop.f32.mrb[131].mxu0 }
 0xb10   : > { %v14507_v8 = vpop.f32.mrb[132].mxu0 }
 0xb11   : > { %v19526_v58 = vadd.f32 %v14507_v8, %v24891_v26  ;;  %v19396_v49 = vpop.f32.mrb[133].mxu0 }
 0xb12   : > { %v14766_v50 = vld [vmem:[#allocation3 + $0xd8] ss:$2 sm:$0x7f]  ;;  %v14510_v9 = vpop.f32.mrb[134].mxu0 }
 0xb13   : > { %v14767_v35 = vmax.f32 %v14764_v51, %v14766_v50  ;;  %14668 = vst [vmem:[#allocation3 + $0xf0] sm:$0xff] %v19526_v58  ;;  %v14769_v62 = vld [vmem:[#allocation3 + $0xd9] ss:$2 sm:$0x7f]  ;;  %v19529_v1 = vadd.f32 %v14510_v9, %v24893_v17  ;;  %v19397_v14 = vpop.f32.mrb[135].mxu0 }
 0xb14   : > { %v15757_v58 = vld [vmem:[%s24926_s16 + $0x18] sm:$0xf] }
 0xb15   : > { %v14770_v31 = vmax.f32 %v14767_v35, %v14769_v62  ;;  %14669 = vst [vmem:[#allocation3 + $0xf8] sm:$0xff] %v19529_v1 }
 0xb17   : > { %v14771_v25 = vadd.f32 %v24920_v41, %v14770_v31 }
 0xb18   : > { %v14515_v0 = vpop.f32.mrb[136].mxu0 }
 0xb19   : > { %v14772_v63 = vmax.f32 %v14771_v25, 0.0  ;;  %v19400_v5 = vpop.f32.mrb[137].mxu0 }
 0xb1a   : > { %v14518_v2 = vpop.f32.mrb[138].mxu0 }
 0xb1b   : > { %v14773_v26 = vpack.c.bf16 %v14772_v63, %v14772_v63  ;;  %v19535_v28 = vadd.f32 %v14518_v2, %v24897_v33  ;;  %v19401_v45 = vpop.f32.mrb[139].mxu0 }
 0xb1c   : > { %v14779_v21 = vld [vmem:[#allocation3 + $0xf0] ss:$2 sm:$0x7f]  ;;  %v14781_v22 = vld [vmem:[#allocation3 + $0xf1] ss:$2 sm:$0x7f] }
 0xb1d   : > { %v14776_v42 = vsel %vm24929_vm3, %v14773_v26, %v15753_v15  ;;  %14671 = vst [vmem:[#allocation3 + $0x108] sm:$0xff] %v19535_v28  ;;  %v14782_v7 = vmax.f32 %v14779_v21, %v14781_v22 }
 0xb1e   : > { %15754 = vst [vmem:[%s24926_s16 + $0x10] sm:$0xf] %v14776_v42 }
 0xb20   : > { %v14523_v17 = vpop.f32.mrb[140].mxu0 }
 0xb21   : > { %v19538_v53 = vadd.f32 %v14523_v17, %v24901_v60  ;;  %v19404_v46 = vpop.f32.mrb[141].mxu0 }
 0xb22   : > { %v14526_v27 = vpop.f32.mrb[142].mxu0 }
 0xb23   : > { %14672 = vst [vmem:[#allocation3 + $0x110] sm:$0xff] %v19538_v53  ;;  %v19405_v47 = vpop.f32.mrb[143].mxu0 }
 0xb28   : > { %v14531_v59 = vpop.f32.mrb[144].mxu0 }
 0xb29   : > { %v19544_v33 = vadd.f32 %v14531_v59, %v24903_v52  ;;  %v19408_v39 = vpop.f32.mrb[145].mxu0 }
 0xb2a   : > { %v14784_v19 = vld [vmem:[#allocation3 + $0x108] ss:$2 sm:$0x7f]  ;;  %v14534_v12 = vpop.f32.mrb[146].mxu0 }
 0xb2b   : > { %v14785_v16 = vmax.f32 %v14782_v7, %v14784_v19  ;;  %14674 = vst [vmem:[#allocation3 + $0x120] sm:$0xff] %v19544_v33  ;;  %v14787_v55 = vld [vmem:[#allocation3 + $0x109] ss:$2 sm:$0x7f]  ;;  %v19547_v60 = vadd.f32 %v14534_v12, %v24905_v4  ;;  %v19409_v11 = vpop.f32.mrb[147].mxu0 }
 0xb2d   : > { %v14788_v44 = vmax.f32 %v14785_v16, %v14787_v55  ;;  %14675 = vst [vmem:[#allocation3 + $0x128] sm:$0xff] %v19547_v60 }
 0xb2f   : > { %v14789_v6 = vadd.f32 %v24920_v41, %v14788_v44 }
 0xb30   : > { %v14539_v18 = vpop.f32.mrb[148].mxu0 }
 0xb31   : > { %v14790_v32 = vmax.f32 %v14789_v6, 0.0  ;;  %v19412_v61 = vpop.f32.mrb[149].mxu0 }
 0xb32   : > { %v14542_v30 = vpop.f32.mrb[150].mxu0 }
 0xb33   : > { %v14791_v52 = vpack.c.bf16 %v14790_v32, %v14790_v32  ;;  %v19553_v37 = vadd.f32 %v14542_v30, %v24907_v29  ;;  %v19413_v20 = vpop.f32.mrb[151].mxu0 }
 0xb34   : > { %v14797_v56 = vld [vmem:[#allocation3 + $0x120] ss:$2 sm:$0x7f]  ;;  %v14799_v10 = vld [vmem:[#allocation3 + $0x121] ss:$2 sm:$0x7f] }
 0xb35   : > { %v14794_v40 = vsel %vm24929_vm3, %v14791_v52, %v15755_v38  ;;  %14677 = vst [vmem:[#allocation3 + $0x138] sm:$0xff] %v19553_v37  ;;  %v14800_v57 = vmax.f32 %v14797_v56, %v14799_v10 }
 0xb36   : > { %15756 = vst [vmem:[%s24926_s16 + $0x14] sm:$0xf] %v14794_v40 }
 0xb38   : > { %v14547_v4 = vpop.f32.mrb[152].mxu0 }
 0xb39   : > { %v19556_v54 = vadd.f32 %v14547_v4, %v24909_v23  ;;  %v19416_v3 = vpop.f32.mrb[153].mxu0 }
 0xb3a   : > { %v14550_v48 = vpop.f32.mrb[154].mxu0 }
 0xb3b   : > { %14678 = vst [vmem:[#allocation3 + $0x140] sm:$0xff] %v19556_v54  ;;  %v19417_v13 = vpop.f32.mrb[155].mxu0 }
 0xb42   : > { %v14802_v36 = vld [vmem:[#allocation3 + $0x138] ss:$2 sm:$0x7f]  ;;  %v14805_v34 = vld [vmem:[#allocation3 + $0x139] ss:$2 sm:$0x7f] }
 0xb43   : > { %v14803_v29 = vmax.f32 %v14800_v57, %v14802_v36 }
 0xb45   : > { %v14806_v43 = vmax.f32 %v14803_v29, %v14805_v34 }
 0xb47   : > { %v14807_v8 = vadd.f32 %v24920_v41, %v14806_v43 }
 0xb49   : > { %v14808_v51 = vmax.f32 %v14807_v8, 0.0 }
 0xb4b   : > { %v14809_v49 = vpack.c.bf16 %v14808_v51, %v14808_v51 }
 0xb4d   : > { %v14812_v23 = vsel %vm24929_vm3, %v14809_v49, %v15757_v58 }
 0xb4e   : > { %15758 = vst [vmem:[%s24926_s16 + $0x18] sm:$0xf] %v14812_v23 }
 0xb4f PF: > { %s16_s21 = sadd.s32 1, %s21834_s21  }
 0xb50   : > { %p13_p4 = scmp.ge.s32.totalorder %s16_s21, 4  }
 0xb52   :  { %15 = sbr.rel (!%p13_p4) target bundleno = 1 (0x1), region = 134 }

</bundles_post_ra>
